<compile_context>
chip_gen: v7x
topology: tpu7x:2x2x1
jax: 0.10.0
libtpu: 0.0.40
codegen_flags: <defaults>
</compile_context>

<pallas_src>
import jax
import jax.numpy as jnp
from jax.experimental import pallas as pl
from jax.experimental.pallas import tpu as pltpu


# ----------------------------------------------------------------------------
# Pallas kernel: fused fftshift + f-scale + concat + 3x3 SAME conv + bias
#                + output unshift + 1/f + residual, NCHW layout
# ----------------------------------------------------------------------------
def _kcnn_conv3x3_kernel(x1_ref, x2_ref, f_ref, invf_ref, w_ref, b_ref, o_ref):
    # x1_ref  : (1, 2c, H, W)  f32 VMEM  -- c2r(k) rearranged, NOT shifted/scaled
    # x2_ref  : (1, 2c, H, W)  f32 VMEM  -- prepared_k0 (already shifted & scaled)
    # f_ref   : (H, 1)         f32 VMEM  -- k-space scaling factor (ones if None)
    # invf_ref: (H, 1)         f32 VMEM  -- 1 / f (ones if None)
    # w_ref   : (Cout*Cin*9,)  f32 SMEM  -- OIHW flattened, Cin = 4c
    # b_ref   : (Cout,)        f32 SMEM
    # o_ref   : (1, Cout, H, W) f32 VMEM -- unshifted, 1/f-scaled, + residual k part
    c1 = x1_ref.shape[1]
    c2 = x2_ref.shape[1]
    cin = c1 + c2
    cout = o_ref.shape[1]
    H = o_ref.shape[2]
    W = o_ref.shape[3]
    half = H // 2

    # Border masks for the implicit zero padding (computed once per step).
    row = jax.lax.broadcasted_iota(jnp.int32, (H, W), 0)
    col = jax.lax.broadcasted_iota(jnp.int32, (H, W), 1)
    not_top = row >= 1           # valid rows when dy == -1
    not_bot = row < H - 1        # valid rows when dy == +1
    not_left = col >= 1          # valid cols when dx == -1
    not_right = col < W - 1      # valid cols when dx == +1

    # Hoisted lane-broadcasts of the scaling factors.
    f_b = jnp.broadcast_to(f_ref[...], (H, W))
    invf_b = jnp.broadcast_to(invf_ref[...], (H, W))

    acc = [jnp.zeros((H, W), jnp.float32) for _ in range(cout)]

    def accumulate(plane, ci_global):
        # Row-shifted variants (sublane rolls on the XLU), ky=0,1,2 <-> dy=-1,0,+1.
        rows = (
            jnp.where(not_top, pltpu.roll(plane, shift=1, axis=0), 0.0),
            plane,
            jnp.where(not_bot, pltpu.roll(plane, shift=H - 1, axis=0), 0.0),
        )
        for ky in range(3):
            rv = rows[ky]
            # Column-shifted variants (lane rolls), kx=0,1,2 <-> dx=-1,0,+1.
            cols = (
                jnp.where(not_left, pltpu.roll(rv, shift=1, axis=1), 0.0),
                rv,
                jnp.where(not_right, pltpu.roll(rv, shift=W - 1, axis=1), 0.0),
            )
            for kx in range(3):
                sh = cols[kx]
                for co in range(cout):
                    wv = w_ref[((co * cin + ci_global) * 3 + ky) * 3 + kx]
                    acc[co] = acc[co] + wv * sh          # scalar-bcast VPU MAC

    # First 2c input channels: the k part -> fused fftshift along US (x) + f scale.
    for ci in range(c1):
        plane = pltpu.roll(x1_ref[0, ci], shift=half, axis=0) * f_b
        accumulate(plane, ci)
    # Last 2c input channels: prepared_k0, used as-is.
    for ci in range(c2):
        accumulate(x2_ref[0, ci], c1 + ci)

    # Epilogue: bias, unshift along US (fftshift), 1/f scale, residual add of the
    # unshifted k part (same (r c) channel order as the conv output).
    for co in range(cout):
        conv = acc[co] + b_ref[co]
        out = pltpu.roll(conv, shift=half, axis=0) * invf_b + x1_ref[0, co]
        o_ref[0, co] = out.astype(o_ref.dtype)


def kcnn_conv3x3_pallas(x1, x2, f_in, inv_f, weight_oihw, bias):
    """Fused KCNN step: returns the rearranged real residual-updated k."""
    n, c1, h, w = x1.shape
    c2 = x2.shape[1]
    cout = weight_oihw.shape[0]
    assert weight_oihw.shape[1] == c1 + c2
    assert cout == c1                      # residual fusion requires 2c outputs
    w_flat = weight_oihw.astype(jnp.float32).reshape(-1)
    b_flat = bias.astype(jnp.float32).reshape(-1)
    return pl.pallas_call(
        _kcnn_conv3x3_kernel,
        out_shape=jax.ShapeDtypeStruct((n, cout, h, w), jnp.float32),
        grid=(n,),
        in_specs=[
            pl.BlockSpec((1, c1, h, w), lambda i: (i, 0, 0, 0)),
            pl.BlockSpec((1, c2, h, w), lambda i: (i, 0, 0, 0)),
            pl.BlockSpec((h, 1), lambda i: (0, 0)),
            pl.BlockSpec((h, 1), lambda i: (0, 0)),
            pl.BlockSpec(memory_space=pltpu.MemorySpace.SMEM),
            pl.BlockSpec(memory_space=pltpu.MemorySpace.SMEM),
        ],
        out_specs=pl.BlockSpec((1, cout, h, w), lambda i: (i, 0, 0, 0)),
        compiler_params=pltpu.CompilerParams(
            dimension_semantics=("parallel",),
            vmem_limit_bytes=32 * 1024 * 1024,
        ),
    )(x1.astype(jnp.float32), x2.astype(jnp.float32),
      f_in.astype(jnp.float32), inv_f.astype(jnp.float32), w_flat, b_flat)


# ----------------------------------------------------------------------------
# KCNNWrapper glue (plain JAX) -- exact replication of the torch semantics
# ----------------------------------------------------------------------------
def c2r(zc):
    # torch.view_as_real: complex (...,) -> real (..., 2) with [real, imag]
    return jnp.stack((zc.real, zc.imag), axis=-1)


def r2c(x):
    # torch.view_as_complex
    return jax.lax.complex(x[..., 0], x[..., 1])


def scaling(kshape, scale=1.0):
    xs = jnp.arange((-kshape) // 2, kshape // 2, dtype=jnp.float32)
    f = 1.0 + jnp.abs(xs) ** scale
    f = f * (2.0 / jnp.mean(f))
    return f


def _rearrange_fwd(x):
    # 'b c z t x y r -> (b z t) (r c) x y'
    b, c, z, t, h, w, r = x.shape
    x = jnp.transpose(x, (0, 2, 3, 6, 1, 4, 5))          # b z t r c x y
    return x.reshape(b * z * t, r * c, h, w)


def _rearrange_bwd(x, b, z, r=2):
    # '(b z t) (r c) x y -> b c z t x y r'
    bzt, rc, h, w = x.shape
    t = bzt // (b * z)
    c = rc // r
    x = x.reshape(b, z, t, r, c, h, w)
    return jnp.transpose(x, (0, 4, 1, 2, 5, 6, 3))        # b c z t x y r


def prepare_k0(k0, k_scaling_factor):
    # TODO(synk): ifft has no Pallas TPU primitive; one-time per-forward precompute
    # kept as jnp.fft glue.
    prepared = jnp.fft.fftshift(jnp.fft.ifft(k0, axis=-1, norm="ortho"), axes=-2)
    prepared = _rearrange_fwd(c2r(prepared))              # (bzt, 2c, x, y) float32
    if k_scaling_factor:
        f = scaling(k0.shape[-2], k_scaling_factor)[:, None]   # (x, 1)
        prepared = prepared * f
    else:
        f = None
    return prepared, f


def kcnn_forward(k, prepared_k0, f, weight, bias):
    """Pallas path: shift / f-scale / concat / conv / unshift / 1/f / residual fused."""
    x1 = _rearrange_fwd(c2r(k))                           # (bzt, 2c, x, y), unshifted
    us_dim = k.shape[-2]
    if f is not None:
        f_in = f.reshape(us_dim, 1).astype(jnp.float32)
        inv_f = 1.0 / f_in
    else:
        f_in = jnp.ones((us_dim, 1), jnp.float32)
        inv_f = jnp.ones((us_dim, 1), jnp.float32)
    k_net = kcnn_conv3x3_pallas(x1, prepared_k0, f_in, inv_f, weight, bias)
    k_new = r2c(_rearrange_bwd(k_net, b=k.shape[0], z=k.shape[2], r=2))
    return k_new, None                                    # net returns a tensor -> h=None


def kcnn_forward_ref(k, prepared_k0, f, weight, bias):
    """Pure-JAX reference of the original torch module (before / net / after)."""
    k_netinput = _rearrange_fwd(c2r(jnp.fft.fftshift(k, axes=-2)))
    if f is not None:
        k_netinput = k_netinput * f
    k_netinput = jnp.concatenate((k_netinput, prepared_k0), axis=1)
    conv = jax.lax.conv_general_dilated(
        k_netinput, weight, window_strides=(1, 1), padding="SAME",
        dimension_numbers=("NCHW", "OIHW", "NCHW"),
        precision=jax.lax.Precision.HIGHEST,
    ) + bias[None, :, None, None]
    kn = _rearrange_bwd(conv, b=k.shape[0], z=k.shape[2], r=2)
    kn = jnp.fft.fftshift(kn, axes=-3)
    if f is not None:
        kn = kn * (1.0 / f[..., None])
    return k + r2c(kn), None


# ----------------------------------------------------------------------------
# Driver
# ----------------------------------------------------------------------------
if __name__ == "__main__":
    b, c, z, t, x, y = 1, 2, 2, 2, 16, 16                 # small but structurally faithful
    cin_net, cout_net = 4 * c, 2 * c

    key = jax.random.PRNGKey(0)
    ks = jax.random.split(key, 6)
    k = (jax.random.normal(ks[0], (b, c, z, t, x, y))
         + 1j * jax.random.normal(ks[1], (b, c, z, t, x, y))).astype(jnp.complex64)
    k0 = (jax.random.normal(ks[2], (b, c, z, t, x, y))
          + 1j * jax.random.normal(ks[3], (b, c, z, t, x, y))).astype(jnp.complex64)

    # deterministic synthetic Conv2d(4c, 2c, 3, padding=1) parameters
    weight = (0.1 * jax.random.normal(ks[4], (cout_net, cin_net, 3, 3))).astype(jnp.float32)
    bias = (0.1 * jax.random.normal(ks[5], (cout_net,))).astype(jnp.float32)

    for k_scaling_factor in (1.0, 0.0):                   # exercise both f branches
        prepared_k0, f = prepare_k0(k0, k_scaling_factor)
        k_new, h = kcnn_forward(k, prepared_k0, f, weight, bias)
        jax.block_until_ready(k_new)
        assert k_new.shape == k.shape and k_new.dtype == jnp.complex64 and h is None

        k_ref, _ = kcnn_forward_ref(k, prepared_k0, f, weight, bias)
        err = jnp.max(jnp.abs(k_new - k_ref))
        assert err < 1e-3, f"KCNN mismatch (k_scaling_factor={k_scaling_factor}): {err}"

    print("KERNEL_OK")
</pallas_src>

<mosaic_0001>
module attributes {stable_mosaic.version = 11 : i64} {
  func.func @_kcnn_conv3x3_kernel(%arg0: i32, %arg1: memref<1x4x16x16xf32, #tpu.memory_space<vmem>>, %arg2: memref<1x4x16x16xf32, #tpu.memory_space<vmem>>, %arg3: memref<16x1xf32, #tpu.memory_space<vmem>>, %arg4: memref<16x1xf32, #tpu.memory_space<vmem>>, %arg5: memref<288xf32, #tpu.memory_space<smem>>, %arg6: memref<4xf32, #tpu.memory_space<smem>>, %arg7: memref<1x4x16x16xf32, #tpu.memory_space<vmem>>) attributes {dimension_semantics = [#tpu.dimension_semantics<parallel>], iteration_bounds = array<i64: 4>, scalar_prefetch = 0 : i64, scratch_operands = 0 : i64, tpu.core_type = #tpu.core_type<tc>, window_params = [{transform_indices = @transform_0, window_bounds = array<i64: 1, 4, 16, 16>}, {transform_indices = @transform_1, window_bounds = array<i64: 1, 4, 16, 16>}, {pipeline_mode = #tpu.pipeline_mode<synchronous>, transform_indices = @transform_2, window_bounds = array<i64: 16, 1>}, {pipeline_mode = #tpu.pipeline_mode<synchronous>, transform_indices = @transform_3, window_bounds = array<i64: 16, 1>}, {transform_indices = @transform_4, window_bounds = array<i64: 288>}, {transform_indices = @transform_5, window_bounds = array<i64: 4>}, {transform_indices = @transform_6, window_bounds = array<i64: 1, 4, 16, 16>}]} {
    %0 = tpu.iota {dimensions = array<i32: 0>} : vector<16x16xi32>
    %1 = tpu.iota {dimensions = array<i32: 1>} : vector<16x16xi32>
    %c1_i32 = arith.constant 1 : i32
    %2 = vector.broadcast %c1_i32 : i32 to vector<16x16xi32>
    %3 = arith.cmpi sge, %0, %2 : vector<16x16xi32>
    %c15_i32 = arith.constant 15 : i32
    %4 = vector.broadcast %c15_i32 : i32 to vector<16x16xi32>
    %5 = arith.cmpi slt, %0, %4 : vector<16x16xi32>
    %c1_i32_0 = arith.constant 1 : i32
    %6 = vector.broadcast %c1_i32_0 : i32 to vector<16x16xi32>
    %7 = arith.cmpi sge, %1, %6 : vector<16x16xi32>
    %c15_i32_1 = arith.constant 15 : i32
    %8 = vector.broadcast %c15_i32_1 : i32 to vector<16x16xi32>
    %9 = arith.cmpi slt, %1, %8 : vector<16x16xi32>
    %c0 = arith.constant 0 : index
    %c0_2 = arith.constant 0 : index
    %10 = vector.load %arg3[%c0, %c0_2] : memref<16x1xf32, #tpu.memory_space<vmem>>, vector<16x1xf32>
    %11 = vector.shape_cast %10 : vector<16x1xf32> to vector<16x1xf32>
    %12 = vector.broadcast %11 : vector<16x1xf32> to vector<16x16xf32>
    %c0_3 = arith.constant 0 : index
    %c0_4 = arith.constant 0 : index
    %13 = vector.load %arg4[%c0_3, %c0_4] : memref<16x1xf32, #tpu.memory_space<vmem>>, vector<16x1xf32>
    %14 = vector.shape_cast %13 : vector<16x1xf32> to vector<16x1xf32>
    %15 = vector.broadcast %14 : vector<16x1xf32> to vector<16x16xf32>
    %cst = arith.constant 0.000000e+00 : f32
    %16 = vector.broadcast %cst : f32 to vector<16x16xf32>
    %cst_5 = arith.constant 0.000000e+00 : f32
    %17 = vector.broadcast %cst_5 : f32 to vector<16x16xf32>
    %cst_6 = arith.constant 0.000000e+00 : f32
    %18 = vector.broadcast %cst_6 : f32 to vector<16x16xf32>
    %cst_7 = arith.constant 0.000000e+00 : f32
    %19 = vector.broadcast %cst_7 : f32 to vector<16x16xf32>
    %c0_8 = arith.constant 0 : index
    %c0_9 = arith.constant 0 : index
    %c0_10 = arith.constant 0 : index
    %c0_11 = arith.constant 0 : index
    %20 = vector.load %arg1[%c0_8, %c0_9, %c0_10, %c0_11] : memref<1x4x16x16xf32, #tpu.memory_space<vmem>>, vector<1x1x16x16xf32>
    %21 = vector.shape_cast %20 : vector<1x1x16x16xf32> to vector<16x16xf32>
    %c8_i32 = arith.constant 8 : i32
    %22 = tpu.dynamic_rotate %21 by %c8_i32 dim 0 : vector<16x16xf32>, i32 -> vector<16x16xf32>
    %23 = arith.mulf %22, %12 : vector<16x16xf32>
    %c1_i32_12 = arith.constant 1 : i32
    %24 = tpu.dynamic_rotate %23 by %c1_i32_12 dim 0 : vector<16x16xf32>, i32 -> vector<16x16xf32>
    %cst_13 = arith.constant 0.000000e+00 : f32
    %25 = vector.broadcast %cst_13 : f32 to vector<16x16xf32>
    %26 = arith.select %3, %24, %25 : vector<16x16xi1>, vector<16x16xf32>
    %c15_i32_14 = arith.constant 15 : i32
    %27 = tpu.dynamic_rotate %23 by %c15_i32_14 dim 0 : vector<16x16xf32>, i32 -> vector<16x16xf32>
    %cst_15 = arith.constant 0.000000e+00 : f32
    %28 = vector.broadcast %cst_15 : f32 to vector<16x16xf32>
    %29 = arith.select %5, %27, %28 : vector<16x16xi1>, vector<16x16xf32>
    %c1_i32_16 = arith.constant 1 : i32
    %30 = tpu.dynamic_rotate %26 by %c1_i32_16 dim 1 : vector<16x16xf32>, i32 -> vector<16x16xf32>
    %cst_17 = arith.constant 0.000000e+00 : f32
    %31 = vector.broadcast %cst_17 : f32 to vector<16x16xf32>
    %32 = arith.select %7, %30, %31 : vector<16x16xi1>, vector<16x16xf32>
    %c15_i32_18 = arith.constant 15 : i32
    %33 = tpu.dynamic_rotate %26 by %c15_i32_18 dim 1 : vector<16x16xf32>, i32 -> vector<16x16xf32>
    %cst_19 = arith.constant 0.000000e+00 : f32
    %34 = vector.broadcast %cst_19 : f32 to vector<16x16xf32>
    %35 = arith.select %9, %33, %34 : vector<16x16xi1>, vector<16x16xf32>
    %c0_20 = arith.constant 0 : index
    %36 = memref.load %arg5[%c0_20] : memref<288xf32, #tpu.memory_space<smem>>
    %37 = vector.broadcast %36 : f32 to vector<16x16xf32>
    %38 = arith.mulf %37, %32 : vector<16x16xf32>
    %39 = arith.addf %16, %38 : vector<16x16xf32>
    %c72 = arith.constant 72 : index
    %40 = memref.load %arg5[%c72] : memref<288xf32, #tpu.memory_space<smem>>
    %41 = vector.broadcast %40 : f32 to vector<16x16xf32>
    %42 = arith.mulf %41, %32 : vector<16x16xf32>
    %43 = arith.addf %17, %42 : vector<16x16xf32>
    %c144 = arith.constant 144 : index
    %44 = memref.load %arg5[%c144] : memref<288xf32, #tpu.memory_space<smem>>
    %45 = vector.broadcast %44 : f32 to vector<16x16xf32>
    %46 = arith.mulf %45, %32 : vector<16x16xf32>
    %47 = arith.addf %18, %46 : vector<16x16xf32>
    %c216 = arith.constant 216 : index
    %48 = memref.load %arg5[%c216] : memref<288xf32, #tpu.memory_space<smem>>
    %49 = vector.broadcast %48 : f32 to vector<16x16xf32>
    %50 = arith.mulf %49, %32 : vector<16x16xf32>
    %51 = arith.addf %19, %50 : vector<16x16xf32>
    %c1 = arith.constant 1 : index
    %52 = memref.load %arg5[%c1] : memref<288xf32, #tpu.memory_space<smem>>
    %53 = vector.broadcast %52 : f32 to vector<16x16xf32>
    %54 = arith.mulf %53, %26 : vector<16x16xf32>
    %55 = arith.addf %39, %54 : vector<16x16xf32>
    %c73 = arith.constant 73 : index
    %56 = memref.load %arg5[%c73] : memref<288xf32, #tpu.memory_space<smem>>
    %57 = vector.broadcast %56 : f32 to vector<16x16xf32>
    %58 = arith.mulf %57, %26 : vector<16x16xf32>
    %59 = arith.addf %43, %58 : vector<16x16xf32>
    %c145 = arith.constant 145 : index
    %60 = memref.load %arg5[%c145] : memref<288xf32, #tpu.memory_space<smem>>
    %61 = vector.broadcast %60 : f32 to vector<16x16xf32>
    %62 = arith.mulf %61, %26 : vector<16x16xf32>
    %63 = arith.addf %47, %62 : vector<16x16xf32>
    %c217 = arith.constant 217 : index
    %64 = memref.load %arg5[%c217] : memref<288xf32, #tpu.memory_space<smem>>
    %65 = vector.broadcast %64 : f32 to vector<16x16xf32>
    %66 = arith.mulf %65, %26 : vector<16x16xf32>
    %67 = arith.addf %51, %66 : vector<16x16xf32>
    %c2 = arith.constant 2 : index
    %68 = memref.load %arg5[%c2] : memref<288xf32, #tpu.memory_space<smem>>
    %69 = vector.broadcast %68 : f32 to vector<16x16xf32>
    %70 = arith.mulf %69, %35 : vector<16x16xf32>
    %71 = arith.addf %55, %70 : vector<16x16xf32>
    %c74 = arith.constant 74 : index
    %72 = memref.load %arg5[%c74] : memref<288xf32, #tpu.memory_space<smem>>
    %73 = vector.broadcast %72 : f32 to vector<16x16xf32>
    %74 = arith.mulf %73, %35 : vector<16x16xf32>
    %75 = arith.addf %59, %74 : vector<16x16xf32>
    %c146 = arith.constant 146 : index
    %76 = memref.load %arg5[%c146] : memref<288xf32, #tpu.memory_space<smem>>
    %77 = vector.broadcast %76 : f32 to vector<16x16xf32>
    %78 = arith.mulf %77, %35 : vector<16x16xf32>
    %79 = arith.addf %63, %78 : vector<16x16xf32>
    %c218 = arith.constant 218 : index
    %80 = memref.load %arg5[%c218] : memref<288xf32, #tpu.memory_space<smem>>
    %81 = vector.broadcast %80 : f32 to vector<16x16xf32>
    %82 = arith.mulf %81, %35 : vector<16x16xf32>
    %83 = arith.addf %67, %82 : vector<16x16xf32>
    %c1_i32_21 = arith.constant 1 : i32
    %84 = tpu.dynamic_rotate %23 by %c1_i32_21 dim 1 : vector<16x16xf32>, i32 -> vector<16x16xf32>
    %cst_22 = arith.constant 0.000000e+00 : f32
    %85 = vector.broadcast %cst_22 : f32 to vector<16x16xf32>
    %86 = arith.select %7, %84, %85 : vector<16x16xi1>, vector<16x16xf32>
    %c15_i32_23 = arith.constant 15 : i32
    %87 = tpu.dynamic_rotate %23 by %c15_i32_23 dim 1 : vector<16x16xf32>, i32 -> vector<16x16xf32>
    %cst_24 = arith.constant 0.000000e+00 : f32
    %88 = vector.broadcast %cst_24 : f32 to vector<16x16xf32>
    %89 = arith.select %9, %87, %88 : vector<16x16xi1>, vector<16x16xf32>
    %c3 = arith.constant 3 : index
    %90 = memref.load %arg5[%c3] : memref<288xf32, #tpu.memory_space<smem>>
    %91 = vector.broadcast %90 : f32 to vector<16x16xf32>
    %92 = arith.mulf %91, %86 : vector<16x16xf32>
    %93 = arith.addf %71, %92 : vector<16x16xf32>
    %c75 = arith.constant 75 : index
    %94 = memref.load %arg5[%c75] : memref<288xf32, #tpu.memory_space<smem>>
    %95 = vector.broadcast %94 : f32 to vector<16x16xf32>
    %96 = arith.mulf %95, %86 : vector<16x16xf32>
    %97 = arith.addf %75, %96 : vector<16x16xf32>
    %c147 = arith.constant 147 : index
    %98 = memref.load %arg5[%c147] : memref<288xf32, #tpu.memory_space<smem>>
    %99 = vector.broadcast %98 : f32 to vector<16x16xf32>
    %100 = arith.mulf %99, %86 : vector<16x16xf32>
    %101 = arith.addf %79, %100 : vector<16x16xf32>
    %c219 = arith.constant 219 : index
    %102 = memref.load %arg5[%c219] : memref<288xf32, #tpu.memory_space<smem>>
    %103 = vector.broadcast %102 : f32 to vector<16x16xf32>
    %104 = arith.mulf %103, %86 : vector<16x16xf32>
    %105 = arith.addf %83, %104 : vector<16x16xf32>
    %c4 = arith.constant 4 : index
    %106 = memref.load %arg5[%c4] : memref<288xf32, #tpu.memory_space<smem>>
    %107 = vector.broadcast %106 : f32 to vector<16x16xf32>
    %108 = arith.mulf %107, %23 : vector<16x16xf32>
    %109 = arith.addf %93, %108 : vector<16x16xf32>
    %c76 = arith.constant 76 : index
    %110 = memref.load %arg5[%c76] : memref<288xf32, #tpu.memory_space<smem>>
    %111 = vector.broadcast %110 : f32 to vector<16x16xf32>
    %112 = arith.mulf %111, %23 : vector<16x16xf32>
    %113 = arith.addf %97, %112 : vector<16x16xf32>
    %c148 = arith.constant 148 : index
    %114 = memref.load %arg5[%c148] : memref<288xf32, #tpu.memory_space<smem>>
    %115 = vector.broadcast %114 : f32 to vector<16x16xf32>
    %116 = arith.mulf %115, %23 : vector<16x16xf32>
    %117 = arith.addf %101, %116 : vector<16x16xf32>
    %c220 = arith.constant 220 : index
    %118 = memref.load %arg5[%c220] : memref<288xf32, #tpu.memory_space<smem>>
    %119 = vector.broadcast %118 : f32 to vector<16x16xf32>
    %120 = arith.mulf %119, %23 : vector<16x16xf32>
    %121 = arith.addf %105, %120 : vector<16x16xf32>
    %c5 = arith.constant 5 : index
    %122 = memref.load %arg5[%c5] : memref<288xf32, #tpu.memory_space<smem>>
    %123 = vector.broadcast %122 : f32 to vector<16x16xf32>
    %124 = arith.mulf %123, %89 : vector<16x16xf32>
    %125 = arith.addf %109, %124 : vector<16x16xf32>
    %c77 = arith.constant 77 : index
    %126 = memref.load %arg5[%c77] : memref<288xf32, #tpu.memory_space<smem>>
    %127 = vector.broadcast %126 : f32 to vector<16x16xf32>
    %128 = arith.mulf %127, %89 : vector<16x16xf32>
    %129 = arith.addf %113, %128 : vector<16x16xf32>
    %c149 = arith.constant 149 : index
    %130 = memref.load %arg5[%c149] : memref<288xf32, #tpu.memory_space<smem>>
    %131 = vector.broadcast %130 : f32 to vector<16x16xf32>
    %132 = arith.mulf %131, %89 : vector<16x16xf32>
    %133 = arith.addf %117, %132 : vector<16x16xf32>
    %c221 = arith.constant 221 : index
    %134 = memref.load %arg5[%c221] : memref<288xf32, #tpu.memory_space<smem>>
    %135 = vector.broadcast %134 : f32 to vector<16x16xf32>
    %136 = arith.mulf %135, %89 : vector<16x16xf32>
    %137 = arith.addf %121, %136 : vector<16x16xf32>
    %c1_i32_25 = arith.constant 1 : i32
    %138 = tpu.dynamic_rotate %29 by %c1_i32_25 dim 1 : vector<16x16xf32>, i32 -> vector<16x16xf32>
    %cst_26 = arith.constant 0.000000e+00 : f32
    %139 = vector.broadcast %cst_26 : f32 to vector<16x16xf32>
    %140 = arith.select %7, %138, %139 : vector<16x16xi1>, vector<16x16xf32>
    %c15_i32_27 = arith.constant 15 : i32
    %141 = tpu.dynamic_rotate %29 by %c15_i32_27 dim 1 : vector<16x16xf32>, i32 -> vector<16x16xf32>
    %cst_28 = arith.constant 0.000000e+00 : f32
    %142 = vector.broadcast %cst_28 : f32 to vector<16x16xf32>
    %143 = arith.select %9, %141, %142 : vector<16x16xi1>, vector<16x16xf32>
    %c6 = arith.constant 6 : index
    %144 = memref.load %arg5[%c6] : memref<288xf32, #tpu.memory_space<smem>>
    %145 = vector.broadcast %144 : f32 to vector<16x16xf32>
    %146 = arith.mulf %145, %140 : vector<16x16xf32>
    %147 = arith.addf %125, %146 : vector<16x16xf32>
    %c78 = arith.constant 78 : index
    %148 = memref.load %arg5[%c78] : memref<288xf32, #tpu.memory_space<smem>>
    %149 = vector.broadcast %148 : f32 to vector<16x16xf32>
    %150 = arith.mulf %149, %140 : vector<16x16xf32>
    %151 = arith.addf %129, %150 : vector<16x16xf32>
    %c150 = arith.constant 150 : index
    %152 = memref.load %arg5[%c150] : memref<288xf32, #tpu.memory_space<smem>>
    %153 = vector.broadcast %152 : f32 to vector<16x16xf32>
    %154 = arith.mulf %153, %140 : vector<16x16xf32>
    %155 = arith.addf %133, %154 : vector<16x16xf32>
    %c222 = arith.constant 222 : index
    %156 = memref.load %arg5[%c222] : memref<288xf32, #tpu.memory_space<smem>>
    %157 = vector.broadcast %156 : f32 to vector<16x16xf32>
    %158 = arith.mulf %157, %140 : vector<16x16xf32>
    %159 = arith.addf %137, %158 : vector<16x16xf32>
    %c7 = arith.constant 7 : index
    %160 = memref.load %arg5[%c7] : memref<288xf32, #tpu.memory_space<smem>>
    %161 = vector.broadcast %160 : f32 to vector<16x16xf32>
    %162 = arith.mulf %161, %29 : vector<16x16xf32>
    %163 = arith.addf %147, %162 : vector<16x16xf32>
    %c79 = arith.constant 79 : index
    %164 = memref.load %arg5[%c79] : memref<288xf32, #tpu.memory_space<smem>>
    %165 = vector.broadcast %164 : f32 to vector<16x16xf32>
    %166 = arith.mulf %165, %29 : vector<16x16xf32>
    %167 = arith.addf %151, %166 : vector<16x16xf32>
    %c151 = arith.constant 151 : index
    %168 = memref.load %arg5[%c151] : memref<288xf32, #tpu.memory_space<smem>>
    %169 = vector.broadcast %168 : f32 to vector<16x16xf32>
    %170 = arith.mulf %169, %29 : vector<16x16xf32>
    %171 = arith.addf %155, %170 : vector<16x16xf32>
    %c223 = arith.constant 223 : index
    %172 = memref.load %arg5[%c223] : memref<288xf32, #tpu.memory_space<smem>>
    %173 = vector.broadcast %172 : f32 to vector<16x16xf32>
    %174 = arith.mulf %173, %29 : vector<16x16xf32>
    %175 = arith.addf %159, %174 : vector<16x16xf32>
    %c8 = arith.constant 8 : index
    %176 = memref.load %arg5[%c8] : memref<288xf32, #tpu.memory_space<smem>>
    %177 = vector.broadcast %176 : f32 to vector<16x16xf32>
    %178 = arith.mulf %177, %143 : vector<16x16xf32>
    %179 = arith.addf %163, %178 : vector<16x16xf32>
    %c80 = arith.constant 80 : index
    %180 = memref.load %arg5[%c80] : memref<288xf32, #tpu.memory_space<smem>>
    %181 = vector.broadcast %180 : f32 to vector<16x16xf32>
    %182 = arith.mulf %181, %143 : vector<16x16xf32>
    %183 = arith.addf %167, %182 : vector<16x16xf32>
    %c152 = arith.constant 152 : index
    %184 = memref.load %arg5[%c152] : memref<288xf32, #tpu.memory_space<smem>>
    %185 = vector.broadcast %184 : f32 to vector<16x16xf32>
    %186 = arith.mulf %185, %143 : vector<16x16xf32>
    %187 = arith.addf %171, %186 : vector<16x16xf32>
    %c224 = arith.constant 224 : index
    %188 = memref.load %arg5[%c224] : memref<288xf32, #tpu.memory_space<smem>>
    %189 = vector.broadcast %188 : f32 to vector<16x16xf32>
    %190 = arith.mulf %189, %143 : vector<16x16xf32>
    %191 = arith.addf %175, %190 : vector<16x16xf32>
    %c0_29 = arith.constant 0 : index
    %c1_30 = arith.constant 1 : index
    %c0_31 = arith.constant 0 : index
    %c0_32 = arith.constant 0 : index
    %192 = vector.load %arg1[%c0_29, %c1_30, %c0_31, %c0_32] : memref<1x4x16x16xf32, #tpu.memory_space<vmem>>, vector<1x1x16x16xf32>
    %193 = vector.shape_cast %192 : vector<1x1x16x16xf32> to vector<16x16xf32>
    %c8_i32_33 = arith.constant 8 : i32
    %194 = tpu.dynamic_rotate %193 by %c8_i32_33 dim 0 : vector<16x16xf32>, i32 -> vector<16x16xf32>
    %195 = arith.mulf %194, %12 : vector<16x16xf32>
    %c1_i32_34 = arith.constant 1 : i32
    %196 = tpu.dynamic_rotate %195 by %c1_i32_34 dim 0 : vector<16x16xf32>, i32 -> vector<16x16xf32>
    %cst_35 = arith.constant 0.000000e+00 : f32
    %197 = vector.broadcast %cst_35 : f32 to vector<16x16xf32>
    %198 = arith.select %3, %196, %197 : vector<16x16xi1>, vector<16x16xf32>
    %c15_i32_36 = arith.constant 15 : i32
    %199 = tpu.dynamic_rotate %195 by %c15_i32_36 dim 0 : vector<16x16xf32>, i32 -> vector<16x16xf32>
    %cst_37 = arith.constant 0.000000e+00 : f32
    %200 = vector.broadcast %cst_37 : f32 to vector<16x16xf32>
    %201 = arith.select %5, %199, %200 : vector<16x16xi1>, vector<16x16xf32>
    %c1_i32_38 = arith.constant 1 : i32
    %202 = tpu.dynamic_rotate %198 by %c1_i32_38 dim 1 : vector<16x16xf32>, i32 -> vector<16x16xf32>
    %cst_39 = arith.constant 0.000000e+00 : f32
    %203 = vector.broadcast %cst_39 : f32 to vector<16x16xf32>
    %204 = arith.select %7, %202, %203 : vector<16x16xi1>, vector<16x16xf32>
    %c15_i32_40 = arith.constant 15 : i32
    %205 = tpu.dynamic_rotate %198 by %c15_i32_40 dim 1 : vector<16x16xf32>, i32 -> vector<16x16xf32>
    %cst_41 = arith.constant 0.000000e+00 : f32
    %206 = vector.broadcast %cst_41 : f32 to vector<16x16xf32>
    %207 = arith.select %9, %205, %206 : vector<16x16xi1>, vector<16x16xf32>
    %c9 = arith.constant 9 : index
    %208 = memref.load %arg5[%c9] : memref<288xf32, #tpu.memory_space<smem>>
    %209 = vector.broadcast %208 : f32 to vector<16x16xf32>
    %210 = arith.mulf %209, %204 : vector<16x16xf32>
    %211 = arith.addf %179, %210 : vector<16x16xf32>
    %c81 = arith.constant 81 : index
    %212 = memref.load %arg5[%c81] : memref<288xf32, #tpu.memory_space<smem>>
    %213 = vector.broadcast %212 : f32 to vector<16x16xf32>
    %214 = arith.mulf %213, %204 : vector<16x16xf32>
    %215 = arith.addf %183, %214 : vector<16x16xf32>
    %c153 = arith.constant 153 : index
    %216 = memref.load %arg5[%c153] : memref<288xf32, #tpu.memory_space<smem>>
    %217 = vector.broadcast %216 : f32 to vector<16x16xf32>
    %218 = arith.mulf %217, %204 : vector<16x16xf32>
    %219 = arith.addf %187, %218 : vector<16x16xf32>
    %c225 = arith.constant 225 : index
    %220 = memref.load %arg5[%c225] : memref<288xf32, #tpu.memory_space<smem>>
    %221 = vector.broadcast %220 : f32 to vector<16x16xf32>
    %222 = arith.mulf %221, %204 : vector<16x16xf32>
    %223 = arith.addf %191, %222 : vector<16x16xf32>
    %c10 = arith.constant 10 : index
    %224 = memref.load %arg5[%c10] : memref<288xf32, #tpu.memory_space<smem>>
    %225 = vector.broadcast %224 : f32 to vector<16x16xf32>
    %226 = arith.mulf %225, %198 : vector<16x16xf32>
    %227 = arith.addf %211, %226 : vector<16x16xf32>
    %c82 = arith.constant 82 : index
    %228 = memref.load %arg5[%c82] : memref<288xf32, #tpu.memory_space<smem>>
    %229 = vector.broadcast %228 : f32 to vector<16x16xf32>
    %230 = arith.mulf %229, %198 : vector<16x16xf32>
    %231 = arith.addf %215, %230 : vector<16x16xf32>
    %c154 = arith.constant 154 : index
    %232 = memref.load %arg5[%c154] : memref<288xf32, #tpu.memory_space<smem>>
    %233 = vector.broadcast %232 : f32 to vector<16x16xf32>
    %234 = arith.mulf %233, %198 : vector<16x16xf32>
    %235 = arith.addf %219, %234 : vector<16x16xf32>
    %c226 = arith.constant 226 : index
    %236 = memref.load %arg5[%c226] : memref<288xf32, #tpu.memory_space<smem>>
    %237 = vector.broadcast %236 : f32 to vector<16x16xf32>
    %238 = arith.mulf %237, %198 : vector<16x16xf32>
    %239 = arith.addf %223, %238 : vector<16x16xf32>
    %c11 = arith.constant 11 : index
    %240 = memref.load %arg5[%c11] : memref<288xf32, #tpu.memory_space<smem>>
    %241 = vector.broadcast %240 : f32 to vector<16x16xf32>
    %242 = arith.mulf %241, %207 : vector<16x16xf32>
    %243 = arith.addf %227, %242 : vector<16x16xf32>
    %c83 = arith.constant 83 : index
    %244 = memref.load %arg5[%c83] : memref<288xf32, #tpu.memory_space<smem>>
    %245 = vector.broadcast %244 : f32 to vector<16x16xf32>
    %246 = arith.mulf %245, %207 : vector<16x16xf32>
    %247 = arith.addf %231, %246 : vector<16x16xf32>
    %c155 = arith.constant 155 : index
    %248 = memref.load %arg5[%c155] : memref<288xf32, #tpu.memory_space<smem>>
    %249 = vector.broadcast %248 : f32 to vector<16x16xf32>
    %250 = arith.mulf %249, %207 : vector<16x16xf32>
    %251 = arith.addf %235, %250 : vector<16x16xf32>
    %c227 = arith.constant 227 : index
    %252 = memref.load %arg5[%c227] : memref<288xf32, #tpu.memory_space<smem>>
    %253 = vector.broadcast %252 : f32 to vector<16x16xf32>
    %254 = arith.mulf %253, %207 : vector<16x16xf32>
    %255 = arith.addf %239, %254 : vector<16x16xf32>
    %c1_i32_42 = arith.constant 1 : i32
    %256 = tpu.dynamic_rotate %195 by %c1_i32_42 dim 1 : vector<16x16xf32>, i32 -> vector<16x16xf32>
    %cst_43 = arith.constant 0.000000e+00 : f32
    %257 = vector.broadcast %cst_43 : f32 to vector<16x16xf32>
    %258 = arith.select %7, %256, %257 : vector<16x16xi1>, vector<16x16xf32>
    %c15_i32_44 = arith.constant 15 : i32
    %259 = tpu.dynamic_rotate %195 by %c15_i32_44 dim 1 : vector<16x16xf32>, i32 -> vector<16x16xf32>
    %cst_45 = arith.constant 0.000000e+00 : f32
    %260 = vector.broadcast %cst_45 : f32 to vector<16x16xf32>
    %261 = arith.select %9, %259, %260 : vector<16x16xi1>, vector<16x16xf32>
    %c12 = arith.constant 12 : index
    %262 = memref.load %arg5[%c12] : memref<288xf32, #tpu.memory_space<smem>>
    %263 = vector.broadcast %262 : f32 to vector<16x16xf32>
    %264 = arith.mulf %263, %258 : vector<16x16xf32>
    %265 = arith.addf %243, %264 : vector<16x16xf32>
    %c84 = arith.constant 84 : index
    %266 = memref.load %arg5[%c84] : memref<288xf32, #tpu.memory_space<smem>>
    %267 = vector.broadcast %266 : f32 to vector<16x16xf32>
    %268 = arith.mulf %267, %258 : vector<16x16xf32>
    %269 = arith.addf %247, %268 : vector<16x16xf32>
    %c156 = arith.constant 156 : index
    %270 = memref.load %arg5[%c156] : memref<288xf32, #tpu.memory_space<smem>>
    %271 = vector.broadcast %270 : f32 to vector<16x16xf32>
    %272 = arith.mulf %271, %258 : vector<16x16xf32>
    %273 = arith.addf %251, %272 : vector<16x16xf32>
    %c228 = arith.constant 228 : index
    %274 = memref.load %arg5[%c228] : memref<288xf32, #tpu.memory_space<smem>>
    %275 = vector.broadcast %274 : f32 to vector<16x16xf32>
    %276 = arith.mulf %275, %258 : vector<16x16xf32>
    %277 = arith.addf %255, %276 : vector<16x16xf32>
    %c13 = arith.constant 13 : index
    %278 = memref.load %arg5[%c13] : memref<288xf32, #tpu.memory_space<smem>>
    %279 = vector.broadcast %278 : f32 to vector<16x16xf32>
    %280 = arith.mulf %279, %195 : vector<16x16xf32>
    %281 = arith.addf %265, %280 : vector<16x16xf32>
    %c85 = arith.constant 85 : index
    %282 = memref.load %arg5[%c85] : memref<288xf32, #tpu.memory_space<smem>>
    %283 = vector.broadcast %282 : f32 to vector<16x16xf32>
    %284 = arith.mulf %283, %195 : vector<16x16xf32>
    %285 = arith.addf %269, %284 : vector<16x16xf32>
    %c157 = arith.constant 157 : index
    %286 = memref.load %arg5[%c157] : memref<288xf32, #tpu.memory_space<smem>>
    %287 = vector.broadcast %286 : f32 to vector<16x16xf32>
    %288 = arith.mulf %287, %195 : vector<16x16xf32>
    %289 = arith.addf %273, %288 : vector<16x16xf32>
    %c229 = arith.constant 229 : index
    %290 = memref.load %arg5[%c229] : memref<288xf32, #tpu.memory_space<smem>>
    %291 = vector.broadcast %290 : f32 to vector<16x16xf32>
    %292 = arith.mulf %291, %195 : vector<16x16xf32>
    %293 = arith.addf %277, %292 : vector<16x16xf32>
    %c14 = arith.constant 14 : index
    %294 = memref.load %arg5[%c14] : memref<288xf32, #tpu.memory_space<smem>>
    %295 = vector.broadcast %294 : f32 to vector<16x16xf32>
    %296 = arith.mulf %295, %261 : vector<16x16xf32>
    %297 = arith.addf %281, %296 : vector<16x16xf32>
    %c86 = arith.constant 86 : index
    %298 = memref.load %arg5[%c86] : memref<288xf32, #tpu.memory_space<smem>>
    %299 = vector.broadcast %298 : f32 to vector<16x16xf32>
    %300 = arith.mulf %299, %261 : vector<16x16xf32>
    %301 = arith.addf %285, %300 : vector<16x16xf32>
    %c158 = arith.constant 158 : index
    %302 = memref.load %arg5[%c158] : memref<288xf32, #tpu.memory_space<smem>>
    %303 = vector.broadcast %302 : f32 to vector<16x16xf32>
    %304 = arith.mulf %303, %261 : vector<16x16xf32>
    %305 = arith.addf %289, %304 : vector<16x16xf32>
    %c230 = arith.constant 230 : index
    %306 = memref.load %arg5[%c230] : memref<288xf32, #tpu.memory_space<smem>>
    %307 = vector.broadcast %306 : f32 to vector<16x16xf32>
    %308 = arith.mulf %307, %261 : vector<16x16xf32>
    %309 = arith.addf %293, %308 : vector<16x16xf32>
    %c1_i32_46 = arith.constant 1 : i32
    %310 = tpu.dynamic_rotate %201 by %c1_i32_46 dim 1 : vector<16x16xf32>, i32 -> vector<16x16xf32>
    %cst_47 = arith.constant 0.000000e+00 : f32
    %311 = vector.broadcast %cst_47 : f32 to vector<16x16xf32>
    %312 = arith.select %7, %310, %311 : vector<16x16xi1>, vector<16x16xf32>
    %c15_i32_48 = arith.constant 15 : i32
    %313 = tpu.dynamic_rotate %201 by %c15_i32_48 dim 1 : vector<16x16xf32>, i32 -> vector<16x16xf32>
    %cst_49 = arith.constant 0.000000e+00 : f32
    %314 = vector.broadcast %cst_49 : f32 to vector<16x16xf32>
    %315 = arith.select %9, %313, %314 : vector<16x16xi1>, vector<16x16xf32>
    %c15 = arith.constant 15 : index
    %316 = memref.load %arg5[%c15] : memref<288xf32, #tpu.memory_space<smem>>
    %317 = vector.broadcast %316 : f32 to vector<16x16xf32>
    %318 = arith.mulf %317, %312 : vector<16x16xf32>
    %319 = arith.addf %297, %318 : vector<16x16xf32>
    %c87 = arith.constant 87 : index
    %320 = memref.load %arg5[%c87] : memref<288xf32, #tpu.memory_space<smem>>
    %321 = vector.broadcast %320 : f32 to vector<16x16xf32>
    %322 = arith.mulf %321, %312 : vector<16x16xf32>
    %323 = arith.addf %301, %322 : vector<16x16xf32>
    %c159 = arith.constant 159 : index
    %324 = memref.load %arg5[%c159] : memref<288xf32, #tpu.memory_space<smem>>
    %325 = vector.broadcast %324 : f32 to vector<16x16xf32>
    %326 = arith.mulf %325, %312 : vector<16x16xf32>
    %327 = arith.addf %305, %326 : vector<16x16xf32>
    %c231 = arith.constant 231 : index
    %328 = memref.load %arg5[%c231] : memref<288xf32, #tpu.memory_space<smem>>
    %329 = vector.broadcast %328 : f32 to vector<16x16xf32>
    %330 = arith.mulf %329, %312 : vector<16x16xf32>
    %331 = arith.addf %309, %330 : vector<16x16xf32>
    %c16 = arith.constant 16 : index
    %332 = memref.load %arg5[%c16] : memref<288xf32, #tpu.memory_space<smem>>
    %333 = vector.broadcast %332 : f32 to vector<16x16xf32>
    %334 = arith.mulf %333, %201 : vector<16x16xf32>
    %335 = arith.addf %319, %334 : vector<16x16xf32>
    %c88 = arith.constant 88 : index
    %336 = memref.load %arg5[%c88] : memref<288xf32, #tpu.memory_space<smem>>
    %337 = vector.broadcast %336 : f32 to vector<16x16xf32>
    %338 = arith.mulf %337, %201 : vector<16x16xf32>
    %339 = arith.addf %323, %338 : vector<16x16xf32>
    %c160 = arith.constant 160 : index
    %340 = memref.load %arg5[%c160] : memref<288xf32, #tpu.memory_space<smem>>
    %341 = vector.broadcast %340 : f32 to vector<16x16xf32>
    %342 = arith.mulf %341, %201 : vector<16x16xf32>
    %343 = arith.addf %327, %342 : vector<16x16xf32>
    %c232 = arith.constant 232 : index
    %344 = memref.load %arg5[%c232] : memref<288xf32, #tpu.memory_space<smem>>
    %345 = vector.broadcast %344 : f32 to vector<16x16xf32>
    %346 = arith.mulf %345, %201 : vector<16x16xf32>
    %347 = arith.addf %331, %346 : vector<16x16xf32>
    %c17 = arith.constant 17 : index
    %348 = memref.load %arg5[%c17] : memref<288xf32, #tpu.memory_space<smem>>
    %349 = vector.broadcast %348 : f32 to vector<16x16xf32>
    %350 = arith.mulf %349, %315 : vector<16x16xf32>
    %351 = arith.addf %335, %350 : vector<16x16xf32>
    %c89 = arith.constant 89 : index
    %352 = memref.load %arg5[%c89] : memref<288xf32, #tpu.memory_space<smem>>
    %353 = vector.broadcast %352 : f32 to vector<16x16xf32>
    %354 = arith.mulf %353, %315 : vector<16x16xf32>
    %355 = arith.addf %339, %354 : vector<16x16xf32>
    %c161 = arith.constant 161 : index
    %356 = memref.load %arg5[%c161] : memref<288xf32, #tpu.memory_space<smem>>
    %357 = vector.broadcast %356 : f32 to vector<16x16xf32>
    %358 = arith.mulf %357, %315 : vector<16x16xf32>
    %359 = arith.addf %343, %358 : vector<16x16xf32>
    %c233 = arith.constant 233 : index
    %360 = memref.load %arg5[%c233] : memref<288xf32, #tpu.memory_space<smem>>
    %361 = vector.broadcast %360 : f32 to vector<16x16xf32>
    %362 = arith.mulf %361, %315 : vector<16x16xf32>
    %363 = arith.addf %347, %362 : vector<16x16xf32>
    %c0_50 = arith.constant 0 : index
    %c2_51 = arith.constant 2 : index
    %c0_52 = arith.constant 0 : index
    %c0_53 = arith.constant 0 : index
    %364 = vector.load %arg1[%c0_50, %c2_51, %c0_52, %c0_53] : memref<1x4x16x16xf32, #tpu.memory_space<vmem>>, vector<1x1x16x16xf32>
    %365 = vector.shape_cast %364 : vector<1x1x16x16xf32> to vector<16x16xf32>
    %c8_i32_54 = arith.constant 8 : i32
    %366 = tpu.dynamic_rotate %365 by %c8_i32_54 dim 0 : vector<16x16xf32>, i32 -> vector<16x16xf32>
    %367 = arith.mulf %366, %12 : vector<16x16xf32>
    %c1_i32_55 = arith.constant 1 : i32
    %368 = tpu.dynamic_rotate %367 by %c1_i32_55 dim 0 : vector<16x16xf32>, i32 -> vector<16x16xf32>
    %cst_56 = arith.constant 0.000000e+00 : f32
    %369 = vector.broadcast %cst_56 : f32 to vector<16x16xf32>
    %370 = arith.select %3, %368, %369 : vector<16x16xi1>, vector<16x16xf32>
    %c15_i32_57 = arith.constant 15 : i32
    %371 = tpu.dynamic_rotate %367 by %c15_i32_57 dim 0 : vector<16x16xf32>, i32 -> vector<16x16xf32>
    %cst_58 = arith.constant 0.000000e+00 : f32
    %372 = vector.broadcast %cst_58 : f32 to vector<16x16xf32>
    %373 = arith.select %5, %371, %372 : vector<16x16xi1>, vector<16x16xf32>
    %c1_i32_59 = arith.constant 1 : i32
    %374 = tpu.dynamic_rotate %370 by %c1_i32_59 dim 1 : vector<16x16xf32>, i32 -> vector<16x16xf32>
    %cst_60 = arith.constant 0.000000e+00 : f32
    %375 = vector.broadcast %cst_60 : f32 to vector<16x16xf32>
    %376 = arith.select %7, %374, %375 : vector<16x16xi1>, vector<16x16xf32>
    %c15_i32_61 = arith.constant 15 : i32
    %377 = tpu.dynamic_rotate %370 by %c15_i32_61 dim 1 : vector<16x16xf32>, i32 -> vector<16x16xf32>
    %cst_62 = arith.constant 0.000000e+00 : f32
    %378 = vector.broadcast %cst_62 : f32 to vector<16x16xf32>
    %379 = arith.select %9, %377, %378 : vector<16x16xi1>, vector<16x16xf32>
    %c18 = arith.constant 18 : index
    %380 = memref.load %arg5[%c18] : memref<288xf32, #tpu.memory_space<smem>>
    %381 = vector.broadcast %380 : f32 to vector<16x16xf32>
    %382 = arith.mulf %381, %376 : vector<16x16xf32>
    %383 = arith.addf %351, %382 : vector<16x16xf32>
    %c90 = arith.constant 90 : index
    %384 = memref.load %arg5[%c90] : memref<288xf32, #tpu.memory_space<smem>>
    %385 = vector.broadcast %384 : f32 to vector<16x16xf32>
    %386 = arith.mulf %385, %376 : vector<16x16xf32>
    %387 = arith.addf %355, %386 : vector<16x16xf32>
    %c162 = arith.constant 162 : index
    %388 = memref.load %arg5[%c162] : memref<288xf32, #tpu.memory_space<smem>>
    %389 = vector.broadcast %388 : f32 to vector<16x16xf32>
    %390 = arith.mulf %389, %376 : vector<16x16xf32>
    %391 = arith.addf %359, %390 : vector<16x16xf32>
    %c234 = arith.constant 234 : index
    %392 = memref.load %arg5[%c234] : memref<288xf32, #tpu.memory_space<smem>>
    %393 = vector.broadcast %392 : f32 to vector<16x16xf32>
    %394 = arith.mulf %393, %376 : vector<16x16xf32>
    %395 = arith.addf %363, %394 : vector<16x16xf32>
    %c19 = arith.constant 19 : index
    %396 = memref.load %arg5[%c19] : memref<288xf32, #tpu.memory_space<smem>>
    %397 = vector.broadcast %396 : f32 to vector<16x16xf32>
    %398 = arith.mulf %397, %370 : vector<16x16xf32>
    %399 = arith.addf %383, %398 : vector<16x16xf32>
    %c91 = arith.constant 91 : index
    %400 = memref.load %arg5[%c91] : memref<288xf32, #tpu.memory_space<smem>>
    %401 = vector.broadcast %400 : f32 to vector<16x16xf32>
    %402 = arith.mulf %401, %370 : vector<16x16xf32>
    %403 = arith.addf %387, %402 : vector<16x16xf32>
    %c163 = arith.constant 163 : index
    %404 = memref.load %arg5[%c163] : memref<288xf32, #tpu.memory_space<smem>>
    %405 = vector.broadcast %404 : f32 to vector<16x16xf32>
    %406 = arith.mulf %405, %370 : vector<16x16xf32>
    %407 = arith.addf %391, %406 : vector<16x16xf32>
    %c235 = arith.constant 235 : index
    %408 = memref.load %arg5[%c235] : memref<288xf32, #tpu.memory_space<smem>>
    %409 = vector.broadcast %408 : f32 to vector<16x16xf32>
    %410 = arith.mulf %409, %370 : vector<16x16xf32>
    %411 = arith.addf %395, %410 : vector<16x16xf32>
    %c20 = arith.constant 20 : index
    %412 = memref.load %arg5[%c20] : memref<288xf32, #tpu.memory_space<smem>>
    %413 = vector.broadcast %412 : f32 to vector<16x16xf32>
    %414 = arith.mulf %413, %379 : vector<16x16xf32>
    %415 = arith.addf %399, %414 : vector<16x16xf32>
    %c92 = arith.constant 92 : index
    %416 = memref.load %arg5[%c92] : memref<288xf32, #tpu.memory_space<smem>>
    %417 = vector.broadcast %416 : f32 to vector<16x16xf32>
    %418 = arith.mulf %417, %379 : vector<16x16xf32>
    %419 = arith.addf %403, %418 : vector<16x16xf32>
    %c164 = arith.constant 164 : index
    %420 = memref.load %arg5[%c164] : memref<288xf32, #tpu.memory_space<smem>>
    %421 = vector.broadcast %420 : f32 to vector<16x16xf32>
    %422 = arith.mulf %421, %379 : vector<16x16xf32>
    %423 = arith.addf %407, %422 : vector<16x16xf32>
    %c236 = arith.constant 236 : index
    %424 = memref.load %arg5[%c236] : memref<288xf32, #tpu.memory_space<smem>>
    %425 = vector.broadcast %424 : f32 to vector<16x16xf32>
    %426 = arith.mulf %425, %379 : vector<16x16xf32>
    %427 = arith.addf %411, %426 : vector<16x16xf32>
    %c1_i32_63 = arith.constant 1 : i32
    %428 = tpu.dynamic_rotate %367 by %c1_i32_63 dim 1 : vector<16x16xf32>, i32 -> vector<16x16xf32>
    %cst_64 = arith.constant 0.000000e+00 : f32
    %429 = vector.broadcast %cst_64 : f32 to vector<16x16xf32>
    %430 = arith.select %7, %428, %429 : vector<16x16xi1>, vector<16x16xf32>
    %c15_i32_65 = arith.constant 15 : i32
    %431 = tpu.dynamic_rotate %367 by %c15_i32_65 dim 1 : vector<16x16xf32>, i32 -> vector<16x16xf32>
    %cst_66 = arith.constant 0.000000e+00 : f32
    %432 = vector.broadcast %cst_66 : f32 to vector<16x16xf32>
    %433 = arith.select %9, %431, %432 : vector<16x16xi1>, vector<16x16xf32>
    %c21 = arith.constant 21 : index
    %434 = memref.load %arg5[%c21] : memref<288xf32, #tpu.memory_space<smem>>
    %435 = vector.broadcast %434 : f32 to vector<16x16xf32>
    %436 = arith.mulf %435, %430 : vector<16x16xf32>
    %437 = arith.addf %415, %436 : vector<16x16xf32>
    %c93 = arith.constant 93 : index
    %438 = memref.load %arg5[%c93] : memref<288xf32, #tpu.memory_space<smem>>
    %439 = vector.broadcast %438 : f32 to vector<16x16xf32>
    %440 = arith.mulf %439, %430 : vector<16x16xf32>
    %441 = arith.addf %419, %440 : vector<16x16xf32>
    %c165 = arith.constant 165 : index
    %442 = memref.load %arg5[%c165] : memref<288xf32, #tpu.memory_space<smem>>
    %443 = vector.broadcast %442 : f32 to vector<16x16xf32>
    %444 = arith.mulf %443, %430 : vector<16x16xf32>
    %445 = arith.addf %423, %444 : vector<16x16xf32>
    %c237 = arith.constant 237 : index
    %446 = memref.load %arg5[%c237] : memref<288xf32, #tpu.memory_space<smem>>
    %447 = vector.broadcast %446 : f32 to vector<16x16xf32>
    %448 = arith.mulf %447, %430 : vector<16x16xf32>
    %449 = arith.addf %427, %448 : vector<16x16xf32>
    %c22 = arith.constant 22 : index
    %450 = memref.load %arg5[%c22] : memref<288xf32, #tpu.memory_space<smem>>
    %451 = vector.broadcast %450 : f32 to vector<16x16xf32>
    %452 = arith.mulf %451, %367 : vector<16x16xf32>
    %453 = arith.addf %437, %452 : vector<16x16xf32>
    %c94 = arith.constant 94 : index
    %454 = memref.load %arg5[%c94] : memref<288xf32, #tpu.memory_space<smem>>
    %455 = vector.broadcast %454 : f32 to vector<16x16xf32>
    %456 = arith.mulf %455, %367 : vector<16x16xf32>
    %457 = arith.addf %441, %456 : vector<16x16xf32>
    %c166 = arith.constant 166 : index
    %458 = memref.load %arg5[%c166] : memref<288xf32, #tpu.memory_space<smem>>
    %459 = vector.broadcast %458 : f32 to vector<16x16xf32>
    %460 = arith.mulf %459, %367 : vector<16x16xf32>
    %461 = arith.addf %445, %460 : vector<16x16xf32>
    %c238 = arith.constant 238 : index
    %462 = memref.load %arg5[%c238] : memref<288xf32, #tpu.memory_space<smem>>
    %463 = vector.broadcast %462 : f32 to vector<16x16xf32>
    %464 = arith.mulf %463, %367 : vector<16x16xf32>
    %465 = arith.addf %449, %464 : vector<16x16xf32>
    %c23 = arith.constant 23 : index
    %466 = memref.load %arg5[%c23] : memref<288xf32, #tpu.memory_space<smem>>
    %467 = vector.broadcast %466 : f32 to vector<16x16xf32>
    %468 = arith.mulf %467, %433 : vector<16x16xf32>
    %469 = arith.addf %453, %468 : vector<16x16xf32>
    %c95 = arith.constant 95 : index
    %470 = memref.load %arg5[%c95] : memref<288xf32, #tpu.memory_space<smem>>
    %471 = vector.broadcast %470 : f32 to vector<16x16xf32>
    %472 = arith.mulf %471, %433 : vector<16x16xf32>
    %473 = arith.addf %457, %472 : vector<16x16xf32>
    %c167 = arith.constant 167 : index
    %474 = memref.load %arg5[%c167] : memref<288xf32, #tpu.memory_space<smem>>
    %475 = vector.broadcast %474 : f32 to vector<16x16xf32>
    %476 = arith.mulf %475, %433 : vector<16x16xf32>
    %477 = arith.addf %461, %476 : vector<16x16xf32>
    %c239 = arith.constant 239 : index
    %478 = memref.load %arg5[%c239] : memref<288xf32, #tpu.memory_space<smem>>
    %479 = vector.broadcast %478 : f32 to vector<16x16xf32>
    %480 = arith.mulf %479, %433 : vector<16x16xf32>
    %481 = arith.addf %465, %480 : vector<16x16xf32>
    %c1_i32_67 = arith.constant 1 : i32
    %482 = tpu.dynamic_rotate %373 by %c1_i32_67 dim 1 : vector<16x16xf32>, i32 -> vector<16x16xf32>
    %cst_68 = arith.constant 0.000000e+00 : f32
    %483 = vector.broadcast %cst_68 : f32 to vector<16x16xf32>
    %484 = arith.select %7, %482, %483 : vector<16x16xi1>, vector<16x16xf32>
    %c15_i32_69 = arith.constant 15 : i32
    %485 = tpu.dynamic_rotate %373 by %c15_i32_69 dim 1 : vector<16x16xf32>, i32 -> vector<16x16xf32>
    %cst_70 = arith.constant 0.000000e+00 : f32
    %486 = vector.broadcast %cst_70 : f32 to vector<16x16xf32>
    %487 = arith.select %9, %485, %486 : vector<16x16xi1>, vector<16x16xf32>
    %c24 = arith.constant 24 : index
    %488 = memref.load %arg5[%c24] : memref<288xf32, #tpu.memory_space<smem>>
    %489 = vector.broadcast %488 : f32 to vector<16x16xf32>
    %490 = arith.mulf %489, %484 : vector<16x16xf32>
    %491 = arith.addf %469, %490 : vector<16x16xf32>
    %c96 = arith.constant 96 : index
    %492 = memref.load %arg5[%c96] : memref<288xf32, #tpu.memory_space<smem>>
    %493 = vector.broadcast %492 : f32 to vector<16x16xf32>
    %494 = arith.mulf %493, %484 : vector<16x16xf32>
    %495 = arith.addf %473, %494 : vector<16x16xf32>
    %c168 = arith.constant 168 : index
    %496 = memref.load %arg5[%c168] : memref<288xf32, #tpu.memory_space<smem>>
    %497 = vector.broadcast %496 : f32 to vector<16x16xf32>
    %498 = arith.mulf %497, %484 : vector<16x16xf32>
    %499 = arith.addf %477, %498 : vector<16x16xf32>
    %c240 = arith.constant 240 : index
    %500 = memref.load %arg5[%c240] : memref<288xf32, #tpu.memory_space<smem>>
    %501 = vector.broadcast %500 : f32 to vector<16x16xf32>
    %502 = arith.mulf %501, %484 : vector<16x16xf32>
    %503 = arith.addf %481, %502 : vector<16x16xf32>
    %c25 = arith.constant 25 : index
    %504 = memref.load %arg5[%c25] : memref<288xf32, #tpu.memory_space<smem>>
    %505 = vector.broadcast %504 : f32 to vector<16x16xf32>
    %506 = arith.mulf %505, %373 : vector<16x16xf32>
    %507 = arith.addf %491, %506 : vector<16x16xf32>
    %c97 = arith.constant 97 : index
    %508 = memref.load %arg5[%c97] : memref<288xf32, #tpu.memory_space<smem>>
    %509 = vector.broadcast %508 : f32 to vector<16x16xf32>
    %510 = arith.mulf %509, %373 : vector<16x16xf32>
    %511 = arith.addf %495, %510 : vector<16x16xf32>
    %c169 = arith.constant 169 : index
    %512 = memref.load %arg5[%c169] : memref<288xf32, #tpu.memory_space<smem>>
    %513 = vector.broadcast %512 : f32 to vector<16x16xf32>
    %514 = arith.mulf %513, %373 : vector<16x16xf32>
    %515 = arith.addf %499, %514 : vector<16x16xf32>
    %c241 = arith.constant 241 : index
    %516 = memref.load %arg5[%c241] : memref<288xf32, #tpu.memory_space<smem>>
    %517 = vector.broadcast %516 : f32 to vector<16x16xf32>
    %518 = arith.mulf %517, %373 : vector<16x16xf32>
    %519 = arith.addf %503, %518 : vector<16x16xf32>
    %c26 = arith.constant 26 : index
    %520 = memref.load %arg5[%c26] : memref<288xf32, #tpu.memory_space<smem>>
    %521 = vector.broadcast %520 : f32 to vector<16x16xf32>
    %522 = arith.mulf %521, %487 : vector<16x16xf32>
    %523 = arith.addf %507, %522 : vector<16x16xf32>
    %c98 = arith.constant 98 : index
    %524 = memref.load %arg5[%c98] : memref<288xf32, #tpu.memory_space<smem>>
    %525 = vector.broadcast %524 : f32 to vector<16x16xf32>
    %526 = arith.mulf %525, %487 : vector<16x16xf32>
    %527 = arith.addf %511, %526 : vector<16x16xf32>
    %c170 = arith.constant 170 : index
    %528 = memref.load %arg5[%c170] : memref<288xf32, #tpu.memory_space<smem>>
    %529 = vector.broadcast %528 : f32 to vector<16x16xf32>
    %530 = arith.mulf %529, %487 : vector<16x16xf32>
    %531 = arith.addf %515, %530 : vector<16x16xf32>
    %c242 = arith.constant 242 : index
    %532 = memref.load %arg5[%c242] : memref<288xf32, #tpu.memory_space<smem>>
    %533 = vector.broadcast %532 : f32 to vector<16x16xf32>
    %534 = arith.mulf %533, %487 : vector<16x16xf32>
    %535 = arith.addf %519, %534 : vector<16x16xf32>
    %c0_71 = arith.constant 0 : index
    %c3_72 = arith.constant 3 : index
    %c0_73 = arith.constant 0 : index
    %c0_74 = arith.constant 0 : index
    %536 = vector.load %arg1[%c0_71, %c3_72, %c0_73, %c0_74] : memref<1x4x16x16xf32, #tpu.memory_space<vmem>>, vector<1x1x16x16xf32>
    %537 = vector.shape_cast %536 : vector<1x1x16x16xf32> to vector<16x16xf32>
    %c8_i32_75 = arith.constant 8 : i32
    %538 = tpu.dynamic_rotate %537 by %c8_i32_75 dim 0 : vector<16x16xf32>, i32 -> vector<16x16xf32>
    %539 = arith.mulf %538, %12 : vector<16x16xf32>
    %c1_i32_76 = arith.constant 1 : i32
    %540 = tpu.dynamic_rotate %539 by %c1_i32_76 dim 0 : vector<16x16xf32>, i32 -> vector<16x16xf32>
    %cst_77 = arith.constant 0.000000e+00 : f32
    %541 = vector.broadcast %cst_77 : f32 to vector<16x16xf32>
    %542 = arith.select %3, %540, %541 : vector<16x16xi1>, vector<16x16xf32>
    %c15_i32_78 = arith.constant 15 : i32
    %543 = tpu.dynamic_rotate %539 by %c15_i32_78 dim 0 : vector<16x16xf32>, i32 -> vector<16x16xf32>
    %cst_79 = arith.constant 0.000000e+00 : f32
    %544 = vector.broadcast %cst_79 : f32 to vector<16x16xf32>
    %545 = arith.select %5, %543, %544 : vector<16x16xi1>, vector<16x16xf32>
    %c1_i32_80 = arith.constant 1 : i32
    %546 = tpu.dynamic_rotate %542 by %c1_i32_80 dim 1 : vector<16x16xf32>, i32 -> vector<16x16xf32>
    %cst_81 = arith.constant 0.000000e+00 : f32
    %547 = vector.broadcast %cst_81 : f32 to vector<16x16xf32>
    %548 = arith.select %7, %546, %547 : vector<16x16xi1>, vector<16x16xf32>
    %c15_i32_82 = arith.constant 15 : i32
    %549 = tpu.dynamic_rotate %542 by %c15_i32_82 dim 1 : vector<16x16xf32>, i32 -> vector<16x16xf32>
    %cst_83 = arith.constant 0.000000e+00 : f32
    %550 = vector.broadcast %cst_83 : f32 to vector<16x16xf32>
    %551 = arith.select %9, %549, %550 : vector<16x16xi1>, vector<16x16xf32>
    %c27 = arith.constant 27 : index
    %552 = memref.load %arg5[%c27] : memref<288xf32, #tpu.memory_space<smem>>
    %553 = vector.broadcast %552 : f32 to vector<16x16xf32>
    %554 = arith.mulf %553, %548 : vector<16x16xf32>
    %555 = arith.addf %523, %554 : vector<16x16xf32>
    %c99 = arith.constant 99 : index
    %556 = memref.load %arg5[%c99] : memref<288xf32, #tpu.memory_space<smem>>
    %557 = vector.broadcast %556 : f32 to vector<16x16xf32>
    %558 = arith.mulf %557, %548 : vector<16x16xf32>
    %559 = arith.addf %527, %558 : vector<16x16xf32>
    %c171 = arith.constant 171 : index
    %560 = memref.load %arg5[%c171] : memref<288xf32, #tpu.memory_space<smem>>
    %561 = vector.broadcast %560 : f32 to vector<16x16xf32>
    %562 = arith.mulf %561, %548 : vector<16x16xf32>
    %563 = arith.addf %531, %562 : vector<16x16xf32>
    %c243 = arith.constant 243 : index
    %564 = memref.load %arg5[%c243] : memref<288xf32, #tpu.memory_space<smem>>
    %565 = vector.broadcast %564 : f32 to vector<16x16xf32>
    %566 = arith.mulf %565, %548 : vector<16x16xf32>
    %567 = arith.addf %535, %566 : vector<16x16xf32>
    %c28 = arith.constant 28 : index
    %568 = memref.load %arg5[%c28] : memref<288xf32, #tpu.memory_space<smem>>
    %569 = vector.broadcast %568 : f32 to vector<16x16xf32>
    %570 = arith.mulf %569, %542 : vector<16x16xf32>
    %571 = arith.addf %555, %570 : vector<16x16xf32>
    %c100 = arith.constant 100 : index
    %572 = memref.load %arg5[%c100] : memref<288xf32, #tpu.memory_space<smem>>
    %573 = vector.broadcast %572 : f32 to vector<16x16xf32>
    %574 = arith.mulf %573, %542 : vector<16x16xf32>
    %575 = arith.addf %559, %574 : vector<16x16xf32>
    %c172 = arith.constant 172 : index
    %576 = memref.load %arg5[%c172] : memref<288xf32, #tpu.memory_space<smem>>
    %577 = vector.broadcast %576 : f32 to vector<16x16xf32>
    %578 = arith.mulf %577, %542 : vector<16x16xf32>
    %579 = arith.addf %563, %578 : vector<16x16xf32>
    %c244 = arith.constant 244 : index
    %580 = memref.load %arg5[%c244] : memref<288xf32, #tpu.memory_space<smem>>
    %581 = vector.broadcast %580 : f32 to vector<16x16xf32>
    %582 = arith.mulf %581, %542 : vector<16x16xf32>
    %583 = arith.addf %567, %582 : vector<16x16xf32>
    %c29 = arith.constant 29 : index
    %584 = memref.load %arg5[%c29] : memref<288xf32, #tpu.memory_space<smem>>
    %585 = vector.broadcast %584 : f32 to vector<16x16xf32>
    %586 = arith.mulf %585, %551 : vector<16x16xf32>
    %587 = arith.addf %571, %586 : vector<16x16xf32>
    %c101 = arith.constant 101 : index
    %588 = memref.load %arg5[%c101] : memref<288xf32, #tpu.memory_space<smem>>
    %589 = vector.broadcast %588 : f32 to vector<16x16xf32>
    %590 = arith.mulf %589, %551 : vector<16x16xf32>
    %591 = arith.addf %575, %590 : vector<16x16xf32>
    %c173 = arith.constant 173 : index
    %592 = memref.load %arg5[%c173] : memref<288xf32, #tpu.memory_space<smem>>
    %593 = vector.broadcast %592 : f32 to vector<16x16xf32>
    %594 = arith.mulf %593, %551 : vector<16x16xf32>
    %595 = arith.addf %579, %594 : vector<16x16xf32>
    %c245 = arith.constant 245 : index
    %596 = memref.load %arg5[%c245] : memref<288xf32, #tpu.memory_space<smem>>
    %597 = vector.broadcast %596 : f32 to vector<16x16xf32>
    %598 = arith.mulf %597, %551 : vector<16x16xf32>
    %599 = arith.addf %583, %598 : vector<16x16xf32>
    %c1_i32_84 = arith.constant 1 : i32
    %600 = tpu.dynamic_rotate %539 by %c1_i32_84 dim 1 : vector<16x16xf32>, i32 -> vector<16x16xf32>
    %cst_85 = arith.constant 0.000000e+00 : f32
    %601 = vector.broadcast %cst_85 : f32 to vector<16x16xf32>
    %602 = arith.select %7, %600, %601 : vector<16x16xi1>, vector<16x16xf32>
    %c15_i32_86 = arith.constant 15 : i32
    %603 = tpu.dynamic_rotate %539 by %c15_i32_86 dim 1 : vector<16x16xf32>, i32 -> vector<16x16xf32>
    %cst_87 = arith.constant 0.000000e+00 : f32
    %604 = vector.broadcast %cst_87 : f32 to vector<16x16xf32>
    %605 = arith.select %9, %603, %604 : vector<16x16xi1>, vector<16x16xf32>
    %c30 = arith.constant 30 : index
    %606 = memref.load %arg5[%c30] : memref<288xf32, #tpu.memory_space<smem>>
    %607 = vector.broadcast %606 : f32 to vector<16x16xf32>
    %608 = arith.mulf %607, %602 : vector<16x16xf32>
    %609 = arith.addf %587, %608 : vector<16x16xf32>
    %c102 = arith.constant 102 : index
    %610 = memref.load %arg5[%c102] : memref<288xf32, #tpu.memory_space<smem>>
    %611 = vector.broadcast %610 : f32 to vector<16x16xf32>
    %612 = arith.mulf %611, %602 : vector<16x16xf32>
    %613 = arith.addf %591, %612 : vector<16x16xf32>
    %c174 = arith.constant 174 : index
    %614 = memref.load %arg5[%c174] : memref<288xf32, #tpu.memory_space<smem>>
    %615 = vector.broadcast %614 : f32 to vector<16x16xf32>
    %616 = arith.mulf %615, %602 : vector<16x16xf32>
    %617 = arith.addf %595, %616 : vector<16x16xf32>
    %c246 = arith.constant 246 : index
    %618 = memref.load %arg5[%c246] : memref<288xf32, #tpu.memory_space<smem>>
    %619 = vector.broadcast %618 : f32 to vector<16x16xf32>
    %620 = arith.mulf %619, %602 : vector<16x16xf32>
    %621 = arith.addf %599, %620 : vector<16x16xf32>
    %c31 = arith.constant 31 : index
    %622 = memref.load %arg5[%c31] : memref<288xf32, #tpu.memory_space<smem>>
    %623 = vector.broadcast %622 : f32 to vector<16x16xf32>
    %624 = arith.mulf %623, %539 : vector<16x16xf32>
    %625 = arith.addf %609, %624 : vector<16x16xf32>
    %c103 = arith.constant 103 : index
    %626 = memref.load %arg5[%c103] : memref<288xf32, #tpu.memory_space<smem>>
    %627 = vector.broadcast %626 : f32 to vector<16x16xf32>
    %628 = arith.mulf %627, %539 : vector<16x16xf32>
    %629 = arith.addf %613, %628 : vector<16x16xf32>
    %c175 = arith.constant 175 : index
    %630 = memref.load %arg5[%c175] : memref<288xf32, #tpu.memory_space<smem>>
    %631 = vector.broadcast %630 : f32 to vector<16x16xf32>
    %632 = arith.mulf %631, %539 : vector<16x16xf32>
    %633 = arith.addf %617, %632 : vector<16x16xf32>
    %c247 = arith.constant 247 : index
    %634 = memref.load %arg5[%c247] : memref<288xf32, #tpu.memory_space<smem>>
    %635 = vector.broadcast %634 : f32 to vector<16x16xf32>
    %636 = arith.mulf %635, %539 : vector<16x16xf32>
    %637 = arith.addf %621, %636 : vector<16x16xf32>
    %c32 = arith.constant 32 : index
    %638 = memref.load %arg5[%c32] : memref<288xf32, #tpu.memory_space<smem>>
    %639 = vector.broadcast %638 : f32 to vector<16x16xf32>
    %640 = arith.mulf %639, %605 : vector<16x16xf32>
    %641 = arith.addf %625, %640 : vector<16x16xf32>
    %c104 = arith.constant 104 : index
    %642 = memref.load %arg5[%c104] : memref<288xf32, #tpu.memory_space<smem>>
    %643 = vector.broadcast %642 : f32 to vector<16x16xf32>
    %644 = arith.mulf %643, %605 : vector<16x16xf32>
    %645 = arith.addf %629, %644 : vector<16x16xf32>
    %c176 = arith.constant 176 : index
    %646 = memref.load %arg5[%c176] : memref<288xf32, #tpu.memory_space<smem>>
    %647 = vector.broadcast %646 : f32 to vector<16x16xf32>
    %648 = arith.mulf %647, %605 : vector<16x16xf32>
    %649 = arith.addf %633, %648 : vector<16x16xf32>
    %c248 = arith.constant 248 : index
    %650 = memref.load %arg5[%c248] : memref<288xf32, #tpu.memory_space<smem>>
    %651 = vector.broadcast %650 : f32 to vector<16x16xf32>
    %652 = arith.mulf %651, %605 : vector<16x16xf32>
    %653 = arith.addf %637, %652 : vector<16x16xf32>
    %c1_i32_88 = arith.constant 1 : i32
    %654 = tpu.dynamic_rotate %545 by %c1_i32_88 dim 1 : vector<16x16xf32>, i32 -> vector<16x16xf32>
    %cst_89 = arith.constant 0.000000e+00 : f32
    %655 = vector.broadcast %cst_89 : f32 to vector<16x16xf32>
    %656 = arith.select %7, %654, %655 : vector<16x16xi1>, vector<16x16xf32>
    %c15_i32_90 = arith.constant 15 : i32
    %657 = tpu.dynamic_rotate %545 by %c15_i32_90 dim 1 : vector<16x16xf32>, i32 -> vector<16x16xf32>
    %cst_91 = arith.constant 0.000000e+00 : f32
    %658 = vector.broadcast %cst_91 : f32 to vector<16x16xf32>
    %659 = arith.select %9, %657, %658 : vector<16x16xi1>, vector<16x16xf32>
    %c33 = arith.constant 33 : index
    %660 = memref.load %arg5[%c33] : memref<288xf32, #tpu.memory_space<smem>>
    %661 = vector.broadcast %660 : f32 to vector<16x16xf32>
    %662 = arith.mulf %661, %656 : vector<16x16xf32>
    %663 = arith.addf %641, %662 : vector<16x16xf32>
    %c105 = arith.constant 105 : index
    %664 = memref.load %arg5[%c105] : memref<288xf32, #tpu.memory_space<smem>>
    %665 = vector.broadcast %664 : f32 to vector<16x16xf32>
    %666 = arith.mulf %665, %656 : vector<16x16xf32>
    %667 = arith.addf %645, %666 : vector<16x16xf32>
    %c177 = arith.constant 177 : index
    %668 = memref.load %arg5[%c177] : memref<288xf32, #tpu.memory_space<smem>>
    %669 = vector.broadcast %668 : f32 to vector<16x16xf32>
    %670 = arith.mulf %669, %656 : vector<16x16xf32>
    %671 = arith.addf %649, %670 : vector<16x16xf32>
    %c249 = arith.constant 249 : index
    %672 = memref.load %arg5[%c249] : memref<288xf32, #tpu.memory_space<smem>>
    %673 = vector.broadcast %672 : f32 to vector<16x16xf32>
    %674 = arith.mulf %673, %656 : vector<16x16xf32>
    %675 = arith.addf %653, %674 : vector<16x16xf32>
    %c34 = arith.constant 34 : index
    %676 = memref.load %arg5[%c34] : memref<288xf32, #tpu.memory_space<smem>>
    %677 = vector.broadcast %676 : f32 to vector<16x16xf32>
    %678 = arith.mulf %677, %545 : vector<16x16xf32>
    %679 = arith.addf %663, %678 : vector<16x16xf32>
    %c106 = arith.constant 106 : index
    %680 = memref.load %arg5[%c106] : memref<288xf32, #tpu.memory_space<smem>>
    %681 = vector.broadcast %680 : f32 to vector<16x16xf32>
    %682 = arith.mulf %681, %545 : vector<16x16xf32>
    %683 = arith.addf %667, %682 : vector<16x16xf32>
    %c178 = arith.constant 178 : index
    %684 = memref.load %arg5[%c178] : memref<288xf32, #tpu.memory_space<smem>>
    %685 = vector.broadcast %684 : f32 to vector<16x16xf32>
    %686 = arith.mulf %685, %545 : vector<16x16xf32>
    %687 = arith.addf %671, %686 : vector<16x16xf32>
    %c250 = arith.constant 250 : index
    %688 = memref.load %arg5[%c250] : memref<288xf32, #tpu.memory_space<smem>>
    %689 = vector.broadcast %688 : f32 to vector<16x16xf32>
    %690 = arith.mulf %689, %545 : vector<16x16xf32>
    %691 = arith.addf %675, %690 : vector<16x16xf32>
    %c35 = arith.constant 35 : index
    %692 = memref.load %arg5[%c35] : memref<288xf32, #tpu.memory_space<smem>>
    %693 = vector.broadcast %692 : f32 to vector<16x16xf32>
    %694 = arith.mulf %693, %659 : vector<16x16xf32>
    %695 = arith.addf %679, %694 : vector<16x16xf32>
    %c107 = arith.constant 107 : index
    %696 = memref.load %arg5[%c107] : memref<288xf32, #tpu.memory_space<smem>>
    %697 = vector.broadcast %696 : f32 to vector<16x16xf32>
    %698 = arith.mulf %697, %659 : vector<16x16xf32>
    %699 = arith.addf %683, %698 : vector<16x16xf32>
    %c179 = arith.constant 179 : index
    %700 = memref.load %arg5[%c179] : memref<288xf32, #tpu.memory_space<smem>>
    %701 = vector.broadcast %700 : f32 to vector<16x16xf32>
    %702 = arith.mulf %701, %659 : vector<16x16xf32>
    %703 = arith.addf %687, %702 : vector<16x16xf32>
    %c251 = arith.constant 251 : index
    %704 = memref.load %arg5[%c251] : memref<288xf32, #tpu.memory_space<smem>>
    %705 = vector.broadcast %704 : f32 to vector<16x16xf32>
    %706 = arith.mulf %705, %659 : vector<16x16xf32>
    %707 = arith.addf %691, %706 : vector<16x16xf32>
    %c0_92 = arith.constant 0 : index
    %c0_93 = arith.constant 0 : index
    %c0_94 = arith.constant 0 : index
    %c0_95 = arith.constant 0 : index
    %708 = vector.load %arg2[%c0_92, %c0_93, %c0_94, %c0_95] : memref<1x4x16x16xf32, #tpu.memory_space<vmem>>, vector<1x1x16x16xf32>
    %709 = vector.shape_cast %708 : vector<1x1x16x16xf32> to vector<16x16xf32>
    %c1_i32_96 = arith.constant 1 : i32
    %710 = tpu.dynamic_rotate %709 by %c1_i32_96 dim 0 : vector<16x16xf32>, i32 -> vector<16x16xf32>
    %cst_97 = arith.constant 0.000000e+00 : f32
    %711 = vector.broadcast %cst_97 : f32 to vector<16x16xf32>
    %712 = arith.select %3, %710, %711 : vector<16x16xi1>, vector<16x16xf32>
    %c15_i32_98 = arith.constant 15 : i32
    %713 = tpu.dynamic_rotate %709 by %c15_i32_98 dim 0 : vector<16x16xf32>, i32 -> vector<16x16xf32>
    %cst_99 = arith.constant 0.000000e+00 : f32
    %714 = vector.broadcast %cst_99 : f32 to vector<16x16xf32>
    %715 = arith.select %5, %713, %714 : vector<16x16xi1>, vector<16x16xf32>
    %c1_i32_100 = arith.constant 1 : i32
    %716 = tpu.dynamic_rotate %712 by %c1_i32_100 dim 1 : vector<16x16xf32>, i32 -> vector<16x16xf32>
    %cst_101 = arith.constant 0.000000e+00 : f32
    %717 = vector.broadcast %cst_101 : f32 to vector<16x16xf32>
    %718 = arith.select %7, %716, %717 : vector<16x16xi1>, vector<16x16xf32>
    %c15_i32_102 = arith.constant 15 : i32
    %719 = tpu.dynamic_rotate %712 by %c15_i32_102 dim 1 : vector<16x16xf32>, i32 -> vector<16x16xf32>
    %cst_103 = arith.constant 0.000000e+00 : f32
    %720 = vector.broadcast %cst_103 : f32 to vector<16x16xf32>
    %721 = arith.select %9, %719, %720 : vector<16x16xi1>, vector<16x16xf32>
    %c36 = arith.constant 36 : index
    %722 = memref.load %arg5[%c36] : memref<288xf32, #tpu.memory_space<smem>>
    %723 = vector.broadcast %722 : f32 to vector<16x16xf32>
    %724 = arith.mulf %723, %718 : vector<16x16xf32>
    %725 = arith.addf %695, %724 : vector<16x16xf32>
    %c108 = arith.constant 108 : index
    %726 = memref.load %arg5[%c108] : memref<288xf32, #tpu.memory_space<smem>>
    %727 = vector.broadcast %726 : f32 to vector<16x16xf32>
    %728 = arith.mulf %727, %718 : vector<16x16xf32>
    %729 = arith.addf %699, %728 : vector<16x16xf32>
    %c180 = arith.constant 180 : index
    %730 = memref.load %arg5[%c180] : memref<288xf32, #tpu.memory_space<smem>>
    %731 = vector.broadcast %730 : f32 to vector<16x16xf32>
    %732 = arith.mulf %731, %718 : vector<16x16xf32>
    %733 = arith.addf %703, %732 : vector<16x16xf32>
    %c252 = arith.constant 252 : index
    %734 = memref.load %arg5[%c252] : memref<288xf32, #tpu.memory_space<smem>>
    %735 = vector.broadcast %734 : f32 to vector<16x16xf32>
    %736 = arith.mulf %735, %718 : vector<16x16xf32>
    %737 = arith.addf %707, %736 : vector<16x16xf32>
    %c37 = arith.constant 37 : index
    %738 = memref.load %arg5[%c37] : memref<288xf32, #tpu.memory_space<smem>>
    %739 = vector.broadcast %738 : f32 to vector<16x16xf32>
    %740 = arith.mulf %739, %712 : vector<16x16xf32>
    %741 = arith.addf %725, %740 : vector<16x16xf32>
    %c109 = arith.constant 109 : index
    %742 = memref.load %arg5[%c109] : memref<288xf32, #tpu.memory_space<smem>>
    %743 = vector.broadcast %742 : f32 to vector<16x16xf32>
    %744 = arith.mulf %743, %712 : vector<16x16xf32>
    %745 = arith.addf %729, %744 : vector<16x16xf32>
    %c181 = arith.constant 181 : index
    %746 = memref.load %arg5[%c181] : memref<288xf32, #tpu.memory_space<smem>>
    %747 = vector.broadcast %746 : f32 to vector<16x16xf32>
    %748 = arith.mulf %747, %712 : vector<16x16xf32>
    %749 = arith.addf %733, %748 : vector<16x16xf32>
    %c253 = arith.constant 253 : index
    %750 = memref.load %arg5[%c253] : memref<288xf32, #tpu.memory_space<smem>>
    %751 = vector.broadcast %750 : f32 to vector<16x16xf32>
    %752 = arith.mulf %751, %712 : vector<16x16xf32>
    %753 = arith.addf %737, %752 : vector<16x16xf32>
    %c38 = arith.constant 38 : index
    %754 = memref.load %arg5[%c38] : memref<288xf32, #tpu.memory_space<smem>>
    %755 = vector.broadcast %754 : f32 to vector<16x16xf32>
    %756 = arith.mulf %755, %721 : vector<16x16xf32>
    %757 = arith.addf %741, %756 : vector<16x16xf32>
    %c110 = arith.constant 110 : index
    %758 = memref.load %arg5[%c110] : memref<288xf32, #tpu.memory_space<smem>>
    %759 = vector.broadcast %758 : f32 to vector<16x16xf32>
    %760 = arith.mulf %759, %721 : vector<16x16xf32>
    %761 = arith.addf %745, %760 : vector<16x16xf32>
    %c182 = arith.constant 182 : index
    %762 = memref.load %arg5[%c182] : memref<288xf32, #tpu.memory_space<smem>>
    %763 = vector.broadcast %762 : f32 to vector<16x16xf32>
    %764 = arith.mulf %763, %721 : vector<16x16xf32>
    %765 = arith.addf %749, %764 : vector<16x16xf32>
    %c254 = arith.constant 254 : index
    %766 = memref.load %arg5[%c254] : memref<288xf32, #tpu.memory_space<smem>>
    %767 = vector.broadcast %766 : f32 to vector<16x16xf32>
    %768 = arith.mulf %767, %721 : vector<16x16xf32>
    %769 = arith.addf %753, %768 : vector<16x16xf32>
    %c1_i32_104 = arith.constant 1 : i32
    %770 = tpu.dynamic_rotate %709 by %c1_i32_104 dim 1 : vector<16x16xf32>, i32 -> vector<16x16xf32>
    %cst_105 = arith.constant 0.000000e+00 : f32
    %771 = vector.broadcast %cst_105 : f32 to vector<16x16xf32>
    %772 = arith.select %7, %770, %771 : vector<16x16xi1>, vector<16x16xf32>
    %c15_i32_106 = arith.constant 15 : i32
    %773 = tpu.dynamic_rotate %709 by %c15_i32_106 dim 1 : vector<16x16xf32>, i32 -> vector<16x16xf32>
    %cst_107 = arith.constant 0.000000e+00 : f32
    %774 = vector.broadcast %cst_107 : f32 to vector<16x16xf32>
    %775 = arith.select %9, %773, %774 : vector<16x16xi1>, vector<16x16xf32>
    %c39 = arith.constant 39 : index
    %776 = memref.load %arg5[%c39] : memref<288xf32, #tpu.memory_space<smem>>
    %777 = vector.broadcast %776 : f32 to vector<16x16xf32>
    %778 = arith.mulf %777, %772 : vector<16x16xf32>
    %779 = arith.addf %757, %778 : vector<16x16xf32>
    %c111 = arith.constant 111 : index
    %780 = memref.load %arg5[%c111] : memref<288xf32, #tpu.memory_space<smem>>
    %781 = vector.broadcast %780 : f32 to vector<16x16xf32>
    %782 = arith.mulf %781, %772 : vector<16x16xf32>
    %783 = arith.addf %761, %782 : vector<16x16xf32>
    %c183 = arith.constant 183 : index
    %784 = memref.load %arg5[%c183] : memref<288xf32, #tpu.memory_space<smem>>
    %785 = vector.broadcast %784 : f32 to vector<16x16xf32>
    %786 = arith.mulf %785, %772 : vector<16x16xf32>
    %787 = arith.addf %765, %786 : vector<16x16xf32>
    %c255 = arith.constant 255 : index
    %788 = memref.load %arg5[%c255] : memref<288xf32, #tpu.memory_space<smem>>
    %789 = vector.broadcast %788 : f32 to vector<16x16xf32>
    %790 = arith.mulf %789, %772 : vector<16x16xf32>
    %791 = arith.addf %769, %790 : vector<16x16xf32>
    %c40 = arith.constant 40 : index
    %792 = memref.load %arg5[%c40] : memref<288xf32, #tpu.memory_space<smem>>
    %793 = vector.broadcast %792 : f32 to vector<16x16xf32>
    %794 = arith.mulf %793, %709 : vector<16x16xf32>
    %795 = arith.addf %779, %794 : vector<16x16xf32>
    %c112 = arith.constant 112 : index
    %796 = memref.load %arg5[%c112] : memref<288xf32, #tpu.memory_space<smem>>
    %797 = vector.broadcast %796 : f32 to vector<16x16xf32>
    %798 = arith.mulf %797, %709 : vector<16x16xf32>
    %799 = arith.addf %783, %798 : vector<16x16xf32>
    %c184 = arith.constant 184 : index
    %800 = memref.load %arg5[%c184] : memref<288xf32, #tpu.memory_space<smem>>
    %801 = vector.broadcast %800 : f32 to vector<16x16xf32>
    %802 = arith.mulf %801, %709 : vector<16x16xf32>
    %803 = arith.addf %787, %802 : vector<16x16xf32>
    %c256 = arith.constant 256 : index
    %804 = memref.load %arg5[%c256] : memref<288xf32, #tpu.memory_space<smem>>
    %805 = vector.broadcast %804 : f32 to vector<16x16xf32>
    %806 = arith.mulf %805, %709 : vector<16x16xf32>
    %807 = arith.addf %791, %806 : vector<16x16xf32>
    %c41 = arith.constant 41 : index
    %808 = memref.load %arg5[%c41] : memref<288xf32, #tpu.memory_space<smem>>
    %809 = vector.broadcast %808 : f32 to vector<16x16xf32>
    %810 = arith.mulf %809, %775 : vector<16x16xf32>
    %811 = arith.addf %795, %810 : vector<16x16xf32>
    %c113 = arith.constant 113 : index
    %812 = memref.load %arg5[%c113] : memref<288xf32, #tpu.memory_space<smem>>
    %813 = vector.broadcast %812 : f32 to vector<16x16xf32>
    %814 = arith.mulf %813, %775 : vector<16x16xf32>
    %815 = arith.addf %799, %814 : vector<16x16xf32>
    %c185 = arith.constant 185 : index
    %816 = memref.load %arg5[%c185] : memref<288xf32, #tpu.memory_space<smem>>
    %817 = vector.broadcast %816 : f32 to vector<16x16xf32>
    %818 = arith.mulf %817, %775 : vector<16x16xf32>
    %819 = arith.addf %803, %818 : vector<16x16xf32>
    %c257 = arith.constant 257 : index
    %820 = memref.load %arg5[%c257] : memref<288xf32, #tpu.memory_space<smem>>
    %821 = vector.broadcast %820 : f32 to vector<16x16xf32>
    %822 = arith.mulf %821, %775 : vector<16x16xf32>
    %823 = arith.addf %807, %822 : vector<16x16xf32>
    %c1_i32_108 = arith.constant 1 : i32
    %824 = tpu.dynamic_rotate %715 by %c1_i32_108 dim 1 : vector<16x16xf32>, i32 -> vector<16x16xf32>
    %cst_109 = arith.constant 0.000000e+00 : f32
    %825 = vector.broadcast %cst_109 : f32 to vector<16x16xf32>
    %826 = arith.select %7, %824, %825 : vector<16x16xi1>, vector<16x16xf32>
    %c15_i32_110 = arith.constant 15 : i32
    %827 = tpu.dynamic_rotate %715 by %c15_i32_110 dim 1 : vector<16x16xf32>, i32 -> vector<16x16xf32>
    %cst_111 = arith.constant 0.000000e+00 : f32
    %828 = vector.broadcast %cst_111 : f32 to vector<16x16xf32>
    %829 = arith.select %9, %827, %828 : vector<16x16xi1>, vector<16x16xf32>
    %c42 = arith.constant 42 : index
    %830 = memref.load %arg5[%c42] : memref<288xf32, #tpu.memory_space<smem>>
    %831 = vector.broadcast %830 : f32 to vector<16x16xf32>
    %832 = arith.mulf %831, %826 : vector<16x16xf32>
    %833 = arith.addf %811, %832 : vector<16x16xf32>
    %c114 = arith.constant 114 : index
    %834 = memref.load %arg5[%c114] : memref<288xf32, #tpu.memory_space<smem>>
    %835 = vector.broadcast %834 : f32 to vector<16x16xf32>
    %836 = arith.mulf %835, %826 : vector<16x16xf32>
    %837 = arith.addf %815, %836 : vector<16x16xf32>
    %c186 = arith.constant 186 : index
    %838 = memref.load %arg5[%c186] : memref<288xf32, #tpu.memory_space<smem>>
    %839 = vector.broadcast %838 : f32 to vector<16x16xf32>
    %840 = arith.mulf %839, %826 : vector<16x16xf32>
    %841 = arith.addf %819, %840 : vector<16x16xf32>
    %c258 = arith.constant 258 : index
    %842 = memref.load %arg5[%c258] : memref<288xf32, #tpu.memory_space<smem>>
    %843 = vector.broadcast %842 : f32 to vector<16x16xf32>
    %844 = arith.mulf %843, %826 : vector<16x16xf32>
    %845 = arith.addf %823, %844 : vector<16x16xf32>
    %c43 = arith.constant 43 : index
    %846 = memref.load %arg5[%c43] : memref<288xf32, #tpu.memory_space<smem>>
    %847 = vector.broadcast %846 : f32 to vector<16x16xf32>
    %848 = arith.mulf %847, %715 : vector<16x16xf32>
    %849 = arith.addf %833, %848 : vector<16x16xf32>
    %c115 = arith.constant 115 : index
    %850 = memref.load %arg5[%c115] : memref<288xf32, #tpu.memory_space<smem>>
    %851 = vector.broadcast %850 : f32 to vector<16x16xf32>
    %852 = arith.mulf %851, %715 : vector<16x16xf32>
    %853 = arith.addf %837, %852 : vector<16x16xf32>
    %c187 = arith.constant 187 : index
    %854 = memref.load %arg5[%c187] : memref<288xf32, #tpu.memory_space<smem>>
    %855 = vector.broadcast %854 : f32 to vector<16x16xf32>
    %856 = arith.mulf %855, %715 : vector<16x16xf32>
    %857 = arith.addf %841, %856 : vector<16x16xf32>
    %c259 = arith.constant 259 : index
    %858 = memref.load %arg5[%c259] : memref<288xf32, #tpu.memory_space<smem>>
    %859 = vector.broadcast %858 : f32 to vector<16x16xf32>
    %860 = arith.mulf %859, %715 : vector<16x16xf32>
    %861 = arith.addf %845, %860 : vector<16x16xf32>
    %c44 = arith.constant 44 : index
    %862 = memref.load %arg5[%c44] : memref<288xf32, #tpu.memory_space<smem>>
    %863 = vector.broadcast %862 : f32 to vector<16x16xf32>
    %864 = arith.mulf %863, %829 : vector<16x16xf32>
    %865 = arith.addf %849, %864 : vector<16x16xf32>
    %c116 = arith.constant 116 : index
    %866 = memref.load %arg5[%c116] : memref<288xf32, #tpu.memory_space<smem>>
    %867 = vector.broadcast %866 : f32 to vector<16x16xf32>
    %868 = arith.mulf %867, %829 : vector<16x16xf32>
    %869 = arith.addf %853, %868 : vector<16x16xf32>
    %c188 = arith.constant 188 : index
    %870 = memref.load %arg5[%c188] : memref<288xf32, #tpu.memory_space<smem>>
    %871 = vector.broadcast %870 : f32 to vector<16x16xf32>
    %872 = arith.mulf %871, %829 : vector<16x16xf32>
    %873 = arith.addf %857, %872 : vector<16x16xf32>
    %c260 = arith.constant 260 : index
    %874 = memref.load %arg5[%c260] : memref<288xf32, #tpu.memory_space<smem>>
    %875 = vector.broadcast %874 : f32 to vector<16x16xf32>
    %876 = arith.mulf %875, %829 : vector<16x16xf32>
    %877 = arith.addf %861, %876 : vector<16x16xf32>
    %c0_112 = arith.constant 0 : index
    %c1_113 = arith.constant 1 : index
    %c0_114 = arith.constant 0 : index
    %c0_115 = arith.constant 0 : index
    %878 = vector.load %arg2[%c0_112, %c1_113, %c0_114, %c0_115] : memref<1x4x16x16xf32, #tpu.memory_space<vmem>>, vector<1x1x16x16xf32>
    %879 = vector.shape_cast %878 : vector<1x1x16x16xf32> to vector<16x16xf32>
    %c1_i32_116 = arith.constant 1 : i32
    %880 = tpu.dynamic_rotate %879 by %c1_i32_116 dim 0 : vector<16x16xf32>, i32 -> vector<16x16xf32>
    %cst_117 = arith.constant 0.000000e+00 : f32
    %881 = vector.broadcast %cst_117 : f32 to vector<16x16xf32>
    %882 = arith.select %3, %880, %881 : vector<16x16xi1>, vector<16x16xf32>
    %c15_i32_118 = arith.constant 15 : i32
    %883 = tpu.dynamic_rotate %879 by %c15_i32_118 dim 0 : vector<16x16xf32>, i32 -> vector<16x16xf32>
    %cst_119 = arith.constant 0.000000e+00 : f32
    %884 = vector.broadcast %cst_119 : f32 to vector<16x16xf32>
    %885 = arith.select %5, %883, %884 : vector<16x16xi1>, vector<16x16xf32>
    %c1_i32_120 = arith.constant 1 : i32
    %886 = tpu.dynamic_rotate %882 by %c1_i32_120 dim 1 : vector<16x16xf32>, i32 -> vector<16x16xf32>
    %cst_121 = arith.constant 0.000000e+00 : f32
    %887 = vector.broadcast %cst_121 : f32 to vector<16x16xf32>
    %888 = arith.select %7, %886, %887 : vector<16x16xi1>, vector<16x16xf32>
    %c15_i32_122 = arith.constant 15 : i32
    %889 = tpu.dynamic_rotate %882 by %c15_i32_122 dim 1 : vector<16x16xf32>, i32 -> vector<16x16xf32>
    %cst_123 = arith.constant 0.000000e+00 : f32
    %890 = vector.broadcast %cst_123 : f32 to vector<16x16xf32>
    %891 = arith.select %9, %889, %890 : vector<16x16xi1>, vector<16x16xf32>
    %c45 = arith.constant 45 : index
    %892 = memref.load %arg5[%c45] : memref<288xf32, #tpu.memory_space<smem>>
    %893 = vector.broadcast %892 : f32 to vector<16x16xf32>
    %894 = arith.mulf %893, %888 : vector<16x16xf32>
    %895 = arith.addf %865, %894 : vector<16x16xf32>
    %c117 = arith.constant 117 : index
    %896 = memref.load %arg5[%c117] : memref<288xf32, #tpu.memory_space<smem>>
    %897 = vector.broadcast %896 : f32 to vector<16x16xf32>
    %898 = arith.mulf %897, %888 : vector<16x16xf32>
    %899 = arith.addf %869, %898 : vector<16x16xf32>
    %c189 = arith.constant 189 : index
    %900 = memref.load %arg5[%c189] : memref<288xf32, #tpu.memory_space<smem>>
    %901 = vector.broadcast %900 : f32 to vector<16x16xf32>
    %902 = arith.mulf %901, %888 : vector<16x16xf32>
    %903 = arith.addf %873, %902 : vector<16x16xf32>
    %c261 = arith.constant 261 : index
    %904 = memref.load %arg5[%c261] : memref<288xf32, #tpu.memory_space<smem>>
    %905 = vector.broadcast %904 : f32 to vector<16x16xf32>
    %906 = arith.mulf %905, %888 : vector<16x16xf32>
    %907 = arith.addf %877, %906 : vector<16x16xf32>
    %c46 = arith.constant 46 : index
    %908 = memref.load %arg5[%c46] : memref<288xf32, #tpu.memory_space<smem>>
    %909 = vector.broadcast %908 : f32 to vector<16x16xf32>
    %910 = arith.mulf %909, %882 : vector<16x16xf32>
    %911 = arith.addf %895, %910 : vector<16x16xf32>
    %c118 = arith.constant 118 : index
    %912 = memref.load %arg5[%c118] : memref<288xf32, #tpu.memory_space<smem>>
    %913 = vector.broadcast %912 : f32 to vector<16x16xf32>
    %914 = arith.mulf %913, %882 : vector<16x16xf32>
    %915 = arith.addf %899, %914 : vector<16x16xf32>
    %c190 = arith.constant 190 : index
    %916 = memref.load %arg5[%c190] : memref<288xf32, #tpu.memory_space<smem>>
    %917 = vector.broadcast %916 : f32 to vector<16x16xf32>
    %918 = arith.mulf %917, %882 : vector<16x16xf32>
    %919 = arith.addf %903, %918 : vector<16x16xf32>
    %c262 = arith.constant 262 : index
    %920 = memref.load %arg5[%c262] : memref<288xf32, #tpu.memory_space<smem>>
    %921 = vector.broadcast %920 : f32 to vector<16x16xf32>
    %922 = arith.mulf %921, %882 : vector<16x16xf32>
    %923 = arith.addf %907, %922 : vector<16x16xf32>
    %c47 = arith.constant 47 : index
    %924 = memref.load %arg5[%c47] : memref<288xf32, #tpu.memory_space<smem>>
    %925 = vector.broadcast %924 : f32 to vector<16x16xf32>
    %926 = arith.mulf %925, %891 : vector<16x16xf32>
    %927 = arith.addf %911, %926 : vector<16x16xf32>
    %c119 = arith.constant 119 : index
    %928 = memref.load %arg5[%c119] : memref<288xf32, #tpu.memory_space<smem>>
    %929 = vector.broadcast %928 : f32 to vector<16x16xf32>
    %930 = arith.mulf %929, %891 : vector<16x16xf32>
    %931 = arith.addf %915, %930 : vector<16x16xf32>
    %c191 = arith.constant 191 : index
    %932 = memref.load %arg5[%c191] : memref<288xf32, #tpu.memory_space<smem>>
    %933 = vector.broadcast %932 : f32 to vector<16x16xf32>
    %934 = arith.mulf %933, %891 : vector<16x16xf32>
    %935 = arith.addf %919, %934 : vector<16x16xf32>
    %c263 = arith.constant 263 : index
    %936 = memref.load %arg5[%c263] : memref<288xf32, #tpu.memory_space<smem>>
    %937 = vector.broadcast %936 : f32 to vector<16x16xf32>
    %938 = arith.mulf %937, %891 : vector<16x16xf32>
    %939 = arith.addf %923, %938 : vector<16x16xf32>
    %c1_i32_124 = arith.constant 1 : i32
    %940 = tpu.dynamic_rotate %879 by %c1_i32_124 dim 1 : vector<16x16xf32>, i32 -> vector<16x16xf32>
    %cst_125 = arith.constant 0.000000e+00 : f32
    %941 = vector.broadcast %cst_125 : f32 to vector<16x16xf32>
    %942 = arith.select %7, %940, %941 : vector<16x16xi1>, vector<16x16xf32>
    %c15_i32_126 = arith.constant 15 : i32
    %943 = tpu.dynamic_rotate %879 by %c15_i32_126 dim 1 : vector<16x16xf32>, i32 -> vector<16x16xf32>
    %cst_127 = arith.constant 0.000000e+00 : f32
    %944 = vector.broadcast %cst_127 : f32 to vector<16x16xf32>
    %945 = arith.select %9, %943, %944 : vector<16x16xi1>, vector<16x16xf32>
    %c48 = arith.constant 48 : index
    %946 = memref.load %arg5[%c48] : memref<288xf32, #tpu.memory_space<smem>>
    %947 = vector.broadcast %946 : f32 to vector<16x16xf32>
    %948 = arith.mulf %947, %942 : vector<16x16xf32>
    %949 = arith.addf %927, %948 : vector<16x16xf32>
    %c120 = arith.constant 120 : index
    %950 = memref.load %arg5[%c120] : memref<288xf32, #tpu.memory_space<smem>>
    %951 = vector.broadcast %950 : f32 to vector<16x16xf32>
    %952 = arith.mulf %951, %942 : vector<16x16xf32>
    %953 = arith.addf %931, %952 : vector<16x16xf32>
    %c192 = arith.constant 192 : index
    %954 = memref.load %arg5[%c192] : memref<288xf32, #tpu.memory_space<smem>>
    %955 = vector.broadcast %954 : f32 to vector<16x16xf32>
    %956 = arith.mulf %955, %942 : vector<16x16xf32>
    %957 = arith.addf %935, %956 : vector<16x16xf32>
    %c264 = arith.constant 264 : index
    %958 = memref.load %arg5[%c264] : memref<288xf32, #tpu.memory_space<smem>>
    %959 = vector.broadcast %958 : f32 to vector<16x16xf32>
    %960 = arith.mulf %959, %942 : vector<16x16xf32>
    %961 = arith.addf %939, %960 : vector<16x16xf32>
    %c49 = arith.constant 49 : index
    %962 = memref.load %arg5[%c49] : memref<288xf32, #tpu.memory_space<smem>>
    %963 = vector.broadcast %962 : f32 to vector<16x16xf32>
    %964 = arith.mulf %963, %879 : vector<16x16xf32>
    %965 = arith.addf %949, %964 : vector<16x16xf32>
    %c121 = arith.constant 121 : index
    %966 = memref.load %arg5[%c121] : memref<288xf32, #tpu.memory_space<smem>>
    %967 = vector.broadcast %966 : f32 to vector<16x16xf32>
    %968 = arith.mulf %967, %879 : vector<16x16xf32>
    %969 = arith.addf %953, %968 : vector<16x16xf32>
    %c193 = arith.constant 193 : index
    %970 = memref.load %arg5[%c193] : memref<288xf32, #tpu.memory_space<smem>>
    %971 = vector.broadcast %970 : f32 to vector<16x16xf32>
    %972 = arith.mulf %971, %879 : vector<16x16xf32>
    %973 = arith.addf %957, %972 : vector<16x16xf32>
    %c265 = arith.constant 265 : index
    %974 = memref.load %arg5[%c265] : memref<288xf32, #tpu.memory_space<smem>>
    %975 = vector.broadcast %974 : f32 to vector<16x16xf32>
    %976 = arith.mulf %975, %879 : vector<16x16xf32>
    %977 = arith.addf %961, %976 : vector<16x16xf32>
    %c50 = arith.constant 50 : index
    %978 = memref.load %arg5[%c50] : memref<288xf32, #tpu.memory_space<smem>>
    %979 = vector.broadcast %978 : f32 to vector<16x16xf32>
    %980 = arith.mulf %979, %945 : vector<16x16xf32>
    %981 = arith.addf %965, %980 : vector<16x16xf32>
    %c122 = arith.constant 122 : index
    %982 = memref.load %arg5[%c122] : memref<288xf32, #tpu.memory_space<smem>>
    %983 = vector.broadcast %982 : f32 to vector<16x16xf32>
    %984 = arith.mulf %983, %945 : vector<16x16xf32>
    %985 = arith.addf %969, %984 : vector<16x16xf32>
    %c194 = arith.constant 194 : index
    %986 = memref.load %arg5[%c194] : memref<288xf32, #tpu.memory_space<smem>>
    %987 = vector.broadcast %986 : f32 to vector<16x16xf32>
    %988 = arith.mulf %987, %945 : vector<16x16xf32>
    %989 = arith.addf %973, %988 : vector<16x16xf32>
    %c266 = arith.constant 266 : index
    %990 = memref.load %arg5[%c266] : memref<288xf32, #tpu.memory_space<smem>>
    %991 = vector.broadcast %990 : f32 to vector<16x16xf32>
    %992 = arith.mulf %991, %945 : vector<16x16xf32>
    %993 = arith.addf %977, %992 : vector<16x16xf32>
    %c1_i32_128 = arith.constant 1 : i32
    %994 = tpu.dynamic_rotate %885 by %c1_i32_128 dim 1 : vector<16x16xf32>, i32 -> vector<16x16xf32>
    %cst_129 = arith.constant 0.000000e+00 : f32
    %995 = vector.broadcast %cst_129 : f32 to vector<16x16xf32>
    %996 = arith.select %7, %994, %995 : vector<16x16xi1>, vector<16x16xf32>
    %c15_i32_130 = arith.constant 15 : i32
    %997 = tpu.dynamic_rotate %885 by %c15_i32_130 dim 1 : vector<16x16xf32>, i32 -> vector<16x16xf32>
    %cst_131 = arith.constant 0.000000e+00 : f32
    %998 = vector.broadcast %cst_131 : f32 to vector<16x16xf32>
    %999 = arith.select %9, %997, %998 : vector<16x16xi1>, vector<16x16xf32>
    %c51 = arith.constant 51 : index
    %1000 = memref.load %arg5[%c51] : memref<288xf32, #tpu.memory_space<smem>>
    %1001 = vector.broadcast %1000 : f32 to vector<16x16xf32>
    %1002 = arith.mulf %1001, %996 : vector<16x16xf32>
    %1003 = arith.addf %981, %1002 : vector<16x16xf32>
    %c123 = arith.constant 123 : index
    %1004 = memref.load %arg5[%c123] : memref<288xf32, #tpu.memory_space<smem>>
    %1005 = vector.broadcast %1004 : f32 to vector<16x16xf32>
    %1006 = arith.mulf %1005, %996 : vector<16x16xf32>
    %1007 = arith.addf %985, %1006 : vector<16x16xf32>
    %c195 = arith.constant 195 : index
    %1008 = memref.load %arg5[%c195] : memref<288xf32, #tpu.memory_space<smem>>
    %1009 = vector.broadcast %1008 : f32 to vector<16x16xf32>
    %1010 = arith.mulf %1009, %996 : vector<16x16xf32>
    %1011 = arith.addf %989, %1010 : vector<16x16xf32>
    %c267 = arith.constant 267 : index
    %1012 = memref.load %arg5[%c267] : memref<288xf32, #tpu.memory_space<smem>>
    %1013 = vector.broadcast %1012 : f32 to vector<16x16xf32>
    %1014 = arith.mulf %1013, %996 : vector<16x16xf32>
    %1015 = arith.addf %993, %1014 : vector<16x16xf32>
    %c52 = arith.constant 52 : index
    %1016 = memref.load %arg5[%c52] : memref<288xf32, #tpu.memory_space<smem>>
    %1017 = vector.broadcast %1016 : f32 to vector<16x16xf32>
    %1018 = arith.mulf %1017, %885 : vector<16x16xf32>
    %1019 = arith.addf %1003, %1018 : vector<16x16xf32>
    %c124 = arith.constant 124 : index
    %1020 = memref.load %arg5[%c124] : memref<288xf32, #tpu.memory_space<smem>>
    %1021 = vector.broadcast %1020 : f32 to vector<16x16xf32>
    %1022 = arith.mulf %1021, %885 : vector<16x16xf32>
    %1023 = arith.addf %1007, %1022 : vector<16x16xf32>
    %c196 = arith.constant 196 : index
    %1024 = memref.load %arg5[%c196] : memref<288xf32, #tpu.memory_space<smem>>
    %1025 = vector.broadcast %1024 : f32 to vector<16x16xf32>
    %1026 = arith.mulf %1025, %885 : vector<16x16xf32>
    %1027 = arith.addf %1011, %1026 : vector<16x16xf32>
    %c268 = arith.constant 268 : index
    %1028 = memref.load %arg5[%c268] : memref<288xf32, #tpu.memory_space<smem>>
    %1029 = vector.broadcast %1028 : f32 to vector<16x16xf32>
    %1030 = arith.mulf %1029, %885 : vector<16x16xf32>
    %1031 = arith.addf %1015, %1030 : vector<16x16xf32>
    %c53 = arith.constant 53 : index
    %1032 = memref.load %arg5[%c53] : memref<288xf32, #tpu.memory_space<smem>>
    %1033 = vector.broadcast %1032 : f32 to vector<16x16xf32>
    %1034 = arith.mulf %1033, %999 : vector<16x16xf32>
    %1035 = arith.addf %1019, %1034 : vector<16x16xf32>
    %c125 = arith.constant 125 : index
    %1036 = memref.load %arg5[%c125] : memref<288xf32, #tpu.memory_space<smem>>
    %1037 = vector.broadcast %1036 : f32 to vector<16x16xf32>
    %1038 = arith.mulf %1037, %999 : vector<16x16xf32>
    %1039 = arith.addf %1023, %1038 : vector<16x16xf32>
    %c197 = arith.constant 197 : index
    %1040 = memref.load %arg5[%c197] : memref<288xf32, #tpu.memory_space<smem>>
    %1041 = vector.broadcast %1040 : f32 to vector<16x16xf32>
    %1042 = arith.mulf %1041, %999 : vector<16x16xf32>
    %1043 = arith.addf %1027, %1042 : vector<16x16xf32>
    %c269 = arith.constant 269 : index
    %1044 = memref.load %arg5[%c269] : memref<288xf32, #tpu.memory_space<smem>>
    %1045 = vector.broadcast %1044 : f32 to vector<16x16xf32>
    %1046 = arith.mulf %1045, %999 : vector<16x16xf32>
    %1047 = arith.addf %1031, %1046 : vector<16x16xf32>
    %c0_132 = arith.constant 0 : index
    %c2_133 = arith.constant 2 : index
    %c0_134 = arith.constant 0 : index
    %c0_135 = arith.constant 0 : index
    %1048 = vector.load %arg2[%c0_132, %c2_133, %c0_134, %c0_135] : memref<1x4x16x16xf32, #tpu.memory_space<vmem>>, vector<1x1x16x16xf32>
    %1049 = vector.shape_cast %1048 : vector<1x1x16x16xf32> to vector<16x16xf32>
    %c1_i32_136 = arith.constant 1 : i32
    %1050 = tpu.dynamic_rotate %1049 by %c1_i32_136 dim 0 : vector<16x16xf32>, i32 -> vector<16x16xf32>
    %cst_137 = arith.constant 0.000000e+00 : f32
    %1051 = vector.broadcast %cst_137 : f32 to vector<16x16xf32>
    %1052 = arith.select %3, %1050, %1051 : vector<16x16xi1>, vector<16x16xf32>
    %c15_i32_138 = arith.constant 15 : i32
    %1053 = tpu.dynamic_rotate %1049 by %c15_i32_138 dim 0 : vector<16x16xf32>, i32 -> vector<16x16xf32>
    %cst_139 = arith.constant 0.000000e+00 : f32
    %1054 = vector.broadcast %cst_139 : f32 to vector<16x16xf32>
    %1055 = arith.select %5, %1053, %1054 : vector<16x16xi1>, vector<16x16xf32>
    %c1_i32_140 = arith.constant 1 : i32
    %1056 = tpu.dynamic_rotate %1052 by %c1_i32_140 dim 1 : vector<16x16xf32>, i32 -> vector<16x16xf32>
    %cst_141 = arith.constant 0.000000e+00 : f32
    %1057 = vector.broadcast %cst_141 : f32 to vector<16x16xf32>
    %1058 = arith.select %7, %1056, %1057 : vector<16x16xi1>, vector<16x16xf32>
    %c15_i32_142 = arith.constant 15 : i32
    %1059 = tpu.dynamic_rotate %1052 by %c15_i32_142 dim 1 : vector<16x16xf32>, i32 -> vector<16x16xf32>
    %cst_143 = arith.constant 0.000000e+00 : f32
    %1060 = vector.broadcast %cst_143 : f32 to vector<16x16xf32>
    %1061 = arith.select %9, %1059, %1060 : vector<16x16xi1>, vector<16x16xf32>
    %c54 = arith.constant 54 : index
    %1062 = memref.load %arg5[%c54] : memref<288xf32, #tpu.memory_space<smem>>
    %1063 = vector.broadcast %1062 : f32 to vector<16x16xf32>
    %1064 = arith.mulf %1063, %1058 : vector<16x16xf32>
    %1065 = arith.addf %1035, %1064 : vector<16x16xf32>
    %c126 = arith.constant 126 : index
    %1066 = memref.load %arg5[%c126] : memref<288xf32, #tpu.memory_space<smem>>
    %1067 = vector.broadcast %1066 : f32 to vector<16x16xf32>
    %1068 = arith.mulf %1067, %1058 : vector<16x16xf32>
    %1069 = arith.addf %1039, %1068 : vector<16x16xf32>
    %c198 = arith.constant 198 : index
    %1070 = memref.load %arg5[%c198] : memref<288xf32, #tpu.memory_space<smem>>
    %1071 = vector.broadcast %1070 : f32 to vector<16x16xf32>
    %1072 = arith.mulf %1071, %1058 : vector<16x16xf32>
    %1073 = arith.addf %1043, %1072 : vector<16x16xf32>
    %c270 = arith.constant 270 : index
    %1074 = memref.load %arg5[%c270] : memref<288xf32, #tpu.memory_space<smem>>
    %1075 = vector.broadcast %1074 : f32 to vector<16x16xf32>
    %1076 = arith.mulf %1075, %1058 : vector<16x16xf32>
    %1077 = arith.addf %1047, %1076 : vector<16x16xf32>
    %c55 = arith.constant 55 : index
    %1078 = memref.load %arg5[%c55] : memref<288xf32, #tpu.memory_space<smem>>
    %1079 = vector.broadcast %1078 : f32 to vector<16x16xf32>
    %1080 = arith.mulf %1079, %1052 : vector<16x16xf32>
    %1081 = arith.addf %1065, %1080 : vector<16x16xf32>
    %c127 = arith.constant 127 : index
    %1082 = memref.load %arg5[%c127] : memref<288xf32, #tpu.memory_space<smem>>
    %1083 = vector.broadcast %1082 : f32 to vector<16x16xf32>
    %1084 = arith.mulf %1083, %1052 : vector<16x16xf32>
    %1085 = arith.addf %1069, %1084 : vector<16x16xf32>
    %c199 = arith.constant 199 : index
    %1086 = memref.load %arg5[%c199] : memref<288xf32, #tpu.memory_space<smem>>
    %1087 = vector.broadcast %1086 : f32 to vector<16x16xf32>
    %1088 = arith.mulf %1087, %1052 : vector<16x16xf32>
    %1089 = arith.addf %1073, %1088 : vector<16x16xf32>
    %c271 = arith.constant 271 : index
    %1090 = memref.load %arg5[%c271] : memref<288xf32, #tpu.memory_space<smem>>
    %1091 = vector.broadcast %1090 : f32 to vector<16x16xf32>
    %1092 = arith.mulf %1091, %1052 : vector<16x16xf32>
    %1093 = arith.addf %1077, %1092 : vector<16x16xf32>
    %c56 = arith.constant 56 : index
    %1094 = memref.load %arg5[%c56] : memref<288xf32, #tpu.memory_space<smem>>
    %1095 = vector.broadcast %1094 : f32 to vector<16x16xf32>
    %1096 = arith.mulf %1095, %1061 : vector<16x16xf32>
    %1097 = arith.addf %1081, %1096 : vector<16x16xf32>
    %c128 = arith.constant 128 : index
    %1098 = memref.load %arg5[%c128] : memref<288xf32, #tpu.memory_space<smem>>
    %1099 = vector.broadcast %1098 : f32 to vector<16x16xf32>
    %1100 = arith.mulf %1099, %1061 : vector<16x16xf32>
    %1101 = arith.addf %1085, %1100 : vector<16x16xf32>
    %c200 = arith.constant 200 : index
    %1102 = memref.load %arg5[%c200] : memref<288xf32, #tpu.memory_space<smem>>
    %1103 = vector.broadcast %1102 : f32 to vector<16x16xf32>
    %1104 = arith.mulf %1103, %1061 : vector<16x16xf32>
    %1105 = arith.addf %1089, %1104 : vector<16x16xf32>
    %c272 = arith.constant 272 : index
    %1106 = memref.load %arg5[%c272] : memref<288xf32, #tpu.memory_space<smem>>
    %1107 = vector.broadcast %1106 : f32 to vector<16x16xf32>
    %1108 = arith.mulf %1107, %1061 : vector<16x16xf32>
    %1109 = arith.addf %1093, %1108 : vector<16x16xf32>
    %c1_i32_144 = arith.constant 1 : i32
    %1110 = tpu.dynamic_rotate %1049 by %c1_i32_144 dim 1 : vector<16x16xf32>, i32 -> vector<16x16xf32>
    %cst_145 = arith.constant 0.000000e+00 : f32
    %1111 = vector.broadcast %cst_145 : f32 to vector<16x16xf32>
    %1112 = arith.select %7, %1110, %1111 : vector<16x16xi1>, vector<16x16xf32>
    %c15_i32_146 = arith.constant 15 : i32
    %1113 = tpu.dynamic_rotate %1049 by %c15_i32_146 dim 1 : vector<16x16xf32>, i32 -> vector<16x16xf32>
    %cst_147 = arith.constant 0.000000e+00 : f32
    %1114 = vector.broadcast %cst_147 : f32 to vector<16x16xf32>
    %1115 = arith.select %9, %1113, %1114 : vector<16x16xi1>, vector<16x16xf32>
    %c57 = arith.constant 57 : index
    %1116 = memref.load %arg5[%c57] : memref<288xf32, #tpu.memory_space<smem>>
    %1117 = vector.broadcast %1116 : f32 to vector<16x16xf32>
    %1118 = arith.mulf %1117, %1112 : vector<16x16xf32>
    %1119 = arith.addf %1097, %1118 : vector<16x16xf32>
    %c129 = arith.constant 129 : index
    %1120 = memref.load %arg5[%c129] : memref<288xf32, #tpu.memory_space<smem>>
    %1121 = vector.broadcast %1120 : f32 to vector<16x16xf32>
    %1122 = arith.mulf %1121, %1112 : vector<16x16xf32>
    %1123 = arith.addf %1101, %1122 : vector<16x16xf32>
    %c201 = arith.constant 201 : index
    %1124 = memref.load %arg5[%c201] : memref<288xf32, #tpu.memory_space<smem>>
    %1125 = vector.broadcast %1124 : f32 to vector<16x16xf32>
    %1126 = arith.mulf %1125, %1112 : vector<16x16xf32>
    %1127 = arith.addf %1105, %1126 : vector<16x16xf32>
    %c273 = arith.constant 273 : index
    %1128 = memref.load %arg5[%c273] : memref<288xf32, #tpu.memory_space<smem>>
    %1129 = vector.broadcast %1128 : f32 to vector<16x16xf32>
    %1130 = arith.mulf %1129, %1112 : vector<16x16xf32>
    %1131 = arith.addf %1109, %1130 : vector<16x16xf32>
    %c58 = arith.constant 58 : index
    %1132 = memref.load %arg5[%c58] : memref<288xf32, #tpu.memory_space<smem>>
    %1133 = vector.broadcast %1132 : f32 to vector<16x16xf32>
    %1134 = arith.mulf %1133, %1049 : vector<16x16xf32>
    %1135 = arith.addf %1119, %1134 : vector<16x16xf32>
    %c130 = arith.constant 130 : index
    %1136 = memref.load %arg5[%c130] : memref<288xf32, #tpu.memory_space<smem>>
    %1137 = vector.broadcast %1136 : f32 to vector<16x16xf32>
    %1138 = arith.mulf %1137, %1049 : vector<16x16xf32>
    %1139 = arith.addf %1123, %1138 : vector<16x16xf32>
    %c202 = arith.constant 202 : index
    %1140 = memref.load %arg5[%c202] : memref<288xf32, #tpu.memory_space<smem>>
    %1141 = vector.broadcast %1140 : f32 to vector<16x16xf32>
    %1142 = arith.mulf %1141, %1049 : vector<16x16xf32>
    %1143 = arith.addf %1127, %1142 : vector<16x16xf32>
    %c274 = arith.constant 274 : index
    %1144 = memref.load %arg5[%c274] : memref<288xf32, #tpu.memory_space<smem>>
    %1145 = vector.broadcast %1144 : f32 to vector<16x16xf32>
    %1146 = arith.mulf %1145, %1049 : vector<16x16xf32>
    %1147 = arith.addf %1131, %1146 : vector<16x16xf32>
    %c59 = arith.constant 59 : index
    %1148 = memref.load %arg5[%c59] : memref<288xf32, #tpu.memory_space<smem>>
    %1149 = vector.broadcast %1148 : f32 to vector<16x16xf32>
    %1150 = arith.mulf %1149, %1115 : vector<16x16xf32>
    %1151 = arith.addf %1135, %1150 : vector<16x16xf32>
    %c131 = arith.constant 131 : index
    %1152 = memref.load %arg5[%c131] : memref<288xf32, #tpu.memory_space<smem>>
    %1153 = vector.broadcast %1152 : f32 to vector<16x16xf32>
    %1154 = arith.mulf %1153, %1115 : vector<16x16xf32>
    %1155 = arith.addf %1139, %1154 : vector<16x16xf32>
    %c203 = arith.constant 203 : index
    %1156 = memref.load %arg5[%c203] : memref<288xf32, #tpu.memory_space<smem>>
    %1157 = vector.broadcast %1156 : f32 to vector<16x16xf32>
    %1158 = arith.mulf %1157, %1115 : vector<16x16xf32>
    %1159 = arith.addf %1143, %1158 : vector<16x16xf32>
    %c275 = arith.constant 275 : index
    %1160 = memref.load %arg5[%c275] : memref<288xf32, #tpu.memory_space<smem>>
    %1161 = vector.broadcast %1160 : f32 to vector<16x16xf32>
    %1162 = arith.mulf %1161, %1115 : vector<16x16xf32>
    %1163 = arith.addf %1147, %1162 : vector<16x16xf32>
    %c1_i32_148 = arith.constant 1 : i32
    %1164 = tpu.dynamic_rotate %1055 by %c1_i32_148 dim 1 : vector<16x16xf32>, i32 -> vector<16x16xf32>
    %cst_149 = arith.constant 0.000000e+00 : f32
    %1165 = vector.broadcast %cst_149 : f32 to vector<16x16xf32>
    %1166 = arith.select %7, %1164, %1165 : vector<16x16xi1>, vector<16x16xf32>
    %c15_i32_150 = arith.constant 15 : i32
    %1167 = tpu.dynamic_rotate %1055 by %c15_i32_150 dim 1 : vector<16x16xf32>, i32 -> vector<16x16xf32>
    %cst_151 = arith.constant 0.000000e+00 : f32
    %1168 = vector.broadcast %cst_151 : f32 to vector<16x16xf32>
    %1169 = arith.select %9, %1167, %1168 : vector<16x16xi1>, vector<16x16xf32>
    %c60 = arith.constant 60 : index
    %1170 = memref.load %arg5[%c60] : memref<288xf32, #tpu.memory_space<smem>>
    %1171 = vector.broadcast %1170 : f32 to vector<16x16xf32>
    %1172 = arith.mulf %1171, %1166 : vector<16x16xf32>
    %1173 = arith.addf %1151, %1172 : vector<16x16xf32>
    %c132 = arith.constant 132 : index
    %1174 = memref.load %arg5[%c132] : memref<288xf32, #tpu.memory_space<smem>>
    %1175 = vector.broadcast %1174 : f32 to vector<16x16xf32>
    %1176 = arith.mulf %1175, %1166 : vector<16x16xf32>
    %1177 = arith.addf %1155, %1176 : vector<16x16xf32>
    %c204 = arith.constant 204 : index
    %1178 = memref.load %arg5[%c204] : memref<288xf32, #tpu.memory_space<smem>>
    %1179 = vector.broadcast %1178 : f32 to vector<16x16xf32>
    %1180 = arith.mulf %1179, %1166 : vector<16x16xf32>
    %1181 = arith.addf %1159, %1180 : vector<16x16xf32>
    %c276 = arith.constant 276 : index
    %1182 = memref.load %arg5[%c276] : memref<288xf32, #tpu.memory_space<smem>>
    %1183 = vector.broadcast %1182 : f32 to vector<16x16xf32>
    %1184 = arith.mulf %1183, %1166 : vector<16x16xf32>
    %1185 = arith.addf %1163, %1184 : vector<16x16xf32>
    %c61 = arith.constant 61 : index
    %1186 = memref.load %arg5[%c61] : memref<288xf32, #tpu.memory_space<smem>>
    %1187 = vector.broadcast %1186 : f32 to vector<16x16xf32>
    %1188 = arith.mulf %1187, %1055 : vector<16x16xf32>
    %1189 = arith.addf %1173, %1188 : vector<16x16xf32>
    %c133 = arith.constant 133 : index
    %1190 = memref.load %arg5[%c133] : memref<288xf32, #tpu.memory_space<smem>>
    %1191 = vector.broadcast %1190 : f32 to vector<16x16xf32>
    %1192 = arith.mulf %1191, %1055 : vector<16x16xf32>
    %1193 = arith.addf %1177, %1192 : vector<16x16xf32>
    %c205 = arith.constant 205 : index
    %1194 = memref.load %arg5[%c205] : memref<288xf32, #tpu.memory_space<smem>>
    %1195 = vector.broadcast %1194 : f32 to vector<16x16xf32>
    %1196 = arith.mulf %1195, %1055 : vector<16x16xf32>
    %1197 = arith.addf %1181, %1196 : vector<16x16xf32>
    %c277 = arith.constant 277 : index
    %1198 = memref.load %arg5[%c277] : memref<288xf32, #tpu.memory_space<smem>>
    %1199 = vector.broadcast %1198 : f32 to vector<16x16xf32>
    %1200 = arith.mulf %1199, %1055 : vector<16x16xf32>
    %1201 = arith.addf %1185, %1200 : vector<16x16xf32>
    %c62 = arith.constant 62 : index
    %1202 = memref.load %arg5[%c62] : memref<288xf32, #tpu.memory_space<smem>>
    %1203 = vector.broadcast %1202 : f32 to vector<16x16xf32>
    %1204 = arith.mulf %1203, %1169 : vector<16x16xf32>
    %1205 = arith.addf %1189, %1204 : vector<16x16xf32>
    %c134 = arith.constant 134 : index
    %1206 = memref.load %arg5[%c134] : memref<288xf32, #tpu.memory_space<smem>>
    %1207 = vector.broadcast %1206 : f32 to vector<16x16xf32>
    %1208 = arith.mulf %1207, %1169 : vector<16x16xf32>
    %1209 = arith.addf %1193, %1208 : vector<16x16xf32>
    %c206 = arith.constant 206 : index
    %1210 = memref.load %arg5[%c206] : memref<288xf32, #tpu.memory_space<smem>>
    %1211 = vector.broadcast %1210 : f32 to vector<16x16xf32>
    %1212 = arith.mulf %1211, %1169 : vector<16x16xf32>
    %1213 = arith.addf %1197, %1212 : vector<16x16xf32>
    %c278 = arith.constant 278 : index
    %1214 = memref.load %arg5[%c278] : memref<288xf32, #tpu.memory_space<smem>>
    %1215 = vector.broadcast %1214 : f32 to vector<16x16xf32>
    %1216 = arith.mulf %1215, %1169 : vector<16x16xf32>
    %1217 = arith.addf %1201, %1216 : vector<16x16xf32>
    %c0_152 = arith.constant 0 : index
    %c3_153 = arith.constant 3 : index
    %c0_154 = arith.constant 0 : index
    %c0_155 = arith.constant 0 : index
    %1218 = vector.load %arg2[%c0_152, %c3_153, %c0_154, %c0_155] : memref<1x4x16x16xf32, #tpu.memory_space<vmem>>, vector<1x1x16x16xf32>
    %1219 = vector.shape_cast %1218 : vector<1x1x16x16xf32> to vector<16x16xf32>
    %c1_i32_156 = arith.constant 1 : i32
    %1220 = tpu.dynamic_rotate %1219 by %c1_i32_156 dim 0 : vector<16x16xf32>, i32 -> vector<16x16xf32>
    %cst_157 = arith.constant 0.000000e+00 : f32
    %1221 = vector.broadcast %cst_157 : f32 to vector<16x16xf32>
    %1222 = arith.select %3, %1220, %1221 : vector<16x16xi1>, vector<16x16xf32>
    %c15_i32_158 = arith.constant 15 : i32
    %1223 = tpu.dynamic_rotate %1219 by %c15_i32_158 dim 0 : vector<16x16xf32>, i32 -> vector<16x16xf32>
    %cst_159 = arith.constant 0.000000e+00 : f32
    %1224 = vector.broadcast %cst_159 : f32 to vector<16x16xf32>
    %1225 = arith.select %5, %1223, %1224 : vector<16x16xi1>, vector<16x16xf32>
    %c1_i32_160 = arith.constant 1 : i32
    %1226 = tpu.dynamic_rotate %1222 by %c1_i32_160 dim 1 : vector<16x16xf32>, i32 -> vector<16x16xf32>
    %cst_161 = arith.constant 0.000000e+00 : f32
    %1227 = vector.broadcast %cst_161 : f32 to vector<16x16xf32>
    %1228 = arith.select %7, %1226, %1227 : vector<16x16xi1>, vector<16x16xf32>
    %c15_i32_162 = arith.constant 15 : i32
    %1229 = tpu.dynamic_rotate %1222 by %c15_i32_162 dim 1 : vector<16x16xf32>, i32 -> vector<16x16xf32>
    %cst_163 = arith.constant 0.000000e+00 : f32
    %1230 = vector.broadcast %cst_163 : f32 to vector<16x16xf32>
    %1231 = arith.select %9, %1229, %1230 : vector<16x16xi1>, vector<16x16xf32>
    %c63 = arith.constant 63 : index
    %1232 = memref.load %arg5[%c63] : memref<288xf32, #tpu.memory_space<smem>>
    %1233 = vector.broadcast %1232 : f32 to vector<16x16xf32>
    %1234 = arith.mulf %1233, %1228 : vector<16x16xf32>
    %1235 = arith.addf %1205, %1234 : vector<16x16xf32>
    %c135 = arith.constant 135 : index
    %1236 = memref.load %arg5[%c135] : memref<288xf32, #tpu.memory_space<smem>>
    %1237 = vector.broadcast %1236 : f32 to vector<16x16xf32>
    %1238 = arith.mulf %1237, %1228 : vector<16x16xf32>
    %1239 = arith.addf %1209, %1238 : vector<16x16xf32>
    %c207 = arith.constant 207 : index
    %1240 = memref.load %arg5[%c207] : memref<288xf32, #tpu.memory_space<smem>>
    %1241 = vector.broadcast %1240 : f32 to vector<16x16xf32>
    %1242 = arith.mulf %1241, %1228 : vector<16x16xf32>
    %1243 = arith.addf %1213, %1242 : vector<16x16xf32>
    %c279 = arith.constant 279 : index
    %1244 = memref.load %arg5[%c279] : memref<288xf32, #tpu.memory_space<smem>>
    %1245 = vector.broadcast %1244 : f32 to vector<16x16xf32>
    %1246 = arith.mulf %1245, %1228 : vector<16x16xf32>
    %1247 = arith.addf %1217, %1246 : vector<16x16xf32>
    %c64 = arith.constant 64 : index
    %1248 = memref.load %arg5[%c64] : memref<288xf32, #tpu.memory_space<smem>>
    %1249 = vector.broadcast %1248 : f32 to vector<16x16xf32>
    %1250 = arith.mulf %1249, %1222 : vector<16x16xf32>
    %1251 = arith.addf %1235, %1250 : vector<16x16xf32>
    %c136 = arith.constant 136 : index
    %1252 = memref.load %arg5[%c136] : memref<288xf32, #tpu.memory_space<smem>>
    %1253 = vector.broadcast %1252 : f32 to vector<16x16xf32>
    %1254 = arith.mulf %1253, %1222 : vector<16x16xf32>
    %1255 = arith.addf %1239, %1254 : vector<16x16xf32>
    %c208 = arith.constant 208 : index
    %1256 = memref.load %arg5[%c208] : memref<288xf32, #tpu.memory_space<smem>>
    %1257 = vector.broadcast %1256 : f32 to vector<16x16xf32>
    %1258 = arith.mulf %1257, %1222 : vector<16x16xf32>
    %1259 = arith.addf %1243, %1258 : vector<16x16xf32>
    %c280 = arith.constant 280 : index
    %1260 = memref.load %arg5[%c280] : memref<288xf32, #tpu.memory_space<smem>>
    %1261 = vector.broadcast %1260 : f32 to vector<16x16xf32>
    %1262 = arith.mulf %1261, %1222 : vector<16x16xf32>
    %1263 = arith.addf %1247, %1262 : vector<16x16xf32>
    %c65 = arith.constant 65 : index
    %1264 = memref.load %arg5[%c65] : memref<288xf32, #tpu.memory_space<smem>>
    %1265 = vector.broadcast %1264 : f32 to vector<16x16xf32>
    %1266 = arith.mulf %1265, %1231 : vector<16x16xf32>
    %1267 = arith.addf %1251, %1266 : vector<16x16xf32>
    %c137 = arith.constant 137 : index
    %1268 = memref.load %arg5[%c137] : memref<288xf32, #tpu.memory_space<smem>>
    %1269 = vector.broadcast %1268 : f32 to vector<16x16xf32>
    %1270 = arith.mulf %1269, %1231 : vector<16x16xf32>
    %1271 = arith.addf %1255, %1270 : vector<16x16xf32>
    %c209 = arith.constant 209 : index
    %1272 = memref.load %arg5[%c209] : memref<288xf32, #tpu.memory_space<smem>>
    %1273 = vector.broadcast %1272 : f32 to vector<16x16xf32>
    %1274 = arith.mulf %1273, %1231 : vector<16x16xf32>
    %1275 = arith.addf %1259, %1274 : vector<16x16xf32>
    %c281 = arith.constant 281 : index
    %1276 = memref.load %arg5[%c281] : memref<288xf32, #tpu.memory_space<smem>>
    %1277 = vector.broadcast %1276 : f32 to vector<16x16xf32>
    %1278 = arith.mulf %1277, %1231 : vector<16x16xf32>
    %1279 = arith.addf %1263, %1278 : vector<16x16xf32>
    %c1_i32_164 = arith.constant 1 : i32
    %1280 = tpu.dynamic_rotate %1219 by %c1_i32_164 dim 1 : vector<16x16xf32>, i32 -> vector<16x16xf32>
    %cst_165 = arith.constant 0.000000e+00 : f32
    %1281 = vector.broadcast %cst_165 : f32 to vector<16x16xf32>
    %1282 = arith.select %7, %1280, %1281 : vector<16x16xi1>, vector<16x16xf32>
    %c15_i32_166 = arith.constant 15 : i32
    %1283 = tpu.dynamic_rotate %1219 by %c15_i32_166 dim 1 : vector<16x16xf32>, i32 -> vector<16x16xf32>
    %cst_167 = arith.constant 0.000000e+00 : f32
    %1284 = vector.broadcast %cst_167 : f32 to vector<16x16xf32>
    %1285 = arith.select %9, %1283, %1284 : vector<16x16xi1>, vector<16x16xf32>
    %c66 = arith.constant 66 : index
    %1286 = memref.load %arg5[%c66] : memref<288xf32, #tpu.memory_space<smem>>
    %1287 = vector.broadcast %1286 : f32 to vector<16x16xf32>
    %1288 = arith.mulf %1287, %1282 : vector<16x16xf32>
    %1289 = arith.addf %1267, %1288 : vector<16x16xf32>
    %c138 = arith.constant 138 : index
    %1290 = memref.load %arg5[%c138] : memref<288xf32, #tpu.memory_space<smem>>
    %1291 = vector.broadcast %1290 : f32 to vector<16x16xf32>
    %1292 = arith.mulf %1291, %1282 : vector<16x16xf32>
    %1293 = arith.addf %1271, %1292 : vector<16x16xf32>
    %c210 = arith.constant 210 : index
    %1294 = memref.load %arg5[%c210] : memref<288xf32, #tpu.memory_space<smem>>
    %1295 = vector.broadcast %1294 : f32 to vector<16x16xf32>
    %1296 = arith.mulf %1295, %1282 : vector<16x16xf32>
    %1297 = arith.addf %1275, %1296 : vector<16x16xf32>
    %c282 = arith.constant 282 : index
    %1298 = memref.load %arg5[%c282] : memref<288xf32, #tpu.memory_space<smem>>
    %1299 = vector.broadcast %1298 : f32 to vector<16x16xf32>
    %1300 = arith.mulf %1299, %1282 : vector<16x16xf32>
    %1301 = arith.addf %1279, %1300 : vector<16x16xf32>
    %c67 = arith.constant 67 : index
    %1302 = memref.load %arg5[%c67] : memref<288xf32, #tpu.memory_space<smem>>
    %1303 = vector.broadcast %1302 : f32 to vector<16x16xf32>
    %1304 = arith.mulf %1303, %1219 : vector<16x16xf32>
    %1305 = arith.addf %1289, %1304 : vector<16x16xf32>
    %c139 = arith.constant 139 : index
    %1306 = memref.load %arg5[%c139] : memref<288xf32, #tpu.memory_space<smem>>
    %1307 = vector.broadcast %1306 : f32 to vector<16x16xf32>
    %1308 = arith.mulf %1307, %1219 : vector<16x16xf32>
    %1309 = arith.addf %1293, %1308 : vector<16x16xf32>
    %c211 = arith.constant 211 : index
    %1310 = memref.load %arg5[%c211] : memref<288xf32, #tpu.memory_space<smem>>
    %1311 = vector.broadcast %1310 : f32 to vector<16x16xf32>
    %1312 = arith.mulf %1311, %1219 : vector<16x16xf32>
    %1313 = arith.addf %1297, %1312 : vector<16x16xf32>
    %c283 = arith.constant 283 : index
    %1314 = memref.load %arg5[%c283] : memref<288xf32, #tpu.memory_space<smem>>
    %1315 = vector.broadcast %1314 : f32 to vector<16x16xf32>
    %1316 = arith.mulf %1315, %1219 : vector<16x16xf32>
    %1317 = arith.addf %1301, %1316 : vector<16x16xf32>
    %c68 = arith.constant 68 : index
    %1318 = memref.load %arg5[%c68] : memref<288xf32, #tpu.memory_space<smem>>
    %1319 = vector.broadcast %1318 : f32 to vector<16x16xf32>
    %1320 = arith.mulf %1319, %1285 : vector<16x16xf32>
    %1321 = arith.addf %1305, %1320 : vector<16x16xf32>
    %c140 = arith.constant 140 : index
    %1322 = memref.load %arg5[%c140] : memref<288xf32, #tpu.memory_space<smem>>
    %1323 = vector.broadcast %1322 : f32 to vector<16x16xf32>
    %1324 = arith.mulf %1323, %1285 : vector<16x16xf32>
    %1325 = arith.addf %1309, %1324 : vector<16x16xf32>
    %c212 = arith.constant 212 : index
    %1326 = memref.load %arg5[%c212] : memref<288xf32, #tpu.memory_space<smem>>
    %1327 = vector.broadcast %1326 : f32 to vector<16x16xf32>
    %1328 = arith.mulf %1327, %1285 : vector<16x16xf32>
    %1329 = arith.addf %1313, %1328 : vector<16x16xf32>
    %c284 = arith.constant 284 : index
    %1330 = memref.load %arg5[%c284] : memref<288xf32, #tpu.memory_space<smem>>
    %1331 = vector.broadcast %1330 : f32 to vector<16x16xf32>
    %1332 = arith.mulf %1331, %1285 : vector<16x16xf32>
    %1333 = arith.addf %1317, %1332 : vector<16x16xf32>
    %c1_i32_168 = arith.constant 1 : i32
    %1334 = tpu.dynamic_rotate %1225 by %c1_i32_168 dim 1 : vector<16x16xf32>, i32 -> vector<16x16xf32>
    %cst_169 = arith.constant 0.000000e+00 : f32
    %1335 = vector.broadcast %cst_169 : f32 to vector<16x16xf32>
    %1336 = arith.select %7, %1334, %1335 : vector<16x16xi1>, vector<16x16xf32>
    %c15_i32_170 = arith.constant 15 : i32
    %1337 = tpu.dynamic_rotate %1225 by %c15_i32_170 dim 1 : vector<16x16xf32>, i32 -> vector<16x16xf32>
    %cst_171 = arith.constant 0.000000e+00 : f32
    %1338 = vector.broadcast %cst_171 : f32 to vector<16x16xf32>
    %1339 = arith.select %9, %1337, %1338 : vector<16x16xi1>, vector<16x16xf32>
    %c69 = arith.constant 69 : index
    %1340 = memref.load %arg5[%c69] : memref<288xf32, #tpu.memory_space<smem>>
    %1341 = vector.broadcast %1340 : f32 to vector<16x16xf32>
    %1342 = arith.mulf %1341, %1336 : vector<16x16xf32>
    %1343 = arith.addf %1321, %1342 : vector<16x16xf32>
    %c141 = arith.constant 141 : index
    %1344 = memref.load %arg5[%c141] : memref<288xf32, #tpu.memory_space<smem>>
    %1345 = vector.broadcast %1344 : f32 to vector<16x16xf32>
    %1346 = arith.mulf %1345, %1336 : vector<16x16xf32>
    %1347 = arith.addf %1325, %1346 : vector<16x16xf32>
    %c213 = arith.constant 213 : index
    %1348 = memref.load %arg5[%c213] : memref<288xf32, #tpu.memory_space<smem>>
    %1349 = vector.broadcast %1348 : f32 to vector<16x16xf32>
    %1350 = arith.mulf %1349, %1336 : vector<16x16xf32>
    %1351 = arith.addf %1329, %1350 : vector<16x16xf32>
    %c285 = arith.constant 285 : index
    %1352 = memref.load %arg5[%c285] : memref<288xf32, #tpu.memory_space<smem>>
    %1353 = vector.broadcast %1352 : f32 to vector<16x16xf32>
    %1354 = arith.mulf %1353, %1336 : vector<16x16xf32>
    %1355 = arith.addf %1333, %1354 : vector<16x16xf32>
    %c70 = arith.constant 70 : index
    %1356 = memref.load %arg5[%c70] : memref<288xf32, #tpu.memory_space<smem>>
    %1357 = vector.broadcast %1356 : f32 to vector<16x16xf32>
    %1358 = arith.mulf %1357, %1225 : vector<16x16xf32>
    %1359 = arith.addf %1343, %1358 : vector<16x16xf32>
    %c142 = arith.constant 142 : index
    %1360 = memref.load %arg5[%c142] : memref<288xf32, #tpu.memory_space<smem>>
    %1361 = vector.broadcast %1360 : f32 to vector<16x16xf32>
    %1362 = arith.mulf %1361, %1225 : vector<16x16xf32>
    %1363 = arith.addf %1347, %1362 : vector<16x16xf32>
    %c214 = arith.constant 214 : index
    %1364 = memref.load %arg5[%c214] : memref<288xf32, #tpu.memory_space<smem>>
    %1365 = vector.broadcast %1364 : f32 to vector<16x16xf32>
    %1366 = arith.mulf %1365, %1225 : vector<16x16xf32>
    %1367 = arith.addf %1351, %1366 : vector<16x16xf32>
    %c286 = arith.constant 286 : index
    %1368 = memref.load %arg5[%c286] : memref<288xf32, #tpu.memory_space<smem>>
    %1369 = vector.broadcast %1368 : f32 to vector<16x16xf32>
    %1370 = arith.mulf %1369, %1225 : vector<16x16xf32>
    %1371 = arith.addf %1355, %1370 : vector<16x16xf32>
    %c71 = arith.constant 71 : index
    %1372 = memref.load %arg5[%c71] : memref<288xf32, #tpu.memory_space<smem>>
    %1373 = vector.broadcast %1372 : f32 to vector<16x16xf32>
    %1374 = arith.mulf %1373, %1339 : vector<16x16xf32>
    %1375 = arith.addf %1359, %1374 : vector<16x16xf32>
    %c143 = arith.constant 143 : index
    %1376 = memref.load %arg5[%c143] : memref<288xf32, #tpu.memory_space<smem>>
    %1377 = vector.broadcast %1376 : f32 to vector<16x16xf32>
    %1378 = arith.mulf %1377, %1339 : vector<16x16xf32>
    %1379 = arith.addf %1363, %1378 : vector<16x16xf32>
    %c215 = arith.constant 215 : index
    %1380 = memref.load %arg5[%c215] : memref<288xf32, #tpu.memory_space<smem>>
    %1381 = vector.broadcast %1380 : f32 to vector<16x16xf32>
    %1382 = arith.mulf %1381, %1339 : vector<16x16xf32>
    %1383 = arith.addf %1367, %1382 : vector<16x16xf32>
    %c287 = arith.constant 287 : index
    %1384 = memref.load %arg5[%c287] : memref<288xf32, #tpu.memory_space<smem>>
    %1385 = vector.broadcast %1384 : f32 to vector<16x16xf32>
    %1386 = arith.mulf %1385, %1339 : vector<16x16xf32>
    %1387 = arith.addf %1371, %1386 : vector<16x16xf32>
    %c0_172 = arith.constant 0 : index
    %1388 = memref.load %arg6[%c0_172] : memref<4xf32, #tpu.memory_space<smem>>
    %1389 = vector.broadcast %1388 : f32 to vector<16x16xf32>
    %1390 = arith.addf %1375, %1389 : vector<16x16xf32>
    %c8_i32_173 = arith.constant 8 : i32
    %1391 = tpu.dynamic_rotate %1390 by %c8_i32_173 dim 0 : vector<16x16xf32>, i32 -> vector<16x16xf32>
    %1392 = arith.mulf %1391, %15 : vector<16x16xf32>
    %c0_174 = arith.constant 0 : index
    %c0_175 = arith.constant 0 : index
    %c0_176 = arith.constant 0 : index
    %c0_177 = arith.constant 0 : index
    %1393 = vector.load %arg1[%c0_174, %c0_175, %c0_176, %c0_177] : memref<1x4x16x16xf32, #tpu.memory_space<vmem>>, vector<1x1x16x16xf32>
    %1394 = vector.shape_cast %1393 : vector<1x1x16x16xf32> to vector<16x16xf32>
    %1395 = arith.addf %1392, %1394 : vector<16x16xf32>
    %c0_178 = arith.constant 0 : index
    %c0_179 = arith.constant 0 : index
    %c0_180 = arith.constant 0 : index
    %c0_181 = arith.constant 0 : index
    %1396 = vector.load %arg7[%c0_178, %c0_179, %c0_180, %c0_181] : memref<1x4x16x16xf32, #tpu.memory_space<vmem>>, vector<1x1x16x16xf32>
    %1397 = vector.shape_cast %1396 : vector<1x1x16x16xf32> to vector<16x16xf32>
    %1398 = vector.shape_cast %1395 : vector<16x16xf32> to vector<1x1x16x16xf32>
    tpu.vector_store %arg7[%c0_178, %c0_179, %c0_180, %c0_181], %1398 {strides = array<i32>} : memref<1x4x16x16xf32, #tpu.memory_space<vmem>>, vector<1x1x16x16xf32>,
    %c1_182 = arith.constant 1 : index
    %1399 = memref.load %arg6[%c1_182] : memref<4xf32, #tpu.memory_space<smem>>
    %1400 = vector.broadcast %1399 : f32 to vector<16x16xf32>
    %1401 = arith.addf %1379, %1400 : vector<16x16xf32>
    %c8_i32_183 = arith.constant 8 : i32
    %1402 = tpu.dynamic_rotate %1401 by %c8_i32_183 dim 0 : vector<16x16xf32>, i32 -> vector<16x16xf32>
    %1403 = arith.mulf %1402, %15 : vector<16x16xf32>
    %c0_184 = arith.constant 0 : index
    %c1_185 = arith.constant 1 : index
    %c0_186 = arith.constant 0 : index
    %c0_187 = arith.constant 0 : index
    %1404 = vector.load %arg1[%c0_184, %c1_185, %c0_186, %c0_187] : memref<1x4x16x16xf32, #tpu.memory_space<vmem>>, vector<1x1x16x16xf32>
    %1405 = vector.shape_cast %1404 : vector<1x1x16x16xf32> to vector<16x16xf32>
    %1406 = arith.addf %1403, %1405 : vector<16x16xf32>
    %c0_188 = arith.constant 0 : index
    %c1_189 = arith.constant 1 : index
    %c0_190 = arith.constant 0 : index
    %c0_191 = arith.constant 0 : index
    %1407 = vector.load %arg7[%c0_188, %c1_189, %c0_190, %c0_191] : memref<1x4x16x16xf32, #tpu.memory_space<vmem>>, vector<1x1x16x16xf32>
    %1408 = vector.shape_cast %1407 : vector<1x1x16x16xf32> to vector<16x16xf32>
    %1409 = vector.shape_cast %1406 : vector<16x16xf32> to vector<1x1x16x16xf32>
    tpu.vector_store %arg7[%c0_188, %c1_189, %c0_190, %c0_191], %1409 {strides = array<i32>} : memref<1x4x16x16xf32, #tpu.memory_space<vmem>>, vector<1x1x16x16xf32>,
    %c2_192 = arith.constant 2 : index
    %1410 = memref.load %arg6[%c2_192] : memref<4xf32, #tpu.memory_space<smem>>
    %1411 = vector.broadcast %1410 : f32 to vector<16x16xf32>
    %1412 = arith.addf %1383, %1411 : vector<16x16xf32>
    %c8_i32_193 = arith.constant 8 : i32
    %1413 = tpu.dynamic_rotate %1412 by %c8_i32_193 dim 0 : vector<16x16xf32>, i32 -> vector<16x16xf32>
    %1414 = arith.mulf %1413, %15 : vector<16x16xf32>
    %c0_194 = arith.constant 0 : index
    %c2_195 = arith.constant 2 : index
    %c0_196 = arith.constant 0 : index
    %c0_197 = arith.constant 0 : index
    %1415 = vector.load %arg1[%c0_194, %c2_195, %c0_196, %c0_197] : memref<1x4x16x16xf32, #tpu.memory_space<vmem>>, vector<1x1x16x16xf32>
    %1416 = vector.shape_cast %1415 : vector<1x1x16x16xf32> to vector<16x16xf32>
    %1417 = arith.addf %1414, %1416 : vector<16x16xf32>
    %c0_198 = arith.constant 0 : index
    %c2_199 = arith.constant 2 : index
    %c0_200 = arith.constant 0 : index
    %c0_201 = arith.constant 0 : index
    %1418 = vector.load %arg7[%c0_198, %c2_199, %c0_200, %c0_201] : memref<1x4x16x16xf32, #tpu.memory_space<vmem>>, vector<1x1x16x16xf32>
    %1419 = vector.shape_cast %1418 : vector<1x1x16x16xf32> to vector<16x16xf32>
    %1420 = vector.shape_cast %1417 : vector<16x16xf32> to vector<1x1x16x16xf32>
    tpu.vector_store %arg7[%c0_198, %c2_199, %c0_200, %c0_201], %1420 {strides = array<i32>} : memref<1x4x16x16xf32, #tpu.memory_space<vmem>>, vector<1x1x16x16xf32>,
    %c3_202 = arith.constant 3 : index
    %1421 = memref.load %arg6[%c3_202] : memref<4xf32, #tpu.memory_space<smem>>
    %1422 = vector.broadcast %1421 : f32 to vector<16x16xf32>
    %1423 = arith.addf %1387, %1422 : vector<16x16xf32>
    %c8_i32_203 = arith.constant 8 : i32
    %1424 = tpu.dynamic_rotate %1423 by %c8_i32_203 dim 0 : vector<16x16xf32>, i32 -> vector<16x16xf32>
    %1425 = arith.mulf %1424, %15 : vector<16x16xf32>
    %c0_204 = arith.constant 0 : index
    %c3_205 = arith.constant 3 : index
    %c0_206 = arith.constant 0 : index
    %c0_207 = arith.constant 0 : index
    %1426 = vector.load %arg1[%c0_204, %c3_205, %c0_206, %c0_207] : memref<1x4x16x16xf32, #tpu.memory_space<vmem>>, vector<1x1x16x16xf32>
    %1427 = vector.shape_cast %1426 : vector<1x1x16x16xf32> to vector<16x16xf32>
    %1428 = arith.addf %1425, %1427 : vector<16x16xf32>
    %c0_208 = arith.constant 0 : index
    %c3_209 = arith.constant 3 : index
    %c0_210 = arith.constant 0 : index
    %c0_211 = arith.constant 0 : index
    %1429 = vector.load %arg7[%c0_208, %c3_209, %c0_210, %c0_211] : memref<1x4x16x16xf32, #tpu.memory_space<vmem>>, vector<1x1x16x16xf32>
    %1430 = vector.shape_cast %1429 : vector<1x1x16x16xf32> to vector<16x16xf32>
    %1431 = vector.shape_cast %1428 : vector<16x16xf32> to vector<1x1x16x16xf32>
    tpu.vector_store %arg7[%c0_208, %c3_209, %c0_210, %c0_211], %1431 {strides = array<i32>} : memref<1x4x16x16xf32, #tpu.memory_space<vmem>>, vector<1x1x16x16xf32>,
    return
  }
  func.func @transform_0(%arg0: i32) -> (i32, i32, i32, i32) {
    %c0_i32 = arith.constant 0 : i32
    %c0_i32_0 = arith.constant 0 : i32
    %c0_i32_1 = arith.constant 0 : i32
    %c0_i32_2 = arith.constant 0 : i32
    return %arg0, %c0_i32, %c0_i32_0, %c0_i32_1 : i32, i32, i32, i32
  }
  func.func @transform_1(%arg0: i32) -> (i32, i32, i32, i32) {
    %c0_i32 = arith.constant 0 : i32
    %c0_i32_0 = arith.constant 0 : i32
    %c0_i32_1 = arith.constant 0 : i32
    %c0_i32_2 = arith.constant 0 : i32
    return %arg0, %c0_i32, %c0_i32_0, %c0_i32_1 : i32, i32, i32, i32
  }
  func.func @transform_2(%arg0: i32) -> (i32, i32) {
    %c0_i32 = arith.constant 0 : i32
    %c0_i32_0 = arith.constant 0 : i32
    %c0_i32_1 = arith.constant 0 : i32
    return %c0_i32, %c0_i32_0 : i32, i32
  }
  func.func @transform_3(%arg0: i32) -> (i32, i32) {
    %c0_i32 = arith.constant 0 : i32
    %c0_i32_0 = arith.constant 0 : i32
    %c0_i32_1 = arith.constant 0 : i32
    return %c0_i32, %c0_i32_0 : i32, i32
  }
  func.func @transform_4(%arg0: i32) -> i32 {
    %c0_i32 = arith.constant 0 : i32
    %c0_i32_0 = arith.constant 0 : i32
    return %c0_i32 : i32
  }
  func.func @transform_5(%arg0: i32) -> i32 {
    %c0_i32 = arith.constant 0 : i32
    %c0_i32_0 = arith.constant 0 : i32
    return %c0_i32 : i32
  }
  func.func @transform_6(%arg0: i32) -> (i32, i32, i32, i32) {
    %c0_i32 = arith.constant 0 : i32
    %c0_i32_0 = arith.constant 0 : i32
    %c0_i32_1 = arith.constant 0 : i32
    %c0_i32_2 = arith.constant 0 : i32
    return %arg0, %c0_i32, %c0_i32_0, %c0_i32_1 : i32, i32, i32, i32
  }
}

</mosaic_0001>

<bundles_post_ra>
// kernel: tpu_custom_call.1
= control target key start
LH: loop header
LB: loop body
LE: loop exit
PB: predicated region body
PF: predicated region fallthrough
CT: control target
= control target key end

     0   :  { %s7763_s0 = inlined_call_operand.hbm [shape: f32[4,4,16,16], index: 0, kind: input, shape index: {}]   ;;  %s7764_s1 = inlined_call_operand.hbm [shape: f32[4,4,16,16], index: 1, kind: input, shape index: {}]   ;;  %s7765_s2 = inlined_call_operand.vmem [shape: f32[16,1], index: 2, kind: input, shape index: {}]   ;;  %s7766_s3 = inlined_call_operand.vmem [shape: f32[16,1], index: 3, kind: input, shape index: {}]   ;;  %s7767_s4 = inlined_call_operand.vmem [shape: f32[288], index: 4, kind: input, shape index: {}]   ;;  %s7768_s5 = inlined_call_operand.vmem [shape: f32[4], index: 5, kind: input, shape index: {}]   ;;  %s7769_s6 = inlined_call_operand.hbm [shape: f32[4,4,16,16], index: 6, kind: output, shape index: {}]  }
   0x1   :  { %8081 = sst [smem:[#allocation311_spill]] %s7763_s0 }
   0x2   :  { %8082 = sst [smem:[#allocation312_spill]] %s7764_s1 }
   0x3   :  { %8083 = sst [smem:[#allocation313_spill]] %s7765_s2 }
   0x4   :  { %8084 = sst [smem:[#allocation314_spill]] %s7766_s3 }
   0x5   :  { %8085 = sst [smem:[#allocation315_spill]] %s7767_s4 }
   0x6   :  { %8086 = sst [smem:[#allocation316_spill]] %s7768_s5 }
   0x7   :  { %8087 = sst [smem:[#allocation317_spill]] %s7769_s6 }
   0x8   :  { %11 = vsyncpa [#allocation3], 0 }
   0x9   :  { %13 = vsyncpa [#allocation3 + $0x1], 0 }
   0xa   :  { %14 = vsyncpa [#allocation7], 0 }
   0xb   :  { %16 = vsyncpa [#allocation7 + $0x1], 0 }
   0xc   :  { %17 = vsyncpa [#allocation5], 0 }
   0xd   :  { %18 = vsyncpa [#allocation10], 0 }
   0xe   :  { %19 = vsyncpa [#allocation4], 0 }
   0xf   :  { %21 = vsyncpa [#allocation4 + $0x1], 0  ;;  %s3789_s21 = smov 0   ;;  %s3791_s22 = smov 0  }
  0x10   :  { %s3793_s23 = smov 0   ;;  %s3795_s24 = smov 0  }
  0x11 LB: > { %8088 = sst [smem:[#allocation17_spill]] %s3727_s21  ;;  %s3810_s25 = sadd.s32 4294967295, %s3739_s24   ;;  %s3739_s24 = sphi %s3795_s24, %s9320_s24   ;;  %s3735_s23 = sphi %s3793_s23, %s9323_s23   ;;  %s3731_s22 = sphi %s3791_s22, %s9322_s22   ;;  %s3727_s21 = sphi %s3789_s21, %s9321_s21  }
  0x12   : > { %8089 = sst [smem:[#allocation18_spill]] %s3731_s22  ;;  %s3131_s26 = sadd.s32 4294967294, %s3739_s24  }
  0x13   : > { %8090 = sst [smem:[#allocation19_spill]] %s3735_s23  ;;  %s3814_s27 = sadd.s32 1, %s3739_s24  }
  0x14   : > { %8091 = sst [smem:[#allocation20_spill]] %s3739_s24  ;;  %s34_s28 = sadd.s32 1, %s3735_s23 }
  0x15   : > { %8092 = sst [smem:[#allocation21_spill]] %s3810_s25  ;;  %s31_s29 = ssub.s32 %s3739_s24, %s3814_s27 }
  0x16   : > { %8093 = sst [smem:[#allocation22_spill]] %s3814_s27  ;;  %p41_p0 = scmp.ne.s32.totalorder %s3735_s23, %s3731_s22 }
  0x17   : > { %p32_p1 = scmp.eq.s32.totalorder %s31_s29, 0  ;;  %p42_p2 = scmp.eq.s32.totalorder %s3739_s24, 0 }
  0x18   : > { %p47_p3 = scmp.ne.s32.totalorder %s3731_s22, %s3727_s21  ;;  %p7770_p4 = scmp.eq.s32.totalorder %s3810_s25, 0 }
  0x19   : > { %s3826_s30 = scalar_select %p32_p1, %s3735_s23, %s34_s28  }
  0x1a   : > { %p3828_p5 = por %p42_p2, %p41_p0  ;;  %p3834_p6 = por %p7770_p4, %p47_p3 }
  0x1b   : > { %8094 = sst [smem:[#allocation23_spill]] %s3826_s30  ;;  %p181_p7 = scmp.eq.s32.totalorder %s3810_s25, 3 }
  0x1c   : > { %s8096_s8 = scalar_select %p3834_p6, 1, 0 }
  0x1d   : > { %p187_p8 = scmp.eq.s32.totalorder %s3131_s26, 3  ;;  %p3132_p9 = scmp.ge.s32.totalorder %s3739_s24, 1 }
  0x1e   : > { %p194_p10 = scmp.lt.s32.totalorder %s3739_s24, 5  ;;  %p3841_p11 = por %p181_p7, %p41_p0 }
  0x1f   : > { %p3845_p12 = por %p187_p8, %p47_p3  ;;  %s8102_s4 = sld [smem:[#allocation315_spill]] }
  0x20   : > { %s8097_s9 = scalar_select %p3841_p11, 1, 0 }
  0x21   : > { %s8099_s10 = scalar_select %p3845_p12, 1, 0 }
  0x22   : > { %8098 = sst [smem:[#allocation24_spill]] %s8097_s9  ;;  %p3849_p13 = pnand %p3132_p9, %p194_p10 }
  0x23   : > { %8100 = sst [smem:[#allocation25_spill]] %s8099_s10  ;;  %p3504_p0 = scmp.lt.s32.totalorder %s3739_s24, 4 }
  0x24   : > { %s8101_s11 = scalar_select %p3849_p13, 1, 0 }
  0x25   : > { %s213_s14 = sshll.u32 %s8102_s4, 4  ;;  %p3484_p1 = pneg %p3849_p13  ;;  %s214_s14 = int_to_ptr.vmem [resolvable:$true] %s213_s14 }
  0x26   : > { %s8104_s5 = sld [smem:[#allocation316_spill]]  ;;  %p3870_p3 = pnand %p3504_p0, %p3828_p5 }
  0x27   : > { %p3861_p2 = pnand %p3484_p1, %p7770_p4  ;;  %s3571_s20 = scalar_lea.vmem %s214_s14, 48 }
  0x28   : > { %p3572_p7 = scmp.ne.s32.totalorder %s214_s14, %s3571_s20  ;;  %s3578_s26 = scalar_lea.vmem %s214_s14, 64 }
  0x29   : > { %p3573_p8 = pneg %p3861_p2  ;;  %p3579_p1 = scmp.lt.s32.totalorder %s214_s14, %s214_s14 }
  0x2a   : > { %p3580_p4 = scmp.lt.s32.totalorder %s3578_s26, %s3571_s20 }
  0x2b   : > { %p3574_p9 = pnand %p3573_p8, %p3572_p7 }
  0x2c   : > { %s224_s18 = sshll.u32 %s8104_s5, 4  ;;  %p3581_p12 = por %p3580_p4, %p3579_p1  ;;  %s225_s18 = int_to_ptr.vmem [resolvable:$true] %s224_s18 }
  0x2d   : > { %p3575_p10 = pneg %p3574_p9 }
  0x2f   : > { %p3582_p11 = pnand %p3581_p12, %p3575_p10 }
  0x31   : > { %3585 = shalt.err (!%p3582_p11)
}
  0x32   : > { %s3741_s28 = smov [#allocation8]   ;;  %s3882_s29 = sand.u32 1, %s3735_s23  }
  0x33   : > { %3487 = dma.vmem_to_smem (!%p3861_p2), %s214_s14, 48, %s3741_s28, [#allocation5]  }
  0x34   : > { %s3586_s7 = scalar_lea.vmem %s225_s18, 16  ;;  %p3594_p9 = scmp.lt.s32.totalorder %s225_s18, %s225_s18 }
  0x35   : > { %p3587_p5 = scmp.ne.s32.totalorder %s225_s18, %s3586_s7  ;;  %p3595_p6 = scmp.lt.s32.totalorder %s3586_s7, %s3586_s7 }
  0x37   : > { %p3589_p0 = pnand %p3587_p5, %p3573_p8  ;;  %p3596_p13 = por %p3595_p6, %p3594_p9 }
  0x39   : > { %p3590_p7 = pneg %p3589_p0 }
  0x3b   : > { %p3597_p4 = pnand %p3596_p13, %p3590_p7 }
  0x3d   : > { %3600 = shalt.err (!%p3597_p4)
}
  0x3e   : > { %s3742_s12 = smov [#allocation9]   ;;  %s3136_s13 = sshll.u32 %s3882_s29, 6 }
  0x3f   : > { %3490 = dma.vmem_to_smem (!%p3861_p2), %s225_s18, 16, %s3742_s12, [#allocation10]  }
  0x40   : > { %s7774_s14 = sshll.u32 %s3739_s24, 10  ;;  %s8106_s0 = sld [smem:[#allocation311_spill]] }
  0x41   : > { %s239_s15 = scalar_lea.vmem [#allocation2], %s3136_s13  ;;  %s236_s28 = scalar_lea.sflag [#allocation3], %s3882_s29 }
  0x42   : > { %s246_s26 = sshll.u32 %s239_s15, 4  ;;  %p3603_p11 = pneg %p3870_p3  ;;  %s3900_s26 = int_to_ptr.vmem [resolvable:$true] %s246_s26 }
  0x46   : > { %s3896_s20 = scalar_lea.hbm %s8106_s0, %s7774_s14  ;;  %s3606_s16 = scalar_lea.hbm %s8106_s0, 4096 }
  0x47   : > { %s3601_s7 = scalar_lea.hbm %s3896_s20, 1024  ;;  %p3607_p2 = scmp.lt.u32.totalorder %s3896_s20, %s8106_s0 }
  0x48   : > { %p3602_p6 = scmp.ne.s32.totalorder %s3896_s20, %s3601_s7  ;;  %p3608_p8 = scmp.lt.u32.totalorder %s3606_s16, %s3601_s7 }
  0x49   : > { %p3610_p1 = scmp.lt.u32.totalorder %s3601_s7, %s3896_s20 }
  0x4a   : > { %p3604_p12 = pnand %p3603_p11, %p3602_p6  ;;  %p3609_p10 = por %p3608_p8, %p3607_p2 }
  0x4c   : > { %p3605_p13 = pneg %p3604_p12  ;;  %p3611_p5 = por %p3610_p1, %p3609_p10 }
  0x4e   : > { %p3612_p0 = pnand %p3611_p5, %p3605_p13 }
  0x50   : > { %3615 = shalt.err (!%p3612_p0)
}
  0x51   : > { %s3616_s15 = scalar_lea.vmem %s3900_s26, 1024  ;;  %s3743_s18 = smov [#allocation2]  }
  0x52   : > { %p3617_p7 = scmp.ne.s32.totalorder %s3900_s26, %s3616_s15  ;;  %s3621_s12 = sshll.u32 %s3743_s18, 4  ;;  %s3622_s12 = int_to_ptr.vmem [resolvable:$false] %s3621_s12 }
  0x53   : > { %s3623_s14 = scalar_lea.vmem %s3622_s12, 2048  ;;  %p3624_p6 = scmp.lt.s32.totalorder %s3900_s26, %s3622_s12 }
  0x54   : > { %p3619_p9 = pnand %p3617_p7, %p3603_p11  ;;  %p3625_p12 = scmp.lt.s32.totalorder %s3623_s14, %s3616_s15 }
  0x56   : > { %p3620_p4 = pneg %p3619_p9  ;;  %p3626_p2 = por %p3625_p12, %p3624_p6 }
  0x58   : > { %p3627_p8 = pnand %p3626_p2, %p3620_p4 }
  0x5a   : > { %3630 = shalt.err (!%p3627_p8)
}
  0x5b   : > { %s3744_s7 = smov 128   ;;  %s3745_s16 = smov 8  }
  0x5c   : > { %3494 = dma.hbm_to_vmem [thread:$0]  (!%p3870_p3), %s3896_s20, 1024, %s3900_s26, %s236_s28, %s3744_s7, %s3744_s7, %s3745_s16  }
  0x5d   : > { %s8107_s17 = sshll.u32 %s3739_s24, 10  ;;  %s8108_s1 = sld [smem:[#allocation312_spill]] }
  0x5e   : > { %s260_s14 = scalar_lea.vmem [#allocation6], %s3136_s13  ;;  %s257_s4 = scalar_lea.sflag [#allocation7], %s3882_s29 }
  0x5f   : > { %s267_s0 = sshll.u32 %s260_s14, 4  ;;  %s3942_s0 = int_to_ptr.vmem [resolvable:$true] %s267_s0 }
  0x63   : > { %s3938_s12 = scalar_lea.hbm %s8108_s1, %s8107_s17  ;;  %s3636_s28 = scalar_lea.hbm %s8108_s1, 4096 }
  0x64   : > { %s3631_s5 = scalar_lea.hbm %s3938_s12, 1024  ;;  %p3637_p5 = scmp.lt.u32.totalorder %s3938_s12, %s8108_s1 }
  0x65   : > { %p3632_p13 = scmp.ne.s32.totalorder %s3938_s12, %s3631_s5  ;;  %p3638_p0 = scmp.lt.u32.totalorder %s3636_s28, %s3631_s5 }
  0x66   : > { %p3640_p9 = scmp.lt.u32.totalorder %s3631_s5, %s3938_s12 }
  0x67   : > { %p3634_p10 = pnand %p3632_p13, %p3603_p11  ;;  %p3639_p7 = por %p3638_p0, %p3637_p5 }
  0x69   : > { %p3635_p1 = pneg %p3634_p10  ;;  %p3641_p4 = por %p3640_p9, %p3639_p7 }
  0x6b   : > { %p3642_p6 = pnand %p3641_p4, %p3635_p1 }
  0x6d   : > { %3645 = shalt.err (!%p3642_p6)
}
  0x6e   : > { %s3646_s13 = scalar_lea.vmem %s3942_s0, 1024  ;;  %s3746_s18 = smov [#allocation6]  }
  0x6f   : > { %p3647_p12 = scmp.ne.s32.totalorder %s3942_s0, %s3646_s13  ;;  %s3651_s14 = sshll.u32 %s3746_s18, 4  ;;  %s3652_s14 = int_to_ptr.vmem [resolvable:$false] %s3651_s14 }
  0x70   : > { %s3653_s20 = scalar_lea.vmem %s3652_s14, 2048  ;;  %p3654_p13 = scmp.lt.s32.totalorder %s3942_s0, %s3652_s14 }
  0x71   : > { %p3649_p2 = pnand %p3647_p12, %p3603_p11  ;;  %p3655_p10 = scmp.lt.s32.totalorder %s3653_s20, %s3646_s13 }
  0x73   : > { %p3650_p8 = pneg %p3649_p2  ;;  %p3656_p5 = por %p3655_p10, %p3654_p13 }
  0x75   : > { %p3657_p0 = pnand %p3656_p5, %p3650_p8 }
  0x77   : > { %3660 = shalt.err (!%p3657_p0)
}
  0x78   : > { %3497 = dma.hbm_to_vmem [thread:$0]  (!%p3870_p3), %s3938_s12, 1024, %s3942_s0, %s257_s4, %s3744_s7, %s3744_s7, %s3745_s16  }
  0x79   : > { %p8109_p11 = scmp.ne.s32.totalorder %s8101_s11, 0 }
  0x7b   : > { %279 = sbr.rel (%p8109_p11) target bundleno = 1167 (0x48f), region = 44 }
  0x82   : > { %s3976_s5 = sand.u32 1, %s3731_s22   ;;  %p8113_p1 = scmp.ne.s32.totalorder %s8096_s8, 0 }
  0x83   : > { %8110 = sst [smem:[#allocation26_spill]] %s3976_s5  ;;  %s3979_s26 = sshll.u32 %s3976_s5, 6 }
  0x84   : > { %8111 = sst [smem:[#allocation27_spill]] %s3979_s26  ;;  %s282_s19 = scalar_lea.sflag [#allocation3], %s3976_s5 }
  0x85   : > { %s3983_s28 = scalar_lea.vmem [#allocation2], %s3979_s26 }
  0x86   : > { %8112 = sst [smem:[#allocation28_spill]] %s3983_s28 }
  0x87   : > { %3706 = dma.done.wait (%p8113_p1), %s282_s19, 1024  }
  0x88   : > { %3708 = vsyncadd (%p8113_p1), %s282_s19, 4294966272  ;;  %s291_s0 = scalar_lea.sflag [#allocation7], %s3976_s5  ;;  %s3991_s4 = scalar_lea.vmem [#allocation6], %s3979_s26 }
  0x89   : > { %8114 = sst [smem:[#allocation29_spill]] %s3991_s4 }
  0x8a   : > { %3710 = dma.done.wait (%p8113_p1), %s291_s0, 1024  }
  0x8b   : > { %3712 = vsyncadd (%p8113_p1), %s291_s0, 4294966272  ;;  %p8115_p3 = scmp.eq.s32.totalorder %s3810_s25, 0 }
  0x8d   : > { %3714 = dma.done.wait (%p8115_p3), [#allocation5], 48   ;;  %p8116_p7 = pmov %p8115_p3 }
  0x8e   : > { %p8117_p9 = pmov %p8115_p3 }
  0x8f   : > { %3716 = vsyncadd (%p8116_p7), [#allocation5], 4294967248 }
  0x90   : > { %3718 = dma.done.wait (%p8117_p9), [#allocation10], 16   ;;  %p8118_p4 = pmov %p8115_p3 }
  0x92   : > { %3720 = vsyncadd (%p8118_p4), [#allocation10], 4294967280 }
  0x93   : > { %307 = sfence }
  0x94   : > { %s8119_s3 = sld [smem:[#allocation314_spill]]  ;;  %s8120_s2 = sld [smem:[#allocation313_spill]]  ;;  %v7775_v2 = vlaneseq  ;;  %v3747_v3 = vmov 0   ;;  %v4012_v4 = vld [vmem:[%s3991_s4] sm:$0xff]  ;;  %v4015_v5 = vld [vmem:[%s3991_s4 + $0x8] sm:$0xff]  ;;  %v4047_v17 = vld [vmem:[%s3991_s4 + $0x10] sm:$0xff] }
  0x95   : > { %3551 = vset.pattern.permute.xlu1 %v3747_v3  ;;  %3550 = vset.pattern.permute.xlu0 %v3747_v3  ;;  %v1668_v7 = vrot.slane %v4012_v4, 7  ;;  %v1669_v8 = vrot.slane %v4015_v5, 7  ;;  %v1674_v14 = vrot.slane %v4012_v4, 1  ;;  %v1675_v15 = vrot.slane %v4015_v5, 1  ;;  %v4050_v18 = vld [vmem:[%s3991_s4 + $0x18] sm:$0xff]  ;;  %s7788_s13 = smov 16  }
  0x96   : > { %v4018_v6 = vshrl.u32 %v7775_v2, 7  ;;  %v1989_v20 = vrot.slane %v4047_v17, 7  ;;  %v1990_v21 = vrot.slane %v4050_v18, 7  ;;  %v1995_v27 = vrot.slane %v4047_v17, 1  ;;  %v4090_v29 = vld [vmem:[%s3991_s4 + $0x20] sm:$0xff]  ;;  %v4093_v30 = vld [vmem:[%s3991_s4 + $0x28] sm:$0xff] }
  0x97   : > { %v1996_v28 = vrot.slane %v4050_v18, 1  ;;  %v2310_v32 = vrot.slane %v4090_v29, 7  ;;  %v2311_v33 = vrot.slane %v4093_v30, 7  ;;  %v2316_v39 = vrot.slane %v4090_v29, 1  ;;  %v3409_v41 = vld [vmem:[%s3991_s4 + $0x30] sm:$0xff]  ;;  %v3410_v42 = vld [vmem:[%s3991_s4 + $0x38] sm:$0xff] }
  0x98   : > { %vm378_vm0 = vcmp.lt.s32.totalorder %v4018_v6, 1  ;;  %vm342_vm1 = vcmp.ge.s32.totalorder %v4018_v6, 1  ;;  %v4043_v16 = vadd.s32 8, %v4018_v6  ;;  %vm385_vm2 = vcmp.lt.s32.totalorder %v4018_v6, 7  ;;  %s7797_s18 = smov 113   ;;  %s7790_s14 = smov 127  }
  0x99   : > { %v1671_v11 = vsel %vm378_vm0, %v1669_v8, %v1668_v7  ;;  %v4034_v12 = vsel %vm378_vm0, %v1668_v7, %v1669_v8  ;;  %v1677_v19 = vsel %vm385_vm2, %v1675_v15, %v1674_v14  ;;  %v4067_v22 = vsel %vm385_vm2, %v1674_v14, %v1675_v15  ;;  %s4581_s20 = sld [smem:[#allocation8 + $0x4]]  ;;  %s4585_s0 = sld [smem:[#allocation8 + $0x1]] }
  0x9a   : > { %v360_v0 = vld [vmem:[%s8119_s3] sm:$0xff]  ;;  %v361_v9 = vld [vmem:[%s8119_s3 + $0x8] sm:$0xff]  ;;  %8121 = vst [vmem:[#allocation30_spill] sm:$0xff] %v4034_v12  ;;  %v4038_v13 = vsel %vm342_vm1, %v1671_v11, 0.0  ;;  %vm345_vm3 = vcmp.lt.s32.totalorder %v4043_v16, 15  ;;  %v1992_v24 = vsel %vm378_vm0, %v1990_v21, %v1989_v20  ;;  %v4081_v25 = vsel %vm378_vm0, %v1989_v20, %v1990_v21  ;;  %s4583_s19 = sld [smem:[#allocation8 + $0x4c]] }
  0x9b   : > { %v348_v1 = vld [vmem:[%s8120_s2] sm:$0xff]  ;;  %364 = vperm.xlu1 %3551, %v360_v0   ;;  %v349_v10 = vld [vmem:[%s8120_s2 + $0x8] sm:$0xff]  ;;  %v4071_v23 = vsel %vm345_vm3, %v1677_v19, 0.0  ;;  %8123 = vst [vmem:[#allocation32_spill] sm:$0xff] %v4081_v25  ;;  %v4085_v26 = vsel %vm342_vm1, %v1992_v24, 0.0  ;;  %v1998_v31 = vsel %vm385_vm2, %v1996_v28, %v1995_v27  ;;  %v4113_v35 = vsel %vm385_vm2, %v1995_v27, %v1996_v28  ;;  %s4587_s11 = sld [smem:[#allocation8 + $0x94]] }
  0x9c   : > { %352 = vperm.xlu0 %3550, %v348_v1   ;;  %8122 = vst [vmem:[#allocation31_spill] sm:$0xff] %v4071_v23  ;;  %8124 = vst [vmem:[#allocation33_spill] sm:$0xff] %v4085_v26  ;;  %v4109_v34 = vsel %vm345_vm3, %v1998_v31, 0.0  ;;  %v2313_v36 = vsel %vm378_vm0, %v2311_v33, %v2310_v32  ;;  %v4127_v38 = vsel %vm378_vm0, %v2310_v32, %v2311_v33  ;;  %v2317_v40 = vrot.slane %v4093_v30, 1  ;;  %s4591_s29 = sld [smem:[#allocation8 + $0x49]]  ;;  %s4597_s16 = sld [smem:[#allocation8 + $0xdc]] }
  0x9d   : > { %8125 = vst [vmem:[#allocation34_spill] sm:$0xff] %v4109_v34  ;;  %8126 = vst [vmem:[#allocation35_spill] sm:$0xff] %v4113_v35  ;;  %v4123_v37 = vsel %vm342_vm1, %v2313_v36, 0.0  ;;  %v2631_v44 = vrot.slane %v3409_v41, 7  ;;  %v2632_v45 = vrot.slane %v3410_v42, 7  ;;  %v2637_v51 = vrot.slane %v3409_v41, 1 }
  0x9e   : > { %8127 = vst [vmem:[#allocation36_spill] sm:$0xff] %v4123_v37  ;;  %8128 = vst [vmem:[#allocation37_spill] sm:$0xff] %v4127_v38  ;;  %v2319_v43 = vsel %vm385_vm2, %v2317_v40, %v2316_v39  ;;  %v4145_v46 = vsel %vm385_vm2, %v2316_v39, %v2317_v40  ;;  %v2638_v52 = vrot.slane %v3410_v42, 1  ;;  %vm390_vm4 = vcmask 1047680   ;;  %s4593_s8 = sld [smem:[#allocation8 + $0x91]]  ;;  %s4599_s12 = sld [smem:[#allocation8 + $0x7]] }
  0x9f   : > { %369 = vperm.xlu1 %3551, %v361_v9   ;;  %8129 = vst [vmem:[#allocation38_spill] sm:$0xff] %v4145_v46  ;;  %v4149_v47 = vsel %vm345_vm3, %v2319_v43, 0.0  ;;  %v2634_v48 = vsel %vm378_vm0, %v2632_v45, %v2631_v44  ;;  %v4159_v49 = vsel %vm378_vm0, %v2631_v44, %v2632_v45  ;;  %v373_v44 = vld [vmem:[%s3983_s28 + $0x8] sm:$0xff]  ;;  %v372_v45 = vld [vmem:[%s3983_s28] sm:$0xff]  ;;  %8144 = sst [smem:[#allocation53_spill]] %s4585_s0  ;;  %s4595_s7 = sld [smem:[#allocation8 + $0xd9]] }
  0xa0   : > { %357 = vperm.xlu0 %3550, %v349_v10   ;;  %8130 = vst [vmem:[#allocation39_spill] sm:$0xff] %v4149_v47  ;;  %8131 = vst [vmem:[#allocation40_spill] sm:$0xff] %v4159_v49  ;;  %v4163_v50 = vsel %vm342_vm1, %v2634_v48, 0.0  ;;  %v2640_v53 = vsel %vm385_vm2, %v2638_v52, %v2637_v51  ;;  %v4179_v55 = vsel %vm385_vm2, %v2637_v51, %v2638_v52  ;;  %s4601_s17 = sld [smem:[#allocation8 + $0xd]]  ;;  %s4607_s15 = sld [smem:[#allocation8 + $0x4f]]  ;;  %vm2957_vm7 = vcmask 130048  }
  0xa1   : > { %8132 = vst [vmem:[#allocation41_spill] sm:$0xff] %v4163_v50  ;;  %v4175_v54 = vsel %vm345_vm3, %v2640_v53, 0.0  ;;  %8134 = vst [vmem:[#allocation43_spill] sm:$0xff] %v4179_v55  ;;  %v3184_v53 = vld [vmem:[%s3983_s28 + $0x18] sm:$0xff]  ;;  %8145 = sst [smem:[#allocation54_spill]] %s4587_s11  ;;  %s4615_s1 = sld [smem:[#allocation8 + $0xa]] }
  0xa2   : > { %8133 = vst [vmem:[#allocation42_spill] sm:$0xff] %v4175_v54  ;;  %8146 = sst [smem:[#allocation55_spill]] %s4591_s29  ;;  %s4617_s2 = sld [smem:[#allocation8 + $0x52]] }
  0xa3   : > { %1680 = vrot.lane.b32.xlu1 %v4038_v13, %s7788_s13  ;;  %8149 = sst [smem:[#allocation58_spill]] %s4597_s16  ;;  %s4623_s23 = sld [smem:[#allocation8 + $0x55]] }
  0xa4   : > { %1683 = vrot.lane.b32.xlu0 %v4034_v12, %s7788_s13  ;;  %8147 = sst [smem:[#allocation56_spill]] %s4593_s8  ;;  %s4619_s3 = sld [smem:[#allocation8 + $0x9a]] }
  0xa5   : > { %8148 = sst [smem:[#allocation57_spill]] %s4595_s7  ;;  %s4621_s30 = sld [smem:[#allocation8 + $0xe2]] }
  0xa6   : > { %8150 = sst [smem:[#allocation59_spill]] %s4599_s12  ;;  %s4625_s22 = sld [smem:[#allocation8 + $0x9d]] }
  0xa7   : > { %1785 = vrot.lane.b32.xlu1 %v4015_v5, %s7788_s13  ;;  %8151 = sst [smem:[#allocation60_spill]] %s4601_s17  ;;  %s4627_s27 = sld [smem:[#allocation8 + $0xe5]] }
  0xa8   : > { %1782 = vrot.lane.b32.xlu0 %v4012_v4, %s7788_s13  ;;  %8152 = sst [smem:[#allocation61_spill]] %s4607_s15  ;;  %s8158_s10 = smov 127  }
  0xa9   : > { %8155 = sst [smem:[#allocation64_spill]] %s4615_s1  ;;  %s4639_s9 = sld [smem:[#allocation8 + $0x13]] }
  0xaa   : > { %8156 = sst [smem:[#allocation65_spill]] %s4617_s2  ;;  %s4633_s21 = sld [smem:[#allocation8 + $0x58]] }
  0xab   : > { %1884 = vrot.lane.b32.xlu1 %v4067_v22, %s7788_s13  ;;  %8157 = sst [smem:[#allocation66_spill]] %s4619_s3  ;;  %s4635_s24 = sld [smem:[#allocation8 + $0xa0]] }
  0xac   : > { %1887 = vrot.lane.b32.xlu0 %v4071_v23, %s7788_s13  ;;  %s4637_s6 = sld [smem:[#allocation8 + $0xe8]]  ;;  %s4641_s5 = sld [smem:[#allocation8 + $0x5b]] }
  0xad   : > { %s4647_s25 = sld [smem:[#allocation8 + $0xa3]]  ;;  %s4653_s4 = sld [smem:[#allocation8 + $0x16]] }
  0xae   : > { %s4649_s26 = sld [smem:[#allocation8 + $0xeb]]  ;;  %s4679_s0 = sld [smem:[#allocation8 + $0x1c]] }
  0xaf   : > { %2004 = vrot.lane.b32.xlu1 %v4081_v25, %s7788_s13  ;;  %8160 = sst [smem:[#allocation68_spill]] %s4639_s9  ;;  %s4657_s9 = sld [smem:[#allocation8 + $0xa6]] }
  0xb0   : > { %2001 = vrot.lane.b32.xlu0 %v4085_v26, %s7788_s13  ;;  %s4681_s8 = sld [smem:[#allocation8 + $0x64]]  ;;  %s4695_s16 = sld [smem:[#allocation8 + $0x1f]] }
  0xb1   : > { %s4687_s29 = sld [smem:[#allocation8 + $0xac]]  ;;  %s4697_s15 = sld [smem:[#allocation8 + $0x67]] }
  0xb2   : > { %8159 = sst [smem:[#allocation67_spill]] %s4637_s6  ;;  %s4659_s6 = sld [smem:[#allocation8 + $0xee]] }
  0xb3   : > { %2103 = vrot.lane.b32.xlu1 %v4047_v17, %s7788_s13  ;;  %8161 = sst [smem:[#allocation69_spill]] %s4641_s5  ;;  %s4655_s5 = sld [smem:[#allocation8 + $0x5e]] }
  0xb4   : > { %2106 = vrot.lane.b32.xlu0 %v4050_v18, %s7788_s13  ;;  %8162 = sst [smem:[#allocation70_spill]] %s4647_s25  ;;  %s4663_s25 = sld [smem:[#allocation8 + $0x19]] }
  0xb5   : > { %8163 = sst [smem:[#allocation71_spill]] %s4649_s26  ;;  %s4665_s26 = sld [smem:[#allocation8 + $0x61]] }
  0xb6   : > { %8165 = sst [smem:[#allocation72_spill]] %s4653_s4  ;;  %s4689_s11 = sld [smem:[#allocation8 + $0xf4]] }
  0xb7   : > { %2208 = vrot.lane.b32.xlu1 %v4109_v34, %s7788_s13  ;;  %8167 = sst [smem:[#allocation74_spill]] %s4657_s9  ;;  %s4673_s9 = sld [smem:[#allocation8 + $0xf1]] }
  0xb8   : > { %2205 = vrot.lane.b32.xlu0 %v4113_v35, %s7788_s13  ;;  %8168 = sst [smem:[#allocation75_spill]] %s4659_s6  ;;  %s8179_s12 = sld [smem:[#allocation68_spill]] }
  0xb9   : > { %8166 = sst [smem:[#allocation73_spill]] %s4655_s5  ;;  %s8181_s17 = sld [smem:[#allocation69_spill]] }
  0xba   : > { %8169 = sst [smem:[#allocation76_spill]] %s4663_s25  ;;  %s4671_s5 = sld [smem:[#allocation8 + $0xa9]] }
  0xbb   : > { %2322 = vrot.lane.b32.xlu1 %v4123_v37, %s7788_s13  ;;  %8170 = sst [smem:[#allocation77_spill]] %s4665_s26  ;;  %s4709_s1 = sld [smem:[#allocation8 + $0xaf]] }
  0xbc   : > { %2325 = vrot.lane.b32.xlu0 %v4127_v38, %s7788_s13  ;;  %8173 = sst [smem:[#allocation80_spill]] %s4679_s0  ;;  %s4727_s7 = sld [smem:[#allocation8 + $0xf7]] }
  0xbd   : > { %8172 = sst [smem:[#allocation79_spill]] %s4673_s9  ;;  %s4733_s4 = sld [smem:[#allocation8 + $0x22]] }
  0xbe   : > { %8174 = sst [smem:[#allocation81_spill]] %s4681_s8  ;;  %s4735_s2 = sld [smem:[#allocation8 + $0x6a]] }
  0xbf   : > { %2424 = vrot.lane.b32.xlu1 %v4090_v29, %s7788_s13  ;;  %8175 = sst [smem:[#allocation82_spill]] %s4687_s29  ;;  %s8187_s6 = sld [smem:[#allocation53_spill]] }
  0xc0   : > { %2427 = vrot.lane.b32.xlu0 %v4093_v30, %s7788_s13  ;;  %8171 = sst [smem:[#allocation78_spill]] %s4671_s5  ;;  %s8189_s25 = sld [smem:[#allocation58_spill]] }
  0xc1   : > { %8176 = sst [smem:[#allocation83_spill]] %s4689_s11  ;;  %s8188_s3 = sld [smem:[#allocation54_spill]] }
  0xc2   : > { %8178 = sst [smem:[#allocation84_spill]] %s4695_s16  ;;  %s4741_s26 = sld [smem:[#allocation8 + $0xb2]] }
  0xc3   : > { %2526 = vrot.lane.b32.xlu1 %v4145_v46, %s7788_s13  ;;  %8180 = sst [smem:[#allocation68_spill]] %s4697_s15  ;;  %s4743_s5 = sld [smem:[#allocation8 + $0xfa]] }
  0xc4   : > { %2529 = vrot.lane.b32.xlu0 %v4149_v47, %s7788_s13  ;;  %8186 = sst [smem:[#allocation69_spill]] %s4709_s1  ;;  %s8191_s8 = sld [smem:[#allocation55_spill]] }
  0xc5   : > { %s4750_s29 = sld [smem:[#allocation8 + $0x3]]  ;;  %s8193_s11 = sld [smem:[#allocation56_spill]] }
  0xc6   : > { %s4752_s16 = sld [smem:[#allocation8 + $0x4b]]  ;;  %s8196_s15 = sld [smem:[#allocation57_spill]] }
  0xc7   : > { %2643 = vrot.lane.b32.xlu1 %v4163_v50, %s7788_s13  ;;  %s4786_s0 = sld [smem:[#allocation8 + $0x5]]  ;;  %s8217_s1 = sld [smem:[#allocation65_spill]] }
  0xc8   : > { %2646 = vrot.lane.b32.xlu0 %v4159_v49, %s7788_s13  ;;  %s4855_s9 = sld [smem:[#allocation8 + $0x9c]] }
  0xcb   : > { %2745 = vrot.lane.b32.xlu1 %v3409_v41, %s7788_s13 }
  0xcc   : > { %2748 = vrot.lane.b32.xlu0 %v3410_v42, %s7788_s13  ;;  %8194 = sst [smem:[#allocation53_spill]] %s4752_s16  ;;  %s4768_s16 = sld [smem:[#allocation8 + $0xdb]] }
  0xcd   : > { %8208 = sst [smem:[#allocation55_spill]] %s4786_s0  ;;  %s4810_s0 = sld [smem:[#allocation8 + $0x95]] }
  0xcf   : > { %2847 = vrot.lane.b32.xlu1 %v4179_v55, %s7788_s13 }
  0xd0   : > { %2850 = vrot.lane.b32.xlu0 %v4175_v54, %s7788_s13 }
  0xd2   : > { %8202 = sst [smem:[#allocation58_spill]] %s4768_s16  ;;  %s8216_s16 = sld [smem:[#allocation64_spill]] }
  0xd3   : > { %8214 = sst [smem:[#allocation57_spill]] %s4810_s0 }
 0x11a   : > { %v4185_v56 = vpop.permute.xlu1 %364 }
 0x11b   : > { %8135 = vst [vmem:[#allocation44_spill] sm:$0xff] %v4185_v56  ;;  %v4187_v57 = vpop.permute.xlu0 %352 }
 0x11c   : > { %v4250_v51 = vmul.f32 %v373_v44, %v4187_v57 }
 0x11e   : > { %v4189_v58 = vpop.permute.xlu1 %369 }
 0x11f   : > { %8136 = vst [vmem:[#allocation45_spill] sm:$0xff] %v4189_v58  ;;  %v4191_v59 = vpop.permute.xlu0 %357 }
 0x120   : > { %v4253_v52 = vmul.f32 %v372_v45, %v4191_v59 }
 0x122   : > { %v1681_v61 = vpop.permute.xlu1 %1680 }
 0x123   : > { %v1684_v60 = vpop.permute.xlu0 %1683  ;;  %v1682_v33 = vsel %vm390_vm4, %v1681_v61, %v4038_v13  ;;  %v4262_v61 = vmul.f32 %v3184_v53, %v4187_v57 }
 0x126   : > { %v1786_v63 = vpop.permute.xlu1 %1785 }
 0x127   : > { %v1783_v62 = vpop.permute.xlu0 %1782  ;;  %v1787_v0 = vsel %vm390_vm4, %v1786_v63, %v4015_v5  ;;  %v3222_v63 = vld [vmem:[%s3983_s28 + $0x28] sm:$0xff] }
 0x128   : > { %v1784_v1 = vsel %vm390_vm4, %v1783_v62, %v4012_v4  ;;  %1790 = vrot.lane.b32.xlu0 %v1787_v0, %s7788_s13  ;;  %v3221_v0 = vld [vmem:[%s3983_s28 + $0x20] sm:$0xff] }
 0x129   : > { %1788 = vrot.lane.b32.xlu1 %v1784_v1, %s7788_s13  ;;  %v4274_v1 = vmul.f32 %v3222_v63, %v4187_v57 }
 0x12a   : > { %v1885_v3 = vpop.permute.xlu1 %1884 }
 0x12b   : > { %v1888_v7 = vpop.permute.xlu0 %1887 }
 0x12c   : > { %v1889_v48 = vsel %vm390_vm4, %v1888_v7, %v4071_v23  ;;  %v3260_v7 = vld [vmem:[%s3983_s28 + $0x38] sm:$0xff] }
 0x12e   : > { %v2005_v8 = vpop.permute.xlu1 %2004 }
 0x12f   : > { %v2002_v9 = vpop.permute.xlu0 %2001 }
 0x130   : > { %v2003_v39 = vsel %vm390_vm4, %v2002_v9, %v4085_v26  ;;  %v4286_v9 = vmul.f32 %v3260_v7, %v4187_v57  ;;  %v708_v57 = vrot.slane %v4262_v61, 1 }
 0x132   : > { %v2104_v10 = vpop.permute.xlu1 %2103 }
 0x133   : > { %v2107_v11 = vpop.permute.xlu0 %2106  ;;  %v2105_v14 = vsel %vm390_vm4, %v2104_v10, %v4047_v17  ;;  %v1685_v17 = vsel %vm390_vm4, %v1684_v60, %v4034_v12  ;;  %v3183_v60 = vld [vmem:[%s3983_s28 + $0x10] sm:$0xff] }
 0x134   : > { %v2108_v15 = vsel %vm390_vm4, %v2107_v11, %v4050_v18  ;;  %2109 = vrot.lane.b32.xlu1 %v2105_v14, %s7788_s13  ;;  %v1886_v18 = vsel %vm390_vm4, %v1885_v3, %v4067_v22  ;;  %v4265_v62 = vmul.f32 %v3183_v60, %v4191_v59  ;;  %v4277_v3 = vmul.f32 %v3221_v0, %v4191_v59 }
 0x135   : > { %2111 = vrot.lane.b32.xlu0 %v2108_v15, %s7788_s13  ;;  %v383_v11 = vrot.slane %v4250_v51, 1  ;;  %v384_v14 = vrot.slane %v4253_v52, 1  ;;  %v376_v15 = vrot.slane %v4250_v51, 7 }
 0x136   : > { %v2209_v4 = vpop.permute.xlu1 %2208 }
 0x137   : > { %v2206_v5 = vpop.permute.xlu0 %2205  ;;  %v2210_v42 = vsel %vm390_vm4, %v2209_v4, %v4109_v34  ;;  %v377_v4 = vrot.slane %v4253_v52, 7 }
 0x138   : > { %v2207_v32 = vsel %vm390_vm4, %v2206_v5, %v4113_v35  ;;  %v702_v5 = vrot.slane %v4262_v61, 7 }
 0x13a   : > { %v2323_v19 = vpop.permute.xlu1 %2322 }
 0x13b   : > { %v2326_v20 = vpop.permute.xlu0 %2325  ;;  %v2324_v41 = vsel %vm390_vm4, %v2323_v19, %v4123_v37  ;;  %v4307_v19 = vsel %vm378_vm0, %v376_v15, %v377_v4 }
 0x13e   : > { %v2425_v21 = vpop.permute.xlu1 %2424 }
 0x13f   : > { %v2428_v24 = vpop.permute.xlu0 %2427  ;;  %v2426_v27 = vsel %vm390_vm4, %v2425_v21, %v4090_v29  ;;  %v2006_v29 = vsel %vm390_vm4, %v2005_v8, %v4081_v25  ;;  %v3259_v8 = vld [vmem:[%s3983_s28 + $0x30] sm:$0xff]  ;;  %v703_v21 = vrot.slane %v4265_v62, 7  ;;  %s8164_s28 = smov 113  }
 0x140   : > { %v2429_v28 = vsel %vm390_vm4, %v2428_v24, %v4093_v30  ;;  %2430 = vrot.lane.b32.xlu0 %v2426_v27, %s7788_s13  ;;  %v2327_v30 = vsel %vm390_vm4, %v2326_v20, %v4127_v38  ;;  %v4289_v10 = vmul.f32 %v3259_v8, %v4191_v59  ;;  %v4303_v59 = vsel %vm385_vm2, %v383_v11, %v384_v14 }
 0x141   : > { %2432 = vrot.lane.b32.xlu1 %v2429_v28, %s7788_s13  ;;  %v709_v20 = vrot.slane %v4265_v62, 1  ;;  %v1025_v24 = vrot.slane %v4274_v1, 7  ;;  %v1031_v27 = vrot.slane %v4274_v1, 1 }
 0x142   : > { %v2527_v31 = vpop.permute.xlu1 %2526 }
 0x143   : > { %v2528_v36 = vsel %vm390_vm4, %v2527_v31, %v4145_v46  ;;  %v2530_v40 = vpop.permute.xlu0 %2529  ;;  %v4319_v28 = vsel %vm385_vm2, %v708_v57, %v709_v20  ;;  %v1348_v31 = vrot.slane %v4286_v9, 7  ;;  %v711_v53 = vsel %vm385_vm2, %v709_v20, %v708_v57 }
 0x144   : > { %1688 = vrot.lane.b32.xlu0 %v1685_v17, %s7788_s13  ;;  %v2531_v43 = vsel %vm390_vm4, %v2530_v40, %v4149_v47  ;;  %v4323_v17 = vsel %vm378_vm0, %v702_v5, %v703_v21  ;;  %v4385_v63 = vsel %vm345_vm3, %v711_v53, 0.0 }
 0x145   : > { %1890 = vrot.lane.b32.xlu1 %v1886_v18, %s7788_s13  ;;  %v1026_v18 = vrot.slane %v4277_v3, 7 }
 0x146   : > { %v4425_v20 = vpop.permute.xlu1 %2643 }
 0x147   : > { %v1028_v7 = vsel %vm378_vm0, %v1026_v18, %v1025_v24 }
 0x148   : > { %2009 = vrot.lane.b32.xlu0 %v2006_v29, %s7788_s13  ;;  %v1032_v29 = vrot.slane %v4277_v3, 1 }
 0x149   : > { %2330 = vrot.lane.b32.xlu1 %v2327_v30, %s7788_s13  ;;  %v1354_v30 = vrot.slane %v4286_v9, 1 }
 0x14a   : > { %v1034_v0 = vsel %vm385_vm2, %v1032_v29, %v1031_v27 }
 0x14b   : > { %v4397_v8 = vsel %vm345_vm3, %v1034_v0, 0.0 }
 0x14c   : > { %2211 = vrot.lane.b32.xlu0 %v2207_v32, %s7788_s13  ;;  %v4335_v32 = vsel %vm378_vm0, %v1025_v24, %v1026_v18  ;;  %v4429_v24 = vpop.permute.xlu1 %2745 }
 0x14d   : > { %1686 = vrot.lane.b32.xlu1 %v1682_v33, %s7788_s13  ;;  %v4339_v33 = vsel %vm385_vm2, %v1031_v27, %v1032_v29 }
 0x150   : > { %2532 = vrot.lane.b32.xlu0 %v2528_v36, %s7788_s13  ;;  %v1355_v36 = vrot.slane %v4289_v10, 1  ;;  %v4433_v27 = vpop.permute.xlu1 %2847 }
 0x151   : > { %2007 = vrot.lane.b32.xlu1 %v2003_v39, %s7788_s13  ;;  %v1349_v39 = vrot.slane %v4289_v10, 7 }
 0x152   : > { %v4349_v40 = vsel %vm385_vm2, %v1354_v30, %v1355_v36 }
 0x154   : > { %2328 = vrot.lane.b32.xlu0 %v2324_v41, %s7788_s13  ;;  %v4353_v41 = vsel %vm378_vm0, %v1348_v31, %v1349_v39 }
 0x155   : > { %2213 = vrot.lane.b32.xlu1 %v2210_v42, %s7788_s13  ;;  %v380_v42 = vsel %vm378_vm0, %v377_v4, %v376_v15  ;;  %v1357_v15 = vsel %vm385_vm2, %v1355_v36, %v1354_v30 }
 0x156   : > { %v4365_v44 = vsel %vm342_vm1, %v380_v42, 0.0  ;;  %v4417_v57 = vsel %vm345_vm3, %v1357_v15, 0.0 }
 0x158   : > { %1892 = vrot.lane.b32.xlu0 %v1889_v48, %s7788_s13  ;;  %v705_v48 = vsel %vm378_vm0, %v703_v21, %v702_v5  ;;  %v4423_v5 = vpop.permute.xlu0 %2646 }
 0x159   : > { %2534 = vrot.lane.b32.xlu1 %v2531_v43, %s7788_s13  ;;  %v387_v43 = vsel %vm385_vm2, %v384_v14, %v383_v11  ;;  %v4381_v60 = vsel %vm342_vm1, %v705_v48, 0.0  ;;  %v4401_v11 = vsel %vm342_vm1, %v1028_v7, 0.0  ;;  %v1351_v14 = vsel %vm378_vm0, %v1349_v39, %v1348_v31 }
 0x15a   : > { %v4369_v45 = vsel %vm345_vm3, %v387_v43, 0.0  ;;  %v4413_v4 = vsel %vm342_vm1, %v1351_v14, 0.0 }
 0x15c   : > { %493 = vrot.lane.b32.xlu0 %v4250_v51, %s7788_s13  ;;  %v4427_v21 = vpop.permute.xlu0 %2748 }
 0x15d   : > { %496 = vrot.lane.b32.xlu1 %v4253_v52, %s7788_s13 }
 0x160   : > { %816 = vrot.lane.b32.xlu0 %v4262_v61, %s7788_s13  ;;  %v4431_v6 = vpop.permute.xlu0 %2850 }
 0x161   : > { %819 = vrot.lane.b32.xlu1 %v4265_v62, %s7788_s13 }
 0x164   : > { %1139 = vrot.lane.b32.xlu0 %v4274_v1, %s7788_s13 }
 0x165   : > { %1142 = vrot.lane.b32.xlu1 %v4277_v3, %s7788_s13 }
 0x168   : > { %1465 = vrot.lane.b32.xlu0 %v4289_v10, %s7788_s13 }
 0x169   : > { %1462 = vrot.lane.b32.xlu1 %v4286_v9, %s7788_s13 }
 0x16c   : > { %595 = vrot.lane.b32.xlu0 %v4303_v59, %s7788_s13 }
 0x16d   : > { %394 = vrot.lane.b32.xlu1 %v4307_v19, %s7788_s13 }
 0x170   : > { %918 = vrot.lane.b32.xlu0 %v4319_v28, %s7788_s13 }
 0x171   : > { %717 = vrot.lane.b32.xlu1 %v4323_v17, %s7788_s13 }
 0x174   : > { %1040 = vrot.lane.b32.xlu0 %v4335_v32, %s7788_s13 }
 0x175   : > { %1241 = vrot.lane.b32.xlu1 %v4339_v33, %s7788_s13 }
 0x178   : > { %1564 = vrot.lane.b32.xlu0 %v4349_v40, %s7788_s13 }
 0x179   : > { %1363 = vrot.lane.b32.xlu1 %v4353_v41, %s7788_s13 }
 0x17c   : > { %391 = vrot.lane.b32.xlu0 %v4365_v44, %s7788_s13 }
 0x17d   : > { %598 = vrot.lane.b32.xlu1 %v4369_v45, %s7788_s13 }
 0x180   : > { %714 = vrot.lane.b32.xlu0 %v4381_v60, %s7788_s13 }
 0x181   : > { %921 = vrot.lane.b32.xlu1 %v4385_v63, %s7788_s13 }
 0x184   : > { %1244 = vrot.lane.b32.xlu0 %v4397_v8, %s7788_s13 }
 0x185   : > { %1037 = vrot.lane.b32.xlu1 %v4401_v11, %s7788_s13 }
 0x188   : > { %1360 = vrot.lane.b32.xlu0 %v4413_v4, %s7788_s13 }
 0x189   : > { %1567 = vrot.lane.b32.xlu1 %v4417_v57, %s7788_s13 }
 0x19a   : > { %v4435_v16 = vpop.permute.xlu0 %1790 }
 0x19b   : > { %v4437_v18 = vpop.permute.xlu1 %1788 }
 0x1a6   : > { %v4441_v30 = vpop.permute.xlu1 %2109 }
 0x1a7   : > { %v4439_v29 = vpop.permute.xlu0 %2111 }
 0x1b2   : > { %v4445_v36 = vpop.permute.xlu0 %2430 }
 0x1b3   : > { %v4443_v31 = vpop.permute.xlu1 %2432 }
 0x1b6   : > { %v4449_v42 = vpop.permute.xlu0 %1688 }
 0x1b7   : > { %v4447_v39 = vpop.permute.xlu1 %1890 }
 0x1ba   : > { %v4453_v48 = vpop.permute.xlu0 %2009 }
 0x1bb   : > { %v4451_v43 = vpop.permute.xlu1 %2330 }
 0x1be   : > { %v4457_v0 = vpop.permute.xlu0 %2211 }
 0x1bf   : > { %v4455_v53 = vpop.permute.xlu1 %1686  ;;  %8137 = vst [vmem:[#allocation46_spill] sm:$0xff] %v4457_v0 }
 0x1c2   : > { %v4461_v14 = vpop.permute.xlu0 %2532 }
 0x1c3   : > { %v4459_v7 = vpop.permute.xlu1 %2007  ;;  %8139 = vst [vmem:[#allocation48_spill] sm:$0xff] %v4461_v14 }
 0x1c4   : > { %8138 = vst [vmem:[#allocation47_spill] sm:$0xff] %v4459_v7 }
 0x1c6   : > { %v4465_v2 = vpop.permute.xlu0 %2328 }
 0x1c7   : > { %v4463_v15 = vpop.permute.xlu1 %2213  ;;  %8141 = vst [vmem:[#allocation50_spill] sm:$0xff] %v4465_v2 }
 0x1c8   : > { %8140 = vst [vmem:[#allocation49_spill] sm:$0xff] %v4463_v15 }
 0x1ca   : > { %v4469_v56 = vpop.permute.xlu0 %1892 }
 0x1cb   : > { %v4467_v58 = vpop.permute.xlu1 %2534  ;;  %8143 = vst [vmem:[#allocation52_spill] sm:$0xff] %v4469_v56 }
 0x1cc   : > { %8142 = vst [vmem:[#allocation51_spill] sm:$0xff] %v4467_v58 }
 0x1ce   : > { %v494_v37 = vpop.permute.xlu0 %493 }
 0x1cf   : > { %v497_v47 = vpop.permute.xlu1 %496  ;;  %v495_v23 = vsel %vm390_vm4, %v494_v37, %v4250_v51 }
 0x1d0   : > { %v498_v34 = vsel %vm390_vm4, %v497_v47, %v4253_v52  ;;  %499 = vrot.lane.b32.xlu0 %v495_v23, %s7788_s13 }
 0x1d1   : > { %501 = vrot.lane.b32.xlu1 %v498_v34, %s7788_s13 }
 0x1d2   : > { %v817_v15 = vpop.permute.xlu0 %816 }
 0x1d3   : > { %v820_v14 = vpop.permute.xlu1 %819  ;;  %v818_v2 = vsel %vm390_vm4, %v817_v15, %v4262_v61 }
 0x1d4   : > { %v821_v58 = vsel %vm390_vm4, %v820_v14, %v4265_v62  ;;  %822 = vrot.lane.b32.xlu0 %v818_v2, %s7788_s13 }
 0x1d5   : > { %824 = vrot.lane.b32.xlu1 %v821_v58, %s7788_s13 }
 0x1d6   : > { %v1140_v56 = vpop.permute.xlu0 %1139 }
 0x1d7   : > { %v1143_v37 = vpop.permute.xlu1 %1142  ;;  %v1141_v47 = vsel %vm390_vm4, %v1140_v56, %v4274_v1 }
 0x1d8   : > { %v1144_v23 = vsel %vm390_vm4, %v1143_v37, %v4277_v3  ;;  %1145 = vrot.lane.b32.xlu0 %v1141_v47, %s7788_s13 }
 0x1d9   : > { %1147 = vrot.lane.b32.xlu1 %v1144_v23, %s7788_s13 }
 0x1da   : > { %v1466_v15 = vpop.permute.xlu0 %1465 }
 0x1db   : > { %v1463_v34 = vpop.permute.xlu1 %1462  ;;  %v1467_v14 = vsel %vm390_vm4, %v1466_v15, %v4289_v10 }
 0x1dc   : > { %v1464_v2 = vsel %vm390_vm4, %v1463_v34, %v4286_v9  ;;  %1470 = vrot.lane.b32.xlu0 %v1467_v14, %s7788_s13 }
 0x1dd   : > { %1468 = vrot.lane.b32.xlu1 %v1464_v2, %s7788_s13 }
 0x1de   : > { %v596_v58 = vpop.permute.xlu0 %595 }
 0x1df   : > { %v395_v56 = vpop.permute.xlu1 %394  ;;  %v597_v37 = vsel %vm390_vm4, %v596_v58, %v4303_v59 }
 0x1e0   : > { %v396_v47 = vsel %vm390_vm4, %v395_v56, %v4307_v19  ;;  %601 = vrot.lane.b32.xlu0 %v597_v37, %s7788_s13 }
 0x1e1   : > { %399 = vrot.lane.b32.xlu1 %v396_v47, %s7788_s13 }
 0x1e2   : > { %v919_v15 = vpop.permute.xlu0 %918 }
 0x1e3   : > { %v718_v23 = vpop.permute.xlu1 %717  ;;  %v920_v34 = vsel %vm390_vm4, %v919_v15, %v4319_v28 }
 0x1e4   : > { %v719_v14 = vsel %vm390_vm4, %v718_v23, %v4323_v17  ;;  %924 = vrot.lane.b32.xlu0 %v920_v34, %s7788_s13 }
 0x1e5   : > { %722 = vrot.lane.b32.xlu1 %v719_v14, %s7788_s13 }
 0x1e6   : > { %v1041_v58 = vpop.permute.xlu0 %1040 }
 0x1e7   : > { %v1242_v2 = vpop.permute.xlu1 %1241  ;;  %v1042_v56 = vsel %vm390_vm4, %v1041_v58, %v4335_v32 }
 0x1e8   : > { %v1243_v15 = vsel %vm390_vm4, %v1242_v2, %v4339_v33 }
 0x1e9   : > { %1045 = vrot.lane.b32.xlu1 %v1042_v56, %s7788_s13 }
 0x1ea   : > { %v1565_v47 = vpop.permute.xlu0 %1564 }
 0x1eb   : > { %v1364_v37 = vpop.permute.xlu1 %1363  ;;  %v1566_v58 = vsel %vm390_vm4, %v1565_v47, %v4349_v40 }
 0x1ec   : > { %v1365_v46 = vsel %vm390_vm4, %v1364_v37, %v4353_v41 }
 0x1ed   : > { %1368 = vrot.lane.b32.xlu0 %v1365_v46, %s7788_s13  ;;  %1247 = vrot.lane.b32.xlu1 %v1243_v15, %s7788_s13 }
 0x1ee   : > { %v392_v23 = vpop.permute.xlu0 %391 }
 0x1ef   : > { %v599_v34 = vpop.permute.xlu1 %598  ;;  %v393_v14 = vsel %vm390_vm4, %v392_v23, %v4365_v44 }
 0x1f0   : > { %v600_v46 = vsel %vm390_vm4, %v599_v34, %v4369_v45 }
 0x1f1   : > { %397 = vrot.lane.b32.xlu0 %v393_v14, %s7788_s13  ;;  %1570 = vrot.lane.b32.xlu1 %v1566_v58, %s7788_s13 }
 0x1f2   : > { %v715_v56 = vpop.permute.xlu0 %714 }
 0x1f3   : > { %v922_v37 = vpop.permute.xlu1 %921  ;;  %v716_v2 = vsel %vm390_vm4, %v715_v56, %v4381_v60 }
 0x1f4   : > { %v923_v47 = vsel %vm390_vm4, %v922_v37, %v4385_v63 }
 0x1f5   : > { %720 = vrot.lane.b32.xlu0 %v716_v2, %s7788_s13  ;;  %603 = vrot.lane.b32.xlu1 %v600_v46, %s7788_s13 }
 0x1f6   : > { %v1245_v15 = vpop.permute.xlu0 %1244 }
 0x1f7   : > { %v1038_v23 = vpop.permute.xlu1 %1037  ;;  %v1246_v56 = vsel %vm390_vm4, %v1245_v15, %v4397_v8 }
 0x1f8   : > { %v1039_v14 = vsel %vm390_vm4, %v1038_v23, %v4401_v11 }
 0x1f9   : > { %926 = vrot.lane.b32.xlu1 %v923_v47, %s7788_s13  ;;  %1043 = vrot.lane.b32.xlu0 %v1039_v14, %s7788_s13 }
 0x1fa   : > { %v1361_v58 = vpop.permute.xlu0 %1360 }
 0x1fb   : > { %v1362_v34 = vsel %vm390_vm4, %v1361_v58, %v4413_v4  ;;  %v1568_v2 = vpop.permute.xlu1 %1567 }
 0x1fc   : > { %v1569_v37 = vsel %vm390_vm4, %v1568_v2, %v4417_v57 }
 0x1fd   : > { %1366 = vrot.lane.b32.xlu1 %v1362_v34, %s7788_s13  ;;  %1249 = vrot.lane.b32.xlu0 %v1246_v56, %s7788_s13 }
 0x201   : > { %1572 = vrot.lane.b32.xlu0 %v1569_v37, %s7788_s13  ;;  %s4609_s13 = sld [smem:[#allocation8 + $0x97]] }
 0x207   : > { %8153 = sst [smem:[#allocation62_spill]] %s4609_s13 }
 0x208   : > { %s8182_s13 = sld [smem:[#allocation70_spill]] }
 0x209   : > { %8190 = sst [smem:[#allocation70_spill]] %s4743_s5  ;;  %s8200_s5 = smov 16  }
 0x242   : > { %v500_v46 = vpop.permute.xlu0 %499 }
 0x243   : > { %v502_v23 = vpop.permute.xlu1 %501  ;;  %v503_v47 = vsel %vm390_vm4, %v500_v46, %v4250_v51 }
 0x244   : > { %v504_v14 = vsel %vm390_vm4, %v502_v23, %v4253_v52  ;;  %507 = vrot.lane.b32.xlu0 %v503_v47, %s7797_s18 }
 0x245   : > { %509 = vrot.lane.b32.xlu1 %v504_v14, %s7797_s18 }
 0x246   : > { %v823_v15 = vpop.permute.xlu0 %822 }
 0x247   : > { %v825_v58 = vpop.permute.xlu1 %824  ;;  %v826_v34 = vsel %vm390_vm4, %v823_v15, %v4262_v61 }
 0x248   : > { %515 = vrot.lane.b32.xlu0 %v503_v47, %s7790_s14  ;;  %v827_v56 = vsel %vm390_vm4, %v825_v58, %v4265_v62 }
 0x249   : > { %517 = vrot.lane.b32.xlu1 %v504_v14, %s7790_s14 }
 0x24a   : > { %v1146_v2 = vpop.permute.xlu0 %1145 }
 0x24b   : > { %v1148_v37 = vpop.permute.xlu1 %1147  ;;  %v1149_v46 = vsel %vm390_vm4, %v1146_v2, %v4274_v1 }
 0x24c   : > { %830 = vrot.lane.b32.xlu0 %v826_v34, %s7797_s18  ;;  %v1150_v23 = vsel %vm390_vm4, %v1148_v37, %v4277_v3 }
 0x24d   : > { %832 = vrot.lane.b32.xlu1 %v827_v56, %s7797_s18 }
 0x24e   : > { %v1471_v47 = vpop.permute.xlu0 %1470 }
 0x24f   : > { %v1469_v14 = vpop.permute.xlu1 %1468  ;;  %v1473_v15 = vsel %vm390_vm4, %v1471_v47, %v4289_v10 }
 0x250   : > { %838 = vrot.lane.b32.xlu0 %v826_v34, %s7790_s14  ;;  %v1472_v58 = vsel %vm390_vm4, %v1469_v14, %v4286_v9 }
 0x251   : > { %840 = vrot.lane.b32.xlu1 %v827_v56, %s7790_s14 }
 0x252   : > { %v602_v56 = vpop.permute.xlu0 %601 }
 0x253   : > { %v400_v34 = vpop.permute.xlu1 %399  ;;  %v605_v2 = vsel %vm390_vm4, %v602_v56, %v4303_v59 }
 0x254   : > { %1153 = vrot.lane.b32.xlu0 %v1149_v46, %s7797_s18  ;;  %v402_v37 = vsel %vm390_vm4, %v400_v34, %v4307_v19 }
 0x255   : > { %1155 = vrot.lane.b32.xlu1 %v1150_v23, %s7797_s18 }
 0x258   : > { %1161 = vrot.lane.b32.xlu0 %v1149_v46, %s7790_s14  ;;  %v723_v46 = vpop.permute.xlu1 %722 }
 0x259   : > { %1163 = vrot.lane.b32.xlu1 %v1150_v23, %s7790_s14  ;;  %v925_v23 = vpop.permute.xlu0 %924 }
 0x25a   : > { %v928_v14 = vsel %vm390_vm4, %v925_v23, %v4319_v28 }
 0x25c   : > { %1476 = vrot.lane.b32.xlu0 %v1472_v58, %s7797_s18  ;;  %v1046_v47 = vpop.permute.xlu1 %1045 }
 0x25d   : > { %1478 = vrot.lane.b32.xlu1 %v1473_v15, %s7797_s18  ;;  %v1048_v56 = vsel %vm390_vm4, %v1046_v47, %v4335_v32 }
 0x25f   : > { %v1369_v34 = vpop.permute.xlu0 %1368 }
 0x260   : > { %1484 = vrot.lane.b32.xlu0 %v1472_v58, %s7790_s14  ;;  %v1248_v58 = vpop.permute.xlu1 %1247  ;;  %v1371_v23 = vsel %vm390_vm4, %v1369_v34, %v4353_v41  ;;  %v8198_v34 = vstv %s4583_s19 }
 0x261   : > { %1486 = vrot.lane.b32.xlu1 %v1473_v15, %s7790_s14  ;;  %v725_v15 = vsel %vm390_vm4, %v723_v46, %v4323_v17  ;;  %v4762_v35 = vmul.f32 %v8198_v34, %v4250_v51  ;;  %v8204_v34 = vstv %s8188_s3 }
 0x262   : > { %v4778_v26 = vmul.f32 %v8204_v34, %v4250_v51  ;;  %v8212_v34 = vstv %s8196_s15  ;;  %s4841_s15 = sld [smem:[#allocation8 + $0x54]] }
 0x263   : > { %8199 = vst [vmem:[#allocation86_spill] sm:$0xff] %v4762_v35  ;;  %v4803_v46 = vmul.f32 %v8212_v34, %v4307_v19  ;;  %v2645_v35 = vsel %vm390_vm4, %v4425_v20, %v4163_v50  ;;  %v8232_v20 = vstv %s8189_s25 }
 0x264   : > { %609 = vrot.lane.b32.xlu0 %v605_v2, %s7797_s18  ;;  %v1571_v47 = vpop.permute.xlu1 %1570  ;;  %8205 = vst [vmem:[#allocation87_spill] sm:$0xff] %v4778_v26 }
 0x265   : > { %407 = vrot.lane.b32.xlu1 %v402_v37, %s7797_s18  ;;  %v1574_v0 = vsel %vm390_vm4, %v1571_v47, %v4349_v40  ;;  %v8203_v47 = vstv %s8187_s6 }
 0x268   : > { %617 = vrot.lane.b32.xlu0 %v605_v2, %s7790_s14  ;;  %v1251_v2 = vsel %vm390_vm4, %v1248_v58, %v4339_v33  ;;  %v398_v58 = vpop.permute.xlu0 %397  ;;  %8224 = sst [smem:[#allocation65_spill]] %s4841_s15  ;;  %s5472_s15 = sld [smem:[#allocation8 + $0xa8]] }
 0x269   : > { %415 = vrot.lane.b32.xlu1 %v402_v37, %s7790_s14  ;;  %s4613_s14 = sld [smem:[#allocation8 + $0xdf]] }
 0x26c   : > { %932 = vrot.lane.b32.xlu0 %v928_v14, %s7797_s18 }
 0x26d   : > { %730 = vrot.lane.b32.xlu1 %v725_v15, %s7797_s18  ;;  %s4631_s18 = sld [smem:[#allocation8 + $0x10]] }
 0x26e   : > { %8467 = sst [smem:[#allocation200_spill]] %s5472_s15  ;;  %s5490_s15 = sld [smem:[#allocation8 + $0xea]] }
 0x26f   : > { %8154 = sst [smem:[#allocation63_spill]] %s4613_s14 }
 0x270   : > { %940 = vrot.lane.b32.xlu0 %v928_v14, %s8158_s10  ;;  %s8183_s14 = sld [smem:[#allocation71_spill]]  ;;  %v2648_v14 = vsel %vm390_vm4, %v4423_v5, %v4159_v49  ;;  %v604_v5 = vpop.permute.xlu1 %603 }
 0x271   : > { %738 = vrot.lane.b32.xlu1 %v725_v15, %s8158_s10  ;;  %v401_v15 = vsel %vm390_vm4, %v398_v58, %v4365_v44  ;;  %8192 = sst [smem:[#allocation71_spill]] %s4750_s29  ;;  %s4766_s29 = sld [smem:[#allocation8 + $0x93]] }
 0x272   : > { %s8229_s0 = sld [smem:[#allocation63_spill]] }
 0x274   : > { %1255 = vrot.lane.b32.xlu0 %v1251_v2, %s8164_s28  ;;  %8476 = sst [smem:[#allocation205_spill]] %s5490_s15 }
 0x275   : > { %1053 = vrot.lane.b32.xlu1 %v1048_v56, %s8164_s28  ;;  %s5524_s15 = sld [smem:[#allocation8 + $0x14]] }
 0x277   : > { %8201 = sst [smem:[#allocation54_spill]] %s4766_s29  ;;  %s4788_s29 = sld [smem:[#allocation8 + $0x4d]] }
 0x278   : > { %1263 = vrot.lane.b32.xlu0 %v1251_v2, %s8158_s10 }
 0x279   : > { %1061 = vrot.lane.b32.xlu1 %v1048_v56, %s8158_s10  ;;  %v8210_v56 = vstv %s8191_s8  ;;  %s8223_s8 = sld [smem:[#allocation59_spill]] }
 0x27a   : > { %v4793_v37 = vmul.f32 %v8210_v56, %v4307_v19  ;;  %v4817_v58 = vmul.f32 %v8210_v56, %v4365_v44  ;;  %v606_v56 = vsel %vm390_vm4, %v604_v5, %v4369_v45  ;;  %v4862_v5 = vmul.f32 %v8232_v20, %v4253_v52 }
 0x27b   : > { %v8241_v20 = vstv %s4621_s30  ;;  %8492 = sst [smem:[#allocation210_spill]] %s5524_s15 }
 0x27c   : > { %405 = vrot.lane.b32.xlu0 %v401_v15, %s8164_s28 }
 0x27d   : > { %1376 = vrot.lane.b32.xlu1 %v1371_v23, %s8164_s28  ;;  %8209 = sst [smem:[#allocation56_spill]] %s4788_s29  ;;  %s4812_s29 = sld [smem:[#allocation8 + $0xdd]] }
 0x280   : > { %413 = vrot.lane.b32.xlu0 %v401_v15, %s8158_s10  ;;  %v8195_v15 = vstv %s4581_s20 }
 0x281   : > { %1384 = vrot.lane.b32.xlu1 %v1371_v23, %s8158_s10  ;;  %v4757_v23 = vmul.f32 %v8195_v15, %v4250_v51  ;;  %v4773_v15 = vmul.f32 %v8203_v47, %v4307_v19  ;;  %v8211_v47 = vstv %s8193_s11  ;;  %s4839_s11 = sld [smem:[#allocation8 + $0xc]] }
 0x282   : > { %v4798_v7 = vmul.f32 %v8211_v47, %v4307_v19  ;;  %v8218_v19 = vmov %v8212_v34 }
 0x283   : > { %8197 = vst [vmem:[#allocation85_spill] sm:$0xff] %v4757_v23  ;;  %8215 = sst [smem:[#allocation89_spill]] %s4812_s29  ;;  %v4827_v34 = vmul.f32 %v8218_v19, %v4365_v44  ;;  %v8227_v19 = vstv %s8188_s3  ;;  %s4875_s3 = sld [smem:[#allocation8 + $0xe]] }
 0x284   : > { %1578 = vrot.lane.b32.xlu0 %v1574_v0, %s8164_s28  ;;  %s8226_s29 = sld [smem:[#allocation61_spill]] }
 0x285   : > { %2651 = vrot.lane.b32.xlu1 %v2648_v14, %s8200_s5  ;;  %v8206_v14 = vstv %s8189_s25  ;;  %8219 = vst [vmem:[#allocation90_spill] sm:$0xff] %v4827_v34  ;;  %s4899_s25 = sld [smem:[#allocation8 + $0x9e]] }
 0x286   : > { %v4783_v2 = vmul.f32 %v8206_v14, %v4250_v51  ;;  %v8213_v51 = vstv %s8187_s6  ;;  %s8221_s6 = sld [smem:[#allocation66_spill]] }
 0x287   : > { %v4808_v14 = vmul.f32 %v8213_v51, %v4365_v44  ;;  %v8220_v51 = vstv %s4581_s20  ;;  %8222 = sst [smem:[#allocation64_spill]] %s4839_s11  ;;  %s8228_s20 = sld [smem:[#allocation62_spill]] }
 0x288   : > { %8207 = vst [vmem:[#allocation88_spill] sm:$0xff] %v4783_v2  ;;  %v4822_v2 = vmul.f32 %v8211_v47, %v4365_v44  ;;  %v4832_v26 = vmul.f32 %v8220_v51, %v4253_v52  ;;  %v8225_v44 = vstv %s4583_s19  ;;  %v4851_v51 = vmul.f32 %v8227_v19, %v4253_v52  ;;  %2649 = vrot.lane.b32.xlu0 %v2645_v35, %s8200_s5  ;;  %8230 = sst [smem:[#allocation66_spill]] %s4855_s9  ;;  %s4857_s11 = sld [smem:[#allocation8 + $0xe4]] }
 0x289   : > { %v4846_v47 = vmul.f32 %v8225_v44, %v4253_v52  ;;  %611 = vrot.lane.b32.xlu1 %v606_v56, %s8164_s28  ;;  %v8233_v44 = vstv %s8216_s16  ;;  %v8235_v35 = vstv %s8217_s1  ;;  %8237 = sst [smem:[#allocation61_spill]] %s4875_s3  ;;  %s4877_s19 = sld [smem:[#allocation8 + $0x56]] }
 0x28a   : > { %v4867_v19 = vmul.f32 %v8233_v44, %v4323_v17  ;;  %v4872_v50 = vmul.f32 %v8235_v35, %v4323_v17  ;;  %v4887_v44 = vmul.f32 %v8241_v20, %v4323_v17  ;;  %v8243_v35 = vstv %s8223_s8  ;;  %s8253_s3 = sld [smem:[#allocation60_spill]]  ;;  %s4995_s8 = sld [smem:[#allocation8 + $0xef]] }
 0x28b   : > { %v8245_v23 = vstv %s8226_s29  ;;  %8247 = sst [smem:[#allocation63_spill]] %s4899_s25  ;;  %s4925_s25 = sld [smem:[#allocation8 + $0x5d]] }
 0x28c   : > { %8234 = vst [vmem:[#allocation91_spill] sm:$0xff] %v4867_v19  ;;  %8236 = vst [vmem:[#allocation92_spill] sm:$0xff] %v4872_v50  ;;  %v8239_v49 = vstv %s8221_s6  ;;  %v4892_v50 = vmul.f32 %v8243_v35, %v4369_v45  ;;  %v4897_v19 = vmul.f32 %v8245_v23, %v4369_v45  ;;  %1586 = vrot.lane.b32.xlu0 %v1574_v0, %s8158_s10  ;;  %s4951_s29 = sld [smem:[#allocation8 + $0xed]]  ;;  %s5562_s9 = sld [smem:[#allocation8 + $0xf3]] }
 0x28d   : > { %v4882_v52 = vmul.f32 %v8239_v49, %v4323_v17  ;;  %8242 = vst [vmem:[#allocation94_spill] sm:$0xff] %v4887_v44  ;;  %v8249_v34 = vstv %s8228_s20  ;;  %v8251_v17 = vstv %s8229_s0  ;;  %v4916_v44 = vmul.f32 %v8243_v35, %v4303_v59  ;;  %619 = vrot.lane.b32.xlu1 %v606_v56, %s8158_s10  ;;  %s4949_s0 = sld [smem:[#allocation8 + $0xa5]]  ;;  %s5043_s20 = sld [smem:[#allocation8 + $0xf6]] }
 0x28e   : > { %8231 = sst [smem:[#allocation59_spill]] %s4857_s11  ;;  %8244 = vst [vmem:[#allocation95_spill] sm:$0xff] %v4892_v50  ;;  %8246 = vst [vmem:[#allocation96_spill] sm:$0xff] %v4897_v19  ;;  %v4906_v49 = vmul.f32 %v8249_v34, %v4369_v45  ;;  %v4911_v20 = vmul.f32 %v8251_v17, %v4369_v45  ;;  %v8256_v45 = vmov %v8251_v17  ;;  %v8257_v35 = vstv %s8216_s16  ;;  %v721_v50 = vpop.permute.xlu0 %720  ;;  %s4971_s16 = sld [smem:[#allocation8 + $0x5f]] }
 0x28f   : > { %8238 = sst [smem:[#allocation62_spill]] %s4877_s19  ;;  %8240 = vst [vmem:[#allocation93_spill] sm:$0xff] %v4882_v52  ;;  %v4921_v52 = vmul.f32 %v8245_v23, %v4303_v59  ;;  %v4935_v17 = vmul.f32 %v8256_v45, %v4303_v59  ;;  %v8259_v23 = vstv %s8217_s1  ;;  %v8265_v45 = vstv %s4621_s30  ;;  %s4969_s1 = sld [smem:[#allocation8 + $0x17]] }
 0x290   : > { %s4901_s19 = sld [smem:[#allocation8 + $0xe6]]  ;;  %8250 = vst [vmem:[#allocation98_spill] sm:$0xff] %v4906_v49  ;;  %8252 = vst [vmem:[#allocation99_spill] sm:$0xff] %v4911_v20  ;;  %v4930_v49 = vmul.f32 %v8249_v34, %v4303_v59  ;;  %v4940_v20 = vmul.f32 %v8257_v35, %v4381_v60  ;;  %v4945_v19 = vmul.f32 %v8259_v23, %v4381_v60  ;;  %v8263_v59 = vstv %s8221_s6  ;;  %s4993_s30 = sld [smem:[#allocation8 + $0xa7]] }
 0x291   : > { %8255 = sst [smem:[#allocation100_spill]] %s4925_s25  ;;  %v4956_v34 = vmul.f32 %v8263_v59, %v4381_v60  ;;  %v4961_v35 = vmul.f32 %v8265_v45, %v4381_v60  ;;  %v8267_v0 = vstv %s8253_s3  ;;  %v8273_v59 = vstv %s4625_s22  ;;  %s8279_s6 = sld [smem:[#allocation67_spill]] }
 0x292   : > { %8258 = vst [vmem:[#allocation101_spill] sm:$0xff] %v4940_v20  ;;  %8260 = vst [vmem:[#allocation102_spill] sm:$0xff] %v4945_v19  ;;  %8262 = sst [smem:[#allocation104_spill]] %s4951_s29  ;;  %v4966_v23 = vmul.f32 %v8267_v0, %v4262_v61  ;;  %v8271_v19 = vstv %s4623_s23  ;;  %v8275_v45 = vstv %s4627_s27  ;;  %v4991_v56 = vmul.f32 %v8267_v0, %v4265_v62  ;;  %s5024_s22 = sld [smem:[#allocation8 + $0x1e]] }
 0x293   : > { %8261 = sst [smem:[#allocation103_spill]] %s4949_s0  ;;  %8264 = vst [vmem:[#allocation105_spill] sm:$0xff] %v4956_v34  ;;  %8266 = vst [vmem:[#allocation106_spill] sm:$0xff] %v4961_v35  ;;  %v4976_v20 = vmul.f32 %v8271_v19, %v4262_v61  ;;  %v4981_v34 = vmul.f32 %v8273_v59, %v4262_v61  ;;  %v4986_v35 = vmul.f32 %v8275_v45, %v4262_v61  ;;  %v8283_v61 = vmov %v8275_v45  ;;  %s5026_s23 = sld [smem:[#allocation8 + $0x66]] }
 0x294   : > { %8268 = vst [vmem:[#allocation107_spill] sm:$0xff] %v4966_v23  ;;  %8270 = sst [smem:[#allocation109_spill]] %s4971_s16  ;;  %8277 = vst [vmem:[#allocation113_spill] sm:$0xff] %v4991_v56  ;;  %v5010_v45 = vmul.f32 %v8283_v61, %v4265_v62  ;;  %v8285_v0 = vstv %s4631_s18  ;;  %v5020_v23 = vsel %vm390_vm4, %v4449_v42, %v4034_v12  ;;  %v8291_v61 = vstv %s4635_s24  ;;  %s5041_s27 = sld [smem:[#allocation8 + $0xae]] }
 0x295   : > { %8269 = sst [smem:[#allocation108_spill]] %s4969_s1  ;;  %8272 = vst [vmem:[#allocation110_spill] sm:$0xff] %v4976_v20  ;;  %8274 = vst [vmem:[#allocation111_spill] sm:$0xff] %v4981_v34  ;;  %v5000_v20 = vmul.f32 %v8271_v19, %v4265_v62  ;;  %v5005_v34 = vmul.f32 %v8273_v59, %v4265_v62  ;;  %v724_v19 = vsel %vm390_vm4, %v721_v50, %v4381_v60  ;;  %v8289_v62 = vstv %s4633_s21  ;;  %s8298_s3 = sld [smem:[#allocation29_spill]] }
 0x296   : > { %8248 = sst [smem:[#allocation97_spill]] %s4901_s19  ;;  %s4923_s19 = sld [smem:[#allocation8 + $0x15]]  ;;  %8276 = vst [vmem:[#allocation112_spill] sm:$0xff] %v4986_v35  ;;  %8284 = vst [vmem:[#allocation117_spill] sm:$0xff] %v5010_v45  ;;  %v5015_v35 = vmul.f32 %v8285_v0, %v4385_v63  ;;  %v5031_v59 = vmul.f32 %v8289_v62, %v4385_v63  ;;  %v5036_v0 = vmul.f32 %v8291_v61, %v4385_v63  ;;  %728 = vrot.lane.b32.xlu0 %v724_v19, %s8164_s28 }
 0x297   : > { %8278 = sst [smem:[#allocation114_spill]] %s4993_s30  ;;  %8281 = vst [vmem:[#allocation115_spill] sm:$0xff] %v5000_v20  ;;  %8282 = vst [vmem:[#allocation116_spill] sm:$0xff] %v5005_v34  ;;  %1696 = vrot.lane.b32.xlu1 %v5020_v23, %s8164_s28  ;;  %v8295_v50 = vstv %s8279_s6  ;;  %v8297_v42 = vstv %s8179_s12  ;;  %v8300_v61 = vstv %s8181_s17  ;;  %s5247_s30 = sld [smem:[#allocation8 + $0x4a]] }
 0x298   : > { %8280 = sst [smem:[#allocation67_spill]] %s4995_s8  ;;  %8286 = vst [vmem:[#allocation118_spill] sm:$0xff] %v5015_v35  ;;  %8290 = vst [vmem:[#allocation121_spill] sm:$0xff] %v5031_v59  ;;  %v5048_v60 = vmul.f32 %v8295_v50, %v4385_v63  ;;  %v5053_v62 = vmul.f32 %v8297_v42, %v4335_v32  ;;  %v5058_v12 = vmul.f32 %v8300_v61, %v4335_v32  ;;  %v8304_v59 = vstv %s8182_s13  ;;  %s5179_s8 = sld [smem:[#allocation8 + $0xd8]] }
 0x299   : > { %8287 = sst [smem:[#allocation119_spill]] %s5024_s22  ;;  %8292 = vst [vmem:[#allocation122_spill] sm:$0xff] %v5036_v0  ;;  %v5068_v50 = vmul.f32 %v8304_v59, %v4335_v32  ;;  %v8311_v0 = vstv %s4633_s21  ;;  %v8315_v59 = vstv %s4635_s24  ;;  %v8317_v35 = vstv %s8279_s6  ;;  %s8318_s22 = sld [smem:[#allocation73_spill]] }
 0x29a   : > { %8288 = sst [smem:[#allocation120_spill]] %s5026_s23  ;;  %8296 = vst [vmem:[#allocation125_spill] sm:$0xff] %v5048_v60  ;;  %8299 = vst [vmem:[#allocation126_spill] sm:$0xff] %v5053_v62  ;;  %s5061_s23 = sld [smem:[#allocation8 + $0x20]]  ;;  %v8306_v60 = vstv %s8183_s14  ;;  %v8309_v62 = vstv %s4631_s18  ;;  %736 = vrot.lane.b32.xlu0 %v724_v19, %s8158_s10 }
 0x29b   : > { %8293 = sst [smem:[#allocation123_spill]] %s5041_s27  ;;  %8301 = vst [vmem:[#allocation127_spill] sm:$0xff] %v5058_v12  ;;  %s5063_s27 = sld [smem:[#allocation8 + $0x68]]  ;;  %8305 = vst [vmem:[#allocation130_spill] sm:$0xff] %v5068_v50  ;;  %v5073_v42 = vmul.f32 %v8306_v60, %v4335_v32  ;;  %v5078_v61 = vmul.f32 %v8309_v62, %v4319_v28  ;;  %v5083_v12 = vmul.f32 %v8311_v0, %v4319_v28  ;;  %v8320_v60 = vstv %s8179_s12 }
 0x29c   : > { %8254 = sst [smem:[#allocation60_spill]] %s4923_s19  ;;  %v5092_v50 = vmul.f32 %v8315_v59, %v4319_v28  ;;  %v5097_v32 = vmul.f32 %v8317_v35, %v4319_v28  ;;  %s8321_s18 = sld [smem:[#allocation74_spill]]  ;;  %v5102_v62 = vmul.f32 %v8320_v60, %v4401_v11  ;;  %v8323_v0 = vstv %s8181_s17 }
 0x29d   : > { %8294 = sst [smem:[#allocation124_spill]] %s5043_s20  ;;  %8308 = vst [vmem:[#allocation131_spill] sm:$0xff] %v5073_v42  ;;  %8310 = vst [vmem:[#allocation132_spill] sm:$0xff] %v5078_v61  ;;  %s8324_s21 = sld [smem:[#allocation75_spill]]  ;;  %v5107_v42 = vmul.f32 %v8323_v0, %v4401_v11  ;;  %v8328_v28 = vstv %s8182_s13  ;;  %v8330_v60 = vstv %s8183_s14 }
 0x29e   : > { %s8307_s20 = sld [smem:[#allocation72_spill]]  ;;  %8312 = vst [vmem:[#allocation133_spill] sm:$0xff] %v5083_v12  ;;  %8316 = vst [vmem:[#allocation135_spill] sm:$0xff] %v5092_v50  ;;  %v3552_v12 = vld [vmem:[%s8298_s3 + $0x38] sm:$0xff]  ;;  %s5112_s24 = sld [smem:[#allocation8 + $0x6]]  ;;  %v5119_v35 = vmul.f32 %v8328_v28, %v4401_v11  ;;  %v5124_v0 = vmul.f32 %v8330_v60, %v4401_v11 }
 0x29f   : > { %8319 = vst [vmem:[#allocation136_spill] sm:$0xff] %v5097_v32  ;;  %8322 = vst [vmem:[#allocation137_spill] sm:$0xff] %v5102_v62  ;;  %v2750_v59 = vsel %vm390_vm4, %v4427_v21, %v3552_v12  ;;  %s5114_s6 = sld [smem:[#allocation8 + $0x4e]]  ;;  %v927_v12 = vpop.permute.xlu1 %926  ;;  %s8334_s12 = sld [smem:[#allocation76_spill]]  ;;  %v8339_v21 = vstv %s8318_s22 }
 0x2a0   : > { %8302 = sst [smem:[#allocation128_spill]] %s5061_s23  ;;  %s5085_s23 = sld [smem:[#allocation8 + $0xb0]]  ;;  %8325 = vst [vmem:[#allocation138_spill] sm:$0xff] %v5107_v42  ;;  %8329 = vst [vmem:[#allocation139_spill] sm:$0xff] %v5119_v35  ;;  %2753 = vrot.lane.b32.xlu1 %v2750_v59, %s8200_s5  ;;  %v5140_v28 = vmul.f32 %v8339_v21, %v4274_v1 }
 0x2a1   : > { %8303 = sst [smem:[#allocation129_spill]] %s5063_s27  ;;  %s5087_s27 = sld [smem:[#allocation8 + $0xf8]]  ;;  %8331 = vst [vmem:[#allocation140_spill] sm:$0xff] %v5124_v0 }
 0x2a2   : > { %s8335_s13 = sld [smem:[#allocation77_spill]]  ;;  %s5133_s17 = sld [smem:[#allocation8 + $0x96]]  ;;  %8341 = vst [vmem:[#allocation142_spill] sm:$0xff] %v5140_v28  ;;  %v5165_v28 = vmul.f32 %v8339_v21, %v4277_v3 }
 0x2a3   : > { %s8340_s14 = sld [smem:[#allocation79_spill]]  ;;  %v8344_v19 = vstv %s8324_s21  ;;  %s8365_s22 = sld [smem:[#allocation70_spill]] }
 0x2a4   : > { %8326 = sst [smem:[#allocation73_spill]] %s5112_s24  ;;  %v8332_v42 = vstv %s8307_s20  ;;  %s5135_s24 = sld [smem:[#allocation8 + $0xde]]  ;;  %v8349_v0 = vstv %s8307_s20  ;;  %8352 = vst [vmem:[#allocation146_spill] sm:$0xff] %v5165_v28 }
 0x2a5   : > { %8327 = sst [smem:[#allocation74_spill]] %s5114_s6  ;;  %v5129_v62 = vmul.f32 %v8332_v42, %v4274_v1  ;;  %s8337_s6 = sld [smem:[#allocation78_spill]]  ;;  %v8342_v42 = vstv %s8321_s18  ;;  %v5160_v35 = vmul.f32 %v8349_v0, %v4277_v3  ;;  %v8359_v0 = vstv %s8334_s12 }
 0x2a6   : > { %8313 = sst [smem:[#allocation72_spill]] %s5085_s23  ;;  %v5145_v60 = vmul.f32 %v8342_v42, %v4274_v1  ;;  %s8360_s20 = sld [smem:[#allocation83_spill]]  ;;  %v5184_v59 = vmul.f32 %v8359_v0, %v4397_v8  ;;  %v929_v0 = vsel %vm390_vm4, %v927_v12, %v4385_v63 }
 0x2a7   : > { %8314 = sst [smem:[#allocation134_spill]] %s5087_s27  ;;  %8333 = vst [vmem:[#allocation141_spill] sm:$0xff] %v5129_v62  ;;  %v5150_v62 = vmul.f32 %v8344_v19, %v4274_v1  ;;  %s5153_s27 = sld [smem:[#allocation8]]  ;;  %8351 = vst [vmem:[#allocation145_spill] sm:$0xff] %v5160_v35  ;;  %v8354_v1 = vmov %v8344_v19  ;;  %934 = vrot.lane.b32.xlu1 %v929_v0, %s8164_s28 }
 0x2a8   : > { %8336 = sst [smem:[#allocation75_spill]] %s5133_s17  ;;  %8343 = vst [vmem:[#allocation143_spill] sm:$0xff] %v5145_v60  ;;  %s8347_s17 = sld [smem:[#allocation80_spill]]  ;;  %v5170_v60 = vmul.f32 %v8342_v42, %v4277_v3  ;;  %v5175_v19 = vmul.f32 %v8354_v1, %v4277_v3  ;;  %8361 = vst [vmem:[#allocation149_spill] sm:$0xff] %v5184_v59  ;;  %v8362_v21 = vstv %s8335_s13 }
 0x2a9   : > { %8345 = vst [vmem:[#allocation144_spill] sm:$0xff] %v5150_v62  ;;  %s5155_s23 = sld [smem:[#allocation8 + $0x48]]  ;;  %v5189_v28 = vmul.f32 %v8362_v21, %v4397_v8  ;;  %v8367_v1 = vstv %s8340_s14  ;;  %s5498_s25 = sld [smem:[#allocation8 + $0x62]] }
 0x2aa   : > { %8338 = sst [smem:[#allocation76_spill]] %s5135_s24  ;;  %s8350_s24 = sld [smem:[#allocation81_spill]]  ;;  %8353 = vst [vmem:[#allocation147_spill] sm:$0xff] %v5170_v60  ;;  %8355 = vst [vmem:[#allocation148_spill] sm:$0xff] %v5175_v19  ;;  %v5199_v19 = vmul.f32 %v8367_v1, %v4397_v8  ;;  %v5204_v60 = vsel %vm390_vm4, %v4455_v53, %v4038_v13 }
 0x2ab   : > { %8358 = sst [smem:[#allocation80_spill]] %s5179_s8  ;;  %8363 = vst [vmem:[#allocation150_spill] sm:$0xff] %v5189_v28  ;;  %v8364_v42 = vstv %s8337_s6  ;;  %1694 = vrot.lane.b32.xlu0 %v5204_v60, %s8164_s28  ;;  %s8378_s8 = sld [smem:[#allocation84_spill]]  ;;  %942 = vrot.lane.b32.xlu1 %v929_v0, %s8158_s10 }
 0x2ac   : > { %v5194_v3 = vmul.f32 %v8364_v42, %v4397_v8  ;;  %8368 = vst [vmem:[#allocation152_spill] sm:$0xff] %v5199_v19  ;;  %s5208_s18 = sld [smem:[#allocation8 + $0x8]]  ;;  %v8380_v12 = vstv %s8360_s20  ;;  %s5516_s29 = sld [smem:[#allocation8 + $0xaa]] }
 0x2ad   : > { %8346 = sst [smem:[#allocation77_spill]] %s5153_s27  ;;  %s5177_s27 = sld [smem:[#allocation8 + $0x90]] }
 0x2ae   : > { %8366 = vst [vmem:[#allocation151_spill] sm:$0xff] %v5194_v3  ;;  %s5210_s21 = sld [smem:[#allocation8 + $0x50]]  ;;  %v8371_v21 = vstv %s8347_s17  ;;  %v8387_v3 = vstv %s8335_s13  ;;  %s5319_s13 = sld [smem:[#allocation8 + $0xe7]] }
 0x2af   : > { %8348 = sst [smem:[#allocation78_spill]] %s5155_s23  ;;  %s8357_s23 = sld [smem:[#allocation82_spill]]  ;;  %v5215_v42 = vmul.f32 %v8371_v21, %v4353_v41  ;;  %v5237_v21 = vmul.f32 %v8380_v12, %v4353_v41  ;;  %v8392_v12 = vstv %s8340_s14  ;;  %1704 = vrot.lane.b32.xlu1 %v5020_v23, %s8158_s10  ;;  %v5508_v23 = vsel %vm390_vm4, %v4451_v43, %v4127_v38  ;;  %v1367_v43 = vpop.permute.xlu1 %1366  ;;  %v8545_v38 = vld [vmem:[#allocation49_spill] sm:$0xff] }
 0x2b0   : > { %v8373_v1 = vstv %s8350_s24  ;;  %s5338_s14 = sld [smem:[#allocation8 + $0x51]]  ;;  %8482 = sst [smem:[#allocation207_spill]] %s5498_s25 }
 0x2b1   : > { %8372 = vst [vmem:[#allocation153_spill] sm:$0xff] %v5215_v42  ;;  %v5220_v19 = vmul.f32 %v8373_v1, %v4353_v41  ;;  %8381 = vst [vmem:[#allocation156_spill] sm:$0xff] %v5237_v21  ;;  %v8382_v1 = vstv %s8334_s12  ;;  %v1637_v42 = vstv %s8365_s22  ;;  %v8394_v21 = vstv %s8347_s17  ;;  %s5269_s12 = sld [smem:[#allocation8 + $0x92]]  ;;  %s5336_s17 = sld [smem:[#allocation8 + $0x9]] }
 0x2b2   : > { %8369 = sst [smem:[#allocation81_spill]] %s5208_s18  ;;  %s5225_s18 = sld [smem:[#allocation8 + $0x98]]  ;;  %v5341_v0 = vmul.f32 %v1637_v42, %v4349_v40 }
 0x2b3   : > { %8356 = sst [smem:[#allocation79_spill]] %s5177_s27  ;;  %8374 = vst [vmem:[#allocation154_spill] sm:$0xff] %v5220_v19  ;;  %v5242_v19 = vmul.f32 %v8382_v1, %v4339_v33  ;;  %s5245_s27 = sld [smem:[#allocation8 + $0x2]]  ;;  %v5262_v1 = vmul.f32 %v8392_v12, %v4339_v33 }
 0x2b4   : > { %8370 = sst [smem:[#allocation82_spill]] %s5210_s21  ;;  %s5227_s21 = sld [smem:[#allocation8 + $0xe0]]  ;;  %8424 = vst [vmem:[#allocation179_spill] sm:$0xff] %v5341_v0 }
 0x2b5   : > { %v8377_v63 = vstv %s8357_s23  ;;  %8383 = vst [vmem:[#allocation157_spill] sm:$0xff] %v5242_v19  ;;  %8393 = vst [vmem:[#allocation160_spill] sm:$0xff] %v5262_v1  ;;  %v5267_v19 = vmul.f32 %v8394_v21, %v4413_v4  ;;  %s5271_s22 = sld [smem:[#allocation8 + $0xda]]  ;;  %v8400_v28 = vstv %s8357_s23  ;;  %v8404_v21 = vstv %s8378_s8  ;;  %v3553_v1 = vld [vmem:[%s8298_s3 + $0x30] sm:$0xff]  ;;  %s5298_s23 = sld [smem:[#allocation8 + $0x57]] }
 0x2b6   : > { %v5232_v53 = vmul.f32 %v8377_v63, %v4353_v41  ;;  %v5252_v63 = vmul.f32 %v8387_v3, %v4339_v33  ;;  %v8398_v3 = vstv %s8350_s24  ;;  %s5296_s24 = sld [smem:[#allocation8 + $0xf]]  ;;  %8415 = sst [smem:[#allocation173_spill]] %s5319_s13 }
 0x2b7   : > { %8395 = vst [vmem:[#allocation161_spill] sm:$0xff] %v5267_v19  ;;  %v5291_v19 = vmul.f32 %v8404_v21, %v4286_v9  ;;  %v8412_v21 = vstv %s4727_s7  ;;  %8422 = sst [smem:[#allocation177_spill]] %s5336_s17  ;;  %s5518_s25 = sld [smem:[#allocation8 + $0xf2]] }
 0x2b8   : > { %8375 = sst [smem:[#allocation83_spill]] %s5225_s18  ;;  %8379 = vst [vmem:[#allocation155_spill] sm:$0xff] %v5232_v53  ;;  %s8385_s18 = sld [smem:[#allocation68_spill]]  ;;  %8389 = vst [vmem:[#allocation158_spill] sm:$0xff] %v5252_v63  ;;  %v8390_v53 = vstv %s8337_s6  ;;  %v5276_v63 = vmul.f32 %v8398_v3, %v4413_v4  ;;  %v2747_v3 = vsel %vm390_vm4, %v4429_v24, %v3553_v1  ;;  %v1044_v24 = vpop.permute.xlu0 %1043  ;;  %v8416_v1 = vstv %s4733_s4 }
 0x2b9   : > { %8384 = sst [smem:[#allocation84_spill]] %s5245_s27  ;;  %v5257_v41 = vmul.f32 %v8390_v53, %v4339_v33  ;;  %v5281_v53 = vmul.f32 %v8400_v28, %v4413_v4  ;;  %v8402_v33 = vstv %s8360_s20  ;;  %8405 = vst [vmem:[#allocation166_spill] sm:$0xff] %v5291_v19  ;;  %v5313_v19 = vmul.f32 %v8412_v21, %v4286_v9  ;;  %2751 = vrot.lane.b32.xlu0 %v2747_v3, %s8200_s5  ;;  %s5317_s6 = sld [smem:[#allocation8 + $0x9f]] }
 0x2ba   : > { %8376 = sst [smem:[#allocation70_spill]] %s5227_s21  ;;  %s8388_s21 = sld [smem:[#allocation69_spill]]  ;;  %8399 = vst [vmem:[#allocation163_spill] sm:$0xff] %v5276_v63  ;;  %v5286_v12 = vmul.f32 %v8402_v33, %v4413_v4  ;;  %v8420_v21 = vstv %s4741_s26 }
 0x2bb   : > { %8386 = sst [smem:[#allocation68_spill]] %s5247_s30  ;;  %8391 = vst [vmem:[#allocation159_spill] sm:$0xff] %v5257_v41  ;;  %8401 = vst [vmem:[#allocation164_spill] sm:$0xff] %v5281_v53  ;;  %v5334_v3 = vmul.f32 %v8420_v21, %v4349_v40  ;;  %s5358_s20 = sld [smem:[#allocation8 + $0x99]] }
 0x2bc   : > { %8396 = sst [smem:[#allocation69_spill]] %s5269_s12  ;;  %8403 = vst [vmem:[#allocation165_spill] sm:$0xff] %v5286_v12  ;;  %8413 = vst [vmem:[#allocation171_spill] sm:$0xff] %v5313_v19  ;;  %v8425_v19 = vstv %s8378_s8  ;;  %s5427_s13 = sld [smem:[#allocation8 + $0xe9]] }
 0x2bd   : > { %8397 = sst [smem:[#allocation162_spill]] %s5271_s22  ;;  %8421 = vst [vmem:[#allocation176_spill] sm:$0xff] %v5334_v3  ;;  %s5541_s1 = sld [smem:[#allocation8 + $0x1b]] }
 0x2be   : > { %8406 = sst [smem:[#allocation167_spill]] %s5296_s24  ;;  %v8408_v28 = vstv %s8385_s18  ;;  %s5447_s24 = sld [smem:[#allocation8 + $0xe3]] }
 0x2bf   : > { %8407 = sst [smem:[#allocation168_spill]] %s5298_s23  ;;  %v5303_v53 = vmul.f32 %v8408_v28, %v4286_v9  ;;  %v5324_v28 = vmul.f32 %v8416_v1, %v4349_v40  ;;  %v8427_v1 = vstv %s8385_s18  ;;  %s5439_s23 = sld [smem:[#allocation8 + $0x53]] }
 0x2c0   : > { %v8410_v33 = vstv %s8388_s21  ;;  %8414 = sst [smem:[#allocation172_spill]] %s5317_s6  ;;  %s5437_s6 = sld [smem:[#allocation8 + $0xb]] }
 0x2c1   : > { %8409 = vst [vmem:[#allocation169_spill] sm:$0xff] %v5303_v53  ;;  %v5308_v12 = vmul.f32 %v8410_v33, %v4286_v9  ;;  %8417 = vst [vmem:[#allocation174_spill] sm:$0xff] %v5324_v28  ;;  %v8418_v9 = vstv %s4735_s2  ;;  %8423 = sst [smem:[#allocation178_spill]] %s5338_s14  ;;  %s5360_s14 = sld [smem:[#allocation8 + $0xe1]]  ;;  %v5385_v28 = vsel %vm390_vm4, %v4431_v6, %v4175_v54  ;;  %v8446_v6 = vlaneseq }
 0x2c2   : > { %v5329_v33 = vmul.f32 %v8418_v9, %v4349_v40  ;;  %v5351_v9 = vmul.f32 %v8427_v1, %v4289_v10  ;;  %8431 = sst [smem:[#allocation183_spill]] %s5358_s20  ;;  %v8433_v40 = vstv %s4727_s7  ;;  %v8437_v1 = vstv %s4735_s2  ;;  %s5394_s2 = sld [smem:[#allocation8 + $0x11]] }
 0x2c3   : > { %8411 = vst [vmem:[#allocation170_spill] sm:$0xff] %v5308_v12  ;;  %v5346_v12 = vmul.f32 %v8425_v19, %v4289_v10  ;;  %v5365_v0 = vmul.f32 %v8433_v40, %v4289_v10  ;;  %v8435_v19 = vstv %s4733_s4  ;;  %v1047_v40 = vsel %vm390_vm4, %v1044_v24, %v4401_v11  ;;  %v5410_v11 = vld [vmem:[%s8298_s3] sm:$0xff]  ;;  %s5425_s20 = sld [smem:[#allocation8 + $0xa1]]  ;;  %8455 = sst [smem:[#allocation193_spill]] %s5427_s13 }
 0x2c4   : > { %8419 = vst [vmem:[#allocation175_spill] sm:$0xff] %v5329_v33  ;;  %8428 = vst [vmem:[#allocation181_spill] sm:$0xff] %v5351_v9  ;;  %v8429_v33 = vstv %s8388_s21  ;;  %v5370_v3 = vmul.f32 %v8435_v19, %v4417_v57  ;;  %v5375_v9 = vmul.f32 %v8437_v1, %v4417_v57  ;;  %v5399_v19 = vmul.f32 %v1637_v42, %v4417_v57  ;;  %v3556_v42 = vld [vmem:[%s8298_s3 + $0x10] sm:$0xff]  ;;  %8460 = sst [smem:[#allocation197_spill]] %s5447_s24  ;;  %s5455_s18 = sld [smem:[#allocation8 + $0x60]] }
 0x2c5   : > { %8426 = vst [vmem:[#allocation180_spill] sm:$0xff] %v5346_v12  ;;  %v5356_v21 = vmul.f32 %v8429_v33, %v4289_v10  ;;  %8434 = vst [vmem:[#allocation185_spill] sm:$0xff] %v5365_v0  ;;  %v8439_v33 = vstv %s4741_s26  ;;  %v5390_v10 = vsel %vm390_vm4, %v4433_v27, %v4179_v55  ;;  %s5396_s26 = sld [smem:[#allocation8 + $0x59]]  ;;  %v5402_v1 = vand.u32 127, %v8446_v6  ;;  %1051 = vrot.lane.b32.xlu0 %v1047_v40, %s8164_s28  ;;  %8457 = sst [smem:[#allocation195_spill]] %s5439_s23 }
 0x2c6   : > { %8436 = vst [vmem:[#allocation186_spill] sm:$0xff] %v5370_v3  ;;  %8438 = vst [vmem:[#allocation187_spill] sm:$0xff] %v5375_v9  ;;  %v5415_v24 = vsel %vm390_vm4, %v4437_v18, %v5410_v11  ;;  %v5420_v6 = vsel %vm390_vm4, %v4441_v30, %v3556_v42  ;;  %8456 = sst [smem:[#allocation194_spill]] %s5437_s6  ;;  %s5453_s6 = sld [smem:[#allocation8 + $0x18]]  ;;  %v5503_v42 = vsel %vm390_vm4, %v4447_v39, %v4067_v22 }
 0x2c7   : > { %8430 = vst [vmem:[#allocation182_spill] sm:$0xff] %v5356_v21  ;;  %8432 = sst [smem:[#allocation184_spill]] %s5360_s14  ;;  %v5380_v21 = vmul.f32 %v8439_v33, %v4417_v57  ;;  %8445 = vst [vmem:[#allocation191_spill] sm:$0xff] %v5399_v19  ;;  %v3554_v33 = vld [vmem:[%s8298_s3 + $0x8] sm:$0xff]  ;;  %v3559_v19 = vld [vmem:[%s8298_s3 + $0x20] sm:$0xff]  ;;  %s5474_s14 = sld [smem:[#allocation8 + $0xf0]] }
 0x2c8   : > { %8441 = sst [smem:[#allocation189_spill]] %s5394_s2  ;;  %v5407_v27 = vsel %vm390_vm4, %v4435_v16, %v3554_v33  ;;  %v3557_v16 = vld [vmem:[%s8298_s3 + $0x18] sm:$0xff]  ;;  %s5480_s2 = sld [smem:[#allocation8 + $0x12]]  ;;  %vm346_vm5 = vcmp.ge.s32.totalorder %v5402_v1, 1  ;;  %vm347_vm6 = vcmp.lt.s32.totalorder %v5402_v1, 15 }
 0x2c9   : > { %8440 = vst [vmem:[#allocation188_spill] sm:$0xff] %v5380_v21  ;;  %8453 = sst [smem:[#allocation192_spill]] %s5425_s20  ;;  %v5432_v18 = vsel %vm390_vm4, %v4439_v29, %v3557_v16  ;;  %s5445_s20 = sld [smem:[#allocation8 + $0x9b]]  ;;  %v3558_v21 = vld [vmem:[%s8298_s3 + $0x28] sm:$0xff]  ;;  %v5465_v16 = vsel %vm390_vm4, %v4445_v36, %v3559_v19  ;;  %1059 = vrot.lane.b32.xlu0 %v1047_v40, %s8158_s10  ;;  %1798 = vrot.lane.b32.xlu1 %v5407_v27, %s8164_s28  ;;  %v1250_v19 = vpop.permute.xlu0 %1249  ;;  %v8524_v40 = vld [vmem:[#allocation33_spill] sm:$0xff] }
 0x2ca   : > { %8465 = sst [smem:[#allocation199_spill]] %s5455_s18  ;;  %v5460_v9 = vsel %vm390_vm4, %v4443_v31, %v3558_v21  ;;  %s5488_s21 = sld [smem:[#allocation8 + $0xa2]]  ;;  %v1252_v33 = vsel %vm390_vm4, %v1250_v19, %v4397_v8  ;;  %v5548_v36 = vsel %vm390_vm4, %v4453_v48, %v4081_v25  ;;  %v8504_v21 = vld [vmem:[#allocation35_spill] sm:$0xff]  ;;  %v8527_v48 = vld [vmem:[#allocation48_spill] sm:$0xff]  ;;  %v8566_v31 = vld [vmem:[#allocation50_spill] sm:$0xff] }
 0x2cb   : > { %8443 = sst [smem:[#allocation190_spill]] %s5396_s26  ;;  %s5482_s26 = sld [smem:[#allocation8 + $0x5a]]  ;;  %v8525_v19 = vld [vmem:[#allocation47_spill] sm:$0xff] }
 0x2cc   : > { %8464 = sst [smem:[#allocation198_spill]] %s5453_s6  ;;  %s5496_s7 = sld [smem:[#allocation8 + $0x1a]]  ;;  %v5591_v39 = vsel %vm390_vm4, %v8525_v19, %v8524_v40 }
 0x2cd   : > { %8469 = sst [smem:[#allocation201_spill]] %s5474_s14  ;;  %1702 = vrot.lane.b32.xlu0 %v5204_v60, %s8158_s10  ;;  %2855 = vrot.lane.b32.xlu1 %v5385_v28, %s8200_s5  ;;  %s5532_s13 = sld [smem:[#allocation8 + $0xa4]]  ;;  %v8505_v28 = vld [vmem:[#allocation46_spill] sm:$0xff] }
 0x2ce   : > { %8471 = sst [smem:[#allocation202_spill]] %s5480_s2  ;;  %s5534_s2 = sld [smem:[#allocation8 + $0xec]]  ;;  %v5553_v8 = vsel %vm390_vm4, %v8505_v28, %v8504_v21  ;;  %v8526_v60 = vld [vmem:[#allocation38_spill] sm:$0xff]  ;;  %v8547_v21 = vld [vmem:[#allocation52_spill] sm:$0xff] }
 0x2cf   : > { %8459 = sst [smem:[#allocation196_spill]] %s5445_s20  ;;  %s5584_s4 = sld [smem:[#allocation8 + $0x21]]  ;;  %v5596_v30 = vsel %vm390_vm4, %v8527_v48, %v8526_v60  ;;  %v1370_v60 = vsel %vm390_vm4, %v1367_v43, %v4413_v4  ;;  %v8544_v28 = vld [vmem:[#allocation34_spill] sm:$0xff]  ;;  %v510_v43 = vpop.permute.xlu1 %509  ;;  %v8565_v48 = vld [vmem:[#allocation36_spill] sm:$0xff] }
 0x2d0   : > { %8475 = sst [smem:[#allocation204_spill]] %s5488_s21  ;;  %s5526_s21 = sld [smem:[#allocation8 + $0x5c]]  ;;  %v5638_v29 = vsel %vm390_vm4, %v8545_v38, %v8544_v28  ;;  %v5680_v40 = vsel %vm390_vm4, %v8566_v31, %v8565_v48  ;;  %v8570_v28 = vld [vmem:[#allocation51_spill] sm:$0xff] }
 0x2d1   : > { %8472 = sst [smem:[#allocation203_spill]] %s5482_s26  ;;  %s5543_s16 = sld [smem:[#allocation8 + $0x63]]  ;;  %1796 = vrot.lane.b32.xlu0 %v5415_v24, %s8164_s28  ;;  %1257 = vrot.lane.b32.xlu1 %v1252_v33, %s8164_s28 }
 0x2d2   : > { %8481 = sst [smem:[#allocation206_spill]] %s5496_s7  ;;  %s5560_s17 = sld [smem:[#allocation8 + $0xab]] }
 0x2d3   : > { %8488 = sst [smem:[#allocation208_spill]] %s5516_s29  ;;  %s5586_s27 = sld [smem:[#allocation8 + $0x69]] }
 0x2d4   : > { %8490 = sst [smem:[#allocation209_spill]] %s5518_s25  ;;  %s5603_s0 = sld [smem:[#allocation8 + $0xb1]] }
 0x2d5   : > { %8496 = sst [smem:[#allocation212_spill]] %s5532_s13  ;;  %2853 = vrot.lane.b32.xlu0 %v5390_v10, %s8200_s5  ;;  %1265 = vrot.lane.b32.xlu1 %v1252_v33, %s8158_s10  ;;  %s5605_s22 = sld [smem:[#allocation8 + $0xf9]]  ;;  %v5616_v10 = vpop.permute.xlu0 %1572  ;;  %v8546_v33 = vld [vmem:[#allocation31_spill] sm:$0xff] }
 0x2d6   : > { %8493 = sst [smem:[#allocation211_spill]] %s5526_s21  ;;  %s5611_s12 = sld [smem:[#allocation8 + $0x23]]  ;;  %v1895_v25 = vsel %vm390_vm4, %v8547_v21, %v8546_v33  ;;  %v8569_v21 = vld [vmem:[#allocation39_spill] sm:$0xff]  ;;  %v518_v33 = vpop.permute.xlu1 %517 }
 0x2d7   : > { %8498 = sst [smem:[#allocation213_spill]] %s5534_s2  ;;  %s5576_s2 = sld [smem:[#allocation8 + $0xad]]  ;;  %v5693_v31 = vsel %vm390_vm4, %v8570_v28, %v8569_v21 }
 0x2d8   : > { %8502 = sst [smem:[#allocation214_spill]] %s5541_s1  ;;  %s5613_s5 = sld [smem:[#allocation8 + $0x6b]] }
 0x2d9   : > { %8503 = sst [smem:[#allocation215_spill]] %s5543_s16  ;;  %s5568_s16 = sld [smem:[#allocation8 + $0x1d]]  ;;  %1806 = vrot.lane.b32.xlu1 %v5407_v27, %s8158_s10  ;;  %1374 = vrot.lane.b32.xlu0 %v1370_v60, %s8164_s28  ;;  %v508_v4 = vpop.permute.xlu0 %507  ;;  %v1575_v27 = vsel %vm390_vm4, %v5616_v10, %v4417_v57  ;;  %v514_v57 = vsel %vm346_vm5, %v510_v43, 0.0 }
 0x2da   : > { %8508 = sst [smem:[#allocation216_spill]] %s5560_s17  ;;  %s5570_s1 = sld [smem:[#allocation8 + $0x65]]  ;;  %v513_v53 = vsel %vm346_vm5, %v508_v4, 0.0  ;;  %v833_v10 = vpop.permute.xlu1 %832 }
 0x2db   : > { %8510 = sst [smem:[#allocation217_spill]] %s5562_s9  ;;  %s5578_s17 = sld [smem:[#allocation8 + $0xf5]] }
 0x2dc   : > { %8522 = sst [smem:[#allocation222_spill]] %s5584_s4  ;;  %s5622_s9 = sld [smem:[#allocation8 + $0xb3]] }
 0x2dd   : > { %8516 = sst [smem:[#allocation220_spill]] %s5576_s2  ;;  %s5631_s7 = sld [smem:[#allocation8 + $0x24]]  ;;  %1900 = vrot.lane.b32.xlu1 %v1895_v25, %s8164_s28  ;;  %1382 = vrot.lane.b32.xlu0 %v1370_v60, %s8158_s10  ;;  %v516_v38 = vpop.permute.xlu0 %515 }
 0x2de   : > { %8523 = sst [smem:[#allocation223_spill]] %s5586_s27  ;;  %s5624_s29 = sld [smem:[#allocation8 + $0xfb]]  ;;  %v521_v19 = vsel %vm347_vm6, %v516_v38, 0.0  ;;  %v522_v38 = vsel %vm347_vm6, %v518_v33, 0.0  ;;  %v841_v33 = vpop.permute.xlu1 %840 }
 0x2df   : > { %8512 = sst [smem:[#allocation218_spill]] %s5568_s16  ;;  %s5633_s3 = sld [smem:[#allocation8 + $0x6c]] }
 0x2e0   : > { %8513 = sst [smem:[#allocation219_spill]] %s5570_s1  ;;  %s8548_s20 = sld [smem:[#allocation205_spill]] }
 0x2e1   : > { %8517 = sst [smem:[#allocation221_spill]] %s5578_s17  ;;  %s8549_s24 = sld [smem:[#allocation206_spill]]  ;;  %1908 = vrot.lane.b32.xlu1 %v1895_v25, %s8158_s10  ;;  %1804 = vrot.lane.b32.xlu0 %v5415_v24, %s8158_s10  ;;  %v831_v25 = vpop.permute.xlu0 %830 }
 0x2e2   : > { %8531 = sst [smem:[#allocation224_spill]] %s5603_s0  ;;  %s8550_s6 = sld [smem:[#allocation207_spill]] }
 0x2e3   : > { %8532 = sst [smem:[#allocation225_spill]] %s5605_s22  ;;  %s8551_s23 = sld [smem:[#allocation208_spill]] }
 0x2e4   : > { %8533 = sst [smem:[#allocation226_spill]] %s5611_s12  ;;  %s5648_s14 = sld [smem:[#allocation8 + $0xb4]] }
 0x2e5   : > { %8534 = sst [smem:[#allocation227_spill]] %s5613_s5  ;;  %s5667_s8 = sld [smem:[#allocation8 + $0xfe]]  ;;  %1580 = vrot.lane.b32.xlu1 %v1575_v27, %s8164_s28  ;;  %1898 = vrot.lane.b32.xlu0 %v5503_v42, %s8164_s28  ;;  %v839_v41 = vpop.permute.xlu0 %838 }
 0x2e6   : > { %8536 = sst [smem:[#allocation228_spill]] %s5622_s9  ;;  %s8561_s19 = sld [smem:[#allocation216_spill]] }
 0x2e7   : > { %8537 = sst [smem:[#allocation229_spill]] %s5624_s29  ;;  %s5659_s29 = sld [smem:[#allocation8 + $0x6e]] }
 0x2e8   : > { %8542 = sst [smem:[#allocation230_spill]] %s5631_s7  ;;  %s5657_s7 = sld [smem:[#allocation8 + $0x26]] }
 0x2e9   : > { %8543 = sst [smem:[#allocation231_spill]] %s5633_s3  ;;  %s5650_s3 = sld [smem:[#allocation8 + $0xfc]]  ;;  %1588 = vrot.lane.b32.xlu1 %v1575_v27, %s8158_s10  ;;  %1906 = vrot.lane.b32.xlu0 %v5503_v42, %s8158_s10  ;;  %v844_v27 = vsel %vm347_vm6, %v839_v41, 0.0 }
 0x2ea   : > { %8552 = sst [smem:[#allocation205_spill]] %s5648_s14  ;;  %s5665_s14 = sld [smem:[#allocation8 + $0xb6]] }
 0x2eb   : > { %8560 = sst [smem:[#allocation234_spill]] %s5667_s8  ;;  %s8562_s30 = sld [smem:[#allocation217_spill]] }
 0x2ec   : > { %s5673_s26 = sld [smem:[#allocation8 + $0x27]]  ;;  %s5721_s22 = sld [smem:[#allocation8 + $0x29]] }
 0x2ed   : > { %8555 = sst [smem:[#allocation232_spill]] %s5659_s29  ;;  %s5723_s0 = sld [smem:[#allocation8 + $0x71]]  ;;  %2017 = vrot.lane.b32.xlu1 %v5548_v36, %s8164_s28  ;;  %2015 = vrot.lane.b32.xlu0 %v5591_v39, %s8164_s28 }
 0x2ee   : > { %8554 = sst [smem:[#allocation207_spill]] %s5657_s7  ;;  %s5675_s29 = sld [smem:[#allocation8 + $0x6f]] }
 0x2ef   : > { %8553 = sst [smem:[#allocation206_spill]] %s5650_s3  ;;  %s5686_s13 = sld [smem:[#allocation8 + $0xb7]] }
 0x2f0   : > { %8559 = sst [smem:[#allocation233_spill]] %s5665_s14  ;;  %s5688_s21 = sld [smem:[#allocation8 + $0xff]] }
 0x2f1   : > { %s8577_s12 = sld [smem:[#allocation71_spill]]  ;;  %s8580_s18 = sld [smem:[#allocation53_spill]]  ;;  %2025 = vrot.lane.b32.xlu1 %v5548_v36, %s8158_s10  ;;  %2023 = vrot.lane.b32.xlu0 %v5591_v39, %s8158_s10 }
 0x2f2   : > { %8563 = sst [smem:[#allocation216_spill]] %s5673_s26  ;;  %s8581_s9 = sld [smem:[#allocation54_spill]] }
 0x2f3   : > { %8578 = sst [smem:[#allocation71_spill]] %s5721_s22  ;;  %s8582_s5 = sld [smem:[#allocation58_spill]] }
 0x2f4   : > { %8564 = sst [smem:[#allocation217_spill]] %s5675_s29  ;;  %s5729_s3 = sld [smem:[#allocation8 + $0xb9]] }
 0x2f5   : > { %8567 = sst [smem:[#allocation235_spill]] %s5686_s13  ;;  %s5731_s11 = sld [smem:[#allocation8 + $0x101]]  ;;  %2119 = vrot.lane.b32.xlu1 %v5432_v18, %s8164_s28  ;;  %2117 = vrot.lane.b32.xlu0 %v5420_v6, %s8164_s28 }
 0x2f6   : > { %8568 = sst [smem:[#allocation236_spill]] %s5688_s21  ;;  %s8586_s14 = sld [smem:[#allocation55_spill]] }
 0x2f7   : > { %8579 = sst [smem:[#allocation237_spill]] %s5723_s0  ;;  %v8585_v4 = vstv %s8577_s12  ;;  %s8587_s16 = sld [smem:[#allocation56_spill]]  ;;  %v8589_v63 = vstv %s8580_s18  ;;  %v8593_v24 = vstv %s8577_s12 }
 0x2f8   : > { %v5740_v28 = vmul.f32 %v8585_v4, %v513_v53  ;;  %s8588_s7 = sld [smem:[#allocation57_spill]]  ;;  %v5749_v43 = vmul.f32 %v8589_v63, %v513_v53  ;;  %v8590_v21 = vstv %s8581_s9  ;;  %s8592_s29 = sld [smem:[#allocation89_spill]]  ;;  %v5765_v0 = vmul.f32 %v8593_v24, %v514_v57 }
 0x2f9   : > { %v5753_v12 = vmul.f32 %v8590_v21, %v513_v53  ;;  %v8591_v3 = vstv %s8582_s5  ;;  %v5769_v60 = vmul.f32 %v8589_v63, %v514_v57  ;;  %v5773_v48 = vmul.f32 %v8590_v21, %v514_v57  ;;  %s8597_s12 = sld [smem:[#allocation64_spill]]  ;;  %s5793_s9 = sld [smem:[#allocation8 + $0x2a]]  ;;  %2127 = vrot.lane.b32.xlu1 %v5432_v18, %s8158_s10  ;;  %2125 = vrot.lane.b32.xlu0 %v5420_v6, %s8158_s10 }
 0x2fa   : > { %8583 = sst [smem:[#allocation53_spill]] %s5729_s3  ;;  %v5757_v4 = vmul.f32 %v8591_v3, %v513_v53  ;;  %v8594_v53 = vmov %v8591_v3  ;;  %v836_v21 = vsel %vm346_vm5, %v831_v25, 0.0  ;;  %s5795_s18 = sld [smem:[#allocation8 + $0x72]] }
 0x2fb   : > { %8584 = sst [smem:[#allocation54_spill]] %s5731_s11  ;;  %v5777_v3 = vmul.f32 %v8594_v53, %v514_v57  ;;  %s8602_s5 = sld [smem:[#allocation65_spill]] }
 0x2fc   : > { %v8595_v59 = vstv %s8586_s14  ;;  %s8603_s21 = sld [smem:[#allocation66_spill]]  ;;  %s8605_s13 = sld [smem:[#allocation59_spill]] }
 0x2fd   : > { %v5781_v55 = vmul.f32 %v8595_v59, %v521_v19  ;;  %v8596_v35 = vstv %s8587_s16  ;;  %v5803_v54 = vmul.f32 %v8595_v59, %v522_v38  ;;  %s8609_s16 = sld [smem:[#allocation62_spill]]  ;;  %s8610_s14 = sld [smem:[#allocation63_spill]]  ;;  %2221 = vrot.lane.b32.xlu1 %v5638_v29, %s8164_s28  ;;  %2219 = vrot.lane.b32.xlu0 %v5553_v8, %s8164_s28 }
 0x2fe   : > { %v5785_v24 = vmul.f32 %v8596_v35, %v521_v19  ;;  %v8598_v63 = vstv %s8588_s7  ;;  %v8601_v57 = vstv %s8592_s29  ;;  %v5807_v32 = vmul.f32 %v8596_v35, %v522_v38  ;;  %s8608_s29 = sld [smem:[#allocation61_spill]]  ;;  %s5832_s7 = sld [smem:[#allocation8 + $0xba]] }
 0x2ff   : > { %v5789_v62 = vmul.f32 %v8598_v63, %v521_v19  ;;  %8599 = sst [smem:[#allocation58_spill]] %s5793_s9  ;;  %v5799_v53 = vmul.f32 %v8601_v57, %v521_v19  ;;  %v5811_v50 = vmul.f32 %v8598_v63, %v522_v38  ;;  %v8604_v25 = vmov %v8601_v57  ;;  %s8616_s0 = sld [smem:[#allocation97_spill]] }
 0x300   : > { %8600 = sst [smem:[#allocation55_spill]] %s5795_s18  ;;  %v5816_v61 = vmul.f32 %v8604_v25, %v522_v38  ;;  %v837_v19 = vsel %vm346_vm5, %v833_v10, 0.0  ;;  %v8606_v35 = vstv %s8597_s12  ;;  %v1154_v38 = vpop.permute.xlu0 %1153  ;;  %v1156_v25 = vpop.permute.xlu1 %1155  ;;  %s5834_s22 = sld [smem:[#allocation8 + $0x102]]  ;;  %v845_v10 = vsel %vm347_vm6, %v841_v33, 0.0 }
 0x301   : > { %v5826_v63 = vmul.f32 %v8606_v35, %v836_v21  ;;  %v8613_v42 = vstv %s8602_s5  ;;  %s5850_s11 = sld [smem:[#allocation8 + $0x2c]]  ;;  %v8622_v45 = vstv %s8597_s12  ;;  %s8636_s12 = sld [smem:[#allocation103_spill]]  ;;  %2229 = vrot.lane.b32.xlu1 %v5638_v29, %s8158_s10  ;;  %2227 = vrot.lane.b32.xlu0 %v5553_v8, %s8158_s10 }
 0x302   : > { %v5838_v59 = vmul.f32 %v8613_v42, %v836_v21  ;;  %v8615_v35 = vstv %s8603_s21  ;;  %v8618_v41 = vstv %s8605_s13  ;;  %s5852_s3 = sld [smem:[#allocation8 + $0x74]]  ;;  %v5856_v20 = vmul.f32 %v8622_v45, %v837_v19  ;;  %s8635_s13 = sld [smem:[#allocation100_spill]] }
 0x303   : > { %8607 = vst [vmem:[#allocation46_spill] sm:$0xff] %v5826_v63  ;;  %v5842_v57 = vmul.f32 %v8615_v35, %v836_v21  ;;  %v5846_v34 = vmul.f32 %v8618_v41, %v836_v21  ;;  %v8626_v63 = vmov %v8618_v41  ;;  %v8630_v45 = vstv %s8609_s16  ;;  %s8633_s21 = sld [smem:[#allocation60_spill]]  ;;  %s8640_s5 = sld [smem:[#allocation104_spill]] }
 0x304   : > { %8611 = sst [smem:[#allocation56_spill]] %s5832_s7  ;;  %8614 = vst [vmem:[#allocation47_spill] sm:$0xff] %v5838_v59  ;;  %8623 = vst [vmem:[#allocation52_spill] sm:$0xff] %v5856_v20  ;;  %v5860_v59 = vmul.f32 %v8613_v42, %v837_v19  ;;  %v5868_v21 = vmul.f32 %v8626_v63, %v837_v19  ;;  %v8628_v33 = vstv %s8608_s29  ;;  %v8632_v42 = vstv %s8610_s14  ;;  %s5902_s26 = sld [smem:[#allocation8 + $0xbc]] }
 0x305   : > { %8617 = vst [vmem:[#allocation48_spill] sm:$0xff] %v5842_v57  ;;  %8619 = vst [vmem:[#allocation49_spill] sm:$0xff] %v5846_v34  ;;  %v5864_v57 = vmul.f32 %v8615_v35, %v837_v19  ;;  %v5874_v41 = vmul.f32 %v8628_v33, %v844_v27  ;;  %v5878_v34 = vmul.f32 %v8630_v45, %v844_v27  ;;  %v1159_v19 = vsel %vm346_vm5, %v1154_v38, 0.0  ;;  %v1162_v38 = vpop.permute.xlu0 %1161  ;;  %s5904_s8 = sld [smem:[#allocation8 + $0x104]]  ;;  %s8651_s29 = sld [smem:[#allocation108_spill]] }
 0x306   : > { %8612 = sst [smem:[#allocation57_spill]] %s5834_s22  ;;  %8624 = vst [vmem:[#allocation50_spill] sm:$0xff] %v5860_v59  ;;  %8627 = vst [vmem:[#allocation238_spill] sm:$0xff] %v5868_v21  ;;  %v5882_v35 = vmul.f32 %v8632_v42, %v844_v27  ;;  %v8637_v63 = vstv %s8616_s0  ;;  %v1160_v42 = vsel %vm346_vm5, %v1156_v25, 0.0  ;;  %s8658_s16 = sld [smem:[#allocation114_spill]]  ;;  %2338 = vrot.lane.b32.xlu1 %v5508_v23, %s8164_s28  ;;  %2336 = vrot.lane.b32.xlu0 %v5680_v40, %s8164_s28 }
 0x307   : > { %8620 = sst [smem:[#allocation89_spill]] %s5850_s11  ;;  %8625 = vst [vmem:[#allocation51_spill] sm:$0xff] %v5864_v57  ;;  %8629 = vst [vmem:[#allocation239_spill] sm:$0xff] %v5874_v41  ;;  %v5890_v56 = vmul.f32 %v8637_v63, %v844_v27  ;;  %v5894_v41 = vmul.f32 %v8628_v33, %v845_v10  ;;  %v8644_v27 = vstv %s8610_s14  ;;  %v8646_v33 = vstv %s8616_s0  ;;  %s8656_s0 = sld [smem:[#allocation109_spill]] }
 0x308   : > { %8621 = sst [smem:[#allocation64_spill]] %s5852_s3  ;;  %8631 = vst [vmem:[#allocation240_spill] sm:$0xff] %v5878_v34  ;;  %8634 = vst [vmem:[#allocation241_spill] sm:$0xff] %v5882_v35  ;;  %v5898_v34 = vmul.f32 %v8630_v45, %v845_v10  ;;  %v1164_v35 = vpop.permute.xlu1 %1163  ;;  %v5908_v63 = vmul.f32 %v8644_v27, %v845_v10  ;;  %v8650_v21 = vstv %s8635_s13  ;;  %v8653_v59 = vstv %s8636_s12  ;;  %s8660_s14 = sld [smem:[#allocation67_spill]] }
 0x309   : > { %8638 = vst [vmem:[#allocation242_spill] sm:$0xff] %v5890_v56  ;;  %8639 = vst [vmem:[#allocation243_spill] sm:$0xff] %v5894_v41  ;;  %v5912_v56 = vmul.f32 %v8646_v33, %v845_v10  ;;  %v8648_v41 = vstv %s8633_s21  ;;  %v5922_v57 = vmul.f32 %v8650_v21, %v1159_v19  ;;  %v5926_v20 = vmul.f32 %v8653_v59, %v1159_v19  ;;  %s8668_s21 = sld [smem:[#allocation119_spill]]  ;;  %s8669_s13 = sld [smem:[#allocation120_spill]] }
 0x30a   : > { %8641 = vst [vmem:[#allocation244_spill] sm:$0xff] %v5898_v34  ;;  %8642 = sst [smem:[#allocation65_spill]] %s5902_s26  ;;  %8645 = vst [vmem:[#allocation245_spill] sm:$0xff] %v5908_v63  ;;  %v5918_v25 = vmul.f32 %v8648_v41, %v1159_v19  ;;  %v1167_v27 = vsel %vm347_vm6, %v1162_v38, 0.0  ;;  %v8655_v10 = vstv %s8640_s5  ;;  %v5938_v34 = vmul.f32 %v8648_v41, %v1160_v42  ;;  %v1477_v41 = vpop.permute.xlu0 %1476  ;;  %s8682_s5 = sld [smem:[#allocation124_spill]]  ;;  %2346 = vrot.lane.b32.xlu1 %v5508_v23, %s8158_s10 }
 0x30b   : > { %8643 = sst [smem:[#allocation66_spill]] %s5904_s8  ;;  %8647 = vst [vmem:[#allocation246_spill] sm:$0xff] %v5912_v56  ;;  %8652 = vst [vmem:[#allocation248_spill] sm:$0xff] %v5922_v57  ;;  %v5934_v33 = vmul.f32 %v8655_v10, %v1159_v19  ;;  %v5942_v59 = vmul.f32 %v8650_v21, %v1160_v42  ;;  %v1168_v38 = vsel %vm347_vm6, %v1164_v35, 0.0  ;;  %v8662_v36 = vstv %s8636_s12  ;;  %s8679_s12 = sld [smem:[#allocation123_spill]]  ;;  %2344 = vrot.lane.b32.xlu0 %v5680_v40, %s8158_s10 }
 0x30c   : > { %8649 = vst [vmem:[#allocation247_spill] sm:$0xff] %v5918_v25  ;;  %8654 = vst [vmem:[#allocation249_spill] sm:$0xff] %v5926_v20  ;;  %v5950_v45 = vmul.f32 %v8662_v36, %v1160_v42  ;;  %v8664_v19 = vmov %v8655_v10  ;;  %v1482_v39 = vsel %vm346_vm5, %v1477_v41, 0.0  ;;  %s8694_s3 = sld [smem:[#allocation72_spill]]  ;;  %s6012_s11 = sld [smem:[#allocation8 + $0xb5]] }
 0x30d   : > { %8657 = vst [vmem:[#allocation250_spill] sm:$0xff] %v5934_v33  ;;  %8659 = vst [vmem:[#allocation251_spill] sm:$0xff] %v5938_v34  ;;  %v5954_v10 = vmul.f32 %v8664_v19, %v1160_v42  ;;  %v1479_v34 = vpop.permute.xlu1 %1478  ;;  %v8666_v33 = vstv %s8651_s29  ;;  %v8672_v42 = vstv %s8658_s16  ;;  %s6000_s29 = sld [smem:[#allocation8 + $0x25]]  ;;  %s8692_s16 = sld [smem:[#allocation128_spill]] }
 0x30e   : > { %8661 = vst [vmem:[#allocation252_spill] sm:$0xff] %v5942_v59  ;;  %8663 = vst [vmem:[#allocation253_spill] sm:$0xff] %v5950_v45  ;;  %v5960_v20 = vmul.f32 %v8666_v33, %v1167_v27  ;;  %v8670_v45 = vstv %s8656_s0  ;;  %v5972_v19 = vmul.f32 %v8672_v42, %v1167_v27  ;;  %v8676_v59 = vmov %v8666_v33  ;;  %s6002_s0 = sld [smem:[#allocation8 + $0x6d]]  ;;  %s8696_s22 = sld [smem:[#allocation134_spill]]  ;;  %2440 = vrot.lane.b32.xlu1 %v5460_v9, %s8164_s28 }
 0x30f   : > { %8665 = vst [vmem:[#allocation254_spill] sm:$0xff] %v5954_v10  ;;  %v5968_v57 = vmul.f32 %v8670_v45, %v1167_v27  ;;  %v8674_v10 = vstv %s8660_s14  ;;  %v5980_v33 = vmul.f32 %v8676_v59, %v1168_v38  ;;  %v8678_v41 = vmov %v8670_v45  ;;  %s8693_s14 = sld [smem:[#allocation129_spill]]  ;;  %s6014_s7 = sld [smem:[#allocation8 + $0xfd]]  ;;  %2438 = vrot.lane.b32.xlu0 %v5465_v16, %s8164_s28 }
 0x310   : > { %8667 = vst [vmem:[#allocation255_spill] sm:$0xff] %v5960_v20  ;;  %8673 = vst [vmem:[#allocation257_spill] sm:$0xff] %v5972_v19  ;;  %v5976_v25 = vmul.f32 %v8674_v10, %v1167_v27  ;;  %v5986_v36 = vmul.f32 %v8678_v41, %v1168_v38  ;;  %v8681_v45 = vmov %v8672_v42  ;;  %v8684_v42 = vmov %v8674_v10  ;;  %s8727_s8 = sld [smem:[#allocation77_spill]]  ;;  %s8730_s26 = sld [smem:[#allocation78_spill]] }
 0x311   : > { %8671 = vst [vmem:[#allocation256_spill] sm:$0xff] %v5968_v57  ;;  %8677 = vst [vmem:[#allocation259_spill] sm:$0xff] %v5980_v33  ;;  %v5990_v35 = vmul.f32 %v8681_v45, %v1168_v38  ;;  %v5994_v21 = vmul.f32 %v8684_v42, %v1168_v38  ;;  %v1483_v27 = vsel %vm346_vm5, %v1479_v34, 0.0  ;;  %v8688_v59 = vstv %s8668_s21  ;;  %v1485_v45 = vpop.permute.xlu0 %1484  ;;  %v1487_v34 = vpop.permute.xlu1 %1486  ;;  %s8732_s18 = sld [smem:[#allocation79_spill]]  ;;  %s8733_s9 = sld [smem:[#allocation80_spill]] }
 0x312   : > { %8675 = vst [vmem:[#allocation258_spill] sm:$0xff] %v5976_v25  ;;  %8680 = vst [vmem:[#allocation260_spill] sm:$0xff] %v5986_v36  ;;  %v6006_v10 = vmul.f32 %v8688_v59, %v1482_v39  ;;  %v8690_v41 = vstv %s8669_s13  ;;  %8695 = sst [smem:[#allocation62_spill]] %s6012_s11  ;;  %v1491_v36 = vsel %vm347_vm6, %v1487_v34, 0.0  ;;  %v8702_v33 = vstv %s8668_s21  ;;  %s8715_s21 = sld [smem:[#allocation73_spill]]  ;;  %2448 = vrot.lane.b32.xlu1 %v5460_v9, %s8158_s10 }
 0x313   : > { %8683 = vst [vmem:[#allocation261_spill] sm:$0xff] %v5990_v35  ;;  %8685 = vst [vmem:[#allocation262_spill] sm:$0xff] %v5994_v21  ;;  %8686 = sst [smem:[#allocation59_spill]] %s6000_s29  ;;  %v6010_v38 = vmul.f32 %v8690_v41, %v1482_v39  ;;  %v8698_v35 = vstv %s8679_s12  ;;  %v6032_v25 = vmul.f32 %v8702_v33, %v1483_v27  ;;  %v8704_v42 = vstv %s8669_s13  ;;  %s8718_s13 = sld [smem:[#allocation74_spill]]  ;;  %2446 = vrot.lane.b32.xlu0 %v5465_v16, %s8158_s10 }
 0x314   : > { %8687 = sst [smem:[#allocation61_spill]] %s6002_s0  ;;  %8689 = vst [vmem:[#allocation263_spill] sm:$0xff] %v6006_v10  ;;  %v6020_v59 = vmul.f32 %v8698_v35, %v1482_v39  ;;  %v8700_v10 = vstv %s8682_s5  ;;  %v6036_v21 = vmul.f32 %v8704_v42, %v1483_v27  ;;  %v8706_v19 = vmov %v8698_v35  ;;  %s8720_s12 = sld [smem:[#allocation75_spill]] }
 0x315   : > { %8691 = vst [vmem:[#allocation264_spill] sm:$0xff] %v6010_v38  ;;  %8697 = sst [smem:[#allocation63_spill]] %s6014_s7  ;;  %v6024_v41 = vmul.f32 %v8700_v10, %v1482_v39  ;;  %v1490_v38 = vsel %vm347_vm6, %v1485_v45, 0.0  ;;  %8703 = vst [vmem:[#allocation267_spill] sm:$0xff] %v6032_v25  ;;  %v6040_v35 = vmul.f32 %v8706_v19, %v1483_v27  ;;  %v8712_v34 = vstv %s8693_s14  ;;  %s8722_s5 = sld [smem:[#allocation76_spill]] }
 0x316   : > { %8699 = vst [vmem:[#allocation265_spill] sm:$0xff] %v6020_v59  ;;  %8705 = vst [vmem:[#allocation268_spill] sm:$0xff] %v6036_v21  ;;  %v8708_v59 = vmov %v8700_v10  ;;  %v8710_v10 = vstv %s8692_s16  ;;  %v6054_v33 = vmul.f32 %v8712_v34, %v1490_v38  ;;  %v8717_v19 = vstv %s8696_s22  ;;  %s6090_s22 = sld [smem:[#allocation8 + $0x70]]  ;;  %s8744_s16 = sld [smem:[#allocation81_spill]]  ;;  %2542 = vrot.lane.b32.xlu1 %v5693_v31, %s8164_s28 }
 0x317   : > { %8701 = vst [vmem:[#allocation266_spill] sm:$0xff] %v6024_v41  ;;  %8707 = vst [vmem:[#allocation269_spill] sm:$0xff] %v6040_v35  ;;  %v6044_v39 = vmul.f32 %v8708_v59, %v1483_v27  ;;  %v6050_v45 = vmul.f32 %v8710_v10, %v1490_v38  ;;  %v8714_v41 = vstv %s8694_s3  ;;  %v6062_v35 = vmul.f32 %v8717_v19, %v1490_v38  ;;  %s6088_s3 = sld [smem:[#allocation8 + $0x28]]  ;;  %s8745_s14 = sld [smem:[#allocation82_spill]] }
 0x318   : > { %8713 = vst [vmem:[#allocation272_spill] sm:$0xff] %v6054_v33  ;;  %v6058_v42 = vmul.f32 %v8714_v41, %v1490_v38  ;;  %v8721_v27 = vmov %v8710_v10  ;;  %v8724_v59 = vmov %v8712_v34  ;;  %v8726_v34 = vmov %v8714_v41  ;;  %v610_v38 = vpop.permute.xlu0 %609  ;;  %s8747_s25 = sld [smem:[#allocation83_spill]]  ;;  %s8750_s15 = sld [smem:[#allocation70_spill]]  ;;  %2540 = vrot.lane.b32.xlu0 %v5596_v30, %s8164_s28 }
 0x319   : > { %8709 = vst [vmem:[#allocation270_spill] sm:$0xff] %v6044_v39  ;;  %8711 = vst [vmem:[#allocation271_spill] sm:$0xff] %v6050_v45  ;;  %v6068_v18 = vmul.f32 %v8721_v27, %v1491_v36  ;;  %v6072_v10 = vmul.f32 %v8724_v59, %v1491_v36  ;;  %v6076_v39 = vmul.f32 %v8726_v34, %v1491_v36  ;;  %v8729_v41 = vmov %v8717_v19  ;;  %v408_v19 = vpop.permute.xlu1 %407  ;;  %s8780_s27 = sld [smem:[#allocation189_spill]]  ;;  %s8781_s4 = sld [smem:[#allocation190_spill]] }
 0x31a   : > { %8716 = vst [vmem:[#allocation273_spill] sm:$0xff] %v6058_v42  ;;  %8719 = vst [vmem:[#allocation274_spill] sm:$0xff] %v6062_v35  ;;  %v6080_v21 = vmul.f32 %v8729_v41, %v1491_v36  ;;  %v615_v6 = vsel %vm346_vm5, %v610_v38, 0.0  ;;  %v412_v27 = vsel %vm346_vm5, %v408_v19, 0.0  ;;  %v8736_v36 = vstv %s8715_s21  ;;  %s8755_s21 = sld [smem:[#allocation162_spill]]  ;;  %s8790_s17 = sld [smem:[#allocation196_spill]]  ;;  %2550 = vrot.lane.b32.xlu1 %v5693_v31, %s8158_s10 }
 0x31b   : > { %8723 = vst [vmem:[#allocation275_spill] sm:$0xff] %v6068_v18  ;;  %8725 = vst [vmem:[#allocation276_spill] sm:$0xff] %v6072_v10  ;;  %v6094_v34 = vmul.f32 %v8736_v36, %v615_v6  ;;  %v8737_v41 = vstv %s8718_s13  ;;  %v8738_v38 = vstv %s8720_s12  ;;  %v8739_v19 = vstv %s8722_s5  ;;  %s8752_s5 = sld [smem:[#allocation84_spill]]  ;;  %s8754_s13 = sld [smem:[#allocation69_spill]] }
 0x31c   : > { %8728 = vst [vmem:[#allocation277_spill] sm:$0xff] %v6076_v39  ;;  %8731 = vst [vmem:[#allocation278_spill] sm:$0xff] %v6080_v21  ;;  %8735 = sst [smem:[#allocation60_spill]] %s6090_s22  ;;  %v6098_v21 = vmul.f32 %v8737_v41, %v615_v6  ;;  %v6102_v39 = vmul.f32 %v8738_v38, %v615_v6  ;;  %v6106_v59 = vmul.f32 %v8739_v19, %v615_v6  ;;  %v8740_v10 = vstv %s8727_s8  ;;  %v618_v41 = vpop.permute.xlu0 %617  ;;  %s8812_s1 = sld [smem:[#allocation204_spill]] }
 0x31d   : > { %8734 = sst [smem:[#allocation97_spill]] %s6088_s3  ;;  %v424_v18 = vmul.f32 %v8740_v10, %v412_v27  ;;  %v8741_v35 = vstv %s8730_s26  ;;  %v8742_v33 = vstv %s8732_s18  ;;  %v8743_v36 = vstv %s8733_s9  ;;  %v416_v6 = vpop.permute.xlu1 %415  ;;  %s8753_s12 = sld [smem:[#allocation68_spill]]  ;;  %2548 = vrot.lane.b32.xlu0 %v5596_v30, %s8158_s10 }
 0x31e   : > { %v430_v42 = vmul.f32 %v8741_v35, %v412_v27  ;;  %v436_v45 = vmul.f32 %v8742_v33, %v412_v27  ;;  %v442_v25 = vmul.f32 %v8743_v36, %v412_v27  ;;  %v8746_v38 = vstv %s6000_s29  ;;  %s8770_s29 = sld [smem:[#allocation173_spill]]  ;;  %s8791_s2 = sld [smem:[#allocation197_spill]] }
 0x31f   : > { %v6123_v19 = vmul.f32 %v8746_v38, %v4038_v13  ;;  %v8749_v35 = vstv %s6002_s0  ;;  %v8055_v10 = vstv %s6012_s11  ;;  %v8057_v27 = vstv %s6014_s7  ;;  %s8764_s7 = sld [smem:[#allocation167_spill]]  ;;  %s8766_s11 = sld [smem:[#allocation168_spill]] }
 0x320   : > { %v6128_v33 = vmul.f32 %v8749_v35, %v4038_v13  ;;  %v450_v36 = vadd.f32 %v4773_v15, %v424_v18  ;;  %v456_v57 = vadd.f32 %v4793_v37, %v430_v42  ;;  %v462_v20 = vadd.f32 %v4798_v7, %v436_v45  ;;  %s8768_s0 = sld [smem:[#allocation172_spill]] }
 0x321   : > { %8748 = vst [vmem:[#allocation279_spill] sm:$0xff] %v6123_v19  ;;  %v468_v38 = vadd.f32 %v4803_v46, %v442_v25  ;;  %v623_v19 = vsel %vm347_vm6, %v618_v41, 0.0  ;;  %v420_v35 = vsel %vm347_vm6, %v416_v6, 0.0  ;;  %v6145_v15 = vmul.f32 %v8055_v10, %v4038_v13 }
 0x322   : > { %8751 = vst [vmem:[#allocation280_spill] sm:$0xff] %v6128_v33  ;;  %v6150_v7 = vmul.f32 %v8057_v27, %v4038_v13  ;;  %v8758_v37 = vstv %s8744_s16  ;;  %v8759_v25 = vstv %s8745_s14  ;;  %v8760_v42 = vstv %s8747_s25  ;;  %v731_v33 = vpop.permute.xlu1 %730  ;;  %s8772_s25 = sld [smem:[#allocation178_spill]]  ;;  %s8773_s14 = sld [smem:[#allocation183_spill]] }
 0x323   : > { %8756 = vst [vmem:[#allocation281_spill] sm:$0xff] %v6145_v15  ;;  %v6154_v46 = vmul.f32 %v8758_v37, %v623_v19  ;;  %v6158_v45 = vmul.f32 %v8759_v25, %v623_v19  ;;  %v6162_v18 = vmul.f32 %v8760_v42, %v623_v19  ;;  %v8761_v29 = vstv %s8750_s15  ;;  %v933_v42 = vpop.permute.xlu0 %932  ;;  %s8771_s15 = sld [smem:[#allocation177_spill]]  ;;  %s8774_s16 = sld [smem:[#allocation184_spill]] }
 0x324   : > { %8757 = vst [vmem:[#allocation282_spill] sm:$0xff] %v6150_v7  ;;  %v6166_v41 = vmul.f32 %v8761_v29, %v623_v19  ;;  %v8763_v6 = vstv %s8752_s5  ;;  %v8765_v13 = vstv %s8753_s12  ;;  %v8767_v37 = vstv %s8754_s13 }
 0x325   : > { %v472_v10 = vmul.f32 %v8763_v6, %v420_v35  ;;  %v478_v27 = vmul.f32 %v8765_v13, %v420_v35  ;;  %v484_v7 = vmul.f32 %v8767_v37, %v420_v35  ;;  %v8769_v25 = vstv %s8755_s21  ;;  %s6270_s21 = sld [smem:[#allocation8 + $0x2b]] }
 0x326   : > { %8762 = vst [vmem:[#allocation283_spill] sm:$0xff] %v6166_v41  ;;  %v490_v15 = vmul.f32 %v8769_v25, %v420_v35  ;;  %v938_v19 = vsel %vm346_vm5, %v933_v42, 0.0  ;;  %v735_v8 = vsel %vm346_vm5, %v731_v33, 0.0  ;;  %v8775_v35 = vstv %s8764_s7  ;;  %s8782_s7 = sld [smem:[#allocation192_spill]] }
 0x327   : > { %v474_v6 = vadd.f32 %v472_v10, %v450_v36  ;;  %v480_v63 = vadd.f32 %v478_v27, %v456_v57  ;;  %v486_v13 = vadd.f32 %v484_v7, %v462_v20  ;;  %v6188_v25 = vmul.f32 %v8775_v35, %v938_v19  ;;  %v739_v7 = vpop.permute.xlu1 %738 }
 0x328   : > { %v492_v37 = vadd.f32 %v490_v15, %v468_v38  ;;  %v8776_v42 = vstv %s8766_s11  ;;  %v8777_v33 = vstv %s8768_s0  ;;  %v8778_v10 = vstv %s8770_s29  ;;  %s8783_s11 = sld [smem:[#allocation193_spill]]  ;;  %v941_v15 = vpop.permute.xlu0 %940  ;;  %s8786_s29 = sld [smem:[#allocation194_spill]] }
 0x329   : > { %v6192_v41 = vmul.f32 %v8776_v42, %v938_v19  ;;  %v6196_v29 = vmul.f32 %v8777_v33, %v938_v19  ;;  %v6200_v36 = vmul.f32 %v8778_v10, %v938_v19  ;;  %v528_v20 = vadd.f32 %v5765_v0, %v474_v6  ;;  %s8788_s0 = sld [smem:[#allocation195_spill]] }
 0x32a   : > { %v534_v57 = vadd.f32 %v5769_v60, %v480_v63  ;;  %v540_v27 = vadd.f32 %v5773_v48, %v486_v13  ;;  %v546_v38 = vadd.f32 %v5777_v3, %v492_v37  ;;  %v8784_v35 = vstv %s8771_s15  ;;  %s8803_s15 = sld [smem:[#allocation200_spill]] }
 0x32b   : > { %8779 = vst [vmem:[#allocation284_spill] sm:$0xff] %v6200_v36  ;;  %v6210_v19 = vmul.f32 %v8784_v35, %v735_v8  ;;  %v8785_v42 = vstv %s8772_s25  ;;  %v8787_v10 = vstv %s8773_s14  ;;  %v8789_v60 = vstv %s8774_s16  ;;  %s8800_s16 = sld [smem:[#allocation198_spill]]  ;;  %s8801_s14 = sld [smem:[#allocation199_spill]] }
 0x32c   : > { %v6214_v33 = vmul.f32 %v8785_v42, %v735_v8  ;;  %v6218_v0 = vmul.f32 %v8787_v10, %v735_v8  ;;  %v6222_v63 = vmul.f32 %v8789_v60, %v735_v8  ;;  %v946_v48 = vsel %vm347_vm6, %v941_v15, 0.0  ;;  %s6250_s25 = sld [smem:[#allocation8 + $0xb8]]  ;;  %8813 = sst [smem:[#allocation104_spill]] %s6270_s21 }
 0x32d   : > { %v743_v3 = vsel %vm347_vm6, %v739_v7, 0.0  ;;  %v552_v6 = vadd.f32 %v4832_v26, %v528_v20  ;;  %v558_v13 = vadd.f32 %v4846_v47, %v534_v57  ;;  %v8792_v37 = vstv %s8780_s27  ;;  %s6252_s27 = sld [smem:[#allocation8 + $0x100]] }
 0x32e   : > { %v6234_v35 = vmul.f32 %v8792_v37, %v946_v48  ;;  %v8794_v42 = vstv %s8781_s4  ;;  %v8796_v10 = vstv %s8782_s7  ;;  %v8798_v15 = vstv %s8783_s11  ;;  %s8806_s4 = sld [smem:[#allocation201_spill]]  ;;  %s8809_s11 = sld [smem:[#allocation202_spill]]  ;;  %v1256_v37 = vpop.permute.xlu0 %1255 }
 0x32f   : > { %v6238_v8 = vmul.f32 %v8794_v42, %v946_v48  ;;  %v6242_v60 = vmul.f32 %v8796_v10, %v946_v48  ;;  %v6246_v56 = vmul.f32 %v8798_v15, %v946_v48  ;;  %v8805_v26 = vstv %s8786_s29  ;;  %s8811_s7 = sld [smem:[#allocation203_spill]]  ;;  %v1054_v42 = vpop.permute.xlu1 %1053  ;;  %s6272_s29 = sld [smem:[#allocation8 + $0x73]] }
 0x330   : > { %8793 = vst [vmem:[#allocation285_spill] sm:$0xff] %v6234_v35  ;;  %v6256_v47 = vmul.f32 %v8805_v26, %v743_v3  ;;  %v8807_v23 = vstv %s8788_s0  ;;  %v8808_v57 = vstv %s8790_s17  ;;  %v8810_v48 = vstv %s8791_s2 }
 0x331   : > { %8795 = vst [vmem:[#allocation286_spill] sm:$0xff] %v6238_v8  ;;  %8797 = vst [vmem:[#allocation287_spill] sm:$0xff] %v6242_v60  ;;  %v6260_v20 = vmul.f32 %v8807_v23, %v743_v3  ;;  %v6264_v7 = vmul.f32 %v8808_v57, %v743_v3  ;;  %v6268_v40 = vmul.f32 %v8810_v48, %v743_v3  ;;  %v1261_v10 = vsel %vm346_vm5, %v1256_v37, 0.0 }
 0x332   : > { %8799 = vst [vmem:[#allocation288_spill] sm:$0xff] %v6246_v56  ;;  %8802 = sst [smem:[#allocation100_spill]] %s6250_s25  ;;  %v1058_v15 = vsel %vm346_vm5, %v1054_v42, 0.0  ;;  %v564_v26 = vadd.f32 %v4851_v51, %v540_v27  ;;  %v570_v23 = vadd.f32 %v4862_v5, %v546_v38  ;;  %v8815_v3 = vstv %s8800_s16  ;;  %s8830_s16 = sld [smem:[#allocation212_spill]] }
 0x333   : > { %8804 = sst [smem:[#allocation103_spill]] %s6252_s27  ;;  %v6282_v57 = vmul.f32 %v8815_v3, %v1261_v10  ;;  %v8817_v48 = vstv %s8801_s14  ;;  %v8819_v60 = vstv %s8803_s15  ;;  %v8825_v37 = vstv %s8812_s1  ;;  %s8828_s15 = sld [smem:[#allocation210_spill]]  ;;  %v1062_v3 = vpop.permute.xlu1 %1061 }
 0x334   : > { %v6286_v56 = vmul.f32 %v8817_v48, %v1261_v10  ;;  %v6290_v8 = vmul.f32 %v8819_v60, %v1261_v10  ;;  %v8821_v35 = vstv %s8806_s4  ;;  %v8823_v51 = vstv %s8809_s11  ;;  %s8827_s4 = sld [smem:[#allocation209_spill]]  ;;  %s8829_s14 = sld [smem:[#allocation211_spill]] }
 0x335   : > { %8814 = sst [smem:[#allocation108_spill]] %s6272_s29  ;;  %8816 = vst [vmem:[#allocation289_spill] sm:$0xff] %v6282_v57  ;;  %v6294_v36 = vmul.f32 %v8821_v35, %v1261_v10  ;;  %v6300_v5 = vmul.f32 %v8823_v51, %v1058_v15  ;;  %v8824_v27 = vstv %s8811_s7  ;;  %v6308_v60 = vmul.f32 %v8825_v37, %v1058_v15  ;;  %v1264_v10 = vpop.permute.xlu0 %1263  ;;  %s8831_s1 = sld [smem:[#allocation213_spill]] }
 0x336   : > { %8818 = vst [vmem:[#allocation290_spill] sm:$0xff] %v6286_v56  ;;  %8820 = vst [vmem:[#allocation291_spill] sm:$0xff] %v6290_v8  ;;  %v6304_v38 = vmul.f32 %v8824_v27, %v1058_v15  ;;  %v8826_v42 = vstv %s8548_s20  ;;  %v6317_v48 = vadd.f32 %v5803_v54, %v552_v6  ;;  %v6320_v51 = vadd.f32 %v5807_v32, %v558_v13 }
 0x337   : > { %8822 = vst [vmem:[#allocation292_spill] sm:$0xff] %v6294_v36  ;;  %v6312_v35 = vmul.f32 %v8826_v42, %v1058_v15  ;;  %v6323_v27 = vadd.f32 %v5811_v50, %v564_v26  ;;  %v6326_v15 = vadd.f32 %v5816_v61, %v570_v23  ;;  %v1269_v37 = vsel %vm347_vm6, %v1264_v10, 0.0 }
 0x338   : > { %v1066_v42 = vsel %vm347_vm6, %v1062_v3, 0.0  ;;  %v8832_v36 = vstv %s6088_s3  ;;  %v8834_v32 = vstv %s6090_s22  ;;  %v8836_v6 = vstv %s8549_s24  ;;  %s8850_s22 = sld [smem:[#allocation214_spill]]  ;;  %s8851_s3 = sld [smem:[#allocation215_spill]] }
 0x339   : > { %v6335_v54 = vmul.f32 %v5410_v11, %v8832_v36  ;;  %v6340_v50 = vmul.f32 %v5410_v11, %v8834_v32  ;;  %v6344_v61 = vmul.f32 %v8836_v6, %v1269_v37  ;;  %v8838_v13 = vstv %s8550_s6  ;;  %v406_v9 = vpop.permute.xlu0 %405 }
 0x33a   : > { %v6348_v26 = vmul.f32 %v8838_v13, %v1269_v37  ;;  %v8840_v23 = vstv %s8551_s23  ;;  %v8842_v3 = vstv %s8827_s4  ;;  %v8844_v36 = vstv %s8828_s15  ;;  %s6396_s4 = sld [smem:[#allocation8 + $0xbb]] }
 0x33b   : > { %8833 = vst [vmem:[#allocation293_spill] sm:$0xff] %v6335_v54  ;;  %8835 = vst [vmem:[#allocation294_spill] sm:$0xff] %v6340_v50  ;;  %v6352_v10 = vmul.f32 %v8840_v23, %v1269_v37  ;;  %v6356_v8 = vmul.f32 %v8842_v3, %v1269_v37  ;;  %v6362_v32 = vmul.f32 %v8844_v36, %v1066_v42  ;;  %v8845_v50 = vstv %s8829_s14  ;;  %v1377_v37 = vpop.permute.xlu1 %1376  ;;  %s6398_s23 = sld [smem:[#allocation8 + $0x103]] }
 0x33c   : > { %8837 = vst [vmem:[#allocation295_spill] sm:$0xff] %v6344_v61  ;;  %8839 = vst [vmem:[#allocation296_spill] sm:$0xff] %v6348_v26  ;;  %v6366_v6 = vmul.f32 %v8845_v50, %v1066_v42  ;;  %v8846_v54 = vstv %s8830_s16  ;;  %v8848_v23 = vstv %s8831_s1  ;;  %v8073_v3 = vstv %s6250_s25  ;;  %s8903_s25 = sld [smem:[#allocation75_spill]] }
 0x33d   : > { %8841 = vst [vmem:[#allocation297_spill] sm:$0xff] %v6352_v10  ;;  %8843 = vst [vmem:[#allocation298_spill] sm:$0xff] %v6356_v8  ;;  %v6370_v13 = vmul.f32 %v8846_v54, %v1066_v42  ;;  %v6374_v10 = vmul.f32 %v8848_v23, %v1066_v42  ;;  %v8074_v50 = vstv %s6252_s27  ;;  %v411_v8 = vsel %vm346_vm5, %v406_v9, 0.0  ;;  %s8873_s27 = sld [smem:[#allocation221_spill]] }
 0x33e   : > { %v1381_v42 = vsel %vm346_vm5, %v1377_v37, 0.0  ;;  %v6389_v16 = vmul.f32 %v5410_v11, %v8073_v3  ;;  %v6394_v23 = vmul.f32 %v5410_v11, %v8074_v50  ;;  %v8856_v36 = vstv %s8727_s8  ;;  %s8869_s8 = sld [smem:[#allocation218_spill]] }
 0x33f   : > { %8847 = vst [vmem:[#allocation299_spill] sm:$0xff] %v6370_v13  ;;  %8849 = vst [vmem:[#allocation300_spill] sm:$0xff] %v6374_v10  ;;  %v423_v54 = vmul.f32 %v8856_v36, %v411_v8  ;;  %v8857_v26 = vstv %s8730_s26  ;;  %v8858_v9 = vstv %s8732_s18  ;;  %v8859_v57 = vstv %s8733_s9  ;;  %s8867_s26 = sld [smem:[#allocation162_spill]]  ;;  %s8870_s9 = sld [smem:[#allocation219_spill]] }
 0x340   : > { %8852 = vst [vmem:[#allocation301_spill] sm:$0xff] %v6389_v16  ;;  %8853 = vst [vmem:[#allocation302_spill] sm:$0xff] %v6394_v23  ;;  %8854 = sst [smem:[#allocation109_spill]] %s6396_s4  ;;  %v429_v61 = vmul.f32 %v8857_v26, %v411_v8  ;;  %v435_v56 = vmul.f32 %v8858_v9, %v411_v8  ;;  %v441_v37 = vmul.f32 %v8859_v57, %v411_v8  ;;  %v8860_v3 = vstv %s8850_s22 }
 0x341   : > { %8855 = sst [smem:[#allocation114_spill]] %s6398_s23  ;;  %v6412_v11 = vmul.f32 %v8860_v3, %v1381_v42  ;;  %v8862_v50 = vstv %s8851_s3  ;;  %v8864_v36 = vstv %s8561_s19  ;;  %v8866_v9 = vstv %s8562_s30  ;;  %s8871_s18 = sld [smem:[#allocation220_spill]] }
 0x342   : > { %v6416_v23 = vmul.f32 %v8862_v50, %v1381_v42  ;;  %v6420_v26 = vmul.f32 %v8864_v36, %v1381_v42  ;;  %v6424_v16 = vmul.f32 %v8866_v9, %v1381_v42  ;;  %v449_v8 = vadd.f32 %v4808_v14, %v423_v54  ;;  %v8872_v50 = vld [vmem:[#allocation90_spill] sm:$0xff] }
 0x343   : > { %8861 = vst [vmem:[#allocation303_spill] sm:$0xff] %v6412_v11  ;;  %v455_v57 = vadd.f32 %v4817_v58, %v429_v61  ;;  %v461_v3 = vadd.f32 %v4822_v2, %v435_v56  ;;  %v467_v36 = vadd.f32 %v8872_v50, %v441_v37  ;;  %v8876_v58 = vstv %s6272_s29  ;;  %s8899_s29 = sld [smem:[#allocation73_spill]] }
 0x344   : > { %8863 = vst [vmem:[#allocation304_spill] sm:$0xff] %v6416_v23  ;;  %8865 = vst [vmem:[#allocation305_spill] sm:$0xff] %v6420_v26  ;;  %v414_v26 = vpop.permute.xlu0 %413  ;;  %v1385_v23 = vpop.permute.xlu1 %1384  ;;  %v6444_v61 = vmul.f32 %v8876_v58, %v4067_v22  ;;  %v8878_v2 = vstv %s8752_s5  ;;  %v8879_v54 = vstv %s8753_s12  ;;  %v8880_v50 = vstv %s8754_s13  ;;  %s8888_s13 = sld [smem:[#allocation222_spill]]  ;;  %s8889_s12 = sld [smem:[#allocation223_spill]] }
 0x345   : > { %8868 = vst [vmem:[#allocation306_spill] sm:$0xff] %v6424_v16  ;;  %v419_v42 = vsel %vm347_vm6, %v414_v26, 0.0  ;;  %v1389_v9 = vsel %vm347_vm6, %v1385_v23, 0.0  ;;  %v8874_v16 = vstv %s6270_s21  ;;  %v8881_v10 = vstv %s8867_s26  ;;  %s8890_s5 = sld [smem:[#allocation224_spill]]  ;;  %s8891_s26 = sld [smem:[#allocation225_spill]] }
 0x346   : > { %v6439_v14 = vmul.f32 %v8874_v16, %v4067_v22  ;;  %8877 = vst [vmem:[#allocation307_spill] sm:$0xff] %v6444_v61  ;;  %v471_v56 = vmul.f32 %v8878_v2, %v419_v42  ;;  %v477_v37 = vmul.f32 %v8879_v54, %v419_v42  ;;  %v483_v11 = vmul.f32 %v8880_v50, %v419_v42  ;;  %s8901_s21 = sld [smem:[#allocation74_spill]] }
 0x347   : > { %v489_v26 = vmul.f32 %v8881_v10, %v419_v42  ;;  %v8882_v23 = vstv %s8869_s8  ;;  %v8884_v58 = vstv %s8871_s18  ;;  %v8886_v2 = vstv %s8873_s27 }
 0x348   : > { %8875 = vst [vmem:[#allocation90_spill] sm:$0xff] %v6439_v14  ;;  %v6458_v16 = vmul.f32 %v8882_v23, %v1389_v9  ;;  %v8883_v14 = vstv %s8870_s9  ;;  %v6466_v61 = vmul.f32 %v8884_v58, %v1389_v9  ;;  %v6470_v54 = vmul.f32 %v8886_v2, %v1389_v9  ;;  %v1579_v23 = vpop.permute.xlu0 %1578  ;;  %v8906_v2 = vld [vmem:[#allocation41_spill] sm:$0xff] }
 0x349   : > { %v6462_v13 = vmul.f32 %v8883_v14, %v1389_v9  ;;  %v473_v10 = vadd.f32 %v471_v56, %v449_v8  ;;  %v479_v42 = vadd.f32 %v477_v37, %v455_v57  ;;  %v485_v31 = vadd.f32 %v483_v11, %v461_v3  ;;  %v2652_v14 = vpop.permute.xlu1 %2651 }
 0x34a   : > { %8885 = vst [vmem:[#allocation308_spill] sm:$0xff] %v6466_v61  ;;  %8887 = vst [vmem:[#allocation309_spill] sm:$0xff] %v6470_v54  ;;  %v491_v50 = vadd.f32 %v489_v26, %v467_v36  ;;  %v1584_v58 = vsel %vm346_vm5, %v1579_v23, 0.0  ;;  %v8892_v61 = vld [vmem:[#allocation40_spill] sm:$0xff]  ;;  %v8893_v3 = vstv %s8888_s13  ;;  %v8894_v56 = vstv %s8889_s12  ;;  %s8905_s13 = sld [smem:[#allocation76_spill]] }
 0x34b   : > { %v2654_v9 = vsel %vm390_vm4, %v2652_v14, %v8892_v61  ;;  %v527_v30 = vadd.f32 %v5740_v28, %v473_v10  ;;  %v533_v8 = vadd.f32 %v5749_v43, %v479_v42  ;;  %v539_v57 = vadd.f32 %v5753_v12, %v485_v31  ;;  %v8898_v43 = vld [vmem:[#allocation85_spill] sm:$0xff]  ;;  %v8900_v42 = vld [vmem:[#allocation86_spill] sm:$0xff]  ;;  %v8902_v31 = vld [vmem:[#allocation87_spill] sm:$0xff] }
 0x34c   : > { %v545_v11 = vadd.f32 %v5757_v4, %v491_v50  ;;  %2659 = vrot.lane.b32.xlu1 %v2654_v9, %s8164_s28  ;;  %v6487_v36 = vmul.f32 %v8893_v3, %v1584_v58  ;;  %v6491_v37 = vmul.f32 %v8894_v56, %v1584_v58  ;;  %v8895_v26 = vstv %s8890_s5  ;;  %v8904_v14 = vld [vmem:[#allocation88_spill] sm:$0xff]  ;;  %v2650_v56 = vpop.permute.xlu0 %2649  ;;  %s8917_s5 = sld [smem:[#allocation229_spill]] }
 0x34d   : > { %v6495_v23 = vmul.f32 %v8895_v26, %v1584_v58  ;;  %v8896_v28 = vstv %s8891_s26  ;;  %v551_v12 = vadd.f32 %v8898_v43, %v527_v30  ;;  %v557_v4 = vadd.f32 %v8900_v42, %v533_v8  ;;  %v612_v54 = vpop.permute.xlu1 %611  ;;  %s8916_s26 = sld [smem:[#allocation228_spill]] }
 0x34e   : > { %v6499_v10 = vmul.f32 %v8896_v28, %v1584_v58  ;;  %v563_v50 = vadd.f32 %v8902_v31, %v539_v57  ;;  %v569_v3 = vadd.f32 %v8904_v14, %v545_v11  ;;  %v2653_v26 = vsel %vm390_vm4, %v2650_v56, %v8906_v2 }
 0x34f   : > { %v616_v58 = vsel %vm346_vm5, %v612_v54, 0.0  ;;  %v8907_v28 = vstv %s6396_s4  ;;  %v8909_v8 = vstv %s6398_s23  ;;  %v575_v57 = vadd.f32 %v5781_v55, %v551_v12  ;;  %2657 = vrot.lane.b32.xlu0 %v2653_v26, %s8164_s28  ;;  %s8914_s23 = sld [smem:[#allocation226_spill]]  ;;  %s8915_s4 = sld [smem:[#allocation227_spill]] }
 0x350   : > { %8897 = vst [vmem:[#allocation310_spill] sm:$0xff] %v6499_v10  ;;  %v6512_v30 = vmul.f32 %v8907_v28, %v4067_v22  ;;  %v6517_v43 = vmul.f32 %v8909_v8, %v4067_v22  ;;  %v581_v11 = vadd.f32 %v5785_v24, %v557_v4  ;;  %v587_v42 = vadd.f32 %v5789_v62, %v563_v50  ;;  %v1587_v22 = vpop.permute.xlu0 %1586 }
 0x351   : > { %v593_v31 = vadd.f32 %v5799_v53, %v569_v3  ;;  %v8910_v14 = vstv %s8899_s29  ;;  %v8911_v56 = vstv %s8901_s21  ;;  %v8912_v28 = vstv %s8903_s25  ;;  %2667 = vrot.lane.b32.xlu1 %v2654_v9, %s8158_s10  ;;  %v620_v55 = vpop.permute.xlu1 %619  ;;  %s8918_s25 = sld [smem:[#allocation81_spill]]  ;;  %s8919_s29 = sld [smem:[#allocation82_spill]] }
 0x352   : > { %8908 = vst [vmem:[#allocation85_spill] sm:$0xff] %v6512_v30  ;;  %v628_v54 = vmul.f32 %v8910_v14, %v616_v58  ;;  %v634_v2 = vmul.f32 %v8911_v56, %v616_v58  ;;  %v640_v61 = vmul.f32 %v8912_v28, %v616_v58  ;;  %v8913_v30 = vstv %s8905_s13  ;;  %s8920_s21 = sld [smem:[#allocation83_spill]]  ;;  %s8921_s13 = sld [smem:[#allocation70_spill]] }
 0x353   : > { %v646_v10 = vmul.f32 %v8913_v30, %v616_v58  ;;  %v629_v62 = vadd.f32 %v6094_v34, %v575_v57  ;;  %v635_v24 = vadd.f32 %v6098_v21, %v581_v11  ;;  %v641_v53 = vadd.f32 %v6102_v39, %v587_v42  ;;  %2665 = vrot.lane.b32.xlu0 %v2653_v26, %s8158_s10  ;;  %v8926_v30 = vld [vmem:[#allocation95_spill] sm:$0xff]  ;;  %v8927_v26 = vld [vmem:[#allocation96_spill] sm:$0xff]  ;;  %v8928_v11 = vld [vmem:[#allocation98_spill] sm:$0xff] }
 0x354   : > { %v647_v12 = vadd.f32 %v6106_v59, %v593_v31  ;;  %v630_v4 = vadd.f32 %v628_v54, %v6317_v48  ;;  %v636_v50 = vadd.f32 %v634_v2, %v6320_v51  ;;  %v642_v9 = vadd.f32 %v640_v61, %v6323_v27  ;;  %v8929_v42 = vld [vmem:[#allocation99_spill] sm:$0xff]  ;;  %v729_v31 = vpop.permute.xlu0 %728 }
 0x355   : > { %v648_v3 = vadd.f32 %v646_v10, %v6326_v15  ;;  %v1592_v58 = vsel %vm347_vm6, %v1587_v22, 0.0  ;;  %v624_v21 = vsel %vm347_vm6, %v620_v55, 0.0  ;;  %v653_v39 = vadd.f32 %v4916_v44, %v629_v62  ;;  %v1697_v14 = vpop.permute.xlu1 %1696 }
 0x356   : > { %v659_v59 = vadd.f32 %v4921_v52, %v635_v24  ;;  %v8922_v34 = vstv %s8914_s23  ;;  %v8923_v51 = vstv %s8915_s4  ;;  %v8924_v15 = vstv %s8916_s26  ;;  %s8935_s26 = sld [smem:[#allocation178_spill]]  ;;  %s8936_s4 = sld [smem:[#allocation183_spill]] }
 0x357   : > { %v6550_v48 = vmul.f32 %v8922_v34, %v1592_v58  ;;  %v6554_v27 = vmul.f32 %v8923_v51, %v1592_v58  ;;  %v6558_v61 = vmul.f32 %v8924_v15, %v1592_v58  ;;  %v8925_v2 = vstv %s8917_s5  ;;  %s8934_s5 = sld [smem:[#allocation177_spill]]  ;;  %s8948_s23 = sld [smem:[#allocation206_spill]] }
 0x358   : > { %v6562_v10 = vmul.f32 %v8925_v2, %v1592_v58  ;;  %v654_v8 = vadd.f32 %v8926_v30, %v630_v4  ;;  %v660_v57 = vadd.f32 %v8927_v26, %v636_v50  ;;  %v666_v44 = vadd.f32 %v8928_v11, %v642_v9  ;;  %v8938_v26 = vld [vmem:[#allocation283_spill] sm:$0xff] }
 0x359   : > { %v672_v52 = vadd.f32 %v8929_v42, %v648_v3  ;;  %v8930_v54 = vstv %s8918_s25  ;;  %v8931_v28 = vstv %s8919_s29  ;;  %v8932_v55 = vstv %s8920_s21  ;;  %s8937_s25 = sld [smem:[#allocation184_spill]]  ;;  %s8942_s29 = sld [smem:[#allocation230_spill]] }
 0x35a   : > { %v676_v56 = vmul.f32 %v8930_v54, %v624_v21  ;;  %v682_v22 = vmul.f32 %v8931_v28, %v624_v21  ;;  %v688_v62 = vmul.f32 %v8932_v55, %v624_v21  ;;  %v8933_v24 = vstv %s8921_s13  ;;  %s8944_s21 = sld [smem:[#allocation231_spill]]  ;;  %s8946_s13 = sld [smem:[#allocation205_spill]]  ;;  %v8950_v28 = vld [vmem:[#allocation94_spill] sm:$0xff] }
 0x35b   : > { %v694_v34 = vmul.f32 %v8933_v24, %v624_v21  ;;  %v665_v58 = vadd.f32 %v4930_v49, %v641_v53  ;;  %v671_v4 = vadd.f32 %v4935_v17, %v647_v12  ;;  %v677_v50 = vadd.f32 %v6154_v46, %v653_v39  ;;  %v737_v46 = vpop.permute.xlu0 %736  ;;  %v2754_v53 = vpop.permute.xlu1 %2753 }
 0x35c   : > { %v683_v9 = vadd.f32 %v6158_v45, %v659_v59  ;;  %v678_v3 = vadd.f32 %v676_v56, %v654_v8  ;;  %v684_v51 = vadd.f32 %v682_v22, %v660_v57  ;;  %v690_v15 = vadd.f32 %v688_v62, %v666_v44  ;;  %v8949_v56 = vld [vmem:[#allocation93_spill] sm:$0xff] }
 0x35d   : > { %v696_v2 = vadd.f32 %v694_v34, %v672_v52  ;;  %v689_v30 = vadd.f32 %v6162_v18, %v665_v58  ;;  %v695_v21 = vadd.f32 %v8938_v26, %v671_v4  ;;  %v734_v49 = vsel %vm346_vm5, %v729_v31, 0.0 }
 0x35e   : > { %v1701_v17 = vsel %vm346_vm5, %v1697_v14, 0.0  ;;  %v749_v45 = vadd.f32 %v6210_v19, %v678_v3  ;;  %v755_v12 = vadd.f32 %v6214_v33, %v684_v51  ;;  %v761_v39 = vadd.f32 %v6218_v0, %v690_v15  ;;  %v8945_v14 = vld [vmem:[#allocation91_spill] sm:$0xff]  ;;  %v8947_v19 = vld [vmem:[#allocation92_spill] sm:$0xff] }
 0x35f   : > { %v767_v59 = vadd.f32 %v6222_v63, %v696_v2  ;;  %v8939_v8 = vstv %s8934_s5  ;;  %v8940_v57 = vstv %s8935_s26  ;;  %v8941_v44 = vstv %s8936_s4  ;;  %s8951_s4 = sld [smem:[#allocation29_spill]]  ;;  %v1695_v34 = vpop.permute.xlu0 %1694  ;;  %s8952_s5 = sld [smem:[#allocation194_spill]] }
 0x360   : > { %v746_v18 = vmul.f32 %v8939_v8, %v734_v49  ;;  %v752_v11 = vmul.f32 %v8940_v57, %v734_v49  ;;  %v758_v42 = vmul.f32 %v8941_v44, %v734_v49  ;;  %v8943_v52 = vstv %s8937_s25  ;;  %v8961_v44 = vld [vmem:[#allocation52_spill] sm:$0xff]  ;;  %s8998_s26 = sld [smem:[#allocation189_spill]]  ;;  %s9000_s25 = sld [smem:[#allocation190_spill]] }
 0x361   : > { %v764_v31 = vmul.f32 %v8943_v52, %v734_v49  ;;  %v773_v54 = vadd.f32 %v8945_v14, %v749_v45  ;;  %v779_v33 = vadd.f32 %v8947_v19, %v755_v12  ;;  %v785_v0 = vadd.f32 %v8949_v56, %v761_v39  ;;  %v8959_v12 = vld [vmem:[#allocation105_spill] sm:$0xff] }
 0x362   : > { %v791_v63 = vadd.f32 %v8950_v28, %v767_v59  ;;  %v748_v22 = vadd.f32 %v746_v18, %v677_v50  ;;  %v754_v55 = vadd.f32 %v752_v11, %v683_v9  ;;  %v760_v62 = vadd.f32 %v758_v42, %v689_v30  ;;  %v8960_v59 = vld [vmem:[#allocation106_spill] sm:$0xff] }
 0x363   : > { %v766_v24 = vadd.f32 %v764_v31, %v695_v21  ;;  %v797_v58 = vadd.f32 %v6256_v47, %v773_v54  ;;  %v803_v4 = vadd.f32 %v6260_v20, %v779_v33  ;;  %v809_v3 = vadd.f32 %v6264_v7, %v785_v0  ;;  %v935_v20 = vpop.permute.xlu1 %934  ;;  %v8957_v7 = vld [vmem:[#allocation101_spill] sm:$0xff]  ;;  %v2752_v28 = vpop.permute.xlu0 %2751 }
 0x364   : > { %v815_v51 = vadd.f32 %v6268_v40, %v791_v63  ;;  %v8953_v15 = vstv %s8942_s29  ;;  %v8954_v26 = vstv %s8944_s21  ;;  %v8955_v9 = vstv %s8946_s13  ;;  %v8958_v40 = vld [vmem:[#allocation102_spill] sm:$0xff]  ;;  %s9002_s29 = sld [smem:[#allocation192_spill]]  ;;  %s9004_s21 = sld [smem:[#allocation193_spill]] }
 0x365   : > { %v6608_v2 = vmul.f32 %v8953_v15, %v1701_v17  ;;  %v6612_v50 = vmul.f32 %v8954_v26, %v1701_v17  ;;  %v6616_v30 = vmul.f32 %v8955_v9, %v1701_v17  ;;  %v8956_v47 = vstv %s8948_s23  ;;  %v3560_v57 = vld [vmem:[%s8951_s4 + $0x38] sm:$0xff]  ;;  %s8981_s23 = sld [smem:[#allocation167_spill]]  ;;  %s9020_s13 = sld [smem:[#allocation204_spill]] }
 0x366   : > { %v6620_v21 = vmul.f32 %v8956_v47, %v1701_v17  ;;  %v772_v49 = vadd.f32 %v8957_v7, %v748_v22  ;;  %v778_v45 = vadd.f32 %v8958_v40, %v754_v55  ;;  %v784_v39 = vadd.f32 %v8959_v12, %v760_v62  ;;  %v8971_v40 = vld [vmem:[#allocation51_spill] sm:$0xff] }
 0x367   : > { %v790_v8 = vadd.f32 %v8960_v59, %v766_v24  ;;  %v742_v18 = vsel %vm347_vm6, %v737_v46, 0.0  ;;  %v2756_v17 = vsel %vm390_vm4, %v2754_v53, %v3560_v57  ;;  %v1700_v11 = vsel %vm346_vm5, %v1695_v34, 0.0  ;;  %v8972_v59 = vld [vmem:[#allocation238_spill] sm:$0xff] }
 0x368   : > { %v851_v42 = vadd.f32 %v8961_v44, %v797_v58  ;;  %v8962_v52 = vstv %s8952_s5  ;;  %v8963_v14 = vstv %s8788_s0  ;;  %v8964_v19 = vstv %s8790_s17  ;;  %2761 = vrot.lane.b32.xlu1 %v2756_v17, %s8164_s28  ;;  %v8973_v57 = vld [vmem:[#allocation113_spill] sm:$0xff]  ;;  %s8983_s17 = sld [smem:[#allocation168_spill]]  ;;  %s8987_s0 = sld [smem:[#allocation173_spill]] }
 0x369   : > { %v794_v31 = vmul.f32 %v8962_v52, %v742_v18  ;;  %v800_v54 = vmul.f32 %v8963_v14, %v742_v18  ;;  %v806_v33 = vmul.f32 %v8964_v19, %v742_v18  ;;  %v8965_v56 = vstv %s8791_s2  ;;  %v943_v52 = vpop.permute.xlu1 %942  ;;  %v8974_v14 = vld [vmem:[#allocation46_spill] sm:$0xff]  ;;  %s8985_s2 = sld [smem:[#allocation172_spill]]  ;;  %s9026_s5 = sld [smem:[#allocation207_spill]] }
 0x36a   : > { %v812_v0 = vmul.f32 %v8965_v56, %v742_v18  ;;  %v8966_v46 = vmov %v8953_v15  ;;  %v8967_v53 = vmov %v8954_v26  ;;  %v8968_v55 = vmov %v8955_v9  ;;  %v8975_v56 = vld [vmem:[#allocation47_spill] sm:$0xff] }
 0x36b   : > { %v6644_v63 = vmul.f32 %v8966_v46, %v1700_v11  ;;  %v6648_v22 = vmul.f32 %v8967_v53, %v1700_v11  ;;  %v6652_v62 = vmul.f32 %v8968_v55, %v1700_v11  ;;  %v8969_v24 = vmov %v8956_v47  ;;  %v8970_v47 = vld [vmem:[#allocation50_spill] sm:$0xff]  ;;  %v8976_v53 = vld [vmem:[#allocation48_spill] sm:$0xff]  ;;  %v8977_v55 = vld [vmem:[#allocation49_spill] sm:$0xff] }
 0x36c   : > { %v6656_v34 = vmul.f32 %v8969_v24, %v1700_v11  ;;  %v796_v58 = vadd.f32 %v794_v31, %v772_v49  ;;  %v802_v15 = vadd.f32 %v800_v54, %v778_v45  ;;  %v808_v26 = vadd.f32 %v806_v33, %v784_v39  ;;  %2769 = vrot.lane.b32.xlu1 %v2756_v17, %s8158_s10  ;;  %v8978_v45 = vld [vmem:[#allocation115_spill] sm:$0xff]  ;;  %v8984_v54 = vld [vmem:[#allocation107_spill] sm:$0xff] }
 0x36d   : > { %v814_v9 = vadd.f32 %v812_v0, %v790_v8  ;;  %v857_v7 = vadd.f32 %v8970_v47, %v803_v4  ;;  %v863_v12 = vadd.f32 %v8971_v40, %v809_v3  ;;  %v869_v18 = vadd.f32 %v8972_v59, %v815_v51  ;;  %v8979_v4 = vld [vmem:[#allocation116_spill] sm:$0xff]  ;;  %v8980_v3 = vld [vmem:[#allocation117_spill] sm:$0xff]  ;;  %v8982_v31 = vld [vmem:[#allocation243_spill] sm:$0xff] }
 0x36e   : > { %v875_v44 = vadd.f32 %v8973_v57, %v851_v42  ;;  %v850_v19 = vadd.f32 %v8974_v14, %v796_v58  ;;  %v856_v46 = vadd.f32 %v8975_v56, %v802_v15  ;;  %v862_v11 = vadd.f32 %v8976_v53, %v808_v26  ;;  %v8986_v0 = vld [vmem:[#allocation110_spill] sm:$0xff]  ;;  %v8988_v58 = vld [vmem:[#allocation111_spill] sm:$0xff]  ;;  %v8989_v26 = vld [vmem:[#allocation112_spill] sm:$0xff] }
 0x36f   : > { %v868_v49 = vadd.f32 %v8977_v55, %v814_v9  ;;  %v881_v39 = vadd.f32 %v8978_v45, %v857_v7  ;;  %v887_v8 = vadd.f32 %v8979_v4, %v863_v12  ;;  %v893_v51 = vadd.f32 %v8980_v3, %v869_v18  ;;  %v1052_v9 = vpop.permute.xlu0 %1051  ;;  %v8990_v47 = vld [vmem:[#allocation244_spill] sm:$0xff]  ;;  %v8991_v40 = vld [vmem:[#allocation245_spill] sm:$0xff]  ;;  %v8992_v59 = vld [vmem:[#allocation246_spill] sm:$0xff] }
 0x370   : > { %v899_v42 = vadd.f32 %v8982_v31, %v875_v44  ;;  %v874_v33 = vadd.f32 %v8984_v54, %v850_v19  ;;  %v880_v24 = vadd.f32 %v8986_v0, %v856_v46  ;;  %v886_v15 = vadd.f32 %v8988_v58, %v862_v11  ;;  %v8993_v44 = vld [vmem:[#allocation239_spill] sm:$0xff]  ;;  %v8994_v19 = vld [vmem:[#allocation240_spill] sm:$0xff]  ;;  %v8995_v46 = vld [vmem:[#allocation241_spill] sm:$0xff]  ;;  %v1705_v31 = vpop.permute.xlu1 %1704 }
 0x371   : > { %v892_v17 = vadd.f32 %v8989_v26, %v868_v49  ;;  %v905_v7 = vadd.f32 %v8990_v47, %v881_v39  ;;  %v911_v12 = vadd.f32 %v8991_v40, %v887_v8  ;;  %v917_v18 = vadd.f32 %v8992_v59, %v893_v51  ;;  %v8996_v11 = vld [vmem:[#allocation242_spill] sm:$0xff]  ;;  %v3561_v54 = vld [vmem:[%s8951_s4 + $0x30] sm:$0xff] }
 0x372   : > { %v939_v57 = vsel %vm346_vm5, %v935_v20, 0.0  ;;  %v898_v14 = vadd.f32 %v8993_v44, %v874_v33  ;;  %v904_v56 = vadd.f32 %v8994_v19, %v880_v24  ;;  %v910_v53 = vadd.f32 %v8995_v46, %v886_v15 }
 0x373   : > { %v916_v55 = vadd.f32 %v8996_v11, %v892_v17  ;;  %v8997_v45 = vstv %s8981_s23  ;;  %v8999_v4 = vstv %s8983_s17  ;;  %v9001_v8 = vstv %s8985_s2  ;;  %s9028_s23 = sld [smem:[#allocation232_spill]]  ;;  %s9030_s17 = sld [smem:[#allocation233_spill]] }
 0x374   : > { %v951_v49 = vmul.f32 %v8997_v45, %v939_v57  ;;  %v957_v39 = vmul.f32 %v8999_v4, %v939_v57  ;;  %v963_v3 = vmul.f32 %v9001_v8, %v939_v57  ;;  %v9003_v51 = vstv %s8987_s0  ;;  %v1060_v45 = vpop.permute.xlu0 %1059  ;;  %s9032_s2 = sld [smem:[#allocation234_spill]]  ;;  %s9050_s0 = sld [smem:[#allocation236_spill]] }
 0x375   : > { %v969_v20 = vmul.f32 %v9003_v51, %v939_v57  ;;  %v2755_v33 = vsel %vm390_vm4, %v2752_v28, %v3561_v54  ;;  %v947_v0 = vsel %vm347_vm6, %v943_v52, 0.0  ;;  %v952_v24 = vadd.f32 %v6188_v25, %v898_v14  ;;  %v9009_v52 = vld [vmem:[#allocation118_spill] sm:$0xff]  ;;  %v9010_v25 = vld [vmem:[#allocation121_spill] sm:$0xff] }
 0x376   : > { %v958_v58 = vadd.f32 %v6192_v41, %v904_v56  ;;  %v953_v15 = vadd.f32 %v951_v49, %v899_v42  ;;  %v959_v26 = vadd.f32 %v957_v39, %v905_v7  ;;  %v965_v17 = vadd.f32 %v963_v3, %v911_v12  ;;  %2759 = vrot.lane.b32.xlu0 %v2755_v33, %s8164_s28  ;;  %v9011_v41 = vld [vmem:[#allocation122_spill] sm:$0xff]  ;;  %v9012_v7 = vld [vmem:[#allocation125_spill] sm:$0xff]  ;;  %v9014_v39 = vld [vmem:[#allocation132_spill] sm:$0xff] }
 0x377   : > { %v971_v47 = vadd.f32 %v969_v20, %v917_v18  ;;  %v9005_v40 = vstv %s8998_s26  ;;  %v9006_v57 = vstv %s9000_s25  ;;  %v9007_v19 = vstv %s9002_s29  ;;  %v9013_v56 = vld [vmem:[#allocation284_spill] sm:$0xff]  ;;  %v9015_v3 = vld [vmem:[#allocation133_spill] sm:$0xff]  ;;  %s9097_s26 = sld [smem:[#allocation208_spill]]  ;;  %s9101_s25 = sld [smem:[#allocation209_spill]] }
 0x378   : > { %v999_v59 = vmul.f32 %v9005_v40, %v947_v0  ;;  %v1005_v44 = vmul.f32 %v9006_v57, %v947_v0  ;;  %v1011_v46 = vmul.f32 %v9007_v19, %v947_v0  ;;  %v9008_v28 = vstv %s9004_s21  ;;  %s9214_s29 = sld [smem:[#allocation222_spill]]  ;;  %s9217_s21 = sld [smem:[#allocation224_spill]] }
 0x379   : > { %v1017_v11 = vmul.f32 %v9008_v28, %v947_v0  ;;  %v977_v4 = vadd.f32 %v9009_v52, %v953_v15  ;;  %v983_v14 = vadd.f32 %v9010_v25, %v959_v26  ;;  %v989_v42 = vadd.f32 %v9011_v41, %v965_v17  ;;  %v1799_v15 = vpop.permute.xlu1 %1798  ;;  %v9016_v26 = vld [vmem:[#allocation135_spill] sm:$0xff]  ;;  %v9017_v17 = vld [vmem:[#allocation136_spill] sm:$0xff]  ;;  %v1703_v25 = vpop.permute.xlu0 %1702  ;;  %v9024_v41 = vld [vmem:[#allocation127_spill] sm:$0xff] }
 0x37a   : > { %v995_v12 = vadd.f32 %v9012_v7, %v971_v47  ;;  %v964_v18 = vadd.f32 %v6196_v29, %v910_v53  ;;  %v970_v49 = vadd.f32 %v9013_v56, %v916_v55  ;;  %v976_v8 = vadd.f32 %v9014_v39, %v952_v24  ;;  %2767 = vrot.lane.b32.xlu0 %v2755_v33, %s8158_s10  ;;  %v9018_v47 = vld [vmem:[#allocation285_spill] sm:$0xff]  ;;  %v9019_v53 = vld [vmem:[#allocation286_spill] sm:$0xff]  ;;  %v9022_v28 = vld [vmem:[#allocation288_spill] sm:$0xff] }
 0x37b   : > { %v982_v51 = vadd.f32 %v9015_v3, %v958_v58  ;;  %v1001_v20 = vadd.f32 %v999_v59, %v977_v4  ;;  %v1007_v54 = vadd.f32 %v1005_v44, %v983_v14  ;;  %v1013_v0 = vadd.f32 %v1011_v46, %v989_v42  ;;  %v9021_v44 = vld [vmem:[#allocation287_spill] sm:$0xff]  ;;  %v9023_v14 = vld [vmem:[#allocation126_spill] sm:$0xff]  ;;  %v9027_v7 = vld [vmem:[#allocation131_spill] sm:$0xff] }
 0x37c   : > { %v1019_v40 = vadd.f32 %v1017_v11, %v995_v12  ;;  %v988_v57 = vadd.f32 %v9016_v26, %v964_v18  ;;  %v994_v19 = vadd.f32 %v9017_v17, %v970_v49  ;;  %v1000_v29 = vadd.f32 %v9018_v47, %v976_v8 }
 0x37d   : > { %v1006_v55 = vadd.f32 %v9019_v53, %v982_v51  ;;  %v1072_v24 = vadd.f32 %v6300_v5, %v1001_v20  ;;  %v1078_v58 = vadd.f32 %v6304_v38, %v1007_v54  ;;  %v1084_v59 = vadd.f32 %v6308_v60, %v1013_v0  ;;  %v9025_v38 = vld [vmem:[#allocation130_spill] sm:$0xff]  ;;  %v9035_v20 = vld [vmem:[#allocation299_spill] sm:$0xff]  ;;  %v2856_v26 = vpop.permute.xlu1 %2855 }
 0x37e   : > { %v1090_v33 = vadd.f32 %v6312_v35, %v1019_v40  ;;  %v1012_v46 = vadd.f32 %v9021_v44, %v988_v57  ;;  %v1018_v11 = vadd.f32 %v9022_v28, %v994_v19  ;;  %v1057_v52 = vsel %vm346_vm5, %v1052_v9, 0.0  ;;  %v9036_v0 = vld [vmem:[#allocation300_spill] sm:$0xff] }
 0x37f   : > { %v1709_v4 = vsel %vm347_vm6, %v1705_v31, 0.0  ;;  %v1096_v5 = vadd.f32 %v9023_v14, %v1072_v24  ;;  %v1102_v42 = vadd.f32 %v9024_v41, %v1078_v58  ;;  %v1108_v60 = vadd.f32 %v9025_v38, %v1084_v59  ;;  %v9051_v14 = vld [vmem:[#allocation140_spill] sm:$0xff]  ;;  %v1797_v41 = vpop.permute.xlu0 %1796 }
 0x380   : > { %v1114_v35 = vadd.f32 %v9027_v7, %v1090_v33  ;;  %v9029_v12 = vstv %s8809_s11  ;;  %v9031_v56 = vstv %s8811_s7  ;;  %v9033_v49 = vstv %s9020_s13  ;;  %s9043_s11 = sld [smem:[#allocation216_spill]]  ;;  %s9048_s7 = sld [smem:[#allocation235_spill]] }
 0x381   : > { %v1069_v18 = vmul.f32 %v9029_v12, %v1057_v52  ;;  %v1075_v9 = vmul.f32 %v9031_v56, %v1057_v52  ;;  %v1081_v39 = vmul.f32 %v9033_v49, %v1057_v52  ;;  %v9034_v31 = vstv %s8548_s20  ;;  %s9046_s20 = sld [smem:[#allocation217_spill]] }
 0x382   : > { %v1087_v8 = vmul.f32 %v9034_v31, %v1057_v52  ;;  %v1120_v3 = vadd.f32 %v6362_v32, %v1096_v5  ;;  %v1126_v51 = vadd.f32 %v6366_v6, %v1102_v42  ;;  %v1132_v54 = vadd.f32 %v9035_v20, %v1108_v60  ;;  %v9052_v60 = vld [vmem:[#allocation42_spill] sm:$0xff]  ;;  %s9218_s13 = sld [smem:[#allocation225_spill]] }
 0x383   : > { %v1138_v40 = vadd.f32 %v9036_v0, %v1114_v35  ;;  %v1071_v57 = vadd.f32 %v1069_v18, %v1000_v29  ;;  %v1077_v17 = vadd.f32 %v1075_v9, %v1006_v55  ;;  %v1083_v19 = vadd.f32 %v1081_v39, %v1012_v46  ;;  %v9045_v29 = vld [vmem:[#allocation137_spill] sm:$0xff]  ;;  %v9047_v46 = vld [vmem:[#allocation138_spill] sm:$0xff] }
 0x384   : > { %v1089_v47 = vadd.f32 %v1087_v8, %v1018_v11  ;;  %v9037_v53 = vstv %s9026_s5  ;;  %v9038_v58 = vstv %s9028_s23  ;;  %v9040_v6 = vstv %s9030_s17  ;;  %v9049_v11 = vld [vmem:[#allocation139_spill] sm:$0xff] }
 0x385   : > { %v6748_v24 = vmul.f32 %v9037_v53, %v1709_v4  ;;  %v6752_v32 = vmul.f32 %v9038_v58, %v1709_v4  ;;  %v6756_v59 = vmul.f32 %v9040_v6, %v1709_v4  ;;  %v9042_v33 = vstv %s9032_s2 }
 0x386   : > { %v6760_v44 = vmul.f32 %v9042_v33, %v1709_v4  ;;  %v1095_v55 = vadd.f32 %v9045_v29, %v1071_v57  ;;  %v1101_v28 = vadd.f32 %v9047_v46, %v1077_v17  ;;  %v1107_v52 = vadd.f32 %v9049_v11, %v1083_v19  ;;  %v1258_v17 = vpop.permute.xlu1 %1257 }
 0x387   : > { %9039 = vst [vmem:[#allocation86_spill] sm:$0xff] %v6752_v32  ;;  %9041 = vst [vmem:[#allocation87_spill] sm:$0xff] %v6756_v59  ;;  %v1113_v5 = vadd.f32 %v9051_v14, %v1089_v47  ;;  %v1065_v42 = vsel %vm347_vm6, %v1060_v45, 0.0  ;;  %v1803_v38 = vsel %vm346_vm5, %v1799_v15, 0.0  ;;  %v1708_v4 = vsel %vm347_vm6, %v1703_v25, 0.0  ;;  %v9114_v59 = vld [vmem:[#allocation291_spill] sm:$0xff] }
 0x388   : > { %9044 = vst [vmem:[#allocation88_spill] sm:$0xff] %v6760_v44  ;;  %v2858_v7 = vsel %vm390_vm4, %v2856_v26, %v9052_v60  ;;  %v9053_v35 = vstv %s8828_s15  ;;  %v9054_v18 = vstv %s8829_s14  ;;  %v9055_v9 = vstv %s8830_s16  ;;  %s9088_s15 = sld [smem:[#allocation198_spill]]  ;;  %s9092_s16 = sld [smem:[#allocation200_spill]]  ;;  %v9113_v44 = vld [vmem:[#allocation290_spill] sm:$0xff]  ;;  %v9115_v32 = vld [vmem:[#allocation292_spill] sm:$0xff] }
 0x389   : > { %v1117_v12 = vmul.f32 %v9053_v35, %v1065_v42  ;;  %v1123_v56 = vmul.f32 %v9054_v18, %v1065_v42  ;;  %v1129_v49 = vmul.f32 %v9055_v9, %v1065_v42  ;;  %v9056_v45 = vstv %s8831_s1  ;;  %2863 = vrot.lane.b32.xlu1 %v2858_v7, %s8164_s28  ;;  %v2854_v9 = vpop.permute.xlu0 %2853  ;;  %s9090_s1 = sld [smem:[#allocation199_spill]]  ;;  %s9094_s14 = sld [smem:[#allocation201_spill]] }
 0x38a   : > { %v1135_v39 = vmul.f32 %v9056_v45, %v1065_v42  ;;  %v9057_v15 = vstv %s9043_s11  ;;  %v9059_v25 = vstv %s9046_s20  ;;  %v9061_v20 = vstv %s9048_s7  ;;  %v9073_v45 = vld [vmem:[#allocation251_spill] sm:$0xff] }
 0x38b   : > { %v6785_v31 = vmul.f32 %v9057_v15, %v1803_v38  ;;  %v6789_v8 = vmul.f32 %v9059_v25, %v1803_v38  ;;  %v6793_v0 = vmul.f32 %v9061_v20, %v1803_v38  ;;  %v9063_v26 = vstv %s9050_s0  ;;  %v9075_v25 = vld [vmem:[#allocation253_spill] sm:$0xff] }
 0x38c   : > { %v6797_v57 = vmul.f32 %v9063_v26, %v1803_v38  ;;  %v1119_v19 = vadd.f32 %v1117_v12, %v1095_v55  ;;  %v1125_v47 = vadd.f32 %v1123_v56, %v1101_v28  ;;  %v1131_v53 = vadd.f32 %v1129_v49, %v1107_v52  ;;  %v9069_v38 = vld [vmem:[#allocation247_spill] sm:$0xff]  ;;  %v9070_v55 = vld [vmem:[#allocation248_spill] sm:$0xff]  ;;  %v9071_v52 = vld [vmem:[#allocation249_spill] sm:$0xff] }
 0x38d   : > { %9058 = vst [vmem:[#allocation95_spill] sm:$0xff] %v6785_v31  ;;  %9060 = vst [vmem:[#allocation96_spill] sm:$0xff] %v6789_v8  ;;  %v1137_v58 = vadd.f32 %v1135_v39, %v1113_v5  ;;  %v9065_v6 = vstv %s9026_s5  ;;  %v9066_v29 = vstv %s9028_s23  ;;  %v9067_v11 = vstv %s9030_s17  ;;  %v9072_v12 = vld [vmem:[#allocation250_spill] sm:$0xff]  ;;  %2871 = vrot.lane.b32.xlu1 %v2858_v7, %s8158_s10  ;;  %v9074_v39 = vld [vmem:[#allocation252_spill] sm:$0xff]  ;;  %s9226_s5 = sld [smem:[#allocation59_spill]]  ;;  %s9228_s23 = sld [smem:[#allocation61_spill]] }
 0x38e   : > { %9062 = vst [vmem:[#allocation98_spill] sm:$0xff] %v6793_v0  ;;  %9064 = vst [vmem:[#allocation99_spill] sm:$0xff] %v6797_v57  ;;  %v6801_v33 = vmul.f32 %v9065_v6, %v1708_v4  ;;  %v6805_v46 = vmul.f32 %v9066_v29, %v1708_v4  ;;  %v6809_v14 = vmul.f32 %v9067_v11, %v1708_v4  ;;  %v9068_v42 = vstv %s9032_s2  ;;  %v9076_v26 = vld [vmem:[#allocation141_spill] sm:$0xff]  ;;  %v9078_v29 = vld [vmem:[#allocation143_spill] sm:$0xff]  ;;  %s9230_s17 = sld [smem:[#allocation62_spill]]  ;;  %s9246_s2 = sld [smem:[#allocation226_spill]] }
 0x38f   : > { %v6813_v35 = vmul.f32 %v9068_v42, %v1708_v4  ;;  %v1173_v18 = vadd.f32 %v9069_v38, %v1119_v19  ;;  %v1179_v28 = vadd.f32 %v9070_v55, %v1125_v47  ;;  %v1185_v5 = vadd.f32 %v9071_v52, %v1131_v53  ;;  %v9077_v47 = vld [vmem:[#allocation142_spill] sm:$0xff]  ;;  %v9079_v11 = vld [vmem:[#allocation144_spill] sm:$0xff] }
 0x390   : > { %v1191_v56 = vadd.f32 %v9072_v12, %v1137_v58  ;;  %v1802_v49 = vsel %vm346_vm5, %v1797_v41, 0.0  ;;  %v1174_v4 = vadd.f32 %v9073_v45, %v1120_v3  ;;  %v1180_v15 = vadd.f32 %v9074_v39, %v1126_v51 }
 0x391   : > { %v1186_v20 = vadd.f32 %v9075_v25, %v1132_v54  ;;  %v1197_v19 = vadd.f32 %v9076_v26, %v1173_v18  ;;  %v1203_v6 = vadd.f32 %v9077_v47, %v1179_v28  ;;  %v1209_v53 = vadd.f32 %v9078_v29, %v1185_v5  ;;  %v1266_v54 = vpop.permute.xlu1 %1265  ;;  %v9084_v18 = vld [vmem:[#allocation255_spill] sm:$0xff]  ;;  %v9085_v28 = vld [vmem:[#allocation256_spill] sm:$0xff]  ;;  %v9086_v5 = vld [vmem:[#allocation257_spill] sm:$0xff] }
 0x392   : > { %v1215_v58 = vadd.f32 %v9079_v11, %v1191_v56  ;;  %v9080_v42 = vstv %s9043_s11  ;;  %v9081_v38 = vstv %s9046_s20  ;;  %v9082_v41 = vstv %s9048_s7  ;;  %v9087_v56 = vld [vmem:[#allocation258_spill] sm:$0xff]  ;;  %s9248_s11 = sld [smem:[#allocation227_spill]]  ;;  %s7116_s20 = sld [smem:[#allocation8 + $0x2d]] }
 0x393   : > { %v6831_v7 = vmul.f32 %v9080_v42, %v1802_v49  ;;  %v6835_v55 = vmul.f32 %v9081_v38, %v1802_v49  ;;  %v6839_v3 = vmul.f32 %v9082_v41, %v1802_v49  ;;  %v9083_v51 = vstv %s9050_s0  ;;  %v9089_v26 = vld [vmem:[#allocation254_spill] sm:$0xff]  ;;  %v9093_v42 = vld [vmem:[#allocation146_spill] sm:$0xff]  ;;  %v9095_v38 = vld [vmem:[#allocation147_spill] sm:$0xff]  ;;  %s7118_s7 = sld [smem:[#allocation8 + $0x75]]  ;;  %s9251_s0 = sld [smem:[#allocation228_spill]] }
 0x394   : > { %v6843_v52 = vmul.f32 %v9083_v51, %v1802_v49  ;;  %v1221_v12 = vadd.f32 %v9084_v18, %v1197_v19  ;;  %v1227_v45 = vadd.f32 %v9085_v28, %v1203_v6  ;;  %v1233_v39 = vadd.f32 %v9086_v5, %v1209_v53  ;;  %v9091_v29 = vld [vmem:[#allocation145_spill] sm:$0xff]  ;;  %v9096_v6 = vld [vmem:[#allocation43_spill] sm:$0xff]  ;;  %v9099_v18 = vld [vmem:[#allocation148_spill] sm:$0xff] }
 0x395   : > { %v1239_v25 = vadd.f32 %v9087_v56, %v1215_v58  ;;  %v1192_v47 = vadd.f32 %v9089_v26, %v1138_v40  ;;  %v1198_v11 = vadd.f32 %v9091_v29, %v1174_v4  ;;  %v1204_v49 = vadd.f32 %v9093_v42, %v1180_v15  ;;  %v9098_v58 = vld [vmem:[#allocation289_spill] sm:$0xff]  ;;  %v1375_v4 = vpop.permute.xlu0 %1374  ;;  %v9100_v15 = vld [vmem:[#allocation259_spill] sm:$0xff]  ;;  %v9102_v5 = vld [vmem:[#allocation260_spill] sm:$0xff] }
 0x396   : > { %v1210_v41 = vadd.f32 %v9095_v38, %v1186_v20  ;;  %v1262_v19 = vsel %vm346_vm5, %v1258_v17, 0.0  ;;  %v2857_v53 = vsel %vm390_vm4, %v2854_v9, %v9096_v6  ;;  %v1270_v40 = vsel %vm347_vm6, %v1266_v54, 0.0  ;;  %v9103_v26 = vld [vmem:[#allocation261_spill] sm:$0xff] }
 0x397   : > { %v1275_v51 = vadd.f32 %v9098_v58, %v1221_v12  ;;  %v1216_v28 = vadd.f32 %v9099_v18, %v1192_v47  ;;  %v1222_v20 = vadd.f32 %v9100_v15, %v1198_v11  ;;  %v1228_v56 = vadd.f32 %v9102_v5, %v1204_v49  ;;  %2861 = vrot.lane.b32.xlu0 %v2857_v53, %s8164_s28  ;;  %v9108_v58 = vld [vmem:[#allocation262_spill] sm:$0xff]  ;;  %s9140_s28 = sld [smem:[#allocation237_spill]] }
 0x398   : > { %v1234_v17 = vadd.f32 %v9103_v26, %v1210_v41  ;;  %v9104_v29 = vstv %s9088_s15  ;;  %v9105_v42 = vstv %s9090_s1  ;;  %v9106_v6 = vstv %s9092_s16  ;;  %s9252_s15 = sld [smem:[#allocation229_spill]]  ;;  %s7124_s1 = sld [smem:[#allocation8 + $0xbd]] }
 0x399   : > { %v1274_v9 = vmul.f32 %v9104_v29, %v1262_v19  ;;  %v1280_v38 = vmul.f32 %v9105_v42, %v1262_v19  ;;  %v1286_v54 = vmul.f32 %v9106_v6, %v1262_v19  ;;  %v9107_v60 = vstv %s9094_s14  ;;  %s7126_s16 = sld [smem:[#allocation8 + $0x105]]  ;;  %s9262_s14 = sld [smem:[#allocation97_spill]] }
 0x39a   : > { %v1292_v12 = vmul.f32 %v9107_v60, %v1262_v19  ;;  %v1240_v57 = vadd.f32 %v9108_v58, %v1216_v28  ;;  %v9109_v47 = vstv %s8549_s24  ;;  %v9110_v0 = vstv %s8550_s6  ;;  %v9116_v19 = vld [vmem:[#allocation149_spill] sm:$0xff]  ;;  %v9117_v58 = vld [vmem:[#allocation150_spill] sm:$0xff]  ;;  %s9141_s24 = sld [smem:[#allocation53_spill]]  ;;  %s9143_s6 = sld [smem:[#allocation54_spill]] }
 0x39b   : > { %v1322_v18 = vmul.f32 %v9109_v47, %v1270_v40  ;;  %v1328_v11 = vmul.f32 %v9110_v0, %v1270_v40  ;;  %v9111_v15 = vstv %s9097_s26  ;;  %v1276_v5 = vadd.f32 %v1274_v9, %v1222_v20  ;;  %2869 = vrot.lane.b32.xlu0 %v2857_v53, %s8158_s10  ;;  %v9118_v47 = vld [vmem:[#allocation151_spill] sm:$0xff]  ;;  %v9119_v20 = vld [vmem:[#allocation157_spill] sm:$0xff]  ;;  %v1383_v9 = vpop.permute.xlu0 %1382  ;;  %s9139_s10 = sld [smem:[#allocation71_spill]]  ;;  %s9263_s26 = sld [smem:[#allocation60_spill]] }
 0x39c   : > { %v1334_v49 = vmul.f32 %v9111_v15, %v1270_v40  ;;  %v1282_v41 = vadd.f32 %v1280_v38, %v1228_v56  ;;  %v1288_v26 = vadd.f32 %v1286_v54, %v1234_v17  ;;  %v9112_v8 = vstv %s9101_s25  ;;  %v1807_v17 = vpop.permute.xlu1 %1806  ;;  %v9124_v54 = vld [vmem:[#allocation295_spill] sm:$0xff]  ;;  %s9264_s25 = sld [smem:[#allocation100_spill]] }
 0x39d   : > { %v1340_v31 = vmul.f32 %v9112_v8, %v1270_v40  ;;  %v1294_v29 = vadd.f32 %v1292_v12, %v1240_v57  ;;  %v1281_v42 = vadd.f32 %v9113_v44, %v1227_v45  ;;  %v1287_v6 = vadd.f32 %v9114_v59, %v1233_v39  ;;  %v9120_v8 = vld [vmem:[#allocation152_spill] sm:$0xff]  ;;  %v9121_v40 = vld [vmem:[#allocation158_spill] sm:$0xff]  ;;  %v9122_v45 = vld [vmem:[#allocation159_spill] sm:$0xff] }
 0x39e   : > { %v1293_v60 = vadd.f32 %v9115_v32, %v1239_v25  ;;  %v1300_v28 = vadd.f32 %v9116_v19, %v1276_v5  ;;  %v1306_v0 = vadd.f32 %v9117_v58, %v1282_v41  ;;  %v1312_v15 = vadd.f32 %v9118_v47, %v1288_v26  ;;  %v9123_v32 = vld [vmem:[#allocation160_spill] sm:$0xff]  ;;  %v9125_v5 = vld [vmem:[#allocation296_spill] sm:$0xff]  ;;  %v9127_v19 = vld [vmem:[#allocation298_spill] sm:$0xff] }
 0x39f   : > { %v1299_v56 = vadd.f32 %v9119_v20, %v1275_v51  ;;  %v1318_v57 = vadd.f32 %v9120_v8, %v1294_v29  ;;  %v1305_v44 = vadd.f32 %v9121_v40, %v1281_v42  ;;  %v1311_v59 = vadd.f32 %v9122_v45, %v1287_v6  ;;  %v9126_v26 = vld [vmem:[#allocation297_spill] sm:$0xff]  ;;  %v9128_v58 = vld [vmem:[#allocation303_spill] sm:$0xff]  ;;  %v9129_v6 = vld [vmem:[#allocation304_spill] sm:$0xff] }
 0x3a0   : > { %v1317_v39 = vadd.f32 %v9123_v32, %v1293_v60  ;;  %v1324_v25 = vadd.f32 %v1322_v18, %v1300_v28  ;;  %v1330_v53 = vadd.f32 %v1328_v11, %v1306_v0  ;;  %v1336_v38 = vadd.f32 %v1334_v49, %v1312_v15  ;;  %v9130_v8 = vld [vmem:[#allocation305_spill] sm:$0xff]  ;;  %v9131_v11 = vld [vmem:[#allocation306_spill] sm:$0xff]  ;;  %v9136_v45 = vld [vmem:[#allocation154_spill] sm:$0xff] }
 0x3a1   : > { %v1323_v12 = vadd.f32 %v9124_v54, %v1299_v56  ;;  %v1342_v51 = vadd.f32 %v1340_v31, %v1318_v57  ;;  %v1329_v41 = vadd.f32 %v9125_v5, %v1305_v44  ;;  %v1335_v29 = vadd.f32 %v9126_v26, %v1311_v59  ;;  %v9135_v40 = vld [vmem:[#allocation153_spill] sm:$0xff]  ;;  %v9137_v32 = vld [vmem:[#allocation155_spill] sm:$0xff]  ;;  %v9142_v54 = vld [vmem:[#allocation156_spill] sm:$0xff] }
 0x3a2   : > { %v1341_v42 = vadd.f32 %v9127_v19, %v1317_v39  ;;  %v1395_v47 = vadd.f32 %v9128_v58, %v1324_v25  ;;  %v1401_v20 = vadd.f32 %v9129_v6, %v1330_v53  ;;  %v1407_v60 = vadd.f32 %v9130_v8, %v1336_v38  ;;  %v1901_v38 = vpop.permute.xlu1 %1900  ;;  %v9144_v6 = vld [vmem:[#allocation308_spill] sm:$0xff] }
 0x3a3   : > { %v1380_v18 = vsel %vm346_vm5, %v1375_v4, 0.0  ;;  %v1413_v49 = vadd.f32 %v9131_v11, %v1342_v51  ;;  %v9132_v28 = vstv %s8850_s22  ;;  %v9133_v31 = vstv %s8851_s3  ;;  %v1805_v4 = vpop.permute.xlu0 %1804  ;;  %s9152_s3 = sld [smem:[#allocation56_spill]]  ;;  %s9154_s22 = sld [smem:[#allocation57_spill]] }
 0x3a4   : > { %v1392_v0 = vmul.f32 %v9132_v28, %v1380_v18  ;;  %v1398_v15 = vmul.f32 %v9133_v31, %v1380_v18  ;;  %v9134_v56 = vstv %s8561_s19  ;;  %v1419_v44 = vadd.f32 %v9135_v40, %v1395_v47  ;;  %s9148_s19 = sld [smem:[#allocation58_spill]]  ;;  %v9157_v40 = vld [vmem:[#allocation165_spill] sm:$0xff] }
 0x3a5   : > { %v1404_v57 = vmul.f32 %v9134_v56, %v1380_v18  ;;  %v1425_v59 = vadd.f32 %v9136_v45, %v1401_v20  ;;  %v1431_v39 = vadd.f32 %v9137_v32, %v1407_v60  ;;  %v9138_v25 = vstv %s8562_s30  ;;  %v9145_v60 = vld [vmem:[#allocation309_spill] sm:$0xff]  ;;  %s9150_s30 = sld [smem:[#allocation55_spill]] }
 0x3a6   : > { %v1410_v53 = vmul.f32 %v9138_v25, %v1380_v18  ;;  %v1437_v51 = vadd.f32 %v9142_v54, %v1413_v49  ;;  %v1394_v5 = vadd.f32 %v1392_v0, %v1323_v12  ;;  %v1400_v26 = vadd.f32 %v1398_v15, %v1329_v41  ;;  %v9146_v49 = vld [vmem:[#allocation161_spill] sm:$0xff]  ;;  %v9147_v41 = vld [vmem:[#allocation163_spill] sm:$0xff] }
 0x3a7   : > { %v1406_v19 = vadd.f32 %v1404_v57, %v1335_v29  ;;  %v1443_v58 = vadd.f32 %v6458_v16, %v1419_v44  ;;  %v1449_v47 = vadd.f32 %v6462_v13, %v1425_v59  ;;  %v1455_v20 = vadd.f32 %v9144_v6, %v1431_v39  ;;  %v1909_v6 = vpop.permute.xlu1 %1908 }
 0x3a8   : > { %v1412_v8 = vadd.f32 %v1410_v53, %v1341_v42  ;;  %v1461_v18 = vadd.f32 %v9145_v60, %v1437_v51  ;;  %v1811_v11 = vsel %vm347_vm6, %v1807_v17, 0.0  ;;  %v1418_v12 = vadd.f32 %v9146_v49, %v1394_v5  ;;  %v9156_v17 = vld [vmem:[#allocation164_spill] sm:$0xff]  ;;  %v1899_v60 = vpop.permute.xlu0 %1898 }
 0x3a9   : > { %v1424_v29 = vadd.f32 %v9147_v41, %v1400_v26  ;;  %v9149_v16 = vstv %s9139_s10  ;;  %v9151_v13 = vstv %s9140_s28  ;;  %v9153_v42 = vstv %s9141_s24 }
 0x3aa   : > { %v6926_v28 = vmul.f32 %v9149_v16, %v1811_v11  ;;  %v6930_v0 = vmul.f32 %v9151_v13, %v1811_v11  ;;  %v6934_v31 = vmul.f32 %v9153_v42, %v1811_v11  ;;  %v9155_v15 = vstv %s9143_s6 }
 0x3ab   : > { %v6938_v56 = vmul.f32 %v9155_v15, %v1811_v11  ;;  %v1430_v57 = vadd.f32 %v9156_v17, %v1406_v19  ;;  %v1436_v44 = vadd.f32 %v9157_v40, %v1412_v8  ;;  %v1388_v45 = vsel %vm347_vm6, %v1383_v9, 0.0 }
 0x3ac   : > { %v1905_v59 = vsel %vm346_vm5, %v1901_v38, 0.0  ;;  %v9158_v32 = vstv %s8869_s8  ;;  %v9159_v25 = vstv %s8870_s9  ;;  %v9160_v54 = vstv %s8871_s18  ;;  %s9171_s8 = sld [smem:[#allocation64_spill]]  ;;  %s9173_s9 = sld [smem:[#allocation65_spill]] }
 0x3ad   : > { %v1440_v39 = vmul.f32 %v9158_v32, %v1388_v45  ;;  %v1446_v53 = vmul.f32 %v9159_v25, %v1388_v45  ;;  %v1452_v51 = vmul.f32 %v9160_v54, %v1388_v45  ;;  %v9161_v5 = vstv %s8873_s27  ;;  %s9170_s27 = sld [smem:[#allocation89_spill]]  ;;  %v9172_v25 = vld [vmem:[#allocation267_spill] sm:$0xff]  ;;  %s9175_s18 = sld [smem:[#allocation66_spill]] }
 0x3ae   : > { %v1458_v26 = vmul.f32 %v9161_v5, %v1388_v45  ;;  %v9162_v11 = vstv %s9148_s19  ;;  %v9164_v8 = vstv %s9150_s30  ;;  %v9166_v9 = vstv %s9152_s3  ;;  %v9174_v54 = vld [vmem:[#allocation263_spill] sm:$0xff] }
 0x3af   : > { %v6956_v19 = vmul.f32 %v9162_v11, %v1905_v59  ;;  %v6960_v49 = vmul.f32 %v9164_v8, %v1905_v59  ;;  %v6964_v38 = vmul.f32 %v9166_v9, %v1905_v59  ;;  %v9168_v41 = vstv %s9154_s22  ;;  %v9183_v9 = vld [vmem:[#allocation166_spill] sm:$0xff] }
 0x3b0   : > { %v6968_v16 = vmul.f32 %v9168_v41, %v1905_v59  ;;  %v1442_v13 = vadd.f32 %v1440_v39, %v1418_v12  ;;  %v1448_v42 = vadd.f32 %v1446_v53, %v1424_v29  ;;  %v1454_v15 = vadd.f32 %v1452_v51, %v1430_v57  ;;  %v9176_v29 = vld [vmem:[#allocation264_spill] sm:$0xff]  ;;  %v9178_v53 = vld [vmem:[#allocation266_spill] sm:$0xff] }
 0x3b1   : > { %9163 = vst [vmem:[#allocation283_spill] sm:$0xff] %v6956_v19  ;;  %9165 = vst [vmem:[#allocation91_spill] sm:$0xff] %v6960_v49  ;;  %v1460_v17 = vadd.f32 %v1458_v26, %v1436_v44  ;;  %v1810_v40 = vsel %vm347_vm6, %v1805_v4, 0.0  ;;  %v1913_v45 = vsel %vm347_vm6, %v1909_v6, 0.0  ;;  %v1904_v32 = vsel %vm346_vm5, %v1899_v60, 0.0  ;;  %v9177_v44 = vld [vmem:[#allocation265_spill] sm:$0xff] }
 0x3b2   : > { %9167 = vst [vmem:[#allocation92_spill] sm:$0xff] %v6964_v38  ;;  %9169 = vst [vmem:[#allocation93_spill] sm:$0xff] %v6968_v16  ;;  %v1497_v59 = vadd.f32 %v9172_v25, %v1443_v58  ;;  %v1496_v12 = vadd.f32 %v9174_v54, %v1442_v13  ;;  %v1502_v57 = vadd.f32 %v9176_v29, %v1448_v42  ;;  %v9179_v51 = vstv %s9139_s10  ;;  %v9184_v13 = vld [vmem:[#allocation169_spill] sm:$0xff]  ;;  %v9186_v25 = vld [vmem:[#allocation171_spill] sm:$0xff]  ;;  %s9268_s10 = sld [smem:[#allocation103_spill]] }
 0x3b3   : > { %v1508_v39 = vadd.f32 %v9177_v44, %v1454_v15  ;;  %v1514_v4 = vadd.f32 %v9178_v53, %v1460_v17  ;;  %v6983_v5 = vmul.f32 %v9179_v51, %v1810_v40  ;;  %v9180_v26 = vstv %s9140_s28  ;;  %v9185_v15 = vld [vmem:[#allocation170_spill] sm:$0xff]  ;;  %v9195_v16 = vld [vmem:[#allocation271_spill] sm:$0xff]  ;;  %v9208_v38 = vld [vmem:[#allocation174_spill] sm:$0xff]  ;;  %s9270_s28 = sld [smem:[#allocation104_spill]] }
 0x3b4   : > { %v6987_v6 = vmul.f32 %v9180_v26, %v1810_v40  ;;  %v9181_v60 = vstv %s9141_s24  ;;  %v9182_v58 = vstv %s9143_s6  ;;  %v1520_v41 = vadd.f32 %v9183_v9, %v1496_v12  ;;  %v9196_v9 = vld [vmem:[#allocation272_spill] sm:$0xff]  ;;  %s7165_s24 = sld [smem:[#allocation8 + $0x2e]] }
 0x3b5   : > { %v6991_v11 = vmul.f32 %v9181_v60, %v1810_v40  ;;  %v6995_v8 = vmul.f32 %v9182_v58, %v1810_v40  ;;  %v1526_v42 = vadd.f32 %v9184_v13, %v1502_v57  ;;  %v1532_v17 = vadd.f32 %v9185_v15, %v1508_v39  ;;  %v9197_v13 = vld [vmem:[#allocation273_spill] sm:$0xff]  ;;  %v9198_v15 = vld [vmem:[#allocation274_spill] sm:$0xff]  ;;  %v9210_v19 = vld [vmem:[#allocation176_spill] sm:$0xff]  ;;  %s7171_s6 = sld [smem:[#allocation8 + $0x76]] }
 0x3b6   : > { %v1538_v54 = vadd.f32 %v9186_v25, %v1514_v4  ;;  %v9187_v29 = vstv %s9170_s27  ;;  %v9189_v53 = vstv %s9171_s8  ;;  %v9191_v26 = vstv %s9173_s9 }
 0x3b7   : > { %v7003_v44 = vmul.f32 %v9187_v29, %v1913_v45  ;;  %v7007_v51 = vmul.f32 %v9189_v53, %v1913_v45  ;;  %v7011_v60 = vmul.f32 %v9191_v26, %v1913_v45  ;;  %v9193_v40 = vstv %s9175_s18 }
 0x3b8   : > { %v7015_v58 = vmul.f32 %v9193_v40, %v1913_v45  ;;  %v1544_v12 = vadd.f32 %v9195_v16, %v1520_v41  ;;  %v1550_v57 = vadd.f32 %v9196_v9, %v1526_v42  ;;  %v1556_v39 = vadd.f32 %v9197_v13, %v1532_v17  ;;  %v9203_v17 = vld [vmem:[#allocation310_spill] sm:$0xff]  ;;  %v9204_v40 = vld [vmem:[#allocation268_spill] sm:$0xff]  ;;  %v9205_v13 = vld [vmem:[#allocation269_spill] sm:$0xff] }
 0x3b9   : > { %9188 = vst [vmem:[#allocation94_spill] sm:$0xff] %v7003_v44  ;;  %9190 = vst [vmem:[#allocation101_spill] sm:$0xff] %v7007_v51  ;;  %v1562_v4 = vadd.f32 %v9198_v15, %v1538_v54  ;;  %v9199_v25 = vstv %s9148_s19  ;;  %v9200_v44 = vstv %s9150_s30  ;;  %v9201_v51 = vstv %s9152_s3  ;;  %s9275_s19 = sld [smem:[#allocation108_spill]]  ;;  %s7173_s30 = sld [smem:[#allocation8 + $0xbe]] }
 0x3ba   : > { %9192 = vst [vmem:[#allocation102_spill] sm:$0xff] %v7011_v60  ;;  %9194 = vst [vmem:[#allocation105_spill] sm:$0xff] %v7015_v58  ;;  %v7023_v29 = vmul.f32 %v9199_v25, %v1904_v32  ;;  %v7027_v53 = vmul.f32 %v9200_v44, %v1904_v32  ;;  %v7031_v26 = vmul.f32 %v9201_v51, %v1904_v32  ;;  %v9202_v60 = vstv %s9154_s22  ;;  %v9206_v44 = vld [vmem:[#allocation270_spill] sm:$0xff]  ;;  %s9276_s3 = sld [smem:[#allocation109_spill]]  ;;  %s9277_s22 = sld [smem:[#allocation114_spill]] }
 0x3bb   : > { %v7035_v45 = vmul.f32 %v9202_v60, %v1904_v32  ;;  %v1598_v16 = vadd.f32 %v6487_v36, %v1544_v12  ;;  %v1604_v41 = vadd.f32 %v6491_v37, %v1550_v57  ;;  %v1610_v42 = vadd.f32 %v6495_v23, %v1556_v39  ;;  %v9207_v58 = vld [vmem:[#allocation180_spill] sm:$0xff]  ;;  %v9209_v32 = vld [vmem:[#allocation175_spill] sm:$0xff]  ;;  %v9211_v12 = vld [vmem:[#allocation179_spill] sm:$0xff]  ;;  %v1581_v57 = vpop.permute.xlu1 %1580 }
 0x3bc   : > { %v1616_v54 = vadd.f32 %v9203_v17, %v1562_v4  ;;  %v1503_v9 = vadd.f32 %v9204_v40, %v1449_v47  ;;  %v1509_v15 = vadd.f32 %v9205_v13, %v1455_v20  ;;  %v1515_v25 = vadd.f32 %v9206_v44, %v1461_v18  ;;  %v9212_v23 = vld [vmem:[#allocation181_spill] sm:$0xff]  ;;  %v9213_v4 = vld [vmem:[#allocation182_spill] sm:$0xff]  ;;  %v9215_v17 = vld [vmem:[#allocation185_spill] sm:$0xff] }
 0x3bd   : > { %v1521_v51 = vadd.f32 %v9207_v58, %v1497_v59  ;;  %v1622_v49 = vadd.f32 %v9208_v38, %v1598_v16  ;;  %v1628_v60 = vadd.f32 %v9209_v32, %v1604_v41  ;;  %v1634_v36 = vadd.f32 %v9210_v19, %v1610_v42  ;;  %v9216_v18 = vld [vmem:[#allocation275_spill] sm:$0xff]  ;;  %v9219_v41 = vld [vmem:[#allocation276_spill] sm:$0xff] }
 0x3be   : > { %v1640_v37 = vadd.f32 %v9211_v12, %v1616_v54  ;;  %v1527_v39 = vadd.f32 %v9212_v23, %v1503_v9  ;;  %v1533_v47 = vadd.f32 %v9213_v4, %v1509_v15  ;;  %v1539_v20 = vadd.f32 %v9215_v17, %v1515_v25  ;;  %v9220_v54 = vld [vmem:[#allocation277_spill] sm:$0xff]  ;;  %v9221_v9 = vld [vmem:[#allocation278_spill] sm:$0xff]  ;;  %v9229_v23 = vld [vmem:[#allocation280_spill] sm:$0xff] }
 0x3bf   : > { %v1545_v59 = vadd.f32 %v9216_v18, %v1521_v51  ;;  %v1646_v38 = vadd.f32 %v6550_v48, %v1622_v49  ;;  %v1652_v58 = vadd.f32 %v6554_v27, %v1628_v60  ;;  %v1658_v19 = vadd.f32 %v6558_v61, %v1634_v36 }
 0x3c0   : > { %v1664_v16 = vadd.f32 %v6562_v10, %v1640_v37  ;;  %v1551_v42 = vadd.f32 %v9219_v41, %v1527_v39  ;;  %v1557_v40 = vadd.f32 %v9220_v54, %v1533_v47  ;;  %v1563_v13 = vadd.f32 %v9221_v9, %v1539_v20  ;;  %v9227_v37 = vld [vmem:[#allocation279_spill] sm:$0xff]  ;;  %v9233_v54 = vld [vmem:[#allocation30_spill] sm:$0xff] }
 0x3c1   : > { %v1585_v15 = vsel %vm346_vm5, %v1581_v57, 0.0  ;;  %v1714_v44 = vadd.f32 %v6644_v63, %v1646_v38  ;;  %v1720_v25 = vadd.f32 %v6648_v22, %v1652_v58  ;;  %v1726_v48 = vadd.f32 %v6652_v62, %v1658_v19  ;;  %v9231_v22 = vld [vmem:[#allocation281_spill] sm:$0xff]  ;;  %v9232_v62 = vld [vmem:[#allocation282_spill] sm:$0xff] }
 0x3c2   : > { %v1732_v27 = vadd.f32 %v6656_v34, %v1664_v16  ;;  %v9222_v61 = vstv %s9214_s29  ;;  %v9223_v10 = vstv %s8889_s12  ;;  %v9224_v32 = vstv %s9217_s21  ;;  %v1907_v34 = vpop.permute.xlu0 %1906  ;;  %s9236_s12 = sld [smem:[#allocation63_spill]]  ;;  %s7224_s21 = sld [smem:[#allocation8 + $0x30]] }
 0x3c3   : > { %v1597_v49 = vmul.f32 %v9222_v61, %v1585_v15  ;;  %v1603_v51 = vmul.f32 %v9223_v10, %v1585_v15  ;;  %v1609_v60 = vmul.f32 %v9224_v32, %v1585_v15  ;;  %v9225_v36 = vstv %s9218_s13  ;;  %s7205_s29 = sld [smem:[#allocation8 + $0x107]]  ;;  %s7226_s13 = sld [smem:[#allocation8 + $0x78]] }
 0x3c4   : > { %v1615_v12 = vmul.f32 %v9225_v36, %v1585_v15  ;;  %v1738_v57 = vadd.f32 %v9227_v37, %v1714_v44  ;;  %v1744_v63 = vadd.f32 %v9229_v23, %v1720_v25  ;;  %v1750_v39 = vadd.f32 %v9231_v22, %v1726_v48  ;;  %v1589_v44 = vpop.permute.xlu1 %1588  ;;  %v9249_v22 = vld [vmem:[#allocation186_spill] sm:$0xff] }
 0x3c5   : > { %v1756_v4 = vadd.f32 %v9232_v62, %v1732_v27  ;;  %v1599_v47 = vadd.f32 %v1597_v49, %v1545_v59  ;;  %v1605_v17 = vadd.f32 %v1603_v51, %v1551_v42  ;;  %v1611_v20 = vadd.f32 %v1609_v60, %v1557_v40  ;;  %v9242_v60 = vld [vmem:[#allocation293_spill] sm:$0xff]  ;;  %v9250_v62 = vld [vmem:[#allocation187_spill] sm:$0xff] }
 0x3c6   : > { %v1617_v18 = vadd.f32 %v1615_v12, %v1563_v13  ;;  %v1762_v38 = vadd.f32 %v6801_v33, %v1738_v57  ;;  %v1768_v58 = vadd.f32 %v6805_v46, %v1744_v63  ;;  %v1774_v19 = vadd.f32 %v6809_v14, %v1750_v39  ;;  %v9243_v12 = vld [vmem:[#allocation294_spill] sm:$0xff] }
 0x3c7   : > { %v1780_v16 = vadd.f32 %v6813_v35, %v1756_v4  ;;  %v1912_v41 = vsel %vm347_vm6, %v1907_v34, 0.0  ;;  %v9234_v59 = vstv %s9226_s5  ;;  %v9235_v40 = vstv %s9228_s23  ;;  %s7230_s5 = sld [smem:[#allocation8 + $0xc0]] }
 0x3c8   : > { %v1737_v42 = vmul.f32 %v9234_v59, %v9233_v54  ;;  %v1743_v9 = vmul.f32 %v9235_v40, %v9233_v54  ;;  %v9237_v13 = vstv %s9230_s17  ;;  %v1816_v15 = vadd.f32 %v6831_v7, %v1762_v38  ;;  %v9244_v7 = vld [vmem:[#allocation301_spill] sm:$0xff]  ;;  %s7232_s23 = sld [smem:[#allocation8 + $0x108]]  ;;  %s7243_s17 = sld [smem:[#allocation8 + $0x31]] }
 0x3c9   : > { %v1749_v33 = vmul.f32 %v9237_v13, %v9233_v54  ;;  %v1822_v46 = vadd.f32 %v6835_v55, %v1768_v58  ;;  %v1828_v14 = vadd.f32 %v6839_v3, %v1774_v19  ;;  %v1834_v35 = vadd.f32 %v6843_v52, %v1780_v16  ;;  %v9245_v55 = vld [vmem:[#allocation302_spill] sm:$0xff]  ;;  %v9254_v16 = vld [vmem:[#allocation191_spill] sm:$0xff] }
 0x3ca   : > { %v9238_v25 = vstv %s9170_s27  ;;  %v9239_v27 = vstv %s9171_s8  ;;  %v9240_v49 = vstv %s9173_s9  ;;  %v9241_v51 = vstv %s9175_s18  ;;  %s7182_s27 = sld [smem:[#allocation8 + $0x106]]  ;;  %s7195_s8 = sld [smem:[#allocation8 + $0x2f]] }
 0x3cb   : > { %v1964_v48 = vmul.f32 %v9238_v25, %v1912_v41  ;;  %v1970_v61 = vmul.f32 %v9239_v27, %v1912_v41  ;;  %v1976_v10 = vmul.f32 %v9240_v49, %v1912_v41  ;;  %v1982_v32 = vmul.f32 %v9241_v51, %v1912_v41  ;;  %v9259_v25 = vld [vmem:[#allocation90_spill] sm:$0xff]  ;;  %v9260_v27 = vld [vmem:[#allocation307_spill] sm:$0xff]  ;;  %s7198_s9 = sld [smem:[#allocation8 + $0x77]] }
 0x3cc   : > { %v1840_v36 = vadd.f32 %v9242_v60, %v1816_v15  ;;  %v1846_v37 = vadd.f32 %v9243_v12, %v1822_v46  ;;  %v1852_v57 = vadd.f32 %v9244_v7, %v1828_v14  ;;  %v1858_v3 = vadd.f32 %v9245_v55, %v1834_v35  ;;  %v9261_v51 = vld [vmem:[#allocation85_spill] sm:$0xff]  ;;  %s7200_s18 = sld [smem:[#allocation8 + $0xbf]] }
 0x3cd   : > { %v9247_v52 = vstv %s9236_s12  ;;  %v1593_v63 = vsel %vm347_vm6, %v1589_v44, 0.0  ;;  %v1623_v39 = vadd.f32 %v9249_v22, %v1599_v47  ;;  %v1629_v4 = vadd.f32 %v9250_v62, %v1605_v17  ;;  %v9253_v47 = vld [vmem:[#allocation188_spill] sm:$0xff]  ;;  %s7245_s12 = sld [smem:[#allocation8 + $0x79]] }
 0x3ce   : > { %v1755_v23 = vmul.f32 %v9247_v52, %v9233_v54  ;;  %v1864_v34 = vadd.f32 %v6983_v5, %v1840_v36  ;;  %v1870_v38 = vadd.f32 %v6987_v6, %v1846_v37  ;;  %v1876_v58 = vadd.f32 %v6991_v11, %v1852_v57 }
 0x3cf   : > { %v1882_v19 = vadd.f32 %v6995_v8, %v1858_v3  ;;  %v1635_v17 = vadd.f32 %v9253_v47, %v1611_v20  ;;  %v1641_v41 = vadd.f32 %v9254_v16, %v1617_v18  ;;  %v9255_v54 = vstv %s9246_s2  ;;  %v9273_v47 = vld [vmem:[#allocation95_spill] sm:$0xff]  ;;  %v9274_v16 = vld [vmem:[#allocation96_spill] sm:$0xff]  ;;  %s7247_s2 = sld [smem:[#allocation8 + $0xc1]] }
 0x3d0   : > { %v1645_v59 = vmul.f32 %v9255_v54, %v1593_v63  ;;  %v9256_v40 = vstv %s9248_s11  ;;  %v1918_v13 = vadd.f32 %v7023_v29, %v1864_v34  ;;  %v1924_v6 = vadd.f32 %v7027_v53, %v1870_v38  ;;  %s7249_s11 = sld [smem:[#allocation8 + $0x109]] }
 0x3d1   : > { %v1651_v5 = vmul.f32 %v9256_v40, %v1593_v63  ;;  %v1930_v11 = vadd.f32 %v7031_v26, %v1876_v58  ;;  %v1936_v8 = vadd.f32 %v7035_v45, %v1882_v19  ;;  %v9257_v14 = vstv %s9251_s0  ;;  %v9272_v19 = vld [vmem:[#allocation88_spill] sm:$0xff]  ;;  %s7259_s0 = sld [smem:[#allocation8 + $0xc2]] }
 0x3d2   : > { %v1647_v15 = vadd.f32 %v1645_v59, %v1623_v39  ;;  %v1657_v35 = vmul.f32 %v9257_v14, %v1593_v63  ;;  %v9258_v44 = vstv %s9252_s15  ;;  %v1942_v18 = vadd.f32 %v9259_v25, %v1918_v13  ;;  %v9278_v13 = vld [vmem:[#allocation98_spill] sm:$0xff]  ;;  %v9281_v14 = vld [vmem:[#allocation31_spill] sm:$0xff]  ;;  %s7261_s15 = sld [smem:[#allocation8 + $0x10a]] }
 0x3d3   : > { %v1653_v46 = vadd.f32 %v1651_v5, %v1629_v4  ;;  %v1663_v20 = vmul.f32 %v9258_v44, %v1593_v63  ;;  %v1948_v49 = vadd.f32 %v9260_v27, %v1924_v6  ;;  %v1954_v60 = vadd.f32 %v9261_v51, %v1930_v11  ;;  %v2016_v63 = vpop.permute.xlu0 %2015  ;;  %v3562_v4 = vld [vmem:[%s8951_s4 + $0x8] sm:$0xff]  ;;  %v9279_v11 = vld [vmem:[#allocation99_spill] sm:$0xff] }
 0x3d4   : > { %v1960_v29 = vadd.f32 %v6517_v43, %v1936_v8  ;;  %v1659_v53 = vadd.f32 %v1657_v35, %v1635_v17  ;;  %v1715_v45 = vadd.f32 %v6608_v2, %v1647_v15  ;;  %v1966_v12 = vadd.f32 %v1964_v48, %v1942_v18 }
 0x3d5   : > { %v1665_v26 = vadd.f32 %v1663_v20, %v1641_v41  ;;  %v1721_v36 = vadd.f32 %v6612_v50, %v1653_v46  ;;  %v1972_v37 = vadd.f32 %v1970_v61, %v1948_v49  ;;  %v1978_v7 = vadd.f32 %v1976_v10, %v1954_v60  ;;  %v9265_v10 = vld [vmem:[#allocation86_spill] sm:$0xff]  ;;  %v2018_v20 = vpop.permute.xlu1 %2017 }
 0x3d6   : > { %v1984_v57 = vadd.f32 %v1982_v32, %v1960_v29  ;;  %v1727_v55 = vadd.f32 %v6616_v30, %v1659_v53  ;;  %v1739_v43 = vadd.f32 %v1737_v42, %v1715_v45  ;;  %v2032_v22 = vstv %s7116_s20  ;;  %s7253_s20 = sld [smem:[#allocation8 + $0x32]] }
 0x3d7   : > { %v1733_v3 = vadd.f32 %v6620_v21, %v1665_v26  ;;  %v1745_v52 = vadd.f32 %v1743_v9, %v1721_v36  ;;  %v2038_v39 = vstv %s7118_s7  ;;  %v2044_v2 = vstv %s7124_s1  ;;  %s7255_s7 = sld [smem:[#allocation8 + $0x7a]]  ;;  %s7272_s1 = sld [smem:[#allocation8 + $0x33]] }
 0x3d8   : > { %v2050_v62 = vstv %s7126_s16  ;;  %v1751_v50 = vadd.f32 %v1749_v33, %v1727_v55  ;;  %v1763_v61 = vadd.f32 %v6748_v24, %v1739_v43  ;;  %v2021_v30 = vsel %vm346_vm5, %v2016_v63, 0.0  ;;  %v9271_v33 = vld [vmem:[#allocation87_spill] sm:$0xff]  ;;  %s7274_s16 = sld [smem:[#allocation8 + $0x7b]] }
 0x3d9   : > { %v1757_v48 = vadd.f32 %v1755_v23, %v1733_v3  ;;  %v1769_v32 = vadd.f32 %v9265_v10, %v1745_v52  ;;  %v9266_v34 = vstv %s9262_s14  ;;  %v9267_v38 = vstv %s9263_s26  ;;  %v9286_v10 = vld [vmem:[#allocation283_spill] sm:$0xff]  ;;  %s7280_s14 = sld [smem:[#allocation8 + $0xc3]] }
 0x3da   : > { %v1839_v21 = vmul.f32 %v3562_v4, %v9266_v34  ;;  %v1845_v42 = vmul.f32 %v3562_v4, %v9267_v38  ;;  %v9269_v9 = vstv %s9264_s25  ;;  %v1775_v23 = vadd.f32 %v9271_v33, %v1751_v50  ;;  %s7282_s26 = sld [smem:[#allocation8 + $0x10b]]  ;;  %s7289_s25 = sld [smem:[#allocation8 + $0x34]] }
 0x3db   : > { %v1851_v58 = vmul.f32 %v3562_v4, %v9269_v9  ;;  %v1781_v24 = vadd.f32 %v9272_v19, %v1757_v48  ;;  %v1817_v17 = vadd.f32 %v9273_v47, %v1763_v61  ;;  %v1823_v41 = vadd.f32 %v9274_v16, %v1769_v32 }
 0x3dc   : > { %v2033_v54 = vmul.f32 %v2032_v22, %v2021_v30  ;;  %v2039_v59 = vmul.f32 %v2038_v39, %v2021_v30  ;;  %v2045_v40 = vmul.f32 %v2044_v2, %v2021_v30  ;;  %v2051_v5 = vmul.f32 %v2050_v62, %v2021_v30 }
 0x3dd   : > { %v1829_v6 = vadd.f32 %v9278_v13, %v1775_v23  ;;  %v1835_v8 = vadd.f32 %v9279_v11, %v1781_v24  ;;  %v9280_v15 = vstv %s9268_s10  ;;  %v9282_v35 = vstv %s9270_s28  ;;  %v9291_v24 = vld [vmem:[#allocation94_spill] sm:$0xff]  ;;  %v9294_v13 = vld [vmem:[#allocation105_spill] sm:$0xff]  ;;  %s7291_s10 = sld [smem:[#allocation8 + $0x7c]] }
 0x3de   : > { %v1857_v46 = vmul.f32 %v3562_v4, %v9280_v15  ;;  %v1941_v44 = vmul.f32 %v9282_v35, %v9281_v14  ;;  %v2035_v25 = vadd.f32 %v2033_v54, %v1966_v12  ;;  %v2041_v18 = vadd.f32 %v2039_v59, %v1972_v37  ;;  %v9288_v4 = vld [vmem:[#allocation92_spill] sm:$0xff]  ;;  %v9292_v54 = vld [vmem:[#allocation101_spill] sm:$0xff]  ;;  %s7293_s28 = sld [smem:[#allocation8 + $0xc4]] }
 0x3df   : > { %v2047_v27 = vadd.f32 %v2045_v40, %v1978_v7  ;;  %v2053_v49 = vadd.f32 %v2051_v5, %v1984_v57  ;;  %v9283_v51 = vstv %s9275_s19  ;;  %v9284_v29 = vstv %s9276_s3  ;;  %v9293_v40 = vld [vmem:[#allocation102_spill] sm:$0xff]  ;;  %s7301_s19 = sld [smem:[#allocation8 + $0x7d]] }
 0x3e0   : > { %v1947_v60 = vmul.f32 %v9283_v51, %v9281_v14  ;;  %v1953_v53 = vmul.f32 %v9284_v29, %v9281_v14  ;;  %v9285_v26 = vstv %s9277_s22  ;;  %v1841_v36 = vadd.f32 %v1839_v21, %v1817_v17  ;;  %v9289_v21 = vld [vmem:[#allocation93_spill] sm:$0xff]  ;;  %s7307_s3 = sld [smem:[#allocation8 + $0x10d]]  ;;  %s7321_s22 = sld [smem:[#allocation8 + $0x36]] }
 0x3e1   : > { %v1959_v45 = vmul.f32 %v9285_v26, %v9281_v14  ;;  %v1847_v55 = vadd.f32 %v1845_v42, %v1823_v41  ;;  %v1853_v3 = vadd.f32 %v1851_v58, %v1829_v6  ;;  %v1859_v43 = vadd.f32 %v1857_v46, %v1835_v8  ;;  %v2024_v8 = vpop.permute.xlu0 %2023 }
 0x3e2   : > { %v2022_v12 = vsel %vm346_vm5, %v2018_v20, 0.0  ;;  %v1865_v37 = vadd.f32 %v6926_v28, %v1841_v36  ;;  %v2056_v28 = vstv %s7165_s24  ;;  %v2074_v9 = vstv %s7182_s27  ;;  %s7295_s24 = sld [smem:[#allocation8 + $0x10c]]  ;;  %s7323_s27 = sld [smem:[#allocation8 + $0x7e]] }
 0x3e3   : > { %v2034_v7 = vmul.f32 %v2032_v22, %v2022_v12  ;;  %v2040_v57 = vmul.f32 %v2038_v39, %v2022_v12  ;;  %v2046_v52 = vmul.f32 %v2044_v2, %v2022_v12  ;;  %v1871_v63 = vadd.f32 %v6930_v0, %v1847_v55  ;;  %v9287_v2 = vld [vmem:[#allocation91_spill] sm:$0xff]  ;;  %v9290_v0 = vld [vmem:[#allocation33_spill] sm:$0xff] }
 0x3e4   : > { %v1877_v50 = vadd.f32 %v6934_v31, %v1853_v3  ;;  %v1883_v48 = vadd.f32 %v6938_v56, %v1859_v43  ;;  %v2052_v61 = vmul.f32 %v2050_v62, %v2022_v12  ;;  %v1919_v32 = vadd.f32 %v9286_v10, %v1865_v37 }
 0x3e5   : > { %v2062_v22 = vstv %s7171_s6  ;;  %v2068_v39 = vstv %s7173_s30  ;;  %v1925_v30 = vadd.f32 %v9287_v2, %v1871_v63  ;;  %v2057_v42 = vmul.f32 %v2056_v28, %v9290_v0  ;;  %s7299_s6 = sld [smem:[#allocation8 + $0x35]] }
 0x3e6   : > { %v1931_v34 = vadd.f32 %v9288_v4, %v1877_v50  ;;  %v1937_v38 = vadd.f32 %v9289_v21, %v1883_v48  ;;  %v1943_v31 = vadd.f32 %v1941_v44, %v1919_v32  ;;  %v2063_v56 = vmul.f32 %v2062_v22, %v9290_v0  ;;  %v2026_v44 = vpop.permute.xlu1 %2025  ;;  %v2118_v32 = vpop.permute.xlu0 %2117  ;;  %s7305_s30 = sld [smem:[#allocation8 + $0xc5]] }
 0x3e7   : > { %v2069_v62 = vmul.f32 %v2068_v39, %v9290_v0  ;;  %v1949_v58 = vadd.f32 %v1947_v60, %v1925_v30  ;;  %v2059_v19 = vadd.f32 %v2057_v42, %v2035_v25  ;;  %v2075_v41 = vmul.f32 %v2074_v9, %v9290_v0  ;;  %v9295_v60 = vld [vmem:[#allocation32_spill] sm:$0xff] }
 0x3e8   : > { %v1955_v33 = vadd.f32 %v1953_v53, %v1931_v34  ;;  %v1961_v23 = vadd.f32 %v1959_v45, %v1937_v38  ;;  %v1967_v47 = vadd.f32 %v9291_v24, %v1943_v31  ;;  %v2065_v17 = vadd.f32 %v2063_v56, %v2041_v18 }
 0x3e9   : > { %v2071_v16 = vadd.f32 %v2069_v62, %v2047_v27  ;;  %v1973_v59 = vadd.f32 %v9292_v54, %v1949_v58  ;;  %v2080_v11 = vstv %s7195_s8  ;;  %v2077_v46 = vadd.f32 %v2075_v41, %v2053_v49  ;;  %s7329_s8 = sld [smem:[#allocation8 + $0xc6]] }
 0x3ea   : > { %v1979_v5 = vadd.f32 %v9293_v40, %v1955_v33  ;;  %v1985_v6 = vadd.f32 %v9294_v13, %v1961_v23  ;;  %v2036_v15 = vadd.f32 %v2034_v7, %v1967_v47  ;;  %v2086_v14 = vstv %s7198_s9  ;;  %s7331_s9 = sld [smem:[#allocation8 + $0x10e]] }
 0x3eb   : > { %v2092_v35 = vstv %s7200_s18  ;;  %v2042_v20 = vadd.f32 %v2040_v57, %v1973_v59  ;;  %v2098_v27 = vstv %s7205_s29  ;;  %v2029_v51 = vsel %vm347_vm6, %v2024_v8, 0.0  ;;  %s7341_s18 = sld [smem:[#allocation8 + $0x37]] }
 0x3ec   : > { %v2048_v25 = vadd.f32 %v2046_v52, %v1979_v5  ;;  %v2054_v18 = vadd.f32 %v2052_v61, %v1985_v6  ;;  %v2058_v29 = vmul.f32 %v2056_v28, %v9295_v60  ;;  %v2064_v53 = vmul.f32 %v2062_v22, %v9295_v60  ;;  %v2120_v28 = vpop.permute.xlu1 %2119  ;;  %s7343_s29 = sld [smem:[#allocation8 + $0x7f]] }
 0x3ed   : > { %v2070_v49 = vmul.f32 %v2068_v39, %v9295_v60  ;;  %v2081_v26 = vmul.f32 %v2080_v11, %v2029_v51  ;;  %v2087_v45 = vmul.f32 %v2086_v14, %v2029_v51  ;;  %v2093_v36 = vmul.f32 %v2092_v35, %v2029_v51 }
 0x3ee   : > { %v2099_v55 = vmul.f32 %v2098_v27, %v2029_v51  ;;  %v2076_v3 = vmul.f32 %v2074_v9, %v9295_v60  ;;  %v2030_v43 = vsel %vm347_vm6, %v2026_v44, 0.0  ;;  %v2060_v12 = vadd.f32 %v2058_v29, %v2036_v15 }
 0x3ef   : > { %v2066_v37 = vadd.f32 %v2064_v53, %v2042_v20  ;;  %v2083_v7 = vadd.f32 %v2081_v26, %v2059_v19  ;;  %v2089_v57 = vadd.f32 %v2087_v45, %v2065_v17  ;;  %v2095_v52 = vadd.f32 %v2093_v36, %v2071_v16 }
 0x3f0   : > { %v2101_v63 = vadd.f32 %v2099_v55, %v2077_v46  ;;  %v2072_v50 = vadd.f32 %v2070_v49, %v2048_v25  ;;  %v2078_v48 = vadd.f32 %v2076_v3, %v2054_v18  ;;  %v2082_v61 = vmul.f32 %v2080_v11, %v2030_v43  ;;  %v3563_v46 = vld [vmem:[%s8951_s4 + $0x10] sm:$0xff]  ;;  %v2126_v25 = vpop.permute.xlu0 %2125  ;;  %v2128_v29 = vpop.permute.xlu1 %2127  ;;  %v3564_v55 = vld [vmem:[%s8951_s4 + $0x18] sm:$0xff] }
 0x3f1   : > { %v2088_v10 = vmul.f32 %v2086_v14, %v2030_v43  ;;  %v2094_v22 = vmul.f32 %v2092_v35, %v2030_v43  ;;  %v2100_v39 = vmul.f32 %v2098_v27, %v2030_v43  ;;  %v2134_v2 = vstv %s7224_s21  ;;  %s7345_s21 = sld [smem:[#allocation8 + $0xc7]] }
 0x3f2   : > { %v2140_v30 = vstv %s7226_s13  ;;  %v2084_v4 = vadd.f32 %v2082_v61, %v2060_v12  ;;  %v2146_v21 = vstv %s7230_s5  ;;  %v2152_v38 = vstv %s7232_s23  ;;  %s7347_s13 = sld [smem:[#allocation8 + $0x10f]]  ;;  %s7351_s5 = sld [smem:[#allocation8 + $0x38]] }
 0x3f3   : > { %v2090_v34 = vadd.f32 %v2088_v10, %v2066_v37  ;;  %v2096_v0 = vadd.f32 %v2094_v22, %v2072_v50  ;;  %v2102_v42 = vadd.f32 %v2100_v39, %v2078_v48  ;;  %v2123_v31 = vsel %vm346_vm5, %v2118_v32, 0.0  ;;  %s7353_s23 = sld [smem:[#allocation8 + $0x80]] }
 0x3f4   : > { %v2124_v56 = vsel %vm346_vm5, %v2120_v28, 0.0  ;;  %v2135_v62 = vmul.f32 %v2134_v2, %v2123_v31  ;;  %v2141_v9 = vmul.f32 %v2140_v30, %v2123_v31  ;;  %v2147_v58 = vmul.f32 %v2146_v21, %v2123_v31 }
 0x3f5   : > { %v2153_v33 = vmul.f32 %v2152_v38, %v2123_v31  ;;  %v2136_v23 = vmul.f32 %v2134_v2, %v2124_v56  ;;  %v2142_v19 = vmul.f32 %v2140_v30, %v2124_v56  ;;  %v2148_v24 = vmul.f32 %v2146_v21, %v2124_v56  ;;  %v2222_v21 = vpop.permute.xlu1 %2221 }
 0x3f6   : > { %v2154_v47 = vmul.f32 %v2152_v38, %v2124_v56  ;;  %v2137_v17 = vadd.f32 %v2135_v62, %v2083_v7  ;;  %v2143_v16 = vadd.f32 %v2141_v9, %v2089_v57  ;;  %v2149_v41 = vadd.f32 %v2147_v58, %v2095_v52 }
 0x3f7   : > { %v2155_v54 = vadd.f32 %v2153_v33, %v2101_v63  ;;  %v2138_v59 = vadd.f32 %v2136_v23, %v2084_v4  ;;  %v2144_v40 = vadd.f32 %v2142_v19, %v2090_v34  ;;  %v2150_v5 = vadd.f32 %v2148_v24, %v2096_v0  ;;  %v2220_v34 = vpop.permute.xlu0 %2219 }
 0x3f8   : > { %v2156_v13 = vadd.f32 %v2154_v47, %v2102_v42  ;;  %v2158_v6 = vstv %s7243_s17  ;;  %v2164_v11 = vstv %s7245_s12  ;;  %v2170_v8 = vstv %s7247_s2  ;;  %s7357_s17 = sld [smem:[#allocation8 + $0xc8]]  ;;  %s7373_s2 = sld [smem:[#allocation8 + $0x39]] }
 0x3f9   : > { %v2176_v15 = vstv %s7249_s11  ;;  %v2159_v14 = vmul.f32 %v3563_v46, %v2158_v6  ;;  %v2165_v35 = vmul.f32 %v3563_v46, %v2164_v11  ;;  %v2171_v44 = vmul.f32 %v3563_v46, %v2170_v8  ;;  %s7359_s12 = sld [smem:[#allocation8 + $0x110]]  ;;  %s7375_s11 = sld [smem:[#allocation8 + $0x81]] }
 0x3fa   : > { %v2177_v20 = vmul.f32 %v3563_v46, %v2176_v15  ;;  %v2182_v18 = vstv %s7253_s20  ;;  %v2188_v27 = vstv %s7255_s7  ;;  %v2194_v51 = vstv %s7259_s0  ;;  %s7381_s20 = sld [smem:[#allocation8 + $0xc9]]  ;;  %s7393_s0 = sld [smem:[#allocation8 + $0x3a]] }
 0x3fb   : > { %v2200_v60 = vstv %s7261_s15  ;;  %v2161_v53 = vadd.f32 %v2159_v14, %v2137_v17  ;;  %v2167_v49 = vadd.f32 %v2165_v35, %v2143_v16  ;;  %v2173_v26 = vadd.f32 %v2171_v44, %v2149_v41  ;;  %s7383_s7 = sld [smem:[#allocation8 + $0x111]]  ;;  %s7395_s15 = sld [smem:[#allocation8 + $0x82]] }
 0x3fc   : > { %v2179_v45 = vadd.f32 %v2177_v20, %v2155_v54  ;;  %v2131_v36 = vsel %vm347_vm6, %v2126_v25, 0.0  ;;  %v2160_v3 = vmul.f32 %v3564_v55, %v2158_v6  ;;  %v2166_v43 = vmul.f32 %v3564_v55, %v2164_v11 }
 0x3fd   : > { %v2172_v12 = vmul.f32 %v3564_v55, %v2170_v8  ;;  %v2183_v37 = vmul.f32 %v2182_v18, %v2131_v36  ;;  %v2189_v7 = vmul.f32 %v2188_v27, %v2131_v36  ;;  %v2195_v57 = vmul.f32 %v2194_v51, %v2131_v36 }
 0x3fe   : > { %v2201_v52 = vmul.f32 %v2200_v60, %v2131_v36  ;;  %v2178_v63 = vmul.f32 %v3564_v55, %v2176_v15  ;;  %v2132_v50 = vsel %vm347_vm6, %v2128_v29, 0.0  ;;  %v2162_v48 = vadd.f32 %v2160_v3, %v2138_v59  ;;  %v2230_v3 = vpop.permute.xlu1 %2229 }
 0x3ff   : > { %v2168_v61 = vadd.f32 %v2166_v43, %v2144_v40  ;;  %v2185_v10 = vadd.f32 %v2183_v37, %v2161_v53  ;;  %v2191_v32 = vadd.f32 %v2189_v7, %v2167_v49  ;;  %v2197_v28 = vadd.f32 %v2195_v57, %v2173_v26  ;;  %v2228_v49 = vpop.permute.xlu0 %2227 }
 0x400   : > { %v2203_v22 = vadd.f32 %v2201_v52, %v2179_v45  ;;  %v2174_v39 = vadd.f32 %v2172_v12, %v2150_v5  ;;  %v2180_v2 = vadd.f32 %v2178_v63, %v2156_v13  ;;  %v2184_v30 = vmul.f32 %v2182_v18, %v2132_v50  ;;  %v9297_v52 = vld [vmem:[#allocation34_spill] sm:$0xff] }
 0x401   : > { %v2190_v4 = vmul.f32 %v2188_v27, %v2132_v50  ;;  %v2196_v38 = vmul.f32 %v2194_v51, %v2132_v50  ;;  %v2202_v0 = vmul.f32 %v2200_v60, %v2132_v50  ;;  %v2236_v42 = vstv %s7272_s1  ;;  %v9296_v27 = vld [vmem:[#allocation35_spill] sm:$0xff]  ;;  %s7397_s1 = sld [smem:[#allocation8 + $0xca]] }
 0x402   : > { %v2242_v31 = vstv %s7274_s16  ;;  %v2186_v56 = vadd.f32 %v2184_v30, %v2162_v48  ;;  %v2248_v9 = vstv %s7280_s14  ;;  %v2254_v58 = vstv %s7282_s26  ;;  %s7399_s16 = sld [smem:[#allocation8 + $0x112]]  ;;  %s7403_s14 = sld [smem:[#allocation8 + $0x3b]] }
 0x403   : > { %v2192_v62 = vadd.f32 %v2190_v4, %v2168_v61  ;;  %v2198_v33 = vadd.f32 %v2196_v38, %v2174_v39  ;;  %v2204_v23 = vadd.f32 %v2202_v0, %v2180_v2  ;;  %v2225_v19 = vsel %vm346_vm5, %v2220_v34, 0.0  ;;  %s7405_s26 = sld [smem:[#allocation8 + $0x83]] }
 0x404   : > { %v2226_v24 = vsel %vm346_vm5, %v2222_v21, 0.0  ;;  %v2237_v47 = vmul.f32 %v2236_v42, %v2225_v19  ;;  %v2243_v17 = vmul.f32 %v2242_v31, %v2225_v19  ;;  %v2249_v16 = vmul.f32 %v2248_v9, %v2225_v19 }
 0x405   : > { %v2255_v41 = vmul.f32 %v2254_v58, %v2225_v19  ;;  %v2238_v54 = vmul.f32 %v2236_v42, %v2226_v24  ;;  %v2244_v59 = vmul.f32 %v2242_v31, %v2226_v24  ;;  %v2250_v40 = vmul.f32 %v2248_v9, %v2226_v24  ;;  %v2339_v9 = vpop.permute.xlu1 %2338 }
 0x406   : > { %v2256_v5 = vmul.f32 %v2254_v58, %v2226_v24  ;;  %v2239_v13 = vadd.f32 %v2237_v47, %v2185_v10  ;;  %v2245_v6 = vadd.f32 %v2243_v17, %v2191_v32  ;;  %v2251_v11 = vadd.f32 %v2249_v16, %v2197_v28 }
 0x407   : > { %v2257_v8 = vadd.f32 %v2255_v41, %v2203_v22  ;;  %v2240_v15 = vadd.f32 %v2238_v54, %v2186_v56  ;;  %v2246_v46 = vadd.f32 %v2244_v59, %v2192_v62  ;;  %v2252_v14 = vadd.f32 %v2250_v40, %v2198_v33  ;;  %v2337_v62 = vpop.permute.xlu0 %2336 }
 0x408   : > { %v2258_v35 = vadd.f32 %v2256_v5, %v2204_v23  ;;  %v2260_v44 = vstv %s7289_s25  ;;  %v2266_v20 = vstv %s7291_s10  ;;  %v2272_v25 = vstv %s7293_s28  ;;  %s7409_s25 = sld [smem:[#allocation8 + $0xcb]]  ;;  %s7422_s28 = sld [smem:[#allocation8 + $0x3c]] }
 0x409   : > { %v2278_v18 = vstv %s7295_s24  ;;  %v2261_v51 = vmul.f32 %v2260_v44, %v9296_v27  ;;  %v2267_v60 = vmul.f32 %v2266_v20, %v9296_v27  ;;  %v2273_v29 = vmul.f32 %v2272_v25, %v9296_v27  ;;  %s7411_s10 = sld [smem:[#allocation8 + $0x113]]  ;;  %s7424_s24 = sld [smem:[#allocation8 + $0x84]] }
 0x40a   : > { %v2279_v53 = vmul.f32 %v2278_v18, %v9296_v27  ;;  %v2284_v26 = vstv %s7299_s6  ;;  %v2290_v45 = vstv %s7301_s19  ;;  %v2296_v36 = vstv %s7305_s30  ;;  %s7430_s6 = sld [smem:[#allocation8 + $0xcc]]  ;;  %s7439_s30 = sld [smem:[#allocation8 + $0x3d]] }
 0x40b   : > { %v2302_v55 = vstv %s7307_s3  ;;  %v2263_v43 = vadd.f32 %v2261_v51, %v2239_v13  ;;  %v2269_v12 = vadd.f32 %v2267_v60, %v2245_v6  ;;  %v2275_v37 = vadd.f32 %v2273_v29, %v2251_v11  ;;  %s7432_s19 = sld [smem:[#allocation8 + $0x114]]  ;;  %s7441_s3 = sld [smem:[#allocation8 + $0x85]] }
 0x40c   : > { %v2281_v7 = vadd.f32 %v2279_v53, %v2257_v8  ;;  %v2233_v57 = vsel %vm347_vm6, %v2228_v49, 0.0  ;;  %v2262_v63 = vmul.f32 %v2260_v44, %v9297_v52  ;;  %v2268_v50 = vmul.f32 %v2266_v20, %v9297_v52 }
 0x40d   : > { %v2274_v48 = vmul.f32 %v2272_v25, %v9297_v52  ;;  %v2285_v61 = vmul.f32 %v2284_v26, %v2233_v57  ;;  %v2291_v10 = vmul.f32 %v2290_v45, %v2233_v57  ;;  %v2297_v32 = vmul.f32 %v2296_v36, %v2233_v57 }
 0x40e   : > { %v2303_v28 = vmul.f32 %v2302_v55, %v2233_v57  ;;  %v2280_v22 = vmul.f32 %v2278_v18, %v9297_v52  ;;  %v2234_v39 = vsel %vm347_vm6, %v2230_v3, 0.0  ;;  %v2264_v2 = vadd.f32 %v2262_v63, %v2240_v15  ;;  %v2347_v63 = vpop.permute.xlu1 %2346 }
 0x40f   : > { %v2270_v30 = vadd.f32 %v2268_v50, %v2246_v46  ;;  %v2287_v4 = vadd.f32 %v2285_v61, %v2263_v43  ;;  %v2293_v34 = vadd.f32 %v2291_v10, %v2269_v12  ;;  %v2299_v21 = vadd.f32 %v2297_v32, %v2275_v37  ;;  %v2345_v12 = vpop.permute.xlu0 %2344 }
 0x410   : > { %v2305_v38 = vadd.f32 %v2303_v28, %v2281_v7  ;;  %v2276_v0 = vadd.f32 %v2274_v48, %v2252_v14  ;;  %v2282_v42 = vadd.f32 %v2280_v22, %v2258_v35  ;;  %v2286_v31 = vmul.f32 %v2284_v26, %v2234_v39  ;;  %v9299_v28 = vld [vmem:[#allocation37_spill] sm:$0xff] }
 0x411   : > { %v2292_v56 = vmul.f32 %v2290_v45, %v2234_v39  ;;  %v2298_v58 = vmul.f32 %v2296_v36, %v2234_v39  ;;  %v2304_v33 = vmul.f32 %v2302_v55, %v2234_v39  ;;  %v2353_v23 = vstv %s7321_s22  ;;  %v9298_v45 = vld [vmem:[#allocation36_spill] sm:$0xff]  ;;  %s7443_s22 = sld [smem:[#allocation8 + $0xcd]] }
 0x412   : > { %v2359_v19 = vstv %s7323_s27  ;;  %v2288_v24 = vadd.f32 %v2286_v31, %v2264_v2  ;;  %v2365_v17 = vstv %s7329_s8  ;;  %v2371_v16 = vstv %s7331_s9  ;;  %s7445_s27 = sld [smem:[#allocation8 + $0x115]]  ;;  %s7449_s8 = sld [smem:[#allocation8 + $0x3e]] }
 0x413   : > { %v2294_v47 = vadd.f32 %v2292_v56, %v2270_v30  ;;  %v2300_v41 = vadd.f32 %v2298_v58, %v2276_v0  ;;  %v2306_v54 = vadd.f32 %v2304_v33, %v2282_v42  ;;  %v2342_v59 = vsel %vm346_vm5, %v2337_v62, 0.0  ;;  %s7453_s9 = sld [smem:[#allocation8 + $0x86]] }
 0x414   : > { %v2343_v40 = vsel %vm346_vm5, %v2339_v9, 0.0  ;;  %v2354_v5 = vmul.f32 %v2353_v23, %v2342_v59  ;;  %v2360_v13 = vmul.f32 %v2359_v19, %v2342_v59  ;;  %v2366_v6 = vmul.f32 %v2365_v17, %v2342_v59 }
 0x415   : > { %v2372_v11 = vmul.f32 %v2371_v16, %v2342_v59  ;;  %v2355_v8 = vmul.f32 %v2353_v23, %v2343_v40  ;;  %v2361_v15 = vmul.f32 %v2359_v19, %v2343_v40  ;;  %v2367_v46 = vmul.f32 %v2365_v17, %v2343_v40  ;;  %v2441_v17 = vpop.permute.xlu1 %2440 }
 0x416   : > { %v2373_v14 = vmul.f32 %v2371_v16, %v2343_v40  ;;  %v2356_v35 = vadd.f32 %v2354_v5, %v2287_v4  ;;  %v2362_v44 = vadd.f32 %v2360_v13, %v2293_v34  ;;  %v2368_v20 = vadd.f32 %v2366_v6, %v2299_v21 }
 0x417   : > { %v2374_v25 = vadd.f32 %v2372_v11, %v2305_v38  ;;  %v2357_v18 = vadd.f32 %v2355_v8, %v2288_v24  ;;  %v2363_v27 = vadd.f32 %v2361_v15, %v2294_v47  ;;  %v2369_v51 = vadd.f32 %v2367_v46, %v2300_v41  ;;  %v2439_v47 = vpop.permute.xlu0 %2438 }
 0x418   : > { %v2375_v60 = vadd.f32 %v2373_v14, %v2306_v54  ;;  %v2377_v29 = vstv %s7341_s18  ;;  %v2383_v53 = vstv %s7343_s29  ;;  %v2389_v49 = vstv %s7345_s21  ;;  %s7455_s18 = sld [smem:[#allocation8 + $0xce]]  ;;  %s7471_s21 = sld [smem:[#allocation8 + $0x3f]] }
 0x419   : > { %v2395_v26 = vstv %s7347_s13  ;;  %v2378_v36 = vmul.f32 %v2377_v29, %v9298_v45  ;;  %v2384_v55 = vmul.f32 %v2383_v53, %v9298_v45  ;;  %v2390_v3 = vmul.f32 %v2389_v49, %v9298_v45  ;;  %s7461_s29 = sld [smem:[#allocation8 + $0x116]]  ;;  %s7473_s13 = sld [smem:[#allocation8 + $0x87]] }
 0x41a   : > { %v2396_v43 = vmul.f32 %v2395_v26, %v9298_v45  ;;  %v2401_v37 = vstv %s7351_s5  ;;  %v2407_v7 = vstv %s7353_s23  ;;  %v2413_v57 = vstv %s7357_s17  ;;  %s7478_s5 = sld [smem:[#allocation8 + $0xcf]]  ;;  %s7491_s17 = sld [smem:[#allocation8 + $0x40]] }
 0x41b   : > { %v2419_v52 = vstv %s7359_s12  ;;  %v2380_v50 = vadd.f32 %v2378_v36, %v2356_v35  ;;  %v2386_v48 = vadd.f32 %v2384_v55, %v2362_v44  ;;  %v2392_v61 = vadd.f32 %v2390_v3, %v2368_v20  ;;  %s7480_s23 = sld [smem:[#allocation8 + $0x117]]  ;;  %s7493_s12 = sld [smem:[#allocation8 + $0x88]] }
 0x41c   : > { %v2398_v10 = vadd.f32 %v2396_v43, %v2374_v25  ;;  %v2350_v32 = vsel %vm347_vm6, %v2345_v12, 0.0  ;;  %v2379_v22 = vmul.f32 %v2377_v29, %v9299_v28  ;;  %v2385_v39 = vmul.f32 %v2383_v53, %v9299_v28 }
 0x41d   : > { %v2391_v2 = vmul.f32 %v2389_v49, %v9299_v28  ;;  %v2402_v30 = vmul.f32 %v2401_v37, %v2350_v32  ;;  %v2408_v4 = vmul.f32 %v2407_v7, %v2350_v32  ;;  %v2414_v34 = vmul.f32 %v2413_v57, %v2350_v32 }
 0x41e   : > { %v2420_v21 = vmul.f32 %v2419_v52, %v2350_v32  ;;  %v2397_v38 = vmul.f32 %v2395_v26, %v9299_v28  ;;  %v2351_v0 = vsel %vm347_vm6, %v2347_v63, 0.0  ;;  %v2381_v42 = vadd.f32 %v2379_v22, %v2357_v18  ;;  %v2449_v22 = vpop.permute.xlu1 %2448 }
 0x41f   : > { %v2387_v31 = vadd.f32 %v2385_v39, %v2363_v27  ;;  %v2404_v56 = vadd.f32 %v2402_v30, %v2380_v50  ;;  %v2410_v62 = vadd.f32 %v2408_v4, %v2386_v48  ;;  %v2416_v9 = vadd.f32 %v2414_v34, %v2392_v61  ;;  %v2447_v48 = vpop.permute.xlu0 %2446 }
 0x420   : > { %v2422_v58 = vadd.f32 %v2420_v21, %v2398_v10  ;;  %v2393_v33 = vadd.f32 %v2391_v2, %v2369_v51  ;;  %v2399_v23 = vadd.f32 %v2397_v38, %v2375_v60  ;;  %v2403_v19 = vmul.f32 %v2401_v37, %v2351_v0  ;;  %v3566_v21 = vld [vmem:[%s8951_s4 + $0x28] sm:$0xff] }
 0x421   : > { %v2409_v24 = vmul.f32 %v2407_v7, %v2351_v0  ;;  %v2415_v16 = vmul.f32 %v2413_v57, %v2351_v0  ;;  %v2421_v41 = vmul.f32 %v2419_v52, %v2351_v0  ;;  %v2455_v54 = vstv %s7373_s2  ;;  %v3565_v7 = vld [vmem:[%s8951_s4 + $0x20] sm:$0xff]  ;;  %s7495_s2 = sld [smem:[#allocation8 + $0xd0]] }
 0x422   : > { %v2461_v59 = vstv %s7375_s11  ;;  %v2405_v40 = vadd.f32 %v2403_v19, %v2381_v42  ;;  %v2467_v13 = vstv %s7381_s20  ;;  %v2473_v6 = vstv %s7383_s7  ;;  %s7497_s11 = sld [smem:[#allocation8 + $0x118]]  ;;  %s7501_s20 = sld [smem:[#allocation8 + $0x41]] }
 0x423   : > { %v2411_v5 = vadd.f32 %v2409_v24, %v2387_v31  ;;  %v2417_v11 = vadd.f32 %v2415_v16, %v2393_v33  ;;  %v2423_v8 = vadd.f32 %v2421_v41, %v2399_v23  ;;  %v2444_v15 = vsel %vm346_vm5, %v2439_v47, 0.0  ;;  %s7503_s7 = sld [smem:[#allocation8 + $0x89]] }
 0x424   : > { %v2445_v46 = vsel %vm346_vm5, %v2441_v17, 0.0  ;;  %v2456_v14 = vmul.f32 %v2455_v54, %v2444_v15  ;;  %v2462_v35 = vmul.f32 %v2461_v59, %v2444_v15  ;;  %v2468_v44 = vmul.f32 %v2467_v13, %v2444_v15 }
 0x425   : > { %v2474_v20 = vmul.f32 %v2473_v6, %v2444_v15  ;;  %v2457_v25 = vmul.f32 %v2455_v54, %v2445_v46  ;;  %v2463_v18 = vmul.f32 %v2461_v59, %v2445_v46  ;;  %v2469_v27 = vmul.f32 %v2467_v13, %v2445_v46 }
 0x426   : > { %v2475_v51 = vmul.f32 %v2473_v6, %v2445_v46  ;;  %v2458_v60 = vadd.f32 %v2456_v14, %v2404_v56  ;;  %v2464_v29 = vadd.f32 %v2462_v35, %v2410_v62  ;;  %v2470_v53 = vadd.f32 %v2468_v44, %v2416_v9 }
 0x427   : > { %v2476_v49 = vadd.f32 %v2474_v20, %v2422_v58  ;;  %v2459_v26 = vadd.f32 %v2457_v25, %v2405_v40  ;;  %v2465_v45 = vadd.f32 %v2463_v18, %v2411_v5  ;;  %v2471_v36 = vadd.f32 %v2469_v27, %v2417_v11  ;;  %v2541_v40 = vpop.permute.xlu0 %2540  ;;  %v2543_v5 = vpop.permute.xlu1 %2542 }
 0x428   : > { %v2477_v55 = vadd.f32 %v2475_v51, %v2423_v8  ;;  %v2479_v3 = vstv %s7393_s0  ;;  %v2485_v43 = vstv %s7395_s15  ;;  %v2491_v12 = vstv %s7397_s1  ;;  %s7507_s0 = sld [smem:[#allocation8 + $0xd1]]  ;;  %s7519_s1 = sld [smem:[#allocation8 + $0x42]] }
 0x429   : > { %v2497_v37 = vstv %s7399_s16  ;;  %v2480_v57 = vmul.f32 %v3565_v7, %v2479_v3  ;;  %v2486_v52 = vmul.f32 %v3565_v7, %v2485_v43  ;;  %v2492_v63 = vmul.f32 %v3565_v7, %v2491_v12  ;;  %s7509_s15 = sld [smem:[#allocation8 + $0x119]]  ;;  %s7525_s16 = sld [smem:[#allocation8 + $0x8a]] }
 0x42a   : > { %v2498_v50 = vmul.f32 %v3565_v7, %v2497_v37  ;;  %v2503_v61 = vstv %s7403_s14  ;;  %v2509_v10 = vstv %s7405_s26  ;;  %v2515_v32 = vstv %s7409_s25  ;;  %s7527_s14 = sld [smem:[#allocation8 + $0xd2]]  ;;  %s7535_s25 = sld [smem:[#allocation8 + $0x43]] }
 0x42b   : > { %v2521_v28 = vstv %s7411_s10  ;;  %v2482_v39 = vadd.f32 %v2480_v57, %v2458_v60  ;;  %v2488_v2 = vadd.f32 %v2486_v52, %v2464_v29  ;;  %v2494_v30 = vadd.f32 %v2492_v63, %v2470_v53  ;;  %s7533_s26 = sld [smem:[#allocation8 + $0x11a]]  ;;  %s7539_s10 = sld [smem:[#allocation8 + $0x8b]] }
 0x42c   : > { %v2500_v4 = vadd.f32 %v2498_v50, %v2476_v49  ;;  %v2452_v34 = vsel %vm347_vm6, %v2447_v48, 0.0  ;;  %v2481_v38 = vmul.f32 %v3566_v21, %v2479_v3  ;;  %v2487_v0 = vmul.f32 %v3566_v21, %v2485_v43 }
 0x42d   : > { %v2493_v42 = vmul.f32 %v3566_v21, %v2491_v12  ;;  %v2504_v31 = vmul.f32 %v2503_v61, %v2452_v34  ;;  %v2510_v56 = vmul.f32 %v2509_v10, %v2452_v34  ;;  %v2516_v62 = vmul.f32 %v2515_v32, %v2452_v34 }
 0x42e   : > { %v2522_v9 = vmul.f32 %v2521_v28, %v2452_v34  ;;  %v2499_v58 = vmul.f32 %v3566_v21, %v2497_v37  ;;  %v2453_v33 = vsel %vm347_vm6, %v2449_v22, 0.0  ;;  %v2483_v23 = vadd.f32 %v2481_v38, %v2459_v26  ;;  %v2551_v21 = vpop.permute.xlu1 %2550 }
 0x42f   : > { %v2506_v19 = vadd.f32 %v2504_v31, %v2482_v39  ;;  %v2512_v24 = vadd.f32 %v2510_v56, %v2488_v2  ;;  %v2518_v47 = vadd.f32 %v2516_v62, %v2494_v30  ;;  %v2489_v17 = vadd.f32 %v2487_v0, %v2465_v45  ;;  %v2549_v39 = vpop.permute.xlu0 %2548  ;;  %v9301_v62 = vld [vmem:[#allocation39_spill] sm:$0xff] }
 0x430   : > { %v2524_v16 = vadd.f32 %v2522_v9, %v2500_v4  ;;  %v2495_v41 = vadd.f32 %v2493_v42, %v2471_v36  ;;  %v2501_v54 = vadd.f32 %v2499_v58, %v2477_v55  ;;  %v2505_v59 = vmul.f32 %v2503_v61, %v2453_v33  ;;  %v9300_v61 = vld [vmem:[#allocation38_spill] sm:$0xff] }
 0x431   : > { %v2511_v13 = vmul.f32 %v2509_v10, %v2453_v33  ;;  %v2517_v6 = vmul.f32 %v2515_v32, %v2453_v33  ;;  %v2557_v11 = vstv %s7422_s28  ;;  %v2563_v8 = vstv %s7424_s24  ;;  %s7544_s28 = sld [smem:[#allocation8 + $0xd3]] }
 0x432   : > { %v2507_v15 = vadd.f32 %v2505_v59, %v2483_v23  ;;  %v2523_v46 = vmul.f32 %v2521_v28, %v2453_v33  ;;  %v2569_v14 = vstv %s7430_s6  ;;  %v2575_v35 = vstv %s7432_s19  ;;  %s7546_s24 = sld [smem:[#allocation8 + $0x11b]]  ;;  %s7549_s6 = sld [smem:[#allocation8 + $0x44]] }
 0x433   : > { %v2513_v44 = vadd.f32 %v2511_v13, %v2489_v17  ;;  %v2519_v20 = vadd.f32 %v2517_v6, %v2495_v41  ;;  %v2546_v25 = vsel %vm346_vm5, %v2541_v40, 0.0  ;;  %v2547_v18 = vsel %vm346_vm5, %v2543_v5, 0.0  ;;  %s7551_s19 = sld [smem:[#allocation8 + $0x8c]] }
 0x434   : > { %v2525_v27 = vadd.f32 %v2523_v46, %v2501_v54  ;;  %v2558_v51 = vmul.f32 %v2557_v11, %v2546_v25  ;;  %v2564_v60 = vmul.f32 %v2563_v8, %v2546_v25  ;;  %v2570_v29 = vmul.f32 %v2569_v14, %v2546_v25  ;;  %v2660_v46 = vpop.permute.xlu1 %2659 }
 0x435   : > { %v2576_v53 = vmul.f32 %v2575_v35, %v2546_v25  ;;  %v2559_v49 = vmul.f32 %v2557_v11, %v2547_v18  ;;  %v2565_v26 = vmul.f32 %v2563_v8, %v2547_v18  ;;  %v2571_v45 = vmul.f32 %v2569_v14, %v2547_v18  ;;  %v2658_v14 = vpop.permute.xlu0 %2657 }
 0x436   : > { %v2560_v36 = vadd.f32 %v2558_v51, %v2506_v19  ;;  %v2566_v55 = vadd.f32 %v2564_v60, %v2512_v24  ;;  %v2572_v3 = vadd.f32 %v2570_v29, %v2518_v47  ;;  %v2577_v43 = vmul.f32 %v2575_v35, %v2547_v18 }
 0x437   : > { %v2578_v12 = vadd.f32 %v2576_v53, %v2524_v16  ;;  %v2561_v37 = vadd.f32 %v2559_v49, %v2507_v15  ;;  %v2567_v7 = vadd.f32 %v2565_v26, %v2513_v44  ;;  %v2573_v57 = vadd.f32 %v2571_v45, %v2519_v20 }
 0x438   : > { %v2581_v52 = vstv %s7439_s30  ;;  %v2587_v63 = vstv %s7441_s3  ;;  %v2593_v50 = vstv %s7443_s22  ;;  %v2599_v48 = vstv %s7445_s27  ;;  %s7556_s30 = sld [smem:[#allocation8 + $0xd4]]  ;;  %s7576_s22 = sld [smem:[#allocation8 + $0x45]] }
 0x439   : > { %v2582_v10 = vmul.f32 %v2581_v52, %v9300_v61  ;;  %v2588_v32 = vmul.f32 %v2587_v63, %v9300_v61  ;;  %v2594_v28 = vmul.f32 %v2593_v50, %v9300_v61  ;;  %v2600_v22 = vmul.f32 %v2599_v48, %v9300_v61  ;;  %s7558_s3 = sld [smem:[#allocation8 + $0x11c]]  ;;  %s7578_s27 = sld [smem:[#allocation8 + $0x8d]] }
 0x43a   : > { %v2579_v2 = vadd.f32 %v2577_v43, %v2525_v27  ;;  %v2605_v30 = vstv %s7449_s8  ;;  %v2611_v4 = vstv %s7453_s9  ;;  %v2617_v34 = vstv %s7455_s18  ;;  %s7586_s8 = sld [smem:[#allocation8 + $0xd5]]  ;;  %s7593_s18 = sld [smem:[#allocation8 + $0x46]] }
 0x43b   : > { %v2584_v38 = vadd.f32 %v2582_v10, %v2560_v36  ;;  %v2590_v0 = vadd.f32 %v2588_v32, %v2566_v55  ;;  %v2596_v42 = vadd.f32 %v2594_v28, %v2572_v3  ;;  %v2623_v31 = vstv %s7461_s29  ;;  %s7588_s9 = sld [smem:[#allocation8 + $0x11d]]  ;;  %s7595_s29 = sld [smem:[#allocation8 + $0x8e]] }
 0x43c   : > { %v2554_v56 = vsel %vm347_vm6, %v2549_v39, 0.0  ;;  %v2583_v9 = vmul.f32 %v2581_v52, %v9301_v62  ;;  %v2589_v58 = vmul.f32 %v2587_v63, %v9301_v62  ;;  %v2595_v33 = vmul.f32 %v2593_v50, %v9301_v62 }
 0x43d   : > { %v2602_v23 = vadd.f32 %v2600_v22, %v2578_v12  ;;  %v2606_v19 = vmul.f32 %v2605_v30, %v2554_v56  ;;  %v2612_v24 = vmul.f32 %v2611_v4, %v2554_v56  ;;  %v2618_v47 = vmul.f32 %v2617_v34, %v2554_v56 }
 0x43e   : > { %v2601_v17 = vmul.f32 %v2599_v48, %v9301_v62  ;;  %v2555_v16 = vsel %vm347_vm6, %v2551_v21, 0.0  ;;  %v2585_v41 = vadd.f32 %v2583_v9, %v2561_v37  ;;  %v2591_v54 = vadd.f32 %v2589_v58, %v2567_v7 }
 0x43f   : > { %v2608_v59 = vadd.f32 %v2606_v19, %v2584_v38  ;;  %v2614_v40 = vadd.f32 %v2612_v24, %v2590_v0  ;;  %v2620_v5 = vadd.f32 %v2618_v47, %v2596_v42  ;;  %v2624_v13 = vmul.f32 %v2623_v31, %v2554_v56 }
 0x440   : > { %v2597_v6 = vadd.f32 %v2595_v33, %v2573_v57  ;;  %v2603_v11 = vadd.f32 %v2601_v17, %v2579_v2  ;;  %v2607_v8 = vmul.f32 %v2605_v30, %v2555_v16  ;;  %v2613_v15 = vmul.f32 %v2611_v4, %v2555_v16  ;;  %v2668_v30 = vpop.permute.xlu1 %2667  ;;  %v9302_v4 = vld [vmem:[#allocation40_spill] sm:$0xff] }
 0x441   : > { %v2619_v35 = vmul.f32 %v2617_v34, %v2555_v16  ;;  %v2625_v44 = vmul.f32 %v2623_v31, %v2555_v16  ;;  %v2674_v20 = vstv %s7471_s21  ;;  %v2680_v25 = vstv %s7473_s13  ;;  %s7597_s21 = sld [smem:[#allocation8 + $0xd6]]  ;;  %s7605_s13 = sld [smem:[#allocation8 + $0x47]] }
 0x442   : > { %v2609_v18 = vadd.f32 %v2607_v8, %v2585_v41  ;;  %v2615_v27 = vadd.f32 %v2613_v15, %v2591_v54  ;;  %v2686_v51 = vstv %s7478_s5  ;;  %v2692_v60 = vstv %s7480_s23  ;;  %v9303_v41 = vld [vmem:[#allocation41_spill] sm:$0xff]  ;;  %s7607_s5 = sld [smem:[#allocation8 + $0x8f]] }
 0x443   : > { %v2621_v29 = vadd.f32 %v2619_v35, %v2597_v6  ;;  %v2627_v53 = vadd.f32 %v2625_v44, %v2603_v11  ;;  %v2664_v49 = vsel %vm346_vm5, %v2660_v46, 0.0  ;;  %v2663_v26 = vsel %vm346_vm5, %v2658_v14, 0.0  ;;  %s7612_s23 = sld [smem:[#allocation8 + $0xd7]] }
 0x444   : > { %v2626_v45 = vadd.f32 %v2624_v13, %v2602_v23  ;;  %v2676_v36 = vmul.f32 %v2674_v20, %v2664_v49  ;;  %v2682_v55 = vmul.f32 %v2680_v25, %v2664_v49  ;;  %v2688_v3 = vmul.f32 %v2686_v51, %v2664_v49  ;;  %v2762_v44 = vpop.permute.xlu1 %2761 }
 0x445   : > { %v2694_v43 = vmul.f32 %v2692_v60, %v2664_v49  ;;  %v2675_v12 = vmul.f32 %v2674_v20, %v2663_v26  ;;  %v2681_v37 = vmul.f32 %v2680_v25, %v2663_v26  ;;  %v2687_v7 = vmul.f32 %v2686_v51, %v2663_v26 }
 0x446   : > { %v2678_v57 = vadd.f32 %v2676_v36, %v2609_v18  ;;  %v2684_v52 = vadd.f32 %v2682_v55, %v2615_v27  ;;  %v2690_v63 = vadd.f32 %v2688_v3, %v2621_v29  ;;  %v2693_v50 = vmul.f32 %v2692_v60, %v2663_v26 }
 0x447   : > { %v2696_v48 = vadd.f32 %v2694_v43, %v2627_v53  ;;  %v2677_v61 = vadd.f32 %v2675_v12, %v2608_v59  ;;  %v2683_v10 = vadd.f32 %v2681_v37, %v2614_v40  ;;  %v2689_v32 = vadd.f32 %v2687_v7, %v2620_v5  ;;  %v2666_v5 = vpop.permute.xlu0 %2665 }
 0x448   : > { %v2698_v28 = vstv %s7491_s17  ;;  %v2704_v22 = vstv %s7493_s12  ;;  %v2710_v39 = vstv %s7495_s2  ;;  %v2716_v2 = vstv %s7497_s11  ;;  %s7614_s17 = sld [smem:[#allocation8 + $0x11f]]  ;;  %s7616_s12 = sld [smem:[#allocation9]] }
 0x449   : > { %v2700_v34 = vmul.f32 %v2698_v28, %v9302_v4  ;;  %v2706_v21 = vmul.f32 %v2704_v22, %v9302_v4  ;;  %v2712_v38 = vmul.f32 %v2710_v39, %v9302_v4  ;;  %v2718_v0 = vmul.f32 %v2716_v2, %v9302_v4  ;;  %s7618_s2 = sld [smem:[#allocation9 + $0x1]]  ;;  %s7620_s11 = sld [smem:[#allocation9 + $0x2]] }
 0x44a   : > { %v2722_v42 = vstv %s7501_s20  ;;  %v2728_v31 = vstv %s7503_s7  ;;  %v2734_v56 = vstv %s7507_s0  ;;  %v2740_v62 = vstv %s7509_s15  ;;  %s7622_s20 = sld [smem:[#allocation9 + $0x3]]  ;;  %s9308_s0 = sld [smem:[#allocation27_spill]] }
 0x44b   : > { %v2672_v9 = vsel %vm347_vm6, %v2668_v30, 0.0  ;;  %v2702_v58 = vadd.f32 %v2700_v34, %v2678_v57  ;;  %v2708_v33 = vadd.f32 %v2706_v21, %v2684_v52  ;;  %v2714_v23 = vadd.f32 %v2712_v38, %v2690_v63  ;;  %v3567_v63 = vld [vmem:[%s8951_s4 + $0x38] sm:$0xff]  ;;  %s9305_s7 = sld [smem:[#allocation28_spill]] }
 0x44c   : > { %v2695_v19 = vadd.f32 %v2693_v50, %v2626_v45  ;;  %v2720_v24 = vadd.f32 %v2718_v0, %v2696_v48  ;;  %v2724_v47 = vmul.f32 %v2722_v42, %v2672_v9  ;;  %v2730_v17 = vmul.f32 %v2728_v31, %v2672_v9 }
 0x44d   : > { %v2736_v16 = vmul.f32 %v2734_v56, %v2672_v9  ;;  %v2699_v54 = vmul.f32 %v2698_v28, %v9303_v41  ;;  %v2705_v59 = vmul.f32 %v2704_v22, %v9303_v41  ;;  %v2711_v40 = vmul.f32 %v2710_v39, %v9303_v41  ;;  %v2760_v28 = vpop.permute.xlu0 %2759 }
 0x44e   : > { %v2726_v13 = vadd.f32 %v2724_v47, %v2702_v58  ;;  %v2732_v6 = vadd.f32 %v2730_v17, %v2708_v33  ;;  %v2742_v11 = vmul.f32 %v2740_v62, %v2672_v9  ;;  %v2717_v8 = vmul.f32 %v2716_v2, %v9303_v41  ;;  %v3568_v41 = vld [vmem:[%s8951_s4 + $0x30] sm:$0xff]  ;;  %s7599_s4 = sld [smem:[#allocation8 + $0x11e]] }
 0x44f   : > { %v2738_v15 = vadd.f32 %v2736_v16, %v2714_v23  ;;  %v2701_v46 = vadd.f32 %v2699_v54, %v2677_v61  ;;  %v2707_v14 = vadd.f32 %v2705_v59, %v2683_v10  ;;  %v2713_v35 = vadd.f32 %v2711_v40, %v2689_v32  ;;  %v2770_v32 = vpop.permute.xlu1 %2769 }
 0x450   : > { %v2744_v20 = vadd.f32 %v2742_v11, %v2720_v24  ;;  %v2719_v25 = vadd.f32 %v2717_v8, %v2695_v19  ;;  %v2671_v18 = vsel %vm347_vm6, %v2666_v5, 0.0  ;;  %v2776_v27 = vstv %s7519_s1  ;;  %s7679_s15 = scalar_lea.vmem [#allocation11], %s9308_s0  ;;  %s9309_s1 = sld [smem:[#allocation21_spill]] }
 0x451   : > { %v2723_v51 = vmul.f32 %v2722_v42, %v2671_v18  ;;  %v2729_v60 = vmul.f32 %v2728_v31, %v2671_v18  ;;  %v2735_v29 = vmul.f32 %v2734_v56, %v2671_v18  ;;  %v2782_v53 = vstv %s7525_s16  ;;  %v2768_v40 = vpop.permute.xlu0 %2767 }
 0x452   : > { %v2788_v49 = vstv %s7527_s14  ;;  %v2794_v26 = vstv %s7533_s26  ;;  %v2766_v45 = vsel %vm346_vm5, %v2762_v44, 0.0  ;;  %v2800_v36 = vstv %s7535_s25  ;;  %s3013_s14 = sshll.u32 %s7679_s15, 4  ;;  %s9311_s26 = sld [smem:[#allocation26_spill]]  ;;  %s7712_s14 = int_to_ptr.vmem [resolvable:$true] %s3013_s14 }
 0x453   : > { %v7566_v55 = vadd.f32 %v2723_v51, %v2701_v46  ;;  %v7568_v3 = vadd.f32 %v2729_v60, %v2707_v14  ;;  %v7570_v43 = vadd.f32 %v2735_v29, %v2713_v35  ;;  %v2741_v12 = vmul.f32 %v2740_v62, %v2671_v18  ;;  %v2864_v29 = vpop.permute.xlu1 %2863  ;;  %s9312_s25 = sld [smem:[#allocation24_spill]] }
 0x454   : > { %v2778_v37 = vmul.f32 %v2776_v27, %v2766_v45  ;;  %v2784_v7 = vmul.f32 %v2782_v53, %v2766_v45  ;;  %v2790_v57 = vmul.f32 %v2788_v49, %v2766_v45  ;;  %v2796_v52 = vmul.f32 %v2794_v26, %v2766_v45 }
 0x455   : > { %v2802_v50 = vmul.f32 %v3567_v63, %v2800_v36  ;;  %v2806_v48 = vstv %s7539_s10  ;;  %v2812_v61 = vstv %s7544_s28  ;;  %v2818_v10 = vstv %s7546_s24  ;;  %s9313_s24 = sld [smem:[#allocation317_spill]] }
 0x456   : > { %v2780_v22 = vadd.f32 %v2778_v37, %v2726_v13  ;;  %v2786_v39 = vadd.f32 %v2784_v7, %v2732_v6  ;;  %v2792_v2 = vadd.f32 %v2790_v57, %v2738_v15  ;;  %v2798_v30 = vadd.f32 %v2796_v52, %v2744_v20  ;;  %s3469_s16 = sshll.u32 %s9309_s1, 10 }
 0x457   : > { %v2808_v4 = vmul.f32 %v3567_v63, %v2806_v48  ;;  %v2814_v34 = vmul.f32 %v3567_v63, %v2812_v61  ;;  %v2820_v21 = vmul.f32 %v3567_v63, %v2818_v10  ;;  %v2824_v38 = vstv %s7549_s6 }
 0x458   : > { %v2830_v0 = vstv %s7551_s19  ;;  %v2836_v42 = vstv %s7556_s30  ;;  %v2842_v31 = vstv %s7558_s3  ;;  %v2774_v56 = vsel %vm347_vm6, %v2770_v32, 0.0  ;;  %s3000_s30 = scalar_lea.sflag [#allocation4], %s9311_s26  ;;  %s3661_s3 = scalar_lea.vmem %s7712_s14, 1024 }
 0x459   : > { %v2743_v62 = vadd.f32 %v2741_v12, %v2719_v25  ;;  %v2804_v9 = vadd.f32 %v2802_v50, %v2780_v22  ;;  %v2810_v58 = vadd.f32 %v2808_v4, %v2786_v39  ;;  %v2816_v33 = vadd.f32 %v2814_v34, %v2792_v2  ;;  %p3662_p6 = scmp.ne.s32.totalorder %s7712_s14, %s3661_s3  ;;  %p9315_p12 = scmp.ne.s32.totalorder %s9312_s25, 0 }
 0x45a   : > { %v2822_v23 = vadd.f32 %v2820_v21, %v2798_v30  ;;  %v2826_v19 = vmul.f32 %v2824_v38, %v2774_v56  ;;  %v2832_v24 = vmul.f32 %v2830_v0, %v2774_v56  ;;  %v2838_v47 = vmul.f32 %v2836_v42, %v2774_v56 }
 0x45b   : > { %v2844_v17 = vmul.f32 %v2842_v31, %v2774_v56  ;;  %v2765_v16 = vsel %vm346_vm5, %v2760_v28, 0.0  ;;  %v2801_v54 = vmul.f32 %v3568_v41, %v2800_v36  ;;  %v2807_v59 = vmul.f32 %v3568_v41, %v2806_v48  ;;  %s9314_s6 = smov %s9313_s24  ;;  %s7710_s19 = scalar_lea.hbm %s9313_s24, %s3469_s16 }
 0x45c   : > { %v2828_v5 = vadd.f32 %v2826_v19, %v2804_v9  ;;  %v2834_v13 = vadd.f32 %v2832_v24, %v2810_v58  ;;  %v2840_v6 = vadd.f32 %v2838_v47, %v2816_v33  ;;  %v2813_v11 = vmul.f32 %v3568_v41, %v2812_v61  ;;  %v2872_v9 = vpop.permute.xlu1 %2871  ;;  %p3663_p2 = pnand %p3662_p6, %p9315_p12 }
 0x45d   : > { %v2777_v8 = vmul.f32 %v2776_v27, %v2765_v16  ;;  %v2783_v15 = vmul.f32 %v2782_v53, %v2765_v16  ;;  %v2789_v46 = vmul.f32 %v2788_v49, %v2765_v16  ;;  %v2795_v14 = vmul.f32 %v2794_v26, %v2765_v16 }
 0x45e   : > { %v2819_v35 = vmul.f32 %v3568_v41, %v2818_v10  ;;  %v2773_v44 = vsel %vm347_vm6, %v2768_v40, 0.0  ;;  %v2878_v20 = vstv %s7576_s22  ;;  %v2884_v25 = vstv %s7578_s27  ;;  %v2862_v41 = vpop.permute.xlu0 %2861  ;;  %p3664_p8 = pneg %p3663_p2  ;;  %s3751_s22 = smov [#allocation11]  }
 0x45f   : > { %v2779_v18 = vadd.f32 %v2777_v8, %v7566_v55  ;;  %v2785_v27 = vadd.f32 %v2783_v15, %v7568_v3  ;;  %v2791_v51 = vadd.f32 %v2789_v46, %v7570_v43  ;;  %v2797_v60 = vadd.f32 %v2795_v14, %v2743_v62  ;;  %v9306_v14 = vld [vmem:[#allocation43_spill] sm:$0xff]  ;;  %s3665_s27 = sshll.u32 %s3751_s22, 4  ;;  %s3666_s27 = int_to_ptr.vmem [resolvable:$false] %s3665_s27 }
 0x460   : > { %v2825_v53 = vmul.f32 %v2824_v38, %v2773_v44  ;;  %v2831_v49 = vmul.f32 %v2830_v0, %v2773_v44  ;;  %v2837_v26 = vmul.f32 %v2836_v42, %v2773_v44  ;;  %v2843_v45 = vmul.f32 %v2842_v31, %v2773_v44  ;;  %v9304_v38 = vld [vmem:[#allocation42_spill] sm:$0xff]  ;;  %p3668_p13 = scmp.lt.s32.totalorder %s7712_s14, %s3666_s27 }
 0x461   : > { %v2803_v36 = vadd.f32 %v2801_v54, %v2779_v18  ;;  %v2809_v55 = vadd.f32 %v2807_v59, %v2785_v27  ;;  %v2815_v3 = vadd.f32 %v2813_v11, %v2791_v51  ;;  %v2821_v43 = vadd.f32 %v2819_v35, %v2797_v60 }
 0x462   : > { %v2846_v12 = vadd.f32 %v2844_v17, %v2822_v23  ;;  %v2890_v37 = vstv %s7586_s8  ;;  %v2896_v7 = vstv %s7588_s9  ;;  %v2868_v57 = vsel %vm346_vm5, %v2864_v29, 0.0  ;;  %s3667_s8 = scalar_lea.vmem %s3666_s27, 2048 }
 0x463   : > { %v2827_v52 = vadd.f32 %v2825_v53, %v2803_v36  ;;  %v2833_v63 = vadd.f32 %v2831_v49, %v2809_v55  ;;  %v2839_v50 = vadd.f32 %v2837_v26, %v2815_v3  ;;  %v2902_v48 = vstv %s7593_s18  ;;  %p3669_p10 = scmp.lt.s32.totalorder %s3667_s8, %s3661_s3 }
 0x464   : > { %v2880_v61 = vmul.f32 %v2878_v20, %v2868_v57  ;;  %v2886_v10 = vmul.f32 %v2884_v25, %v2868_v57  ;;  %v2892_v32 = vmul.f32 %v2890_v37, %v2868_v57  ;;  %v2898_v28 = vmul.f32 %v2896_v7, %v2868_v57 }
 0x465   : > { %v2845_v22 = vadd.f32 %v2843_v45, %v2821_v43  ;;  %v2908_v39 = vstv %s7595_s29  ;;  %v2914_v2 = vstv %s7597_s21  ;;  %v2920_v30 = vstv %s7599_s4  ;;  %v3448_v43 = vld [vmem:[%s9305_s7 + $0x10] sm:$0xff]  ;;  %p3670_p5 = por %p3669_p10, %p3668_p13 }
 0x466   : > { %v2882_v4 = vadd.f32 %v2880_v61, %v2828_v5  ;;  %v2888_v34 = vadd.f32 %v2886_v10, %v2834_v13  ;;  %v2894_v21 = vadd.f32 %v2892_v32, %v2840_v6  ;;  %v2904_v0 = vmul.f32 %v2902_v48, %v9304_v38  ;;  %v2870_v10 = vpop.permute.xlu0 %2869  ;;  %v3458_v32 = vld [vmem:[%s9305_s7 + $0x30] sm:$0xff] }
 0x467   : > { %v2900_v42 = vadd.f32 %v2898_v28, %v2846_v12  ;;  %v2910_v31 = vmul.f32 %v2908_v39, %v9304_v38  ;;  %v2916_v56 = vmul.f32 %v2914_v2, %v9304_v38  ;;  %v2922_v62 = vmul.f32 %v2920_v30, %v9304_v38  ;;  %v3453_v12 = vld [vmem:[%s9305_s7 + $0x20] sm:$0xff]  ;;  %p3671_p0 = pnand %p3670_p5, %p3664_p8 }
 0x468   : > { %v2926_v58 = vstv %s7605_s13  ;;  %v2932_v33 = vstv %s7607_s5  ;;  %v2938_v23 = vstv %s7612_s23  ;;  %v2944_v19 = vstv %s7614_s17 }
 0x469   : > { %v2950_v24 = vstv %s7616_s12  ;;  %v2961_v47 = vstv %s7618_s2  ;;  %v2974_v17 = vstv %s7620_s11  ;;  %v2987_v16 = vstv %s7622_s20 }
 0x46a   : > { %v2876_v54 = vsel %vm347_vm6, %v2872_v9, 0.0  ;;  %v2906_v59 = vadd.f32 %v2904_v0, %v2882_v4  ;;  %v2912_v40 = vadd.f32 %v2910_v31, %v2888_v34  ;;  %v2918_v5 = vadd.f32 %v2916_v56, %v2894_v21 }
 0x46b   : > { %v2924_v13 = vadd.f32 %v2922_v62, %v2900_v42  ;;  %v2928_v6 = vmul.f32 %v2926_v58, %v2876_v54  ;;  %v2934_v11 = vmul.f32 %v2932_v33, %v2876_v54  ;;  %v2940_v8 = vmul.f32 %v2938_v23, %v2876_v54 }
 0x46c   : > { %v2946_v15 = vmul.f32 %v2944_v19, %v2876_v54  ;;  %v2867_v46 = vsel %vm346_vm5, %v2862_v41, 0.0  ;;  %v2903_v35 = vmul.f32 %v2902_v48, %v9306_v14  ;;  %v2909_v44 = vmul.f32 %v2908_v39, %v9306_v14 }
 0x46d   : > { %v2930_v18 = vadd.f32 %v2928_v6, %v2906_v59  ;;  %v2936_v27 = vadd.f32 %v2934_v11, %v2912_v40  ;;  %v2942_v51 = vadd.f32 %v2940_v8, %v2918_v5  ;;  %v2879_v60 = vmul.f32 %v2878_v20, %v2867_v46  ;;  %v9310_v6 = vld [vmem:[#allocation45_spill] sm:$0xff] }
 0x46e   : > { %v2948_v29 = vadd.f32 %v2946_v15, %v2924_v13  ;;  %v2885_v53 = vmul.f32 %v2884_v25, %v2867_v46  ;;  %v2891_v49 = vmul.f32 %v2890_v37, %v2867_v46  ;;  %v2897_v26 = vmul.f32 %v2896_v7, %v2867_v46  ;;  %v9307_v25 = vld [vmem:[#allocation44_spill] sm:$0xff] }
 0x46f   : > { %v2952_v45 = vadd.f32 %v2950_v24, %v2930_v18  ;;  %v2963_v36 = vadd.f32 %v2961_v47, %v2936_v27  ;;  %v2976_v55 = vadd.f32 %v2974_v17, %v2942_v51  ;;  %v2881_v3 = vadd.f32 %v2879_v60, %v2827_v52 }
 0x470   : > { %v2989_v57 = vadd.f32 %v2987_v16, %v2948_v29  ;;  %v2887_v48 = vadd.f32 %v2885_v53, %v2833_v63  ;;  %v2893_v20 = vadd.f32 %v2891_v49, %v2839_v50  ;;  %v2899_v61 = vadd.f32 %v2897_v26, %v2845_v22  ;;  %v3569_v63 = vld [vmem:[%s9305_s7] sm:$0xff] }
 0x471   : > { %v2953_v37 = vmul.f32 %v2952_v45, %v9307_v25  ;;  %v2964_v7 = vmul.f32 %v2963_v36, %v9307_v25  ;;  %v2977_v28 = vmul.f32 %v2976_v55, %v9307_v25  ;;  %v2905_v39 = vadd.f32 %v2903_v35, %v2881_v3 }
 0x472   : > { %v2990_v52 = vmul.f32 %v2989_v57, %v9307_v25  ;;  %v2911_v4 = vadd.f32 %v2909_v44, %v2887_v48  ;;  %v2915_v34 = vmul.f32 %v2914_v2, %v9306_v14  ;;  %v2921_v21 = vmul.f32 %v2920_v30, %v9306_v14 }
 0x473   : > { %v2955_v50 = vadd.f32 %v3569_v63, %v2953_v37  ;;  %v2968_v22 = vadd.f32 %v3448_v43, %v2964_v7  ;;  %v2981_v38 = vadd.f32 %v3453_v12, %v2977_v28  ;;  %v2875_v0 = vsel %vm347_vm6, %v2870_v10, 0.0 }
 0x474   : > { %v2994_v42 = vadd.f32 %v3458_v32, %v2990_v52  ;;  %v2917_v31 = vadd.f32 %v2915_v34, %v2893_v20  ;;  %v2923_v56 = vadd.f32 %v2921_v21, %v2899_v61  ;;  %v2927_v62 = vmul.f32 %v2926_v58, %v2875_v0 }
 0x475   : > { %2958 = vst.msk [vmem:[%s7679_s15] sm:$0xff] %vm2957_vm7, %v2955_v50  ;;  %3450 = vst.msk [vmem:[%s7679_s15 + $0x10] sm:$0xff] %vm2957_vm7, %v2968_v22  ;;  %v2933_v1 = vmul.f32 %v2932_v33, %v2875_v0  ;;  %v2939_v2 = vmul.f32 %v2938_v23, %v2875_v0  ;;  %v2945_v30 = vmul.f32 %v2944_v19, %v2875_v0  ;;  %v3449_v33 = vld [vmem:[%s9305_s7 + $0x18] sm:$0xff]  ;;  %v3454_v23 = vld [vmem:[%s9305_s7 + $0x28] sm:$0xff] }
 0x476   : > { %3455 = vst.msk [vmem:[%s7679_s15 + $0x20] sm:$0xff] %vm2957_vm7, %v2981_v38  ;;  %3460 = vst.msk [vmem:[%s7679_s15 + $0x30] sm:$0xff] %vm2957_vm7, %v2994_v42  ;;  %v2929_v9 = vadd.f32 %v2927_v62, %v2905_v39  ;;  %v3459_v19 = vld [vmem:[%s9305_s7 + $0x38] sm:$0xff] }
 0x477   : > { %v2935_v58 = vadd.f32 %v2933_v1, %v2911_v4  ;;  %v2941_v41 = vadd.f32 %v2939_v2, %v2917_v31  ;;  %v2947_v54 = vadd.f32 %v2945_v30, %v2923_v56 }
 0x478   : > { %v2951_v59 = vadd.f32 %v2950_v24, %v2929_v9 }
 0x479   : > { %v2962_v40 = vadd.f32 %v2961_v47, %v2935_v58  ;;  %v2975_v5 = vadd.f32 %v2974_v17, %v2941_v41  ;;  %v2988_v13 = vadd.f32 %v2987_v16, %v2947_v54  ;;  %v3570_v16 = vld [vmem:[%s9305_s7 + $0x8] sm:$0xff] }
 0x47a   : > { %v2954_v11 = vmul.f32 %v2951_v59, %v9310_v6 }
 0x47b   : > { %v2965_v24 = vmul.f32 %v2962_v40, %v9310_v6  ;;  %v2978_v47 = vmul.f32 %v2975_v5, %v9310_v6  ;;  %v2991_v17 = vmul.f32 %v2988_v13, %v9310_v6 }
 0x47c   : > { %v2956_v8 = vadd.f32 %v3570_v16, %v2954_v11 }
 0x47d   : > { %v2969_v15 = vadd.f32 %v3449_v33, %v2965_v24  ;;  %v2982_v46 = vadd.f32 %v3454_v23, %v2978_v47  ;;  %v2995_v14 = vadd.f32 %v3459_v19, %v2991_v17 }
 0x47e   : > { %2959 = vst.msk [vmem:[%s7679_s15 + $0x8] sm:$0xff] %vm2957_vm7, %v2956_v8 }
 0x47f   : > { %3451 = vst.msk [vmem:[%s7679_s15 + $0x18] sm:$0xff] %vm2957_vm7, %v2969_v15  ;;  %3456 = vst.msk [vmem:[%s7679_s15 + $0x28] sm:$0xff] %vm2957_vm7, %v2982_v46 }
 0x480   : > { %3461 = vst.msk [vmem:[%s7679_s15 + $0x38] sm:$0xff] %vm2957_vm7, %v2995_v14 }
 0x481   : > { %3674 = shalt.err (!%p3671_p0)
}
 0x482   : > { %s3675_s9 = scalar_lea.hbm %s7710_s19, 1024  ;;  %s3679_s21 = scalar_lea.hbm %s9314_s6, 4096 }
 0x483   : > { %p3676_p11 = scmp.ne.s32.totalorder %s7710_s19, %s3675_s9  ;;  %p3680_p7 = scmp.lt.u32.totalorder %s7710_s19, %s9314_s6 }
 0x484   : > { %p3681_p9 = scmp.lt.u32.totalorder %s3679_s21, %s3675_s9  ;;  %p3683_p6 = scmp.lt.u32.totalorder %s3675_s9, %s7710_s19 }
 0x485   : > { %p3677_p1 = pnand %p3676_p11, %p9315_p12 }
 0x486   : > { %p3682_p4 = por %p3681_p9, %p3680_p7 }
 0x487   : > { %p3678_p3 = pneg %p3677_p1 }
 0x488   : > { %p3684_p2 = por %p3683_p6, %p3682_p4 }
 0x48a   : > { %p3685_p8 = pnand %p3684_p2, %p3678_p3 }
 0x48c   : > { %3688 = shalt.err (!%p3685_p8)
}
 0x48d   : > { %s3752_s5 = smov 128   ;;  %s3753_s23 = smov 8  }
 0x48e   : > { %3482 = dma.vmem_to_hbm [thread:$0]  (%p9315_p12), %s7712_s14, 1024, %s7710_s19, %s3000_s30, %s3752_s5, %s3752_s5, %s3753_s23  }
 0x48f PF: > { %s9316_s17 = sld [smem:[#allocation20_spill]]  ;;  %s9317_s12 = sld [smem:[#allocation17_spill]] }
 0x490   : > { %s9318_s2 = sld [smem:[#allocation25_spill]] }
 0x495   : > { %p3507_p13 = scmp.ge.s32.totalorder %s9316_s17, 2  ;;  %s3028_s11 = sand.u32 1, %s9317_s12  }
 0x496   : > { %p9319_p10 = scmp.ne.s32.totalorder %s9318_s2, 0  ;;  %s3029_s20 = scalar_lea.sflag [#allocation4], %s3028_s11 }
 0x498   : > { %p3499_p5 = pnand %p3507_p13, %p9319_p10 }
 0x49a   : > { %3722 = dma.done.wait (!%p3499_p5), %s3029_s20, 1024  }
 0x49b   : > { %3724 = vsyncadd (!%p3499_p5), %s3029_s20, 4294966272  ;;  %s9320_s24 = sld [smem:[#allocation22_spill]]  ;;  %s9321_s21 = sld [smem:[#allocation18_spill]] }
 0x49c   : > { %s9322_s22 = sld [smem:[#allocation19_spill]]  ;;  %s9323_s23 = sld [smem:[#allocation23_spill]] }
 0x4a1   : > { %p24_p0 = scmp.ge.s32.totalorder %s9320_s24, 6  }
 0x4a3   :  { %26 = sbr.rel (!%p24_p0) target bundleno = 17 (0x11), region = 120 }
 0x4aa   :  { %3034 = vsyncpa [#allocation3], 1 }
 0x4ab   :  { %3036 = vsyncpa [#allocation3 + $0x1], 1 }
 0x4ac   :  { %3037 = vsyncpa [#allocation7], 1 }
 0x4ad   :  { %3039 = vsyncpa [#allocation7 + $0x1], 1 }
 0x4ae   :  { %3040 = vsyncpa [#allocation4], 1 }
 0x4af   :  { %3042 = vsyncpa [#allocation4 + $0x1], 1 }
 0x4b0   :  { %3043 = vsyncpa [#allocation5], 1 }
 0x4b1   :  { %3045 = vsyncpa [#allocation5 + $0x1], 1 }
 0x4b2   :  { %3046 = vsyncpa [#allocation10], 1 }

</bundles_post_ra>
